<compile_context>
chip_gen: v6e
topology: v6e:2x2x1
jax: 0.10.0
libtpu: 0.0.40
codegen_flags: <defaults>
</compile_context>

<pallas_src>
import functools

import jax
import jax.numpy as jnp
from jax import lax
from jax.experimental import pallas as pl
from jax.experimental.pallas import tpu as pltpu


PT = 3   # top/bottom pad rows in the canvas (>= max conv pad + 1 so every tap
         # slice stays in bounds)
PW = 2   # left pad columns (== max conv pad); canvas width WT >= W + 2*PW


# ------------------------------------------------------------------ kernel

def _amp_wp_kernel(xp_ref, w1_ref, b1_ref, g1_ref, be1_ref,
                   w2_ref, b2_ref, g2_ref, be2_ref,
                   w3_ref, b3_ref, m_ref, mt_ref,
                   o_ref,
                   canv_ref, acc_ref, acc3_ref,
                   *, H, W, WT, C, G, q, eps):
    N = H * WT                      # rows of the "wide" activation layout
    CH = H + 2 * PT                 # canvas rows
    Cg = C // G
    inv_n = 1.0 / float(H * W * Cg)

    # 0/1 masks selecting the W valid columns of every WT-wide canvas row
    # (WT is a multiple of 8; at the test sizes also a power of two).
    col_s = lax.broadcasted_iota(jnp.int32, (N, 1), 0) % WT
    valid_s = (col_s >= PW) & (col_s < PW + W)                 # (N,1) bool
    col_l = lax.broadcasted_iota(jnp.int32, (1, N), 1) % WT
    valid_l = (col_l >= PW) & (col_l < PW + W)                 # (1,N) bool
    vrow = valid_l.astype(jnp.float32)                         # (1,N) 0/1

    # Canvas init: zero ONLY the border rows every step (cheap; safe even if
    # the "parallel" batch grid is split across TensorCores).  The interior
    # row range, pad columns included, comes from the pre-padded input block.
    zrow = jnp.zeros((PT * WT, C), canv_ref.dtype)
    canv_ref[0:PT * WT, :] = zrow
    canv_ref[(PT + H) * WT:CH * WT, :] = zrow
    canv_ref[PT * WT:(PT + H) * WT, :] = xp_ref[0].reshape(N, C)

    def conv(acc, w_ref, K):
        # "Same" conv = K*K shifted bf16 matmuls accumulated into an f32 VMEM
        # accumulator -- no materialised im2col.
        k = (K - 1) // 2
        for j in range(K * K):
            dy, dx = j // K, j % K
            off = (PT - k + dy) * WT + (dx - k)                # static, >= 0
            lhs = canv_ref[off:off + N, :].astype(jnp.bfloat16)
            t = jnp.dot(lhs, w_ref[j], preferred_element_type=jnp.float32)
            if j == 0:
                acc[...] = t
            else:
                acc[...] += t

    def gn_relu_store(b, gamma, beta):
        # GroupNorm over valid pixels only (mask folded into the MXU row sum),
        # affine folded to one FMA, ReLU, masked write-back into the canvas
        # (which re-zeroes the pad columns for the next conv).
        y = acc_ref[...] + b                                               # (N,C)
        s = jnp.dot(vrow, y, preferred_element_type=jnp.float32)          # (1,C)
        ss = jnp.dot(vrow, y * y, preferred_element_type=jnp.float32)     # (1,C)
        gmean = jnp.dot(s, m_ref[...], preferred_element_type=jnp.float32) * inv_n
        gmsq = jnp.dot(ss, m_ref[...], preferred_element_type=jnp.float32) * inv_n
        gvar = jnp.maximum(gmsq - gmean * gmean, 0.0)          # clamp: no NaN
        mean_c = jnp.dot(gmean, mt_ref[...], preferred_element_type=jnp.float32)
        var_c = jnp.dot(gvar, mt_ref[...], preferred_element_type=jnp.float32)
        scale = lax.rsqrt(var_c + eps) * gamma
        shift = beta - mean_c * scale
        h = jnp.maximum(y * scale + shift, 0.0)
        h = jnp.where(valid_s, h, 0.0)
        canv_ref[PT * WT:(PT + H) * WT, :] = h

    # AMP: conv5x5 -> GN+ReLU -> conv3x3 -> GN+ReLU -> conv3x3 (tau pre-folded)
    conv(acc_ref, w1_ref, 5)
    gn_relu_store(b1_ref[...], g1_ref[...], be1_ref[...])
    conv(acc_ref, w2_ref, 3)
    gn_relu_store(b2_ref[...], g2_ref[...], be2_ref[...])
    conv(acc3_ref, w3_ref, 3)

    # Softmax over the spatial axis on (q, N): reductions run along lanes;
    # pad columns are masked to -1e30 -> probability exactly 0.
    lt = (acc3_ref[...] + b3_ref[...]).T                                   # (q,N)
    lt = jnp.where(valid_l, lt, -1e30)
    p = jnp.exp(lt - jnp.max(lt, axis=-1, keepdims=True))
    a = p * pl.reciprocal(jnp.sum(p, axis=-1, keepdims=True), approx=True)

    # WP: F_P = A @ F in f32 (F = original features; pad columns are zero and
    # get zero attention, so the wide layout pools exactly over the H*W pixels).
    o_ref[...] = jnp.dot(a, xp_ref[0].reshape(N, C),
                         preferred_element_type=jnp.float32)               # (q,C)


# --------------------------------------------------------------- pallas glue

def fused_amp_wp(x_nhwc, p, m, mt, *, groups, tau):
    """Fused AMP + WP for one scale.  Returns pooled features (B*q, C)."""
    B, H, W, C = x_nhwc.shape
    q = p["w3"].shape[-1]
    WT = max(8, ((W + 2 * PW + 7) // 8) * 8)    # padded row width, lane/sublane friendly
    CH = H + 2 * PT
    N = H * WT

    # Pre-pad the width once in XLA: the padded block both fills the canvas
    # interior in one aligned store and serves as F (pad columns exactly 0).
    xp = jnp.pad(x_nhwc, ((0, 0), (0, 0), (PW, WT - W - PW), (0, 0)))

    pk = lambda w: w.reshape(w.shape[0] * w.shape[1],
                             w.shape[2], w.shape[3]).astype(jnp.bfloat16)
    w1p, w2p = pk(p["w1"]), pk(p["w2"])
    w3p = pk(p["w3"] * tau)                     # fold tau into the logit conv
    b3 = (p["b3"] * tau).reshape(1, -1).astype(jnp.float32)
    vec = lambda v: v.reshape(1, -1).astype(jnp.float32)

    # Explicit scoped-VMEM budget with headroom (scratches + pipelined blocks).
    est = 4 * (CH * WT * C + N * C + N * q)                     # f32 scratches
    est += 2 * 4 * (H * WT * C + q * C)                         # dbl-buffered act blocks
    est += 2 * 2 * ((25 + 9) * C * C + 9 * C * q)               # dbl-buffered bf16 weights
    vmem_limit = int(min(max(32 * 2**20, 1.5 * est), 128 * 2**20))

    kern = functools.partial(_amp_wp_kernel, H=H, W=W, WT=WT, C=C,
                             G=groups, q=q, eps=1e-5)
    # NOTE: weight / affine / group-matrix operands have constant index maps,
    # so they are DMA'd only once across the batch grid.
    return pl.pallas_call(
        kern,
        out_shape=jax.ShapeDtypeStruct((B * q, C), jnp.float32),
        grid=(B,),
        in_specs=[
            pl.BlockSpec((1, H, WT, C), lambda b: (b, 0, 0, 0)),
            pl.BlockSpec((25, C, C), lambda b: (0, 0, 0)),
            pl.BlockSpec((1, C), lambda b: (0, 0)),
            pl.BlockSpec((1, C), lambda b: (0, 0)),
            pl.BlockSpec((1, C), lambda b: (0, 0)),
            pl.BlockSpec((9, C, C), lambda b: (0, 0, 0)),
            pl.BlockSpec((1, C), lambda b: (0, 0)),
            pl.BlockSpec((1, C), lambda b: (0, 0)),
            pl.BlockSpec((1, C), lambda b: (0, 0)),
            pl.BlockSpec((9, C, q), lambda b: (0, 0, 0)),
            pl.BlockSpec((1, q), lambda b: (0, 0)),
            pl.BlockSpec((C, groups), lambda b: (0, 0)),
            pl.BlockSpec((groups, C), lambda b: (0, 0)),
        ],
        out_specs=pl.BlockSpec((q, C), lambda b: (b, 0)),
        scratch_shapes=[
            pltpu.VMEM((CH * WT, C), jnp.float32),   # activation canvas (shared by all convs)
            pltpu.VMEM((N, C), jnp.float32),         # conv1 / conv2 accumulator
            pltpu.VMEM((N, q), jnp.float32),         # conv3 (logit) accumulator
        ],
        compiler_params=pltpu.CompilerParams(
            dimension_semantics=("parallel",),
            vmem_limit_bytes=vmem_limit),
    )(xp, w1p, vec(p["b1"]), vec(p["g1"]), vec(p["be1"]),
      w2p, vec(p["b2"]), vec(p["g2"]), vec(p["be2"]),
      w3p, b3, m, mt)


def sapm_forward(features_nchw, params, *, groups, tau):
    """Pallas implementation of SAPM_Deformable.forward.

    features_nchw: list of [B, C, H_i, W_i] arrays (PyTorch layout)."""
    B, C = features_nchw[0].shape[0], features_nchw[0].shape[1]
    q = params["amps"][0]["w3"].shape[-1]
    Cg = C // groups
    # channel -> group one-hot matrices for the GroupNorm reductions
    m = (jnp.arange(C)[:, None] // Cg == jnp.arange(groups)[None, :]
         ).astype(jnp.float32)
    mt = m.T

    pooled = []
    for i, x_nchw in enumerate(features_nchw):
        x = jnp.transpose(x_nchw, (0, 2, 3, 1))                  # NCHW -> NHWC
        pooled.append(fused_amp_wp(x, params["amps"][i], m, mt,
                                   groups=groups, tau=tau))      # (B*q, C)

    # Cross-scale mean + CR MLP + gating: a handful of tiny matmuls -> plain
    # XLA (a dedicated pallas_call here is pure launch/DMA overhead).
    fp_avg = sum(pooled) * (1.0 / len(pooled))                   # (B*q, C)
    cr = params["cr"]
    y = jax.nn.relu(fp_avg @ cr["w1"] + cr["b1"])
    z = jax.nn.sigmoid(y @ cr["w2"] + cr["b2"])
    return (z * fp_avg).reshape(B, q, C)                         # F_O


# ---------------------------------------------------------- reference / init

def ref_forward(features_nhwc, params, *, groups, tau):
    def conv(x, w, b):
        return lax.conv_general_dilated(
            x, w, (1, 1), "SAME",
            dimension_numbers=("NHWC", "HWIO", "NHWC")) + b

    def gn(x, gamma, beta):
        B, H, W, C = x.shape
        Cg = C // groups
        xr = x.reshape(B, H * W, groups, Cg)
        mean = xr.mean(axis=(1, 3), keepdims=True)
        var = xr.var(axis=(1, 3), keepdims=True)
        xn = ((xr - mean) / jnp.sqrt(var + 1e-5)).reshape(B, H, W, C)
        return xn * gamma + beta

    pooled = []
    for i, x in enumerate(features_nhwc):
        p = params["amps"][i]
        h = jax.nn.relu(gn(conv(x, p["w1"], p["b1"]), p["g1"], p["be1"]))
        h = jax.nn.relu(gn(conv(h, p["w2"], p["b2"]), p["g2"], p["be2"]))
        h = conv(h, p["w3"], p["b3"]) * tau
        B, H, W, q = h.shape
        A = jax.nn.softmax(h.reshape(B, H * W, q), axis=1)
        F = x.reshape(B, H * W, -1)
        pooled.append(jnp.einsum("bnq,bnc->bqc", A, F))
    fp_avg = jnp.mean(jnp.stack(pooled), axis=0)
    cr = params["cr"]
    y = jax.nn.relu(fp_avg @ cr["w1"] + cr["b1"])
    z = jax.nn.sigmoid(y @ cr["w2"] + cr["b2"])
    return z * fp_avg


def init_params(key, C, q, num_scales):
    keys = iter(jax.random.split(key, num_scales * 10 + 4))
    nrm = lambda shape, s: s * jax.random.normal(next(keys), shape, jnp.float32)
    amps = []
    for _ in range(num_scales):
        amps.append({
            "w1": nrm((5, 5, C, C), 0.05), "b1": nrm((C,), 0.05),
            "g1": 1.0 + nrm((C,), 0.1),    "be1": nrm((C,), 0.1),
            "w2": nrm((3, 3, C, C), 0.05), "b2": nrm((C,), 0.05),
            "g2": 1.0 + nrm((C,), 0.1),    "be2": nrm((C,), 0.1),
            "w3": nrm((3, 3, C, q), 0.05), "b3": nrm((q,), 0.05),
        })
    cr = {
        "w1": nrm((C, C), 0.1), "b1": nrm((C,), 0.05),
        "w2": nrm((C, C), 0.1), "b2": nrm((C,), 0.05),
    }
    return {"amps": amps, "cr": cr}


# ----------------------------------------------------------------------- run

if __name__ == "__main__":
    B, C, q, groups, tau = 2, 32, 16, 8, 1.2
    num_scales = 2
    spatial = [8, 4]                                   # per-scale H = W

    key = jax.random.PRNGKey(0)
    k_feat, k_par = jax.random.split(key)
    fkeys = jax.random.split(k_feat, num_scales)
    feats_nchw = [jax.random.normal(fkeys[i], (B, C, s, s), jnp.float32)
                  for i, s in enumerate(spatial)]
    params = init_params(k_par, C, q, num_scales)

    out = sapm_forward(feats_nchw, params, groups=groups, tau=tau)
    out = jax.block_until_ready(out)

    feats_nhwc = [jnp.transpose(f, (0, 2, 3, 1)) for f in feats_nchw]
    ref = ref_forward(feats_nhwc, params, groups=groups, tau=tau)

    assert out.shape == (B, q, C), out.shape
    # Conv matmuls use bf16 MXU operands -> compare with a bf16-level tolerance.
    err = jnp.max(jnp.abs(out - ref))
    assert jnp.allclose(out, ref, atol=3e-2, rtol=3e-2), f"max abs err {err}"
    print("KERNEL_OK")
</pallas_src>

<mosaic_0001>
module attributes {stable_mosaic.version = 11 : i64} {
  func.func @_amp_wp_kernel(%arg0: i32, %arg1: memref<1x8x16x32xf32, #tpu.memory_space<vmem>>, %arg2: memref<25x32x32xbf16, #tpu.memory_space<vmem>>, %arg3: memref<1x32xf32, #tpu.memory_space<vmem>>, %arg4: memref<1x32xf32, #tpu.memory_space<vmem>>, %arg5: memref<1x32xf32, #tpu.memory_space<vmem>>, %arg6: memref<9x32x32xbf16, #tpu.memory_space<vmem>>, %arg7: memref<1x32xf32, #tpu.memory_space<vmem>>, %arg8: memref<1x32xf32, #tpu.memory_space<vmem>>, %arg9: memref<1x32xf32, #tpu.memory_space<vmem>>, %arg10: memref<9x32x16xbf16, #tpu.memory_space<vmem>>, %arg11: memref<1x16xf32, #tpu.memory_space<vmem>>, %arg12: memref<32x8xf32, #tpu.memory_space<vmem>>, %arg13: memref<8x32xf32, #tpu.memory_space<vmem>>, %arg14: memref<16x32xf32, #tpu.memory_space<vmem>>, %arg15: memref<224x32xf32, #tpu.memory_space<vmem>>, %arg16: memref<128x32xf32, #tpu.memory_space<vmem>>, %arg17: memref<128x16xf32, #tpu.memory_space<vmem>>) attributes {dimension_semantics = [#tpu.dimension_semantics<parallel>], iteration_bounds = array<i64: 2>, scalar_prefetch = 0 : i64, scratch_operands = 3 : i64, tpu.core_type = #tpu.core_type<tc>, window_params = [{transform_indices = @transform_0, window_bounds = array<i64: 1, 8, 16, 32>}, {pipeline_mode = #tpu.pipeline_mode<synchronous>, transform_indices = @transform_1, window_bounds = array<i64: 25, 32, 32>}, {pipeline_mode = #tpu.pipeline_mode<synchronous>, transform_indices = @transform_2, window_bounds = array<i64: 1, 32>}, {pipeline_mode = #tpu.pipeline_mode<synchronous>, transform_indices = @transform_3, window_bounds = array<i64: 1, 32>}, {pipeline_mode = #tpu.pipeline_mode<synchronous>, transform_indices = @transform_4, window_bounds = array<i64: 1, 32>}, {pipeline_mode = #tpu.pipeline_mode<synchronous>, transform_indices = @transform_5, window_bounds = array<i64: 9, 32, 32>}, {pipeline_mode = #tpu.pipeline_mode<synchronous>, transform_indices = @transform_6, window_bounds = array<i64: 1, 32>}, {pipeline_mode = #tpu.pipeline_mode<synchronous>, transform_indices = @transform_7, window_bounds = array<i64: 1, 32>}, {pipeline_mode = #tpu.pipeline_mode<synchronous>, transform_indices = @transform_8, window_bounds = array<i64: 1, 32>}, {pipeline_mode = #tpu.pipeline_mode<synchronous>, transform_indices = @transform_9, window_bounds = array<i64: 9, 32, 16>}, {pipeline_mode = #tpu.pipeline_mode<synchronous>, transform_indices = @transform_10, window_bounds = array<i64: 1, 16>}, {pipeline_mode = #tpu.pipeline_mode<synchronous>, transform_indices = @transform_11, window_bounds = array<i64: 32, 8>}, {pipeline_mode = #tpu.pipeline_mode<synchronous>, transform_indices = @transform_12, window_bounds = array<i64: 8, 32>}, {transform_indices = @transform_13, window_bounds = array<i64: 16, 32>}]} {
    %0 = tpu.iota {dimensions = array<i32: 0>} : vector<128x1xi32>
    %c16_i32 = arith.constant 16 : i32
    %c0_i32 = arith.constant 0 : i32
    %1 = arith.cmpi eq, %c16_i32, %c0_i32 : i32
    %c1_i32 = arith.constant 1 : i32
    %2 = arith.select %1, %c1_i32, %c16_i32 : i32
    %3 = vector.broadcast %2 : i32 to vector<128x1xi32>
    %4 = arith.remsi %0, %3 : vector<128x1xi32>
    %c0_i32_0 = arith.constant 0 : i32
    %5 = vector.broadcast %c0_i32_0 : i32 to vector<128x1xi32>
    %6 = arith.cmpi ne, %4, %5 : vector<128x1xi32>
    %c0_i32_1 = arith.constant 0 : i32
    %7 = vector.broadcast %c0_i32_1 : i32 to vector<128x1xi32>
    %8 = arith.cmpi slt, %4, %7 : vector<128x1xi32>
    %c0_i32_2 = arith.constant 0 : i32
    %9 = arith.cmpi slt, %2, %c0_i32_2 : i32
    %10 = vector.broadcast %9 : i1 to vector<128x1xi1>
    %11 = vector.broadcast %10 : vector<128x1xi1> to vector<128x1xi1>
    %12 = arith.xori %8, %11 : vector<128x1xi1>
    %13 = arith.andi %12, %6 : vector<128x1xi1>
    %14 = vector.broadcast %2 : i32 to vector<128x1xi32>
    %15 = arith.addi %4, %14 : vector<128x1xi32>
    %16 = arith.select %13, %15, %4 : vector<128x1xi1>, vector<128x1xi32>
    %c2_i32 = arith.constant 2 : i32
    %17 = vector.broadcast %c2_i32 : i32 to vector<128x1xi32>
    %18 = arith.cmpi sge, %16, %17 : vector<128x1xi32>
    %c10_i32 = arith.constant 10 : i32
    %19 = vector.broadcast %c10_i32 : i32 to vector<128x1xi32>
    %20 = arith.cmpi slt, %16, %19 : vector<128x1xi32>
    %21 = arith.andi %18, %20 : vector<128x1xi1>
    %22 = tpu.iota {dimensions = array<i32: 1>} : vector<1x128xi32>
    %c16_i32_3 = arith.constant 16 : i32
    %c0_i32_4 = arith.constant 0 : i32
    %23 = arith.cmpi eq, %c16_i32_3, %c0_i32_4 : i32
    %c1_i32_5 = arith.constant 1 : i32
    %24 = arith.select %23, %c1_i32_5, %c16_i32_3 : i32
    %25 = vector.broadcast %24 : i32 to vector<1x128xi32>
    %26 = arith.remsi %22, %25 : vector<1x128xi32>
    %c0_i32_6 = arith.constant 0 : i32
    %27 = vector.broadcast %c0_i32_6 : i32 to vector<1x128xi32>
    %28 = arith.cmpi ne, %26, %27 : vector<1x128xi32>
    %c0_i32_7 = arith.constant 0 : i32
    %29 = vector.broadcast %c0_i32_7 : i32 to vector<1x128xi32>
    %30 = arith.cmpi slt, %26, %29 : vector<1x128xi32>
    %c0_i32_8 = arith.constant 0 : i32
    %31 = arith.cmpi slt, %24, %c0_i32_8 : i32
    %32 = vector.broadcast %31 : i1 to vector<1x128xi1>
    %33 = vector.broadcast %32 : vector<1x128xi1> to vector<1x128xi1>
    %34 = arith.xori %30, %33 : vector<1x128xi1>
    %35 = arith.andi %34, %28 : vector<1x128xi1>
    %36 = vector.broadcast %24 : i32 to vector<1x128xi32>
    %37 = arith.addi %26, %36 : vector<1x128xi32>
    %38 = arith.select %35, %37, %26 : vector<1x128xi1>, vector<1x128xi32>
    %c2_i32_9 = arith.constant 2 : i32
    %39 = vector.broadcast %c2_i32_9 : i32 to vector<1x128xi32>
    %40 = arith.cmpi sge, %38, %39 : vector<1x128xi32>
    %c10_i32_10 = arith.constant 10 : i32
    %41 = vector.broadcast %c10_i32_10 : i32 to vector<1x128xi32>
    %42 = arith.cmpi slt, %38, %41 : vector<1x128xi32>
    %43 = arith.andi %40, %42 : vector<1x128xi1>
    %44 = arith.extui %43 : vector<1x128xi1> to vector<1x128xi32>
    %45 = arith.sitofp %44 : vector<1x128xi32> to vector<1x128xf32>
    %cst = arith.constant 0.000000e+00 : f32
    %46 = vector.broadcast %cst : f32 to vector<48x32xf32>
    %c0 = arith.constant 0 : index
    %c0_11 = arith.constant 0 : index
    %47 = vector.load %arg15[%c0, %c0_11] : memref<224x32xf32, #tpu.memory_space<vmem>>, vector<48x32xf32>
    tpu.vector_store %arg15[%c0, %c0_11], %46 {strides = array<i32>} : memref<224x32xf32, #tpu.memory_space<vmem>>, vector<48x32xf32>,
    %c176 = arith.constant 176 : index
    %c0_12 = arith.constant 0 : index
    %48 = vector.load %arg15[%c176, %c0_12] : memref<224x32xf32, #tpu.memory_space<vmem>>, vector<48x32xf32>
    tpu.vector_store %arg15[%c176, %c0_12], %46 {strides = array<i32>} : memref<224x32xf32, #tpu.memory_space<vmem>>, vector<48x32xf32>,
    %c0_13 = arith.constant 0 : index
    %c0_14 = arith.constant 0 : index
    %c0_15 = arith.constant 0 : index
    %c0_16 = arith.constant 0 : index
    %49 = vector.load %arg1[%c0_13, %c0_14, %c0_15, %c0_16] : memref<1x8x16x32xf32, #tpu.memory_space<vmem>>, vector<1x8x16x32xf32>
    %50 = vector.shape_cast %49 : vector<1x8x16x32xf32> to vector<8x16x32xf32>
    %51 = vector.shape_cast %50 : vector<8x16x32xf32> to vector<128x32xf32>
    %c48 = arith.constant 48 : index
    %c0_17 = arith.constant 0 : index
    %52 = vector.load %arg15[%c48, %c0_17] : memref<224x32xf32, #tpu.memory_space<vmem>>, vector<128x32xf32>
    tpu.vector_store %arg15[%c48, %c0_17], %51 {strides = array<i32>} : memref<224x32xf32, #tpu.memory_space<vmem>>, vector<128x32xf32>,
    %c14 = arith.constant 14 : index
    %c0_18 = arith.constant 0 : index
    %53 = vector.load %arg15[%c14, %c0_18] : memref<224x32xf32, #tpu.memory_space<vmem>>, vector<128x32xf32>
    %54 = arith.truncf %53 : vector<128x32xf32> to vector<128x32xbf16>
    %c0_19 = arith.constant 0 : index
    %c0_20 = arith.constant 0 : index
    %c0_21 = arith.constant 0 : index
    %55 = vector.load %arg2[%c0_19, %c0_20, %c0_21] : memref<25x32x32xbf16, #tpu.memory_space<vmem>>, vector<1x32x32xbf16>
    %56 = vector.shape_cast %55 : vector<1x32x32xbf16> to vector<32x32xbf16>
    %cst_22 = arith.constant dense<0.000000e+00> : vector<128x32xf32>
    %57 = tpu.matmul %54, %56, %cst_22 {dimension_numbers = #tpu.dot_dimension_numbers<[1], [0], [0], [1], [0, 0, 1, 1], [], []>} : vector<128x32xbf16>, vector<32x32xbf16>, vector<128x32xf32> -> vector<128x32xf32>
    %c0_23 = arith.constant 0 : index
    %c0_24 = arith.constant 0 : index
    %58 = vector.load %arg16[%c0_23, %c0_24] : memref<128x32xf32, #tpu.memory_space<vmem>>, vector<128x32xf32>
    tpu.vector_store %arg16[%c0_23, %c0_24], %57 {strides = array<i32>} : memref<128x32xf32, #tpu.memory_space<vmem>>, vector<128x32xf32>,
    %c15 = arith.constant 15 : index
    %c0_25 = arith.constant 0 : index
    %59 = vector.load %arg15[%c15, %c0_25] : memref<224x32xf32, #tpu.memory_space<vmem>>, vector<128x32xf32>
    %60 = arith.truncf %59 : vector<128x32xf32> to vector<128x32xbf16>
    %c1 = arith.constant 1 : index
    %c0_26 = arith.constant 0 : index
    %c0_27 = arith.constant 0 : index
    %61 = vector.load %arg2[%c1, %c0_26, %c0_27] : memref<25x32x32xbf16, #tpu.memory_space<vmem>>, vector<1x32x32xbf16>
    %62 = vector.shape_cast %61 : vector<1x32x32xbf16> to vector<32x32xbf16>
    %cst_28 = arith.constant dense<0.000000e+00> : vector<128x32xf32>
    %63 = tpu.matmul %60, %62, %cst_28 {dimension_numbers = #tpu.dot_dimension_numbers<[1], [0], [0], [1], [0, 0, 1, 1], [], []>} : vector<128x32xbf16>, vector<32x32xbf16>, vector<128x32xf32> -> vector<128x32xf32>
    %c0_29 = arith.constant 0 : index
    %c0_30 = arith.constant 0 : index
    %64 = vector.load %arg16[%c0_29, %c0_30] : memref<128x32xf32, #tpu.memory_space<vmem>>, vector<128x32xf32>
    %65 = arith.addf %64, %63 : vector<128x32xf32>
    %c0_31 = arith.constant 0 : index
    %c0_32 = arith.constant 0 : index
    %66 = vector.load %arg16[%c0_31, %c0_32] : memref<128x32xf32, #tpu.memory_space<vmem>>, vector<128x32xf32>
    tpu.vector_store %arg16[%c0_31, %c0_32], %65 {strides = array<i32>} : memref<128x32xf32, #tpu.memory_space<vmem>>, vector<128x32xf32>,
    %c16 = arith.constant 16 : index
    %c0_33 = arith.constant 0 : index
    %67 = vector.load %arg15[%c16, %c0_33] : memref<224x32xf32, #tpu.memory_space<vmem>>, vector<128x32xf32>
    %68 = arith.truncf %67 : vector<128x32xf32> to vector<128x32xbf16>
    %c2 = arith.constant 2 : index
    %c0_34 = arith.constant 0 : index
    %c0_35 = arith.constant 0 : index
    %69 = vector.load %arg2[%c2, %c0_34, %c0_35] : memref<25x32x32xbf16, #tpu.memory_space<vmem>>, vector<1x32x32xbf16>
    %70 = vector.shape_cast %69 : vector<1x32x32xbf16> to vector<32x32xbf16>
    %cst_36 = arith.constant dense<0.000000e+00> : vector<128x32xf32>
    %71 = tpu.matmul %68, %70, %cst_36 {dimension_numbers = #tpu.dot_dimension_numbers<[1], [0], [0], [1], [0, 0, 1, 1], [], []>} : vector<128x32xbf16>, vector<32x32xbf16>, vector<128x32xf32> -> vector<128x32xf32>
    %c0_37 = arith.constant 0 : index
    %c0_38 = arith.constant 0 : index
    %72 = vector.load %arg16[%c0_37, %c0_38] : memref<128x32xf32, #tpu.memory_space<vmem>>, vector<128x32xf32>
    %73 = arith.addf %72, %71 : vector<128x32xf32>
    %c0_39 = arith.constant 0 : index
    %c0_40 = arith.constant 0 : index
    %74 = vector.load %arg16[%c0_39, %c0_40] : memref<128x32xf32, #tpu.memory_space<vmem>>, vector<128x32xf32>
    tpu.vector_store %arg16[%c0_39, %c0_40], %73 {strides = array<i32>} : memref<128x32xf32, #tpu.memory_space<vmem>>, vector<128x32xf32>,
    %c17 = arith.constant 17 : index
    %c0_41 = arith.constant 0 : index
    %75 = vector.load %arg15[%c17, %c0_41] : memref<224x32xf32, #tpu.memory_space<vmem>>, vector<128x32xf32>
    %76 = arith.truncf %75 : vector<128x32xf32> to vector<128x32xbf16>
    %c3 = arith.constant 3 : index
    %c0_42 = arith.constant 0 : index
    %c0_43 = arith.constant 0 : index
    %77 = vector.load %arg2[%c3, %c0_42, %c0_43] : memref<25x32x32xbf16, #tpu.memory_space<vmem>>, vector<1x32x32xbf16>
    %78 = vector.shape_cast %77 : vector<1x32x32xbf16> to vector<32x32xbf16>
    %cst_44 = arith.constant dense<0.000000e+00> : vector<128x32xf32>
    %79 = tpu.matmul %76, %78, %cst_44 {dimension_numbers = #tpu.dot_dimension_numbers<[1], [0], [0], [1], [0, 0, 1, 1], [], []>} : vector<128x32xbf16>, vector<32x32xbf16>, vector<128x32xf32> -> vector<128x32xf32>
    %c0_45 = arith.constant 0 : index
    %c0_46 = arith.constant 0 : index
    %80 = vector.load %arg16[%c0_45, %c0_46] : memref<128x32xf32, #tpu.memory_space<vmem>>, vector<128x32xf32>
    %81 = arith.addf %80, %79 : vector<128x32xf32>
    %c0_47 = arith.constant 0 : index
    %c0_48 = arith.constant 0 : index
    %82 = vector.load %arg16[%c0_47, %c0_48] : memref<128x32xf32, #tpu.memory_space<vmem>>, vector<128x32xf32>
    tpu.vector_store %arg16[%c0_47, %c0_48], %81 {strides = array<i32>} : memref<128x32xf32, #tpu.memory_space<vmem>>, vector<128x32xf32>,
    %c18 = arith.constant 18 : index
    %c0_49 = arith.constant 0 : index
    %83 = vector.load %arg15[%c18, %c0_49] : memref<224x32xf32, #tpu.memory_space<vmem>>, vector<128x32xf32>
    %84 = arith.truncf %83 : vector<128x32xf32> to vector<128x32xbf16>
    %c4 = arith.constant 4 : index
    %c0_50 = arith.constant 0 : index
    %c0_51 = arith.constant 0 : index
    %85 = vector.load %arg2[%c4, %c0_50, %c0_51] : memref<25x32x32xbf16, #tpu.memory_space<vmem>>, vector<1x32x32xbf16>
    %86 = vector.shape_cast %85 : vector<1x32x32xbf16> to vector<32x32xbf16>
    %cst_52 = arith.constant dense<0.000000e+00> : vector<128x32xf32>
    %87 = tpu.matmul %84, %86, %cst_52 {dimension_numbers = #tpu.dot_dimension_numbers<[1], [0], [0], [1], [0, 0, 1, 1], [], []>} : vector<128x32xbf16>, vector<32x32xbf16>, vector<128x32xf32> -> vector<128x32xf32>
    %c0_53 = arith.constant 0 : index
    %c0_54 = arith.constant 0 : index
    %88 = vector.load %arg16[%c0_53, %c0_54] : memref<128x32xf32, #tpu.memory_space<vmem>>, vector<128x32xf32>
    %89 = arith.addf %88, %87 : vector<128x32xf32>
    %c0_55 = arith.constant 0 : index
    %c0_56 = arith.constant 0 : index
    %90 = vector.load %arg16[%c0_55, %c0_56] : memref<128x32xf32, #tpu.memory_space<vmem>>, vector<128x32xf32>
    tpu.vector_store %arg16[%c0_55, %c0_56], %89 {strides = array<i32>} : memref<128x32xf32, #tpu.memory_space<vmem>>, vector<128x32xf32>,
    %c30 = arith.constant 30 : index
    %c0_57 = arith.constant 0 : index
    %91 = vector.load %arg15[%c30, %c0_57] : memref<224x32xf32, #tpu.memory_space<vmem>>, vector<128x32xf32>
    %92 = arith.truncf %91 : vector<128x32xf32> to vector<128x32xbf16>
    %c5 = arith.constant 5 : index
    %c0_58 = arith.constant 0 : index
    %c0_59 = arith.constant 0 : index
    %93 = vector.load %arg2[%c5, %c0_58, %c0_59] : memref<25x32x32xbf16, #tpu.memory_space<vmem>>, vector<1x32x32xbf16>
    %94 = vector.shape_cast %93 : vector<1x32x32xbf16> to vector<32x32xbf16>
    %cst_60 = arith.constant dense<0.000000e+00> : vector<128x32xf32>
    %95 = tpu.matmul %92, %94, %cst_60 {dimension_numbers = #tpu.dot_dimension_numbers<[1], [0], [0], [1], [0, 0, 1, 1], [], []>} : vector<128x32xbf16>, vector<32x32xbf16>, vector<128x32xf32> -> vector<128x32xf32>
    %c0_61 = arith.constant 0 : index
    %c0_62 = arith.constant 0 : index
    %96 = vector.load %arg16[%c0_61, %c0_62] : memref<128x32xf32, #tpu.memory_space<vmem>>, vector<128x32xf32>
    %97 = arith.addf %96, %95 : vector<128x32xf32>
    %c0_63 = arith.constant 0 : index
    %c0_64 = arith.constant 0 : index
    %98 = vector.load %arg16[%c0_63, %c0_64] : memref<128x32xf32, #tpu.memory_space<vmem>>, vector<128x32xf32>
    tpu.vector_store %arg16[%c0_63, %c0_64], %97 {strides = array<i32>} : memref<128x32xf32, #tpu.memory_space<vmem>>, vector<128x32xf32>,
    %c31 = arith.constant 31 : index
    %c0_65 = arith.constant 0 : index
    %99 = vector.load %arg15[%c31, %c0_65] : memref<224x32xf32, #tpu.memory_space<vmem>>, vector<128x32xf32>
    %100 = arith.truncf %99 : vector<128x32xf32> to vector<128x32xbf16>
    %c6 = arith.constant 6 : index
    %c0_66 = arith.constant 0 : index
    %c0_67 = arith.constant 0 : index
    %101 = vector.load %arg2[%c6, %c0_66, %c0_67] : memref<25x32x32xbf16, #tpu.memory_space<vmem>>, vector<1x32x32xbf16>
    %102 = vector.shape_cast %101 : vector<1x32x32xbf16> to vector<32x32xbf16>
    %cst_68 = arith.constant dense<0.000000e+00> : vector<128x32xf32>
    %103 = tpu.matmul %100, %102, %cst_68 {dimension_numbers = #tpu.dot_dimension_numbers<[1], [0], [0], [1], [0, 0, 1, 1], [], []>} : vector<128x32xbf16>, vector<32x32xbf16>, vector<128x32xf32> -> vector<128x32xf32>
    %c0_69 = arith.constant 0 : index
    %c0_70 = arith.constant 0 : index
    %104 = vector.load %arg16[%c0_69, %c0_70] : memref<128x32xf32, #tpu.memory_space<vmem>>, vector<128x32xf32>
    %105 = arith.addf %104, %103 : vector<128x32xf32>
    %c0_71 = arith.constant 0 : index
    %c0_72 = arith.constant 0 : index
    %106 = vector.load %arg16[%c0_71, %c0_72] : memref<128x32xf32, #tpu.memory_space<vmem>>, vector<128x32xf32>
    tpu.vector_store %arg16[%c0_71, %c0_72], %105 {strides = array<i32>} : memref<128x32xf32, #tpu.memory_space<vmem>>, vector<128x32xf32>,
    %c32 = arith.constant 32 : index
    %c0_73 = arith.constant 0 : index
    %107 = vector.load %arg15[%c32, %c0_73] : memref<224x32xf32, #tpu.memory_space<vmem>>, vector<128x32xf32>
    %108 = arith.truncf %107 : vector<128x32xf32> to vector<128x32xbf16>
    %c7 = arith.constant 7 : index
    %c0_74 = arith.constant 0 : index
    %c0_75 = arith.constant 0 : index
    %109 = vector.load %arg2[%c7, %c0_74, %c0_75] : memref<25x32x32xbf16, #tpu.memory_space<vmem>>, vector<1x32x32xbf16>
    %110 = vector.shape_cast %109 : vector<1x32x32xbf16> to vector<32x32xbf16>
    %cst_76 = arith.constant dense<0.000000e+00> : vector<128x32xf32>
    %111 = tpu.matmul %108, %110, %cst_76 {dimension_numbers = #tpu.dot_dimension_numbers<[1], [0], [0], [1], [0, 0, 1, 1], [], []>} : vector<128x32xbf16>, vector<32x32xbf16>, vector<128x32xf32> -> vector<128x32xf32>
    %c0_77 = arith.constant 0 : index
    %c0_78 = arith.constant 0 : index
    %112 = vector.load %arg16[%c0_77, %c0_78] : memref<128x32xf32, #tpu.memory_space<vmem>>, vector<128x32xf32>
    %113 = arith.addf %112, %111 : vector<128x32xf32>
    %c0_79 = arith.constant 0 : index
    %c0_80 = arith.constant 0 : index
    %114 = vector.load %arg16[%c0_79, %c0_80] : memref<128x32xf32, #tpu.memory_space<vmem>>, vector<128x32xf32>
    tpu.vector_store %arg16[%c0_79, %c0_80], %113 {strides = array<i32>} : memref<128x32xf32, #tpu.memory_space<vmem>>, vector<128x32xf32>,
    %c33 = arith.constant 33 : index
    %c0_81 = arith.constant 0 : index
    %115 = vector.load %arg15[%c33, %c0_81] : memref<224x32xf32, #tpu.memory_space<vmem>>, vector<128x32xf32>
    %116 = arith.truncf %115 : vector<128x32xf32> to vector<128x32xbf16>
    %c8 = arith.constant 8 : index
    %c0_82 = arith.constant 0 : index
    %c0_83 = arith.constant 0 : index
    %117 = vector.load %arg2[%c8, %c0_82, %c0_83] : memref<25x32x32xbf16, #tpu.memory_space<vmem>>, vector<1x32x32xbf16>
    %118 = vector.shape_cast %117 : vector<1x32x32xbf16> to vector<32x32xbf16>
    %cst_84 = arith.constant dense<0.000000e+00> : vector<128x32xf32>
    %119 = tpu.matmul %116, %118, %cst_84 {dimension_numbers = #tpu.dot_dimension_numbers<[1], [0], [0], [1], [0, 0, 1, 1], [], []>} : vector<128x32xbf16>, vector<32x32xbf16>, vector<128x32xf32> -> vector<128x32xf32>
    %c0_85 = arith.constant 0 : index
    %c0_86 = arith.constant 0 : index
    %120 = vector.load %arg16[%c0_85, %c0_86] : memref<128x32xf32, #tpu.memory_space<vmem>>, vector<128x32xf32>
    %121 = arith.addf %120, %119 : vector<128x32xf32>
    %c0_87 = arith.constant 0 : index
    %c0_88 = arith.constant 0 : index
    %122 = vector.load %arg16[%c0_87, %c0_88] : memref<128x32xf32, #tpu.memory_space<vmem>>, vector<128x32xf32>
    tpu.vector_store %arg16[%c0_87, %c0_88], %121 {strides = array<i32>} : memref<128x32xf32, #tpu.memory_space<vmem>>, vector<128x32xf32>,
    %c34 = arith.constant 34 : index
    %c0_89 = arith.constant 0 : index
    %123 = vector.load %arg15[%c34, %c0_89] : memref<224x32xf32, #tpu.memory_space<vmem>>, vector<128x32xf32>
    %124 = arith.truncf %123 : vector<128x32xf32> to vector<128x32xbf16>
    %c9 = arith.constant 9 : index
    %c0_90 = arith.constant 0 : index
    %c0_91 = arith.constant 0 : index
    %125 = vector.load %arg2[%c9, %c0_90, %c0_91] : memref<25x32x32xbf16, #tpu.memory_space<vmem>>, vector<1x32x32xbf16>
    %126 = vector.shape_cast %125 : vector<1x32x32xbf16> to vector<32x32xbf16>
    %cst_92 = arith.constant dense<0.000000e+00> : vector<128x32xf32>
    %127 = tpu.matmul %124, %126, %cst_92 {dimension_numbers = #tpu.dot_dimension_numbers<[1], [0], [0], [1], [0, 0, 1, 1], [], []>} : vector<128x32xbf16>, vector<32x32xbf16>, vector<128x32xf32> -> vector<128x32xf32>
    %c0_93 = arith.constant 0 : index
    %c0_94 = arith.constant 0 : index
    %128 = vector.load %arg16[%c0_93, %c0_94] : memref<128x32xf32, #tpu.memory_space<vmem>>, vector<128x32xf32>
    %129 = arith.addf %128, %127 : vector<128x32xf32>
    %c0_95 = arith.constant 0 : index
    %c0_96 = arith.constant 0 : index
    %130 = vector.load %arg16[%c0_95, %c0_96] : memref<128x32xf32, #tpu.memory_space<vmem>>, vector<128x32xf32>
    tpu.vector_store %arg16[%c0_95, %c0_96], %129 {strides = array<i32>} : memref<128x32xf32, #tpu.memory_space<vmem>>, vector<128x32xf32>,
    %c46 = arith.constant 46 : index
    %c0_97 = arith.constant 0 : index
    %131 = vector.load %arg15[%c46, %c0_97] : memref<224x32xf32, #tpu.memory_space<vmem>>, vector<128x32xf32>
    %132 = arith.truncf %131 : vector<128x32xf32> to vector<128x32xbf16>
    %c10 = arith.constant 10 : index
    %c0_98 = arith.constant 0 : index
    %c0_99 = arith.constant 0 : index
    %133 = vector.load %arg2[%c10, %c0_98, %c0_99] : memref<25x32x32xbf16, #tpu.memory_space<vmem>>, vector<1x32x32xbf16>
    %134 = vector.shape_cast %133 : vector<1x32x32xbf16> to vector<32x32xbf16>
    %cst_100 = arith.constant dense<0.000000e+00> : vector<128x32xf32>
    %135 = tpu.matmul %132, %134, %cst_100 {dimension_numbers = #tpu.dot_dimension_numbers<[1], [0], [0], [1], [0, 0, 1, 1], [], []>} : vector<128x32xbf16>, vector<32x32xbf16>, vector<128x32xf32> -> vector<128x32xf32>
    %c0_101 = arith.constant 0 : index
    %c0_102 = arith.constant 0 : index
    %136 = vector.load %arg16[%c0_101, %c0_102] : memref<128x32xf32, #tpu.memory_space<vmem>>, vector<128x32xf32>
    %137 = arith.addf %136, %135 : vector<128x32xf32>
    %c0_103 = arith.constant 0 : index
    %c0_104 = arith.constant 0 : index
    %138 = vector.load %arg16[%c0_103, %c0_104] : memref<128x32xf32, #tpu.memory_space<vmem>>, vector<128x32xf32>
    tpu.vector_store %arg16[%c0_103, %c0_104], %137 {strides = array<i32>} : memref<128x32xf32, #tpu.memory_space<vmem>>, vector<128x32xf32>,
    %c47 = arith.constant 47 : index
    %c0_105 = arith.constant 0 : index
    %139 = vector.load %arg15[%c47, %c0_105] : memref<224x32xf32, #tpu.memory_space<vmem>>, vector<128x32xf32>
    %140 = arith.truncf %139 : vector<128x32xf32> to vector<128x32xbf16>
    %c11 = arith.constant 11 : index
    %c0_106 = arith.constant 0 : index
    %c0_107 = arith.constant 0 : index
    %141 = vector.load %arg2[%c11, %c0_106, %c0_107] : memref<25x32x32xbf16, #tpu.memory_space<vmem>>, vector<1x32x32xbf16>
    %142 = vector.shape_cast %141 : vector<1x32x32xbf16> to vector<32x32xbf16>
    %cst_108 = arith.constant dense<0.000000e+00> : vector<128x32xf32>
    %143 = tpu.matmul %140, %142, %cst_108 {dimension_numbers = #tpu.dot_dimension_numbers<[1], [0], [0], [1], [0, 0, 1, 1], [], []>} : vector<128x32xbf16>, vector<32x32xbf16>, vector<128x32xf32> -> vector<128x32xf32>
    %c0_109 = arith.constant 0 : index
    %c0_110 = arith.constant 0 : index
    %144 = vector.load %arg16[%c0_109, %c0_110] : memref<128x32xf32, #tpu.memory_space<vmem>>, vector<128x32xf32>
    %145 = arith.addf %144, %143 : vector<128x32xf32>
    %c0_111 = arith.constant 0 : index
    %c0_112 = arith.constant 0 : index
    %146 = vector.load %arg16[%c0_111, %c0_112] : memref<128x32xf32, #tpu.memory_space<vmem>>, vector<128x32xf32>
    tpu.vector_store %arg16[%c0_111, %c0_112], %145 {strides = array<i32>} : memref<128x32xf32, #tpu.memory_space<vmem>>, vector<128x32xf32>,
    %c48_113 = arith.constant 48 : index
    %c0_114 = arith.constant 0 : index
    %147 = vector.load %arg15[%c48_113, %c0_114] : memref<224x32xf32, #tpu.memory_space<vmem>>, vector<128x32xf32>
    %148 = arith.truncf %147 : vector<128x32xf32> to vector<128x32xbf16>
    %c12 = arith.constant 12 : index
    %c0_115 = arith.constant 0 : index
    %c0_116 = arith.constant 0 : index
    %149 = vector.load %arg2[%c12, %c0_115, %c0_116] : memref<25x32x32xbf16, #tpu.memory_space<vmem>>, vector<1x32x32xbf16>
    %150 = vector.shape_cast %149 : vector<1x32x32xbf16> to vector<32x32xbf16>
    %cst_117 = arith.constant dense<0.000000e+00> : vector<128x32xf32>
    %151 = tpu.matmul %148, %150, %cst_117 {dimension_numbers = #tpu.dot_dimension_numbers<[1], [0], [0], [1], [0, 0, 1, 1], [], []>} : vector<128x32xbf16>, vector<32x32xbf16>, vector<128x32xf32> -> vector<128x32xf32>
    %c0_118 = arith.constant 0 : index
    %c0_119 = arith.constant 0 : index
    %152 = vector.load %arg16[%c0_118, %c0_119] : memref<128x32xf32, #tpu.memory_space<vmem>>, vector<128x32xf32>
    %153 = arith.addf %152, %151 : vector<128x32xf32>
    %c0_120 = arith.constant 0 : index
    %c0_121 = arith.constant 0 : index
    %154 = vector.load %arg16[%c0_120, %c0_121] : memref<128x32xf32, #tpu.memory_space<vmem>>, vector<128x32xf32>
    tpu.vector_store %arg16[%c0_120, %c0_121], %153 {strides = array<i32>} : memref<128x32xf32, #tpu.memory_space<vmem>>, vector<128x32xf32>,
    %c49 = arith.constant 49 : index
    %c0_122 = arith.constant 0 : index
    %155 = vector.load %arg15[%c49, %c0_122] : memref<224x32xf32, #tpu.memory_space<vmem>>, vector<128x32xf32>
    %156 = arith.truncf %155 : vector<128x32xf32> to vector<128x32xbf16>
    %c13 = arith.constant 13 : index
    %c0_123 = arith.constant 0 : index
    %c0_124 = arith.constant 0 : index
    %157 = vector.load %arg2[%c13, %c0_123, %c0_124] : memref<25x32x32xbf16, #tpu.memory_space<vmem>>, vector<1x32x32xbf16>
    %158 = vector.shape_cast %157 : vector<1x32x32xbf16> to vector<32x32xbf16>
    %cst_125 = arith.constant dense<0.000000e+00> : vector<128x32xf32>
    %159 = tpu.matmul %156, %158, %cst_125 {dimension_numbers = #tpu.dot_dimension_numbers<[1], [0], [0], [1], [0, 0, 1, 1], [], []>} : vector<128x32xbf16>, vector<32x32xbf16>, vector<128x32xf32> -> vector<128x32xf32>
    %c0_126 = arith.constant 0 : index
    %c0_127 = arith.constant 0 : index
    %160 = vector.load %arg16[%c0_126, %c0_127] : memref<128x32xf32, #tpu.memory_space<vmem>>, vector<128x32xf32>
    %161 = arith.addf %160, %159 : vector<128x32xf32>
    %c0_128 = arith.constant 0 : index
    %c0_129 = arith.constant 0 : index
    %162 = vector.load %arg16[%c0_128, %c0_129] : memref<128x32xf32, #tpu.memory_space<vmem>>, vector<128x32xf32>
    tpu.vector_store %arg16[%c0_128, %c0_129], %161 {strides = array<i32>} : memref<128x32xf32, #tpu.memory_space<vmem>>, vector<128x32xf32>,
    %c50 = arith.constant 50 : index
    %c0_130 = arith.constant 0 : index
    %163 = vector.load %arg15[%c50, %c0_130] : memref<224x32xf32, #tpu.memory_space<vmem>>, vector<128x32xf32>
    %164 = arith.truncf %163 : vector<128x32xf32> to vector<128x32xbf16>
    %c14_131 = arith.constant 14 : index
    %c0_132 = arith.constant 0 : index
    %c0_133 = arith.constant 0 : index
    %165 = vector.load %arg2[%c14_131, %c0_132, %c0_133] : memref<25x32x32xbf16, #tpu.memory_space<vmem>>, vector<1x32x32xbf16>
    %166 = vector.shape_cast %165 : vector<1x32x32xbf16> to vector<32x32xbf16>
    %cst_134 = arith.constant dense<0.000000e+00> : vector<128x32xf32>
    %167 = tpu.matmul %164, %166, %cst_134 {dimension_numbers = #tpu.dot_dimension_numbers<[1], [0], [0], [1], [0, 0, 1, 1], [], []>} : vector<128x32xbf16>, vector<32x32xbf16>, vector<128x32xf32> -> vector<128x32xf32>
    %c0_135 = arith.constant 0 : index
    %c0_136 = arith.constant 0 : index
    %168 = vector.load %arg16[%c0_135, %c0_136] : memref<128x32xf32, #tpu.memory_space<vmem>>, vector<128x32xf32>
    %169 = arith.addf %168, %167 : vector<128x32xf32>
    %c0_137 = arith.constant 0 : index
    %c0_138 = arith.constant 0 : index
    %170 = vector.load %arg16[%c0_137, %c0_138] : memref<128x32xf32, #tpu.memory_space<vmem>>, vector<128x32xf32>
    tpu.vector_store %arg16[%c0_137, %c0_138], %169 {strides = array<i32>} : memref<128x32xf32, #tpu.memory_space<vmem>>, vector<128x32xf32>,
    %c62 = arith.constant 62 : index
    %c0_139 = arith.constant 0 : index
    %171 = vector.load %arg15[%c62, %c0_139] : memref<224x32xf32, #tpu.memory_space<vmem>>, vector<128x32xf32>
    %172 = arith.truncf %171 : vector<128x32xf32> to vector<128x32xbf16>
    %c15_140 = arith.constant 15 : index
    %c0_141 = arith.constant 0 : index
    %c0_142 = arith.constant 0 : index
    %173 = vector.load %arg2[%c15_140, %c0_141, %c0_142] : memref<25x32x32xbf16, #tpu.memory_space<vmem>>, vector<1x32x32xbf16>
    %174 = vector.shape_cast %173 : vector<1x32x32xbf16> to vector<32x32xbf16>
    %cst_143 = arith.constant dense<0.000000e+00> : vector<128x32xf32>
    %175 = tpu.matmul %172, %174, %cst_143 {dimension_numbers = #tpu.dot_dimension_numbers<[1], [0], [0], [1], [0, 0, 1, 1], [], []>} : vector<128x32xbf16>, vector<32x32xbf16>, vector<128x32xf32> -> vector<128x32xf32>
    %c0_144 = arith.constant 0 : index
    %c0_145 = arith.constant 0 : index
    %176 = vector.load %arg16[%c0_144, %c0_145] : memref<128x32xf32, #tpu.memory_space<vmem>>, vector<128x32xf32>
    %177 = arith.addf %176, %175 : vector<128x32xf32>
    %c0_146 = arith.constant 0 : index
    %c0_147 = arith.constant 0 : index
    %178 = vector.load %arg16[%c0_146, %c0_147] : memref<128x32xf32, #tpu.memory_space<vmem>>, vector<128x32xf32>
    tpu.vector_store %arg16[%c0_146, %c0_147], %177 {strides = array<i32>} : memref<128x32xf32, #tpu.memory_space<vmem>>, vector<128x32xf32>,
    %c63 = arith.constant 63 : index
    %c0_148 = arith.constant 0 : index
    %179 = vector.load %arg15[%c63, %c0_148] : memref<224x32xf32, #tpu.memory_space<vmem>>, vector<128x32xf32>
    %180 = arith.truncf %179 : vector<128x32xf32> to vector<128x32xbf16>
    %c16_149 = arith.constant 16 : index
    %c0_150 = arith.constant 0 : index
    %c0_151 = arith.constant 0 : index
    %181 = vector.load %arg2[%c16_149, %c0_150, %c0_151] : memref<25x32x32xbf16, #tpu.memory_space<vmem>>, vector<1x32x32xbf16>
    %182 = vector.shape_cast %181 : vector<1x32x32xbf16> to vector<32x32xbf16>
    %cst_152 = arith.constant dense<0.000000e+00> : vector<128x32xf32>
    %183 = tpu.matmul %180, %182, %cst_152 {dimension_numbers = #tpu.dot_dimension_numbers<[1], [0], [0], [1], [0, 0, 1, 1], [], []>} : vector<128x32xbf16>, vector<32x32xbf16>, vector<128x32xf32> -> vector<128x32xf32>
    %c0_153 = arith.constant 0 : index
    %c0_154 = arith.constant 0 : index
    %184 = vector.load %arg16[%c0_153, %c0_154] : memref<128x32xf32, #tpu.memory_space<vmem>>, vector<128x32xf32>
    %185 = arith.addf %184, %183 : vector<128x32xf32>
    %c0_155 = arith.constant 0 : index
    %c0_156 = arith.constant 0 : index
    %186 = vector.load %arg16[%c0_155, %c0_156] : memref<128x32xf32, #tpu.memory_space<vmem>>, vector<128x32xf32>
    tpu.vector_store %arg16[%c0_155, %c0_156], %185 {strides = array<i32>} : memref<128x32xf32, #tpu.memory_space<vmem>>, vector<128x32xf32>,
    %c64 = arith.constant 64 : index
    %c0_157 = arith.constant 0 : index
    %187 = vector.load %arg15[%c64, %c0_157] : memref<224x32xf32, #tpu.memory_space<vmem>>, vector<128x32xf32>
    %188 = arith.truncf %187 : vector<128x32xf32> to vector<128x32xbf16>
    %c17_158 = arith.constant 17 : index
    %c0_159 = arith.constant 0 : index
    %c0_160 = arith.constant 0 : index
    %189 = vector.load %arg2[%c17_158, %c0_159, %c0_160] : memref<25x32x32xbf16, #tpu.memory_space<vmem>>, vector<1x32x32xbf16>
    %190 = vector.shape_cast %189 : vector<1x32x32xbf16> to vector<32x32xbf16>
    %cst_161 = arith.constant dense<0.000000e+00> : vector<128x32xf32>
    %191 = tpu.matmul %188, %190, %cst_161 {dimension_numbers = #tpu.dot_dimension_numbers<[1], [0], [0], [1], [0, 0, 1, 1], [], []>} : vector<128x32xbf16>, vector<32x32xbf16>, vector<128x32xf32> -> vector<128x32xf32>
    %c0_162 = arith.constant 0 : index
    %c0_163 = arith.constant 0 : index
    %192 = vector.load %arg16[%c0_162, %c0_163] : memref<128x32xf32, #tpu.memory_space<vmem>>, vector<128x32xf32>
    %193 = arith.addf %192, %191 : vector<128x32xf32>
    %c0_164 = arith.constant 0 : index
    %c0_165 = arith.constant 0 : index
    %194 = vector.load %arg16[%c0_164, %c0_165] : memref<128x32xf32, #tpu.memory_space<vmem>>, vector<128x32xf32>
    tpu.vector_store %arg16[%c0_164, %c0_165], %193 {strides = array<i32>} : memref<128x32xf32, #tpu.memory_space<vmem>>, vector<128x32xf32>,
    %c65 = arith.constant 65 : index
    %c0_166 = arith.constant 0 : index
    %195 = vector.load %arg15[%c65, %c0_166] : memref<224x32xf32, #tpu.memory_space<vmem>>, vector<128x32xf32>
    %196 = arith.truncf %195 : vector<128x32xf32> to vector<128x32xbf16>
    %c18_167 = arith.constant 18 : index
    %c0_168 = arith.constant 0 : index
    %c0_169 = arith.constant 0 : index
    %197 = vector.load %arg2[%c18_167, %c0_168, %c0_169] : memref<25x32x32xbf16, #tpu.memory_space<vmem>>, vector<1x32x32xbf16>
    %198 = vector.shape_cast %197 : vector<1x32x32xbf16> to vector<32x32xbf16>
    %cst_170 = arith.constant dense<0.000000e+00> : vector<128x32xf32>
    %199 = tpu.matmul %196, %198, %cst_170 {dimension_numbers = #tpu.dot_dimension_numbers<[1], [0], [0], [1], [0, 0, 1, 1], [], []>} : vector<128x32xbf16>, vector<32x32xbf16>, vector<128x32xf32> -> vector<128x32xf32>
    %c0_171 = arith.constant 0 : index
    %c0_172 = arith.constant 0 : index
    %200 = vector.load %arg16[%c0_171, %c0_172] : memref<128x32xf32, #tpu.memory_space<vmem>>, vector<128x32xf32>
    %201 = arith.addf %200, %199 : vector<128x32xf32>
    %c0_173 = arith.constant 0 : index
    %c0_174 = arith.constant 0 : index
    %202 = vector.load %arg16[%c0_173, %c0_174] : memref<128x32xf32, #tpu.memory_space<vmem>>, vector<128x32xf32>
    tpu.vector_store %arg16[%c0_173, %c0_174], %201 {strides = array<i32>} : memref<128x32xf32, #tpu.memory_space<vmem>>, vector<128x32xf32>,
    %c66 = arith.constant 66 : index
    %c0_175 = arith.constant 0 : index
    %203 = vector.load %arg15[%c66, %c0_175] : memref<224x32xf32, #tpu.memory_space<vmem>>, vector<128x32xf32>
    %204 = arith.truncf %203 : vector<128x32xf32> to vector<128x32xbf16>
    %c19 = arith.constant 19 : index
    %c0_176 = arith.constant 0 : index
    %c0_177 = arith.constant 0 : index
    %205 = vector.load %arg2[%c19, %c0_176, %c0_177] : memref<25x32x32xbf16, #tpu.memory_space<vmem>>, vector<1x32x32xbf16>
    %206 = vector.shape_cast %205 : vector<1x32x32xbf16> to vector<32x32xbf16>
    %cst_178 = arith.constant dense<0.000000e+00> : vector<128x32xf32>
    %207 = tpu.matmul %204, %206, %cst_178 {dimension_numbers = #tpu.dot_dimension_numbers<[1], [0], [0], [1], [0, 0, 1, 1], [], []>} : vector<128x32xbf16>, vector<32x32xbf16>, vector<128x32xf32> -> vector<128x32xf32>
    %c0_179 = arith.constant 0 : index
    %c0_180 = arith.constant 0 : index
    %208 = vector.load %arg16[%c0_179, %c0_180] : memref<128x32xf32, #tpu.memory_space<vmem>>, vector<128x32xf32>
    %209 = arith.addf %208, %207 : vector<128x32xf32>
    %c0_181 = arith.constant 0 : index
    %c0_182 = arith.constant 0 : index
    %210 = vector.load %arg16[%c0_181, %c0_182] : memref<128x32xf32, #tpu.memory_space<vmem>>, vector<128x32xf32>
    tpu.vector_store %arg16[%c0_181, %c0_182], %209 {strides = array<i32>} : memref<128x32xf32, #tpu.memory_space<vmem>>, vector<128x32xf32>,
    %c78 = arith.constant 78 : index
    %c0_183 = arith.constant 0 : index
    %211 = vector.load %arg15[%c78, %c0_183] : memref<224x32xf32, #tpu.memory_space<vmem>>, vector<128x32xf32>
    %212 = arith.truncf %211 : vector<128x32xf32> to vector<128x32xbf16>
    %c20 = arith.constant 20 : index
    %c0_184 = arith.constant 0 : index
    %c0_185 = arith.constant 0 : index
    %213 = vector.load %arg2[%c20, %c0_184, %c0_185] : memref<25x32x32xbf16, #tpu.memory_space<vmem>>, vector<1x32x32xbf16>
    %214 = vector.shape_cast %213 : vector<1x32x32xbf16> to vector<32x32xbf16>
    %cst_186 = arith.constant dense<0.000000e+00> : vector<128x32xf32>
    %215 = tpu.matmul %212, %214, %cst_186 {dimension_numbers = #tpu.dot_dimension_numbers<[1], [0], [0], [1], [0, 0, 1, 1], [], []>} : vector<128x32xbf16>, vector<32x32xbf16>, vector<128x32xf32> -> vector<128x32xf32>
    %c0_187 = arith.constant 0 : index
    %c0_188 = arith.constant 0 : index
    %216 = vector.load %arg16[%c0_187, %c0_188] : memref<128x32xf32, #tpu.memory_space<vmem>>, vector<128x32xf32>
    %217 = arith.addf %216, %215 : vector<128x32xf32>
    %c0_189 = arith.constant 0 : index
    %c0_190 = arith.constant 0 : index
    %218 = vector.load %arg16[%c0_189, %c0_190] : memref<128x32xf32, #tpu.memory_space<vmem>>, vector<128x32xf32>
    tpu.vector_store %arg16[%c0_189, %c0_190], %217 {strides = array<i32>} : memref<128x32xf32, #tpu.memory_space<vmem>>, vector<128x32xf32>,
    %c79 = arith.constant 79 : index
    %c0_191 = arith.constant 0 : index
    %219 = vector.load %arg15[%c79, %c0_191] : memref<224x32xf32, #tpu.memory_space<vmem>>, vector<128x32xf32>
    %220 = arith.truncf %219 : vector<128x32xf32> to vector<128x32xbf16>
    %c21 = arith.constant 21 : index
    %c0_192 = arith.constant 0 : index
    %c0_193 = arith.constant 0 : index
    %221 = vector.load %arg2[%c21, %c0_192, %c0_193] : memref<25x32x32xbf16, #tpu.memory_space<vmem>>, vector<1x32x32xbf16>
    %222 = vector.shape_cast %221 : vector<1x32x32xbf16> to vector<32x32xbf16>
    %cst_194 = arith.constant dense<0.000000e+00> : vector<128x32xf32>
    %223 = tpu.matmul %220, %222, %cst_194 {dimension_numbers = #tpu.dot_dimension_numbers<[1], [0], [0], [1], [0, 0, 1, 1], [], []>} : vector<128x32xbf16>, vector<32x32xbf16>, vector<128x32xf32> -> vector<128x32xf32>
    %c0_195 = arith.constant 0 : index
    %c0_196 = arith.constant 0 : index
    %224 = vector.load %arg16[%c0_195, %c0_196] : memref<128x32xf32, #tpu.memory_space<vmem>>, vector<128x32xf32>
    %225 = arith.addf %224, %223 : vector<128x32xf32>
    %c0_197 = arith.constant 0 : index
    %c0_198 = arith.constant 0 : index
    %226 = vector.load %arg16[%c0_197, %c0_198] : memref<128x32xf32, #tpu.memory_space<vmem>>, vector<128x32xf32>
    tpu.vector_store %arg16[%c0_197, %c0_198], %225 {strides = array<i32>} : memref<128x32xf32, #tpu.memory_space<vmem>>, vector<128x32xf32>,
    %c80 = arith.constant 80 : index
    %c0_199 = arith.constant 0 : index
    %227 = vector.load %arg15[%c80, %c0_199] : memref<224x32xf32, #tpu.memory_space<vmem>>, vector<128x32xf32>
    %228 = arith.truncf %227 : vector<128x32xf32> to vector<128x32xbf16>
    %c22 = arith.constant 22 : index
    %c0_200 = arith.constant 0 : index
    %c0_201 = arith.constant 0 : index
    %229 = vector.load %arg2[%c22, %c0_200, %c0_201] : memref<25x32x32xbf16, #tpu.memory_space<vmem>>, vector<1x32x32xbf16>
    %230 = vector.shape_cast %229 : vector<1x32x32xbf16> to vector<32x32xbf16>
    %cst_202 = arith.constant dense<0.000000e+00> : vector<128x32xf32>
    %231 = tpu.matmul %228, %230, %cst_202 {dimension_numbers = #tpu.dot_dimension_numbers<[1], [0], [0], [1], [0, 0, 1, 1], [], []>} : vector<128x32xbf16>, vector<32x32xbf16>, vector<128x32xf32> -> vector<128x32xf32>
    %c0_203 = arith.constant 0 : index
    %c0_204 = arith.constant 0 : index
    %232 = vector.load %arg16[%c0_203, %c0_204] : memref<128x32xf32, #tpu.memory_space<vmem>>, vector<128x32xf32>
    %233 = arith.addf %232, %231 : vector<128x32xf32>
    %c0_205 = arith.constant 0 : index
    %c0_206 = arith.constant 0 : index
    %234 = vector.load %arg16[%c0_205, %c0_206] : memref<128x32xf32, #tpu.memory_space<vmem>>, vector<128x32xf32>
    tpu.vector_store %arg16[%c0_205, %c0_206], %233 {strides = array<i32>} : memref<128x32xf32, #tpu.memory_space<vmem>>, vector<128x32xf32>,
    %c81 = arith.constant 81 : index
    %c0_207 = arith.constant 0 : index
    %235 = vector.load %arg15[%c81, %c0_207] : memref<224x32xf32, #tpu.memory_space<vmem>>, vector<128x32xf32>
    %236 = arith.truncf %235 : vector<128x32xf32> to vector<128x32xbf16>
    %c23 = arith.constant 23 : index
    %c0_208 = arith.constant 0 : index
    %c0_209 = arith.constant 0 : index
    %237 = vector.load %arg2[%c23, %c0_208, %c0_209] : memref<25x32x32xbf16, #tpu.memory_space<vmem>>, vector<1x32x32xbf16>
    %238 = vector.shape_cast %237 : vector<1x32x32xbf16> to vector<32x32xbf16>
    %cst_210 = arith.constant dense<0.000000e+00> : vector<128x32xf32>
    %239 = tpu.matmul %236, %238, %cst_210 {dimension_numbers = #tpu.dot_dimension_numbers<[1], [0], [0], [1], [0, 0, 1, 1], [], []>} : vector<128x32xbf16>, vector<32x32xbf16>, vector<128x32xf32> -> vector<128x32xf32>
    %c0_211 = arith.constant 0 : index
    %c0_212 = arith.constant 0 : index
    %240 = vector.load %arg16[%c0_211, %c0_212] : memref<128x32xf32, #tpu.memory_space<vmem>>, vector<128x32xf32>
    %241 = arith.addf %240, %239 : vector<128x32xf32>
    %c0_213 = arith.constant 0 : index
    %c0_214 = arith.constant 0 : index
    %242 = vector.load %arg16[%c0_213, %c0_214] : memref<128x32xf32, #tpu.memory_space<vmem>>, vector<128x32xf32>
    tpu.vector_store %arg16[%c0_213, %c0_214], %241 {strides = array<i32>} : memref<128x32xf32, #tpu.memory_space<vmem>>, vector<128x32xf32>,
    %c82 = arith.constant 82 : index
    %c0_215 = arith.constant 0 : index
    %243 = vector.load %arg15[%c82, %c0_215] : memref<224x32xf32, #tpu.memory_space<vmem>>, vector<128x32xf32>
    %244 = arith.truncf %243 : vector<128x32xf32> to vector<128x32xbf16>
    %c24 = arith.constant 24 : index
    %c0_216 = arith.constant 0 : index
    %c0_217 = arith.constant 0 : index
    %245 = vector.load %arg2[%c24, %c0_216, %c0_217] : memref<25x32x32xbf16, #tpu.memory_space<vmem>>, vector<1x32x32xbf16>
    %246 = vector.shape_cast %245 : vector<1x32x32xbf16> to vector<32x32xbf16>
    %cst_218 = arith.constant dense<0.000000e+00> : vector<128x32xf32>
    %247 = tpu.matmul %244, %246, %cst_218 {dimension_numbers = #tpu.dot_dimension_numbers<[1], [0], [0], [1], [0, 0, 1, 1], [], []>} : vector<128x32xbf16>, vector<32x32xbf16>, vector<128x32xf32> -> vector<128x32xf32>
    %c0_219 = arith.constant 0 : index
    %c0_220 = arith.constant 0 : index
    %248 = vector.load %arg16[%c0_219, %c0_220] : memref<128x32xf32, #tpu.memory_space<vmem>>, vector<128x32xf32>
    %249 = arith.addf %248, %247 : vector<128x32xf32>
    %c0_221 = arith.constant 0 : index
    %c0_222 = arith.constant 0 : index
    %250 = vector.load %arg16[%c0_221, %c0_222] : memref<128x32xf32, #tpu.memory_space<vmem>>, vector<128x32xf32>
    tpu.vector_store %arg16[%c0_221, %c0_222], %249 {strides = array<i32>} : memref<128x32xf32, #tpu.memory_space<vmem>>, vector<128x32xf32>,
    %c0_223 = arith.constant 0 : index
    %c0_224 = arith.constant 0 : index
    %251 = vector.load %arg3[%c0_223, %c0_224] : memref<1x32xf32, #tpu.memory_space<vmem>>, vector<1x32xf32>
    %c0_225 = arith.constant 0 : index
    %c0_226 = arith.constant 0 : index
    %252 = vector.load %arg4[%c0_225, %c0_226] : memref<1x32xf32, #tpu.memory_space<vmem>>, vector<1x32xf32>
    %c0_227 = arith.constant 0 : index
    %c0_228 = arith.constant 0 : index
    %253 = vector.load %arg5[%c0_227, %c0_228] : memref<1x32xf32, #tpu.memory_space<vmem>>, vector<1x32xf32>
    %c0_229 = arith.constant 0 : index
    %c0_230 = arith.constant 0 : index
    %254 = vector.load %arg16[%c0_229, %c0_230] : memref<128x32xf32, #tpu.memory_space<vmem>>, vector<128x32xf32>
    %255 = vector.broadcast %251 : vector<1x32xf32> to vector<128x32xf32>
    %256 = arith.addf %254, %255 : vector<128x32xf32>
    %cst_231 = arith.constant dense<0.000000e+00> : vector<1x32xf32>
    %257 = tpu.matmul %45, %256, %cst_231 {dimension_numbers = #tpu.dot_dimension_numbers<[1], [0], [0], [1], [0, 0, 1, 1], [], []>} : vector<1x128xf32>, vector<128x32xf32>, vector<1x32xf32> -> vector<1x32xf32>
    %258 = arith.mulf %256, %256 : vector<128x32xf32>
    %cst_232 = arith.constant dense<0.000000e+00> : vector<1x32xf32>
    %259 = tpu.matmul %45, %258, %cst_232 {dimension_numbers = #tpu.dot_dimension_numbers<[1], [0], [0], [1], [0, 0, 1, 1], [], []>} : vector<1x128xf32>, vector<128x32xf32>, vector<1x32xf32> -> vector<1x32xf32>
    %c0_233 = arith.constant 0 : index
    %c0_234 = arith.constant 0 : index
    %260 = vector.load %arg12[%c0_233, %c0_234] : memref<32x8xf32, #tpu.memory_space<vmem>>, vector<32x8xf32>
    %cst_235 = arith.constant dense<0.000000e+00> : vector<1x8xf32>
    %261 = tpu.matmul %257, %260, %cst_235 {dimension_numbers = #tpu.dot_dimension_numbers<[1], [0], [0], [1], [0, 0, 1, 1], [], []>} : vector<1x32xf32>, vector<32x8xf32>, vector<1x8xf32> -> vector<1x8xf32>
    %cst_236 = arith.constant 3.906250e-03 : f32
    %262 = vector.broadcast %cst_236 : f32 to vector<1x8xf32>
    %263 = arith.mulf %261, %262 : vector<1x8xf32>
    %c0_237 = arith.constant 0 : index
    %c0_238 = arith.constant 0 : index
    %264 = vector.load %arg12[%c0_237, %c0_238] : memref<32x8xf32, #tpu.memory_space<vmem>>, vector<32x8xf32>
    %cst_239 = arith.constant dense<0.000000e+00> : vector<1x8xf32>
    %265 = tpu.matmul %259, %264, %cst_239 {dimension_numbers = #tpu.dot_dimension_numbers<[1], [0], [0], [1], [0, 0, 1, 1], [], []>} : vector<1x32xf32>, vector<32x8xf32>, vector<1x8xf32> -> vector<1x8xf32>
    %cst_240 = arith.constant 3.906250e-03 : f32
    %266 = vector.broadcast %cst_240 : f32 to vector<1x8xf32>
    %267 = arith.mulf %265, %266 : vector<1x8xf32>
    %268 = arith.mulf %263, %263 : vector<1x8xf32>
    %269 = arith.subf %267, %268 : vector<1x8xf32>
    %cst_241 = arith.constant 0.000000e+00 : f32
    %270 = vector.broadcast %cst_241 : f32 to vector<1x8xf32>
    %271 = arith.maximumf %269, %270 : vector<1x8xf32>
    %c0_242 = arith.constant 0 : index
    %c0_243 = arith.constant 0 : index
    %272 = vector.load %arg13[%c0_242, %c0_243] : memref<8x32xf32, #tpu.memory_space<vmem>>, vector<8x32xf32>
    %cst_244 = arith.constant dense<0.000000e+00> : vector<1x32xf32>
    %273 = tpu.matmul %263, %272, %cst_244 {dimension_numbers = #tpu.dot_dimension_numbers<[1], [0], [0], [1], [0, 0, 1, 1], [], []>} : vector<1x8xf32>, vector<8x32xf32>, vector<1x32xf32> -> vector<1x32xf32>
    %c0_245 = arith.constant 0 : index
    %c0_246 = arith.constant 0 : index
    %274 = vector.load %arg13[%c0_245, %c0_246] : memref<8x32xf32, #tpu.memory_space<vmem>>, vector<8x32xf32>
    %cst_247 = arith.constant dense<0.000000e+00> : vector<1x32xf32>
    %275 = tpu.matmul %271, %274, %cst_247 {dimension_numbers = #tpu.dot_dimension_numbers<[1], [0], [0], [1], [0, 0, 1, 1], [], []>} : vector<1x8xf32>, vector<8x32xf32>, vector<1x32xf32> -> vector<1x32xf32>
    %cst_248 = arith.constant 9.99999974E-6 : f32
    %276 = vector.broadcast %cst_248 : f32 to vector<1x32xf32>
    %277 = arith.addf %275, %276 : vector<1x32xf32>
    %278 = math.rsqrt %277 : vector<1x32xf32>
    %279 = arith.mulf %278, %252 : vector<1x32xf32>
    %280 = arith.mulf %273, %279 : vector<1x32xf32>
    %281 = arith.subf %253, %280 : vector<1x32xf32>
    %282 = vector.broadcast %279 : vector<1x32xf32> to vector<128x32xf32>
    %283 = arith.mulf %256, %282 : vector<128x32xf32>
    %284 = vector.broadcast %281 : vector<1x32xf32> to vector<128x32xf32>
    %285 = arith.addf %283, %284 : vector<128x32xf32>
    %cst_249 = arith.constant 0.000000e+00 : f32
    %286 = vector.broadcast %cst_249 : f32 to vector<128x32xf32>
    %287 = arith.maximumf %285, %286 : vector<128x32xf32>
    %cst_250 = arith.constant 0.000000e+00 : f32
    %288 = vector.shape_cast %21 : vector<128x1xi1> to vector<128x1xi1>
    %289 = vector.broadcast %288 : vector<128x1xi1> to vector<128x32xi1>
    %290 = vector.broadcast %cst_250 : f32 to vector<128x32xf32>
    %291 = arith.select %289, %287, %290 : vector<128x32xi1>, vector<128x32xf32>
    %c48_251 = arith.constant 48 : index
    %c0_252 = arith.constant 0 : index
    %292 = vector.load %arg15[%c48_251, %c0_252] : memref<224x32xf32, #tpu.memory_space<vmem>>, vector<128x32xf32>
    tpu.vector_store %arg15[%c48_251, %c0_252], %291 {strides = array<i32>} : memref<224x32xf32, #tpu.memory_space<vmem>>, vector<128x32xf32>,
    %c31_253 = arith.constant 31 : index
    %c0_254 = arith.constant 0 : index
    %293 = vector.load %arg15[%c31_253, %c0_254] : memref<224x32xf32, #tpu.memory_space<vmem>>, vector<128x32xf32>
    %294 = arith.truncf %293 : vector<128x32xf32> to vector<128x32xbf16>
    %c0_255 = arith.constant 0 : index
    %c0_256 = arith.constant 0 : index
    %c0_257 = arith.constant 0 : index
    %295 = vector.load %arg6[%c0_255, %c0_256, %c0_257] : memref<9x32x32xbf16, #tpu.memory_space<vmem>>, vector<1x32x32xbf16>
    %296 = vector.shape_cast %295 : vector<1x32x32xbf16> to vector<32x32xbf16>
    %cst_258 = arith.constant dense<0.000000e+00> : vector<128x32xf32>
    %297 = tpu.matmul %294, %296, %cst_258 {dimension_numbers = #tpu.dot_dimension_numbers<[1], [0], [0], [1], [0, 0, 1, 1], [], []>} : vector<128x32xbf16>, vector<32x32xbf16>, vector<128x32xf32> -> vector<128x32xf32>
    %c0_259 = arith.constant 0 : index
    %c0_260 = arith.constant 0 : index
    %298 = vector.load %arg16[%c0_259, %c0_260] : memref<128x32xf32, #tpu.memory_space<vmem>>, vector<128x32xf32>
    tpu.vector_store %arg16[%c0_259, %c0_260], %297 {strides = array<i32>} : memref<128x32xf32, #tpu.memory_space<vmem>>, vector<128x32xf32>,
    %c32_261 = arith.constant 32 : index
    %c0_262 = arith.constant 0 : index
    %299 = vector.load %arg15[%c32_261, %c0_262] : memref<224x32xf32, #tpu.memory_space<vmem>>, vector<128x32xf32>
    %300 = arith.truncf %299 : vector<128x32xf32> to vector<128x32xbf16>
    %c1_263 = arith.constant 1 : index
    %c0_264 = arith.constant 0 : index
    %c0_265 = arith.constant 0 : index
    %301 = vector.load %arg6[%c1_263, %c0_264, %c0_265] : memref<9x32x32xbf16, #tpu.memory_space<vmem>>, vector<1x32x32xbf16>
    %302 = vector.shape_cast %301 : vector<1x32x32xbf16> to vector<32x32xbf16>
    %cst_266 = arith.constant dense<0.000000e+00> : vector<128x32xf32>
    %303 = tpu.matmul %300, %302, %cst_266 {dimension_numbers = #tpu.dot_dimension_numbers<[1], [0], [0], [1], [0, 0, 1, 1], [], []>} : vector<128x32xbf16>, vector<32x32xbf16>, vector<128x32xf32> -> vector<128x32xf32>
    %c0_267 = arith.constant 0 : index
    %c0_268 = arith.constant 0 : index
    %304 = vector.load %arg16[%c0_267, %c0_268] : memref<128x32xf32, #tpu.memory_space<vmem>>, vector<128x32xf32>
    %305 = arith.addf %304, %303 : vector<128x32xf32>
    %c0_269 = arith.constant 0 : index
    %c0_270 = arith.constant 0 : index
    %306 = vector.load %arg16[%c0_269, %c0_270] : memref<128x32xf32, #tpu.memory_space<vmem>>, vector<128x32xf32>
    tpu.vector_store %arg16[%c0_269, %c0_270], %305 {strides = array<i32>} : memref<128x32xf32, #tpu.memory_space<vmem>>, vector<128x32xf32>,
    %c33_271 = arith.constant 33 : index
    %c0_272 = arith.constant 0 : index
    %307 = vector.load %arg15[%c33_271, %c0_272] : memref<224x32xf32, #tpu.memory_space<vmem>>, vector<128x32xf32>
    %308 = arith.truncf %307 : vector<128x32xf32> to vector<128x32xbf16>
    %c2_273 = arith.constant 2 : index
    %c0_274 = arith.constant 0 : index
    %c0_275 = arith.constant 0 : index
    %309 = vector.load %arg6[%c2_273, %c0_274, %c0_275] : memref<9x32x32xbf16, #tpu.memory_space<vmem>>, vector<1x32x32xbf16>
    %310 = vector.shape_cast %309 : vector<1x32x32xbf16> to vector<32x32xbf16>
    %cst_276 = arith.constant dense<0.000000e+00> : vector<128x32xf32>
    %311 = tpu.matmul %308, %310, %cst_276 {dimension_numbers = #tpu.dot_dimension_numbers<[1], [0], [0], [1], [0, 0, 1, 1], [], []>} : vector<128x32xbf16>, vector<32x32xbf16>, vector<128x32xf32> -> vector<128x32xf32>
    %c0_277 = arith.constant 0 : index
    %c0_278 = arith.constant 0 : index
    %312 = vector.load %arg16[%c0_277, %c0_278] : memref<128x32xf32, #tpu.memory_space<vmem>>, vector<128x32xf32>
    %313 = arith.addf %312, %311 : vector<128x32xf32>
    %c0_279 = arith.constant 0 : index
    %c0_280 = arith.constant 0 : index
    %314 = vector.load %arg16[%c0_279, %c0_280] : memref<128x32xf32, #tpu.memory_space<vmem>>, vector<128x32xf32>
    tpu.vector_store %arg16[%c0_279, %c0_280], %313 {strides = array<i32>} : memref<128x32xf32, #tpu.memory_space<vmem>>, vector<128x32xf32>,
    %c47_281 = arith.constant 47 : index
    %c0_282 = arith.constant 0 : index
    %315 = vector.load %arg15[%c47_281, %c0_282] : memref<224x32xf32, #tpu.memory_space<vmem>>, vector<128x32xf32>
    %316 = arith.truncf %315 : vector<128x32xf32> to vector<128x32xbf16>
    %c3_283 = arith.constant 3 : index
    %c0_284 = arith.constant 0 : index
    %c0_285 = arith.constant 0 : index
    %317 = vector.load %arg6[%c3_283, %c0_284, %c0_285] : memref<9x32x32xbf16, #tpu.memory_space<vmem>>, vector<1x32x32xbf16>
    %318 = vector.shape_cast %317 : vector<1x32x32xbf16> to vector<32x32xbf16>
    %cst_286 = arith.constant dense<0.000000e+00> : vector<128x32xf32>
    %319 = tpu.matmul %316, %318, %cst_286 {dimension_numbers = #tpu.dot_dimension_numbers<[1], [0], [0], [1], [0, 0, 1, 1], [], []>} : vector<128x32xbf16>, vector<32x32xbf16>, vector<128x32xf32> -> vector<128x32xf32>
    %c0_287 = arith.constant 0 : index
    %c0_288 = arith.constant 0 : index
    %320 = vector.load %arg16[%c0_287, %c0_288] : memref<128x32xf32, #tpu.memory_space<vmem>>, vector<128x32xf32>
    %321 = arith.addf %320, %319 : vector<128x32xf32>
    %c0_289 = arith.constant 0 : index
    %c0_290 = arith.constant 0 : index
    %322 = vector.load %arg16[%c0_289, %c0_290] : memref<128x32xf32, #tpu.memory_space<vmem>>, vector<128x32xf32>
    tpu.vector_store %arg16[%c0_289, %c0_290], %321 {strides = array<i32>} : memref<128x32xf32, #tpu.memory_space<vmem>>, vector<128x32xf32>,
    %c48_291 = arith.constant 48 : index
    %c0_292 = arith.constant 0 : index
    %323 = vector.load %arg15[%c48_291, %c0_292] : memref<224x32xf32, #tpu.memory_space<vmem>>, vector<128x32xf32>
    %324 = arith.truncf %323 : vector<128x32xf32> to vector<128x32xbf16>
    %c4_293 = arith.constant 4 : index
    %c0_294 = arith.constant 0 : index
    %c0_295 = arith.constant 0 : index
    %325 = vector.load %arg6[%c4_293, %c0_294, %c0_295] : memref<9x32x32xbf16, #tpu.memory_space<vmem>>, vector<1x32x32xbf16>
    %326 = vector.shape_cast %325 : vector<1x32x32xbf16> to vector<32x32xbf16>
    %cst_296 = arith.constant dense<0.000000e+00> : vector<128x32xf32>
    %327 = tpu.matmul %324, %326, %cst_296 {dimension_numbers = #tpu.dot_dimension_numbers<[1], [0], [0], [1], [0, 0, 1, 1], [], []>} : vector<128x32xbf16>, vector<32x32xbf16>, vector<128x32xf32> -> vector<128x32xf32>
    %c0_297 = arith.constant 0 : index
    %c0_298 = arith.constant 0 : index
    %328 = vector.load %arg16[%c0_297, %c0_298] : memref<128x32xf32, #tpu.memory_space<vmem>>, vector<128x32xf32>
    %329 = arith.addf %328, %327 : vector<128x32xf32>
    %c0_299 = arith.constant 0 : index
    %c0_300 = arith.constant 0 : index
    %330 = vector.load %arg16[%c0_299, %c0_300] : memref<128x32xf32, #tpu.memory_space<vmem>>, vector<128x32xf32>
    tpu.vector_store %arg16[%c0_299, %c0_300], %329 {strides = array<i32>} : memref<128x32xf32, #tpu.memory_space<vmem>>, vector<128x32xf32>,
    %c49_301 = arith.constant 49 : index
    %c0_302 = arith.constant 0 : index
    %331 = vector.load %arg15[%c49_301, %c0_302] : memref<224x32xf32, #tpu.memory_space<vmem>>, vector<128x32xf32>
    %332 = arith.truncf %331 : vector<128x32xf32> to vector<128x32xbf16>
    %c5_303 = arith.constant 5 : index
    %c0_304 = arith.constant 0 : index
    %c0_305 = arith.constant 0 : index
    %333 = vector.load %arg6[%c5_303, %c0_304, %c0_305] : memref<9x32x32xbf16, #tpu.memory_space<vmem>>, vector<1x32x32xbf16>
    %334 = vector.shape_cast %333 : vector<1x32x32xbf16> to vector<32x32xbf16>
    %cst_306 = arith.constant dense<0.000000e+00> : vector<128x32xf32>
    %335 = tpu.matmul %332, %334, %cst_306 {dimension_numbers = #tpu.dot_dimension_numbers<[1], [0], [0], [1], [0, 0, 1, 1], [], []>} : vector<128x32xbf16>, vector<32x32xbf16>, vector<128x32xf32> -> vector<128x32xf32>
    %c0_307 = arith.constant 0 : index
    %c0_308 = arith.constant 0 : index
    %336 = vector.load %arg16[%c0_307, %c0_308] : memref<128x32xf32, #tpu.memory_space<vmem>>, vector<128x32xf32>
    %337 = arith.addf %336, %335 : vector<128x32xf32>
    %c0_309 = arith.constant 0 : index
    %c0_310 = arith.constant 0 : index
    %338 = vector.load %arg16[%c0_309, %c0_310] : memref<128x32xf32, #tpu.memory_space<vmem>>, vector<128x32xf32>
    tpu.vector_store %arg16[%c0_309, %c0_310], %337 {strides = array<i32>} : memref<128x32xf32, #tpu.memory_space<vmem>>, vector<128x32xf32>,
    %c63_311 = arith.constant 63 : index
    %c0_312 = arith.constant 0 : index
    %339 = vector.load %arg15[%c63_311, %c0_312] : memref<224x32xf32, #tpu.memory_space<vmem>>, vector<128x32xf32>
    %340 = arith.truncf %339 : vector<128x32xf32> to vector<128x32xbf16>
    %c6_313 = arith.constant 6 : index
    %c0_314 = arith.constant 0 : index
    %c0_315 = arith.constant 0 : index
    %341 = vector.load %arg6[%c6_313, %c0_314, %c0_315] : memref<9x32x32xbf16, #tpu.memory_space<vmem>>, vector<1x32x32xbf16>
    %342 = vector.shape_cast %341 : vector<1x32x32xbf16> to vector<32x32xbf16>
    %cst_316 = arith.constant dense<0.000000e+00> : vector<128x32xf32>
    %343 = tpu.matmul %340, %342, %cst_316 {dimension_numbers = #tpu.dot_dimension_numbers<[1], [0], [0], [1], [0, 0, 1, 1], [], []>} : vector<128x32xbf16>, vector<32x32xbf16>, vector<128x32xf32> -> vector<128x32xf32>
    %c0_317 = arith.constant 0 : index
    %c0_318 = arith.constant 0 : index
    %344 = vector.load %arg16[%c0_317, %c0_318] : memref<128x32xf32, #tpu.memory_space<vmem>>, vector<128x32xf32>
    %345 = arith.addf %344, %343 : vector<128x32xf32>
    %c0_319 = arith.constant 0 : index
    %c0_320 = arith.constant 0 : index
    %346 = vector.load %arg16[%c0_319, %c0_320] : memref<128x32xf32, #tpu.memory_space<vmem>>, vector<128x32xf32>
    tpu.vector_store %arg16[%c0_319, %c0_320], %345 {strides = array<i32>} : memref<128x32xf32, #tpu.memory_space<vmem>>, vector<128x32xf32>,
    %c64_321 = arith.constant 64 : index
    %c0_322 = arith.constant 0 : index
    %347 = vector.load %arg15[%c64_321, %c0_322] : memref<224x32xf32, #tpu.memory_space<vmem>>, vector<128x32xf32>
    %348 = arith.truncf %347 : vector<128x32xf32> to vector<128x32xbf16>
    %c7_323 = arith.constant 7 : index
    %c0_324 = arith.constant 0 : index
    %c0_325 = arith.constant 0 : index
    %349 = vector.load %arg6[%c7_323, %c0_324, %c0_325] : memref<9x32x32xbf16, #tpu.memory_space<vmem>>, vector<1x32x32xbf16>
    %350 = vector.shape_cast %349 : vector<1x32x32xbf16> to vector<32x32xbf16>
    %cst_326 = arith.constant dense<0.000000e+00> : vector<128x32xf32>
    %351 = tpu.matmul %348, %350, %cst_326 {dimension_numbers = #tpu.dot_dimension_numbers<[1], [0], [0], [1], [0, 0, 1, 1], [], []>} : vector<128x32xbf16>, vector<32x32xbf16>, vector<128x32xf32> -> vector<128x32xf32>
    %c0_327 = arith.constant 0 : index
    %c0_328 = arith.constant 0 : index
    %352 = vector.load %arg16[%c0_327, %c0_328] : memref<128x32xf32, #tpu.memory_space<vmem>>, vector<128x32xf32>
    %353 = arith.addf %352, %351 : vector<128x32xf32>
    %c0_329 = arith.constant 0 : index
    %c0_330 = arith.constant 0 : index
    %354 = vector.load %arg16[%c0_329, %c0_330] : memref<128x32xf32, #tpu.memory_space<vmem>>, vector<128x32xf32>
    tpu.vector_store %arg16[%c0_329, %c0_330], %353 {strides = array<i32>} : memref<128x32xf32, #tpu.memory_space<vmem>>, vector<128x32xf32>,
    %c65_331 = arith.constant 65 : index
    %c0_332 = arith.constant 0 : index
    %355 = vector.load %arg15[%c65_331, %c0_332] : memref<224x32xf32, #tpu.memory_space<vmem>>, vector<128x32xf32>
    %356 = arith.truncf %355 : vector<128x32xf32> to vector<128x32xbf16>
    %c8_333 = arith.constant 8 : index
    %c0_334 = arith.constant 0 : index
    %c0_335 = arith.constant 0 : index
    %357 = vector.load %arg6[%c8_333, %c0_334, %c0_335] : memref<9x32x32xbf16, #tpu.memory_space<vmem>>, vector<1x32x32xbf16>
    %358 = vector.shape_cast %357 : vector<1x32x32xbf16> to vector<32x32xbf16>
    %cst_336 = arith.constant dense<0.000000e+00> : vector<128x32xf32>
    %359 = tpu.matmul %356, %358, %cst_336 {dimension_numbers = #tpu.dot_dimension_numbers<[1], [0], [0], [1], [0, 0, 1, 1], [], []>} : vector<128x32xbf16>, vector<32x32xbf16>, vector<128x32xf32> -> vector<128x32xf32>
    %c0_337 = arith.constant 0 : index
    %c0_338 = arith.constant 0 : index
    %360 = vector.load %arg16[%c0_337, %c0_338] : memref<128x32xf32, #tpu.memory_space<vmem>>, vector<128x32xf32>
    %361 = arith.addf %360, %359 : vector<128x32xf32>
    %c0_339 = arith.constant 0 : index
    %c0_340 = arith.constant 0 : index
    %362 = vector.load %arg16[%c0_339, %c0_340] : memref<128x32xf32, #tpu.memory_space<vmem>>, vector<128x32xf32>
    tpu.vector_store %arg16[%c0_339, %c0_340], %361 {strides = array<i32>} : memref<128x32xf32, #tpu.memory_space<vmem>>, vector<128x32xf32>,
    %c0_341 = arith.constant 0 : index
    %c0_342 = arith.constant 0 : index
    %363 = vector.load %arg7[%c0_341, %c0_342] : memref<1x32xf32, #tpu.memory_space<vmem>>, vector<1x32xf32>
    %c0_343 = arith.constant 0 : index
    %c0_344 = arith.constant 0 : index
    %364 = vector.load %arg8[%c0_343, %c0_344] : memref<1x32xf32, #tpu.memory_space<vmem>>, vector<1x32xf32>
    %c0_345 = arith.constant 0 : index
    %c0_346 = arith.constant 0 : index
    %365 = vector.load %arg9[%c0_345, %c0_346] : memref<1x32xf32, #tpu.memory_space<vmem>>, vector<1x32xf32>
    %c0_347 = arith.constant 0 : index
    %c0_348 = arith.constant 0 : index
    %366 = vector.load %arg16[%c0_347, %c0_348] : memref<128x32xf32, #tpu.memory_space<vmem>>, vector<128x32xf32>
    %367 = vector.broadcast %363 : vector<1x32xf32> to vector<128x32xf32>
    %368 = arith.addf %366, %367 : vector<128x32xf32>
    %cst_349 = arith.constant dense<0.000000e+00> : vector<1x32xf32>
    %369 = tpu.matmul %45, %368, %cst_349 {dimension_numbers = #tpu.dot_dimension_numbers<[1], [0], [0], [1], [0, 0, 1, 1], [], []>} : vector<1x128xf32>, vector<128x32xf32>, vector<1x32xf32> -> vector<1x32xf32>
    %370 = arith.mulf %368, %368 : vector<128x32xf32>
    %cst_350 = arith.constant dense<0.000000e+00> : vector<1x32xf32>
    %371 = tpu.matmul %45, %370, %cst_350 {dimension_numbers = #tpu.dot_dimension_numbers<[1], [0], [0], [1], [0, 0, 1, 1], [], []>} : vector<1x128xf32>, vector<128x32xf32>, vector<1x32xf32> -> vector<1x32xf32>
    %c0_351 = arith.constant 0 : index
    %c0_352 = arith.constant 0 : index
    %372 = vector.load %arg12[%c0_351, %c0_352] : memref<32x8xf32, #tpu.memory_space<vmem>>, vector<32x8xf32>
    %cst_353 = arith.constant dense<0.000000e+00> : vector<1x8xf32>
    %373 = tpu.matmul %369, %372, %cst_353 {dimension_numbers = #tpu.dot_dimension_numbers<[1], [0], [0], [1], [0, 0, 1, 1], [], []>} : vector<1x32xf32>, vector<32x8xf32>, vector<1x8xf32> -> vector<1x8xf32>
    %cst_354 = arith.constant 3.906250e-03 : f32
    %374 = vector.broadcast %cst_354 : f32 to vector<1x8xf32>
    %375 = arith.mulf %373, %374 : vector<1x8xf32>
    %c0_355 = arith.constant 0 : index
    %c0_356 = arith.constant 0 : index
    %376 = vector.load %arg12[%c0_355, %c0_356] : memref<32x8xf32, #tpu.memory_space<vmem>>, vector<32x8xf32>
    %cst_357 = arith.constant dense<0.000000e+00> : vector<1x8xf32>
    %377 = tpu.matmul %371, %376, %cst_357 {dimension_numbers = #tpu.dot_dimension_numbers<[1], [0], [0], [1], [0, 0, 1, 1], [], []>} : vector<1x32xf32>, vector<32x8xf32>, vector<1x8xf32> -> vector<1x8xf32>
    %cst_358 = arith.constant 3.906250e-03 : f32
    %378 = vector.broadcast %cst_358 : f32 to vector<1x8xf32>
    %379 = arith.mulf %377, %378 : vector<1x8xf32>
    %380 = arith.mulf %375, %375 : vector<1x8xf32>
    %381 = arith.subf %379, %380 : vector<1x8xf32>
    %cst_359 = arith.constant 0.000000e+00 : f32
    %382 = vector.broadcast %cst_359 : f32 to vector<1x8xf32>
    %383 = arith.maximumf %381, %382 : vector<1x8xf32>
    %c0_360 = arith.constant 0 : index
    %c0_361 = arith.constant 0 : index
    %384 = vector.load %arg13[%c0_360, %c0_361] : memref<8x32xf32, #tpu.memory_space<vmem>>, vector<8x32xf32>
    %cst_362 = arith.constant dense<0.000000e+00> : vector<1x32xf32>
    %385 = tpu.matmul %375, %384, %cst_362 {dimension_numbers = #tpu.dot_dimension_numbers<[1], [0], [0], [1], [0, 0, 1, 1], [], []>} : vector<1x8xf32>, vector<8x32xf32>, vector<1x32xf32> -> vector<1x32xf32>
    %c0_363 = arith.constant 0 : index
    %c0_364 = arith.constant 0 : index
    %386 = vector.load %arg13[%c0_363, %c0_364] : memref<8x32xf32, #tpu.memory_space<vmem>>, vector<8x32xf32>
    %cst_365 = arith.constant dense<0.000000e+00> : vector<1x32xf32>
    %387 = tpu.matmul %383, %386, %cst_365 {dimension_numbers = #tpu.dot_dimension_numbers<[1], [0], [0], [1], [0, 0, 1, 1], [], []>} : vector<1x8xf32>, vector<8x32xf32>, vector<1x32xf32> -> vector<1x32xf32>
    %cst_366 = arith.constant 9.99999974E-6 : f32
    %388 = vector.broadcast %cst_366 : f32 to vector<1x32xf32>
    %389 = arith.addf %387, %388 : vector<1x32xf32>
    %390 = math.rsqrt %389 : vector<1x32xf32>
    %391 = arith.mulf %390, %364 : vector<1x32xf32>
    %392 = arith.mulf %385, %391 : vector<1x32xf32>
    %393 = arith.subf %365, %392 : vector<1x32xf32>
    %394 = vector.broadcast %391 : vector<1x32xf32> to vector<128x32xf32>
    %395 = arith.mulf %368, %394 : vector<128x32xf32>
    %396 = vector.broadcast %393 : vector<1x32xf32> to vector<128x32xf32>
    %397 = arith.addf %395, %396 : vector<128x32xf32>
    %cst_367 = arith.constant 0.000000e+00 : f32
    %398 = vector.broadcast %cst_367 : f32 to vector<128x32xf32>
    %399 = arith.maximumf %397, %398 : vector<128x32xf32>
    %cst_368 = arith.constant 0.000000e+00 : f32
    %400 = vector.shape_cast %21 : vector<128x1xi1> to vector<128x1xi1>
    %401 = vector.broadcast %400 : vector<128x1xi1> to vector<128x32xi1>
    %402 = vector.broadcast %cst_368 : f32 to vector<128x32xf32>
    %403 = arith.select %401, %399, %402 : vector<128x32xi1>, vector<128x32xf32>
    %c48_369 = arith.constant 48 : index
    %c0_370 = arith.constant 0 : index
    %404 = vector.load %arg15[%c48_369, %c0_370] : memref<224x32xf32, #tpu.memory_space<vmem>>, vector<128x32xf32>
    tpu.vector_store %arg15[%c48_369, %c0_370], %403 {strides = array<i32>} : memref<224x32xf32, #tpu.memory_space<vmem>>, vector<128x32xf32>,
    %c31_371 = arith.constant 31 : index
    %c0_372 = arith.constant 0 : index
    %405 = vector.load %arg15[%c31_371, %c0_372] : memref<224x32xf32, #tpu.memory_space<vmem>>, vector<128x32xf32>
    %406 = arith.truncf %405 : vector<128x32xf32> to vector<128x32xbf16>
    %c0_373 = arith.constant 0 : index
    %c0_374 = arith.constant 0 : index
    %c0_375 = arith.constant 0 : index
    %407 = vector.load %arg10[%c0_373, %c0_374, %c0_375] : memref<9x32x16xbf16, #tpu.memory_space<vmem>>, vector<1x32x16xbf16>
    %408 = vector.shape_cast %407 : vector<1x32x16xbf16> to vector<32x16xbf16>
    %cst_376 = arith.constant dense<0.000000e+00> : vector<128x16xf32>
    %409 = tpu.matmul %406, %408, %cst_376 {dimension_numbers = #tpu.dot_dimension_numbers<[1], [0], [0], [1], [0, 0, 1, 1], [], []>} : vector<128x32xbf16>, vector<32x16xbf16>, vector<128x16xf32> -> vector<128x16xf32>
    %c0_377 = arith.constant 0 : index
    %c0_378 = arith.constant 0 : index
    %410 = vector.load %arg17[%c0_377, %c0_378] : memref<128x16xf32, #tpu.memory_space<vmem>>, vector<128x16xf32>
    tpu.vector_store %arg17[%c0_377, %c0_378], %409 {strides = array<i32>} : memref<128x16xf32, #tpu.memory_space<vmem>>, vector<128x16xf32>,
    %c32_379 = arith.constant 32 : index
    %c0_380 = arith.constant 0 : index
    %411 = vector.load %arg15[%c32_379, %c0_380] : memref<224x32xf32, #tpu.memory_space<vmem>>, vector<128x32xf32>
    %412 = arith.truncf %411 : vector<128x32xf32> to vector<128x32xbf16>
    %c1_381 = arith.constant 1 : index
    %c0_382 = arith.constant 0 : index
    %c0_383 = arith.constant 0 : index
    %413 = vector.load %arg10[%c1_381, %c0_382, %c0_383] : memref<9x32x16xbf16, #tpu.memory_space<vmem>>, vector<1x32x16xbf16>
    %414 = vector.shape_cast %413 : vector<1x32x16xbf16> to vector<32x16xbf16>
    %cst_384 = arith.constant dense<0.000000e+00> : vector<128x16xf32>
    %415 = tpu.matmul %412, %414, %cst_384 {dimension_numbers = #tpu.dot_dimension_numbers<[1], [0], [0], [1], [0, 0, 1, 1], [], []>} : vector<128x32xbf16>, vector<32x16xbf16>, vector<128x16xf32> -> vector<128x16xf32>
    %c0_385 = arith.constant 0 : index
    %c0_386 = arith.constant 0 : index
    %416 = vector.load %arg17[%c0_385, %c0_386] : memref<128x16xf32, #tpu.memory_space<vmem>>, vector<128x16xf32>
    %417 = arith.addf %416, %415 : vector<128x16xf32>
    %c0_387 = arith.constant 0 : index
    %c0_388 = arith.constant 0 : index
    %418 = vector.load %arg17[%c0_387, %c0_388] : memref<128x16xf32, #tpu.memory_space<vmem>>, vector<128x16xf32>
    tpu.vector_store %arg17[%c0_387, %c0_388], %417 {strides = array<i32>} : memref<128x16xf32, #tpu.memory_space<vmem>>, vector<128x16xf32>,
    %c33_389 = arith.constant 33 : index
    %c0_390 = arith.constant 0 : index
    %419 = vector.load %arg15[%c33_389, %c0_390] : memref<224x32xf32, #tpu.memory_space<vmem>>, vector<128x32xf32>
    %420 = arith.truncf %419 : vector<128x32xf32> to vector<128x32xbf16>
    %c2_391 = arith.constant 2 : index
    %c0_392 = arith.constant 0 : index
    %c0_393 = arith.constant 0 : index
    %421 = vector.load %arg10[%c2_391, %c0_392, %c0_393] : memref<9x32x16xbf16, #tpu.memory_space<vmem>>, vector<1x32x16xbf16>
    %422 = vector.shape_cast %421 : vector<1x32x16xbf16> to vector<32x16xbf16>
    %cst_394 = arith.constant dense<0.000000e+00> : vector<128x16xf32>
    %423 = tpu.matmul %420, %422, %cst_394 {dimension_numbers = #tpu.dot_dimension_numbers<[1], [0], [0], [1], [0, 0, 1, 1], [], []>} : vector<128x32xbf16>, vector<32x16xbf16>, vector<128x16xf32> -> vector<128x16xf32>
    %c0_395 = arith.constant 0 : index
    %c0_396 = arith.constant 0 : index
    %424 = vector.load %arg17[%c0_395, %c0_396] : memref<128x16xf32, #tpu.memory_space<vmem>>, vector<128x16xf32>
    %425 = arith.addf %424, %423 : vector<128x16xf32>
    %c0_397 = arith.constant 0 : index
    %c0_398 = arith.constant 0 : index
    %426 = vector.load %arg17[%c0_397, %c0_398] : memref<128x16xf32, #tpu.memory_space<vmem>>, vector<128x16xf32>
    tpu.vector_store %arg17[%c0_397, %c0_398], %425 {strides = array<i32>} : memref<128x16xf32, #tpu.memory_space<vmem>>, vector<128x16xf32>,
    %c47_399 = arith.constant 47 : index
    %c0_400 = arith.constant 0 : index
    %427 = vector.load %arg15[%c47_399, %c0_400] : memref<224x32xf32, #tpu.memory_space<vmem>>, vector<128x32xf32>
    %428 = arith.truncf %427 : vector<128x32xf32> to vector<128x32xbf16>
    %c3_401 = arith.constant 3 : index
    %c0_402 = arith.constant 0 : index
    %c0_403 = arith.constant 0 : index
    %429 = vector.load %arg10[%c3_401, %c0_402, %c0_403] : memref<9x32x16xbf16, #tpu.memory_space<vmem>>, vector<1x32x16xbf16>
    %430 = vector.shape_cast %429 : vector<1x32x16xbf16> to vector<32x16xbf16>
    %cst_404 = arith.constant dense<0.000000e+00> : vector<128x16xf32>
    %431 = tpu.matmul %428, %430, %cst_404 {dimension_numbers = #tpu.dot_dimension_numbers<[1], [0], [0], [1], [0, 0, 1, 1], [], []>} : vector<128x32xbf16>, vector<32x16xbf16>, vector<128x16xf32> -> vector<128x16xf32>
    %c0_405 = arith.constant 0 : index
    %c0_406 = arith.constant 0 : index
    %432 = vector.load %arg17[%c0_405, %c0_406] : memref<128x16xf32, #tpu.memory_space<vmem>>, vector<128x16xf32>
    %433 = arith.addf %432, %431 : vector<128x16xf32>
    %c0_407 = arith.constant 0 : index
    %c0_408 = arith.constant 0 : index
    %434 = vector.load %arg17[%c0_407, %c0_408] : memref<128x16xf32, #tpu.memory_space<vmem>>, vector<128x16xf32>
    tpu.vector_store %arg17[%c0_407, %c0_408], %433 {strides = array<i32>} : memref<128x16xf32, #tpu.memory_space<vmem>>, vector<128x16xf32>,
    %c48_409 = arith.constant 48 : index
    %c0_410 = arith.constant 0 : index
    %435 = vector.load %arg15[%c48_409, %c0_410] : memref<224x32xf32, #tpu.memory_space<vmem>>, vector<128x32xf32>
    %436 = arith.truncf %435 : vector<128x32xf32> to vector<128x32xbf16>
    %c4_411 = arith.constant 4 : index
    %c0_412 = arith.constant 0 : index
    %c0_413 = arith.constant 0 : index
    %437 = vector.load %arg10[%c4_411, %c0_412, %c0_413] : memref<9x32x16xbf16, #tpu.memory_space<vmem>>, vector<1x32x16xbf16>
    %438 = vector.shape_cast %437 : vector<1x32x16xbf16> to vector<32x16xbf16>
    %cst_414 = arith.constant dense<0.000000e+00> : vector<128x16xf32>
    %439 = tpu.matmul %436, %438, %cst_414 {dimension_numbers = #tpu.dot_dimension_numbers<[1], [0], [0], [1], [0, 0, 1, 1], [], []>} : vector<128x32xbf16>, vector<32x16xbf16>, vector<128x16xf32> -> vector<128x16xf32>
    %c0_415 = arith.constant 0 : index
    %c0_416 = arith.constant 0 : index
    %440 = vector.load %arg17[%c0_415, %c0_416] : memref<128x16xf32, #tpu.memory_space<vmem>>, vector<128x16xf32>
    %441 = arith.addf %440, %439 : vector<128x16xf32>
    %c0_417 = arith.constant 0 : index
    %c0_418 = arith.constant 0 : index
    %442 = vector.load %arg17[%c0_417, %c0_418] : memref<128x16xf32, #tpu.memory_space<vmem>>, vector<128x16xf32>
    tpu.vector_store %arg17[%c0_417, %c0_418], %441 {strides = array<i32>} : memref<128x16xf32, #tpu.memory_space<vmem>>, vector<128x16xf32>,
    %c49_419 = arith.constant 49 : index
    %c0_420 = arith.constant 0 : index
    %443 = vector.load %arg15[%c49_419, %c0_420] : memref<224x32xf32, #tpu.memory_space<vmem>>, vector<128x32xf32>
    %444 = arith.truncf %443 : vector<128x32xf32> to vector<128x32xbf16>
    %c5_421 = arith.constant 5 : index
    %c0_422 = arith.constant 0 : index
    %c0_423 = arith.constant 0 : index
    %445 = vector.load %arg10[%c5_421, %c0_422, %c0_423] : memref<9x32x16xbf16, #tpu.memory_space<vmem>>, vector<1x32x16xbf16>
    %446 = vector.shape_cast %445 : vector<1x32x16xbf16> to vector<32x16xbf16>
    %cst_424 = arith.constant dense<0.000000e+00> : vector<128x16xf32>
    %447 = tpu.matmul %444, %446, %cst_424 {dimension_numbers = #tpu.dot_dimension_numbers<[1], [0], [0], [1], [0, 0, 1, 1], [], []>} : vector<128x32xbf16>, vector<32x16xbf16>, vector<128x16xf32> -> vector<128x16xf32>
    %c0_425 = arith.constant 0 : index
    %c0_426 = arith.constant 0 : index
    %448 = vector.load %arg17[%c0_425, %c0_426] : memref<128x16xf32, #tpu.memory_space<vmem>>, vector<128x16xf32>
    %449 = arith.addf %448, %447 : vector<128x16xf32>
    %c0_427 = arith.constant 0 : index
    %c0_428 = arith.constant 0 : index
    %450 = vector.load %arg17[%c0_427, %c0_428] : memref<128x16xf32, #tpu.memory_space<vmem>>, vector<128x16xf32>
    tpu.vector_store %arg17[%c0_427, %c0_428], %449 {strides = array<i32>} : memref<128x16xf32, #tpu.memory_space<vmem>>, vector<128x16xf32>,
    %c63_429 = arith.constant 63 : index
    %c0_430 = arith.constant 0 : index
    %451 = vector.load %arg15[%c63_429, %c0_430] : memref<224x32xf32, #tpu.memory_space<vmem>>, vector<128x32xf32>
    %452 = arith.truncf %451 : vector<128x32xf32> to vector<128x32xbf16>
    %c6_431 = arith.constant 6 : index
    %c0_432 = arith.constant 0 : index
    %c0_433 = arith.constant 0 : index
    %453 = vector.load %arg10[%c6_431, %c0_432, %c0_433] : memref<9x32x16xbf16, #tpu.memory_space<vmem>>, vector<1x32x16xbf16>
    %454 = vector.shape_cast %453 : vector<1x32x16xbf16> to vector<32x16xbf16>
    %cst_434 = arith.constant dense<0.000000e+00> : vector<128x16xf32>
    %455 = tpu.matmul %452, %454, %cst_434 {dimension_numbers = #tpu.dot_dimension_numbers<[1], [0], [0], [1], [0, 0, 1, 1], [], []>} : vector<128x32xbf16>, vector<32x16xbf16>, vector<128x16xf32> -> vector<128x16xf32>
    %c0_435 = arith.constant 0 : index
    %c0_436 = arith.constant 0 : index
    %456 = vector.load %arg17[%c0_435, %c0_436] : memref<128x16xf32, #tpu.memory_space<vmem>>, vector<128x16xf32>
    %457 = arith.addf %456, %455 : vector<128x16xf32>
    %c0_437 = arith.constant 0 : index
    %c0_438 = arith.constant 0 : index
    %458 = vector.load %arg17[%c0_437, %c0_438] : memref<128x16xf32, #tpu.memory_space<vmem>>, vector<128x16xf32>
    tpu.vector_store %arg17[%c0_437, %c0_438], %457 {strides = array<i32>} : memref<128x16xf32, #tpu.memory_space<vmem>>, vector<128x16xf32>,
    %c64_439 = arith.constant 64 : index
    %c0_440 = arith.constant 0 : index
    %459 = vector.load %arg15[%c64_439, %c0_440] : memref<224x32xf32, #tpu.memory_space<vmem>>, vector<128x32xf32>
    %460 = arith.truncf %459 : vector<128x32xf32> to vector<128x32xbf16>
    %c7_441 = arith.constant 7 : index
    %c0_442 = arith.constant 0 : index
    %c0_443 = arith.constant 0 : index
    %461 = vector.load %arg10[%c7_441, %c0_442, %c0_443] : memref<9x32x16xbf16, #tpu.memory_space<vmem>>, vector<1x32x16xbf16>
    %462 = vector.shape_cast %461 : vector<1x32x16xbf16> to vector<32x16xbf16>
    %cst_444 = arith.constant dense<0.000000e+00> : vector<128x16xf32>
    %463 = tpu.matmul %460, %462, %cst_444 {dimension_numbers = #tpu.dot_dimension_numbers<[1], [0], [0], [1], [0, 0, 1, 1], [], []>} : vector<128x32xbf16>, vector<32x16xbf16>, vector<128x16xf32> -> vector<128x16xf32>
    %c0_445 = arith.constant 0 : index
    %c0_446 = arith.constant 0 : index
    %464 = vector.load %arg17[%c0_445, %c0_446] : memref<128x16xf32, #tpu.memory_space<vmem>>, vector<128x16xf32>
    %465 = arith.addf %464, %463 : vector<128x16xf32>
    %c0_447 = arith.constant 0 : index
    %c0_448 = arith.constant 0 : index
    %466 = vector.load %arg17[%c0_447, %c0_448] : memref<128x16xf32, #tpu.memory_space<vmem>>, vector<128x16xf32>
    tpu.vector_store %arg17[%c0_447, %c0_448], %465 {strides = array<i32>} : memref<128x16xf32, #tpu.memory_space<vmem>>, vector<128x16xf32>,
    %c65_449 = arith.constant 65 : index
    %c0_450 = arith.constant 0 : index
    %467 = vector.load %arg15[%c65_449, %c0_450] : memref<224x32xf32, #tpu.memory_space<vmem>>, vector<128x32xf32>
    %468 = arith.truncf %467 : vector<128x32xf32> to vector<128x32xbf16>
    %c8_451 = arith.constant 8 : index
    %c0_452 = arith.constant 0 : index
    %c0_453 = arith.constant 0 : index
    %469 = vector.load %arg10[%c8_451, %c0_452, %c0_453] : memref<9x32x16xbf16, #tpu.memory_space<vmem>>, vector<1x32x16xbf16>
    %470 = vector.shape_cast %469 : vector<1x32x16xbf16> to vector<32x16xbf16>
    %cst_454 = arith.constant dense<0.000000e+00> : vector<128x16xf32>
    %471 = tpu.matmul %468, %470, %cst_454 {dimension_numbers = #tpu.dot_dimension_numbers<[1], [0], [0], [1], [0, 0, 1, 1], [], []>} : vector<128x32xbf16>, vector<32x16xbf16>, vector<128x16xf32> -> vector<128x16xf32>
    %c0_455 = arith.constant 0 : index
    %c0_456 = arith.constant 0 : index
    %472 = vector.load %arg17[%c0_455, %c0_456] : memref<128x16xf32, #tpu.memory_space<vmem>>, vector<128x16xf32>
    %473 = arith.addf %472, %471 : vector<128x16xf32>
    %c0_457 = arith.constant 0 : index
    %c0_458 = arith.constant 0 : index
    %474 = vector.load %arg17[%c0_457, %c0_458] : memref<128x16xf32, #tpu.memory_space<vmem>>, vector<128x16xf32>
    tpu.vector_store %arg17[%c0_457, %c0_458], %473 {strides = array<i32>} : memref<128x16xf32, #tpu.memory_space<vmem>>, vector<128x16xf32>,
    %c0_459 = arith.constant 0 : index
    %c0_460 = arith.constant 0 : index
    %475 = vector.load %arg17[%c0_459, %c0_460] : memref<128x16xf32, #tpu.memory_space<vmem>>, vector<128x16xf32>
    %c0_461 = arith.constant 0 : index
    %c0_462 = arith.constant 0 : index
    %476 = vector.load %arg11[%c0_461, %c0_462] : memref<1x16xf32, #tpu.memory_space<vmem>>, vector<1x16xf32>
    %477 = vector.broadcast %476 : vector<1x16xf32> to vector<128x16xf32>
    %478 = arith.addf %475, %477 : vector<128x16xf32>
    %479 = tpu.transpose %478, [1, 0] : vector<128x16xf32> -> vector<16x128xf32>
    %cst_463 = arith.constant -1.000000e+30 : f32
    %480 = vector.shape_cast %43 : vector<1x128xi1> to vector<1x128xi1>
    %481 = vector.broadcast %480 : vector<1x128xi1> to vector<16x128xi1>
    %482 = vector.broadcast %cst_463 : f32 to vector<16x128xf32>
    %483 = arith.select %481, %479, %482 : vector<16x128xi1>, vector<16x128xf32>
    %cst_464 = arith.constant dense<0xFF800000> : vector<16xf32>
    %484 = vector.multi_reduction <maximumf>, %483, %cst_464 [1] : vector<16x128xf32> to vector<16xf32>
    %485 = vector.shape_cast %484 : vector<16xf32> to vector<16x1xf32>
    %486 = vector.broadcast %485 : vector<16x1xf32> to vector<16x128xf32>
    %487 = arith.subf %483, %486 : vector<16x128xf32>
    %488 = math.exp %487 : vector<16x128xf32>
    %cst_465 = arith.constant dense<0.000000e+00> : vector<16xf32>
    %489 = vector.multi_reduction <add>, %488, %cst_465 [1] : vector<16x128xf32> to vector<16xf32>
    %490 = vector.shape_cast %489 : vector<16xf32> to vector<16x1xf32>
    %491 = tpu.reciprocal %490 {approx = true} : vector<16x1xf32> -> vector<16x1xf32>
    %492 = vector.broadcast %491 : vector<16x1xf32> to vector<16x128xf32>
    %493 = arith.mulf %488, %492 : vector<16x128xf32>
    %c0_466 = arith.constant 0 : index
    %c0_467 = arith.constant 0 : index
    %c0_468 = arith.constant 0 : index
    %c0_469 = arith.constant 0 : index
    %494 = vector.load %arg1[%c0_466, %c0_467, %c0_468, %c0_469] : memref<1x8x16x32xf32, #tpu.memory_space<vmem>>, vector<1x8x16x32xf32>
    %495 = vector.shape_cast %494 : vector<1x8x16x32xf32> to vector<8x16x32xf32>
    %496 = vector.shape_cast %495 : vector<8x16x32xf32> to vector<128x32xf32>
    %cst_470 = arith.constant dense<0.000000e+00> : vector<16x32xf32>
    %497 = tpu.matmul %493, %496, %cst_470 {dimension_numbers = #tpu.dot_dimension_numbers<[1], [0], [0], [1], [0, 0, 1, 1], [], []>} : vector<16x128xf32>, vector<128x32xf32>, vector<16x32xf32> -> vector<16x32xf32>
    %c0_471 = arith.constant 0 : index
    %c0_472 = arith.constant 0 : index
    %498 = vector.load %arg14[%c0_471, %c0_472] : memref<16x32xf32, #tpu.memory_space<vmem>>, vector<16x32xf32>
    tpu.vector_store %arg14[%c0_471, %c0_472], %497 {strides = array<i32>} : memref<16x32xf32, #tpu.memory_space<vmem>>, vector<16x32xf32>,
    return
  }
  func.func @transform_0(%arg0: i32) -> (i32, i32, i32, i32) {
    %c0_i32 = arith.constant 0 : i32
    %c0_i32_0 = arith.constant 0 : i32
    %c0_i32_1 = arith.constant 0 : i32
    %c0_i32_2 = arith.constant 0 : i32
    return %arg0, %c0_i32, %c0_i32_0, %c0_i32_1 : i32, i32, i32, i32
  }
  func.func @transform_1(%arg0: i32) -> (i32, i32, i32) {
    %c0_i32 = arith.constant 0 : i32
    %c0_i32_0 = arith.constant 0 : i32
    %c0_i32_1 = arith.constant 0 : i32
    %c0_i32_2 = arith.constant 0 : i32
    return %c0_i32, %c0_i32_0, %c0_i32_1 : i32, i32, i32
  }
  func.func @transform_2(%arg0: i32) -> (i32, i32) {
    %c0_i32 = arith.constant 0 : i32
    %c0_i32_0 = arith.constant 0 : i32
    %c0_i32_1 = arith.constant 0 : i32
    return %c0_i32, %c0_i32_0 : i32, i32
  }
  func.func @transform_3(%arg0: i32) -> (i32, i32) {
    %c0_i32 = arith.constant 0 : i32
    %c0_i32_0 = arith.constant 0 : i32
    %c0_i32_1 = arith.constant 0 : i32
    return %c0_i32, %c0_i32_0 : i32, i32
  }
  func.func @transform_4(%arg0: i32) -> (i32, i32) {
    %c0_i32 = arith.constant 0 : i32
    %c0_i32_0 = arith.constant 0 : i32
    %c0_i32_1 = arith.constant 0 : i32
    return %c0_i32, %c0_i32_0 : i32, i32
  }
  func.func @transform_5(%arg0: i32) -> (i32, i32, i32) {
    %c0_i32 = arith.constant 0 : i32
    %c0_i32_0 = arith.constant 0 : i32
    %c0_i32_1 = arith.constant 0 : i32
    %c0_i32_2 = arith.constant 0 : i32
    return %c0_i32, %c0_i32_0, %c0_i32_1 : i32, i32, i32
  }
  func.func @transform_6(%arg0: i32) -> (i32, i32) {
    %c0_i32 = arith.constant 0 : i32
    %c0_i32_0 = arith.constant 0 : i32
    %c0_i32_1 = arith.constant 0 : i32
    return %c0_i32, %c0_i32_0 : i32, i32
  }
  func.func @transform_7(%arg0: i32) -> (i32, i32) {
    %c0_i32 = arith.constant 0 : i32
    %c0_i32_0 = arith.constant 0 : i32
    %c0_i32_1 = arith.constant 0 : i32
    return %c0_i32, %c0_i32_0 : i32, i32
  }
  func.func @transform_8(%arg0: i32) -> (i32, i32) {
    %c0_i32 = arith.constant 0 : i32
    %c0_i32_0 = arith.constant 0 : i32
    %c0_i32_1 = arith.constant 0 : i32
    return %c0_i32, %c0_i32_0 : i32, i32
  }
  func.func @transform_9(%arg0: i32) -> (i32, i32, i32) {
    %c0_i32 = arith.constant 0 : i32
    %c0_i32_0 = arith.constant 0 : i32
    %c0_i32_1 = arith.constant 0 : i32
    %c0_i32_2 = arith.constant 0 : i32
    return %c0_i32, %c0_i32_0, %c0_i32_1 : i32, i32, i32
  }
  func.func @transform_10(%arg0: i32) -> (i32, i32) {
    %c0_i32 = arith.constant 0 : i32
    %c0_i32_0 = arith.constant 0 : i32
    %c0_i32_1 = arith.constant 0 : i32
    return %c0_i32, %c0_i32_0 : i32, i32
  }
  func.func @transform_11(%arg0: i32) -> (i32, i32) {
    %c0_i32 = arith.constant 0 : i32
    %c0_i32_0 = arith.constant 0 : i32
    %c0_i32_1 = arith.constant 0 : i32
    return %c0_i32, %c0_i32_0 : i32, i32
  }
  func.func @transform_12(%arg0: i32) -> (i32, i32) {
    %c0_i32 = arith.constant 0 : i32
    %c0_i32_0 = arith.constant 0 : i32
    %c0_i32_1 = arith.constant 0 : i32
    return %c0_i32, %c0_i32_0 : i32, i32
  }
  func.func @transform_13(%arg0: i32) -> (i32, i32) {
    %c0_i32 = arith.constant 0 : i32
    %c0_i32_0 = arith.constant 0 : i32
    return %arg0, %c0_i32 : i32, i32
  }
}

</mosaic_0001>

<bundles_post_ra>
// kernel: tpu_custom_call.1
= control target key start
LH: loop header
LB: loop body
LE: loop exit
PB: predicated region body
PF: predicated region fallthrough
CT: control target
= control target key end

     0   :  { %s16635_s0 = inlined_call_operand.vmem [shape: f32[2,8,16,32], index: 0, kind: input, shape index: {}]   ;;  %s16636_s1 = inlined_call_operand.hbm [shape: bf16[25,32,32], index: 1, kind: input, shape index: {}]   ;;  %s16637_s2 = inlined_call_operand.hbm [shape: f32[1,32], index: 2, kind: input, shape index: {}]   ;;  %s16638_s3 = inlined_call_operand.hbm [shape: f32[1,32], index: 3, kind: input, shape index: {}]   ;;  %s16639_s4 = inlined_call_operand.hbm [shape: f32[1,32], index: 4, kind: input, shape index: {}]   ;;  %s16640_s5 = inlined_call_operand.hbm [shape: bf16[9,32,32], index: 5, kind: input, shape index: {}]   ;;  %s16641_s6 = inlined_call_operand.hbm [shape: f32[1,32], index: 6, kind: input, shape index: {}]   ;;  %s16642_s7 = inlined_call_operand.hbm [shape: f32[1,32], index: 7, kind: input, shape index: {}]   ;;  %s16643_s8 = inlined_call_operand.hbm [shape: f32[1,32], index: 8, kind: input, shape index: {}]   ;;  %s16644_s9 = inlined_call_operand.vmem [shape: bf16[9,32,16], index: 9, kind: input, shape index: {}]   ;;  %s16645_s10 = inlined_call_operand.vmem [shape: f32[1,16], index: 10, kind: input, shape index: {}]   ;;  %s16646_s11 = inlined_call_operand.vmem [shape: f32[32,8], index: 11, kind: input, shape index: {}]   ;;  %s16647_s12 = inlined_call_operand.vmem [shape: f32[8,32], index: 12, kind: input, shape index: {}]   ;;  %s16648_s13 = inlined_call_operand.hbm [shape: f32[32,32], index: 13, kind: output, shape index: {}]  }
   0x1   :  { %16671 = sst [smem:[#allocation30_spill]] %s16637_s2 }
   0x2   :  { %16672 = sst [smem:[#allocation31_spill]] %s16639_s4 }
   0x3   :  { %18 = vsyncpa [#allocation6], 0 }
   0x4   :  { %19 = vsyncpa [#allocation9], 0 }
   0x5   :  { %20 = vsyncpa [#allocation12], 0 }
   0x6   :  { %21 = vsyncpa [#allocation15], 0 }
   0x7   :  { %22 = vsyncpa [#allocation18], 0 }
   0x8   :  { %23 = vsyncpa [#allocation7], 0 }
   0x9   :  { %25 = vsyncpa [#allocation7 + $0x1], 0  ;;  %s14114_s25 = smov 0   ;;  %s14116_s26 = smov 0  }
   0xa   :  { %s14118_s27 = smov 0   ;;  %s14120_s28 = smov 0  }
   0xb LB: > { %16673 = sst [smem:[#allocation26_spill]] %s14022_s27  ;;  %s14135_s29 = sadd.s32 4294967295, %s14026_s28   ;;  %s14026_s28 = sphi %s14120_s28, %s17031_s28   ;;  %s14022_s27 = sphi %s14118_s27, %s17033_s27   ;;  %s14018_s26 = sphi %s14116_s26, %s17035_s26   ;;  %s14014_s25 = sphi %s14114_s25, %s17034_s25  }
   0xc   : > { %s11358_s30 = sadd.s32 4294967294, %s14026_s28   ;;  %s14139_s14 = sadd.s32 1, %s14026_s28  }
   0xd   : > { %16674 = sst [smem:[#allocation27_spill]] %s14139_s14  ;;  %s316_s15 = sadd.s32 1, %s14022_s27 }
   0xe   : > { %s313_s16 = ssub.s32 %s14026_s28, %s14139_s14  ;;  %p326_p0 = scmp.ne.s32.totalorder %s14022_s27, %s14018_s26 }
   0xf   : > { %p314_p1 = scmp.eq.s32.totalorder %s313_s16, 0  ;;  %p327_p2 = scmp.eq.s32.totalorder %s14135_s29, 1 }
  0x10   : > { %p332_p3 = scmp.ne.s32.totalorder %s14018_s26, %s14014_s25  ;;  %p333_p4 = scmp.eq.s32.totalorder %s11358_s30, 1 }
  0x11   : > { %s14150_s17 = scalar_select %p314_p1, %s14022_s27, %s316_s15  }
  0x12   : > { %p14152_p5 = por %p327_p2, %p326_p0  ;;  %p14156_p6 = por %p333_p4, %p332_p3 }
  0x13   : > { %16675 = sst [smem:[#allocation28_spill]] %s14150_s17  ;;  %p11359_p7 = scmp.ge.s32.totalorder %s14026_s28, 1 }
  0x14   : > { %s16676_s18 = scalar_select %p14152_p5, 1, 0 }
  0x15   : > { %s16677_s19 = scalar_select %p14156_p6, 1, 0 }
  0x16   : > { %p340_p8 = scmp.lt.s32.totalorder %s14026_s28, 3  ;;  %p16652_p9 = scmp.eq.s32.totalorder %s14135_s29, 0 }
  0x17   : > { %16678 = sst [smem:[#allocation29_spill]] %s16677_s19  ;;  %s14028_s21 = smov [#allocation8]  }
  0x18   : > { %p14163_p10 = pnand %p11359_p7, %p340_p8  ;;  %s366_s22 = sshll.u32 %s14028_s21, 4  ;;  %s367_s22 = int_to_ptr.vmem [resolvable:$true] %s366_s22 }
  0x19   : > { %s14029_s23 = smov [#allocation11]   ;;  %s14030_s15 = smov [#allocation14]  }
  0x1a   : > { %s16679_s20 = scalar_select %p14163_p10, 1, 0 }
  0x1b   : > { %p13547_p11 = pneg %p14163_p10  ;;  %s388_s24 = sshll.u32 %s14029_s23, 4  ;;  %s389_s24 = int_to_ptr.vmem [resolvable:$true] %s388_s24 }
  0x1c   : > { %s412_s16 = sshll.u32 %s14030_s15, 4  ;;  %s13749_s21 = scalar_lea.vmem %s367_s22, 16  ;;  %s14175_s16 = int_to_ptr.vmem [resolvable:$true] %s412_s16 }
  0x1d   : > { %p14171_p12 = pnand %p16652_p9, %p13547_p11  ;;  %p13750_p0 = scmp.ne.s32.totalorder %s367_s22, %s13749_s21 }
  0x1e   : > { %s13756_s23 = scalar_lea.vmem %s367_s22, 32  ;;  %p13757_p3 = scmp.lt.s32.totalorder %s367_s22, %s367_s22 }
  0x1f   : > { %p14179_p13 = pneg %p14171_p12  ;;  %p13758_p4 = scmp.lt.s32.totalorder %s13756_s23, %s13749_s21 }
  0x21   : > { %p13752_p1 = pnand %p13750_p0, %p14179_p13  ;;  %p13759_p7 = por %p13758_p4, %p13757_p3 }
  0x23   : > { %p13753_p2 = pneg %p13752_p1 }
  0x25   : > { %p13760_p8 = pnand %p13759_p7, %p13753_p2 }
  0x27   : > { %13763 = shalt.err (!%p13760_p8)
}
  0x28   : > { %s16682_s2 = sld [smem:[#allocation30_spill]]  ;;  %s13775_s14 = scalar_lea.vmem %s389_s24, 16 }
  0x29   : > { %p13776_p11 = scmp.ne.s32.totalorder %s389_s24, %s13775_s14  ;;  %s13782_s19 = scalar_lea.vmem %s389_s24, 32 }
  0x2a   : > { %p13783_p0 = scmp.lt.s32.totalorder %s389_s24, %s389_s24  ;;  %p13784_p1 = scmp.lt.s32.totalorder %s13782_s19, %s13775_s14 }
  0x2b   : > { %p13778_p9 = pnand %p13776_p11, %p14179_p13 }
  0x2c   : > { %p13785_p5 = por %p13784_p1, %p13783_p0 }
  0x2d   : > { %p13779_p6 = pneg %p13778_p9 }
  0x2e   : > { %13553 = dma.hbm_to_vmem [thread:$0]  (!%p14171_p12), %s16682_s2, 16, %s367_s22, [#allocation9]  }
  0x2f   : > { %p13786_p10 = pnand %p13785_p5, %p13779_p6 }
  0x31   : > { %13789 = shalt.err (!%p13786_p10)
}
  0x32   : > { %s16683_s4 = sld [smem:[#allocation31_spill]]  ;;  %s13801_s27 = scalar_lea.vmem %s14175_s16, 16 }
  0x33   : > { %p13802_p2 = scmp.ne.s32.totalorder %s14175_s16, %s13801_s27  ;;  %s13808_s14 = scalar_lea.vmem %s14175_s16, 32 }
  0x34   : > { %p13809_p5 = scmp.lt.s32.totalorder %s14175_s16, %s14175_s16  ;;  %p13810_p6 = scmp.lt.s32.totalorder %s13808_s14, %s13801_s27 }
  0x35   : > { %p13804_p9 = pnand %p13802_p2, %p14179_p13 }
  0x36   : > { %p13811_p10 = por %p13810_p6, %p13809_p5 }
  0x37   : > { %p13805_p3 = pneg %p13804_p9 }
  0x38   : > { %13559 = dma.hbm_to_vmem [thread:$0]  (!%p14171_p12), %s16683_s4, 16, %s389_s24, [#allocation12]  }
  0x39   : > { %p13812_p4 = pnand %p13811_p10, %p13805_p3 }
  0x3b   : > { %13815 = shalt.err (!%p13812_p4)
}
  0x3c   : > { %13565 = dma.hbm_to_vmem [thread:$0]  (!%p14171_p12), %s16641_s6, 16, %s14175_s16, [#allocation15]  }
  0x3d   : > { %s14031_s24 = smov [#allocation5]  }
  0x3e   : > { %s352_s15 = sshll.u32 %s14031_s24, 4  ;;  %s353_s15 = int_to_ptr.vmem [resolvable:$true] %s352_s15 }
  0x3f   : > { %s13827_s21 = scalar_lea.vmem %s353_s15, 6400  ;;  %p13835_p0 = scmp.lt.s32.totalorder %s353_s15, %s353_s15 }
  0x40   : > { %p13828_p7 = scmp.ne.s32.totalorder %s353_s15, %s13827_s21  ;;  %p13836_p1 = scmp.lt.s32.totalorder %s13827_s21, %s13827_s21 }
  0x42   : > { %p13830_p8 = pnand %p13828_p7, %p14179_p13  ;;  %p13837_p2 = por %p13836_p1, %p13835_p0 }
  0x44   : > { %p13831_p11 = pneg %p13830_p8 }
  0x46   : > { %p13838_p9 = pnand %p13837_p2, %p13831_p11 }
  0x48   : > { %13841 = shalt.err (!%p13838_p9)
}
  0x49   : > { %s14032_s23 = smov 64   ;;  %s14033_s27 = smov 4  }
  0x4a   : > { %13550 = dma.hbm_to_vmem [thread:$0]  (!%p14171_p12), %s16636_s1, 6400, %s353_s15, [#allocation6], %s14032_s23, %s14032_s23, %s14033_s27  }
  0x4b   : > { %s14034_s19 = smov [#allocation10]   ;;  %s14035_s24 = smov [#allocation13]  }
  0x4c   : > { %s377_s22 = sshll.u32 %s14034_s19, 4  ;;  %s398_s2 = sshll.u32 %s14035_s24, 4  ;;  %s378_s22 = int_to_ptr.vmem [resolvable:$true] %s377_s22  ;;  %s399_s2 = int_to_ptr.vmem [resolvable:$true] %s398_s2 }
  0x4d   : > { %s13853_s21 = scalar_lea.vmem %s378_s22, 16  ;;  %s13860_s4 = scalar_lea.vmem %s378_s22, 32 }
  0x4e   : > { %p13854_p3 = scmp.ne.s32.totalorder %s378_s22, %s13853_s21  ;;  %p13861_p10 = scmp.lt.s32.totalorder %s378_s22, %s378_s22 }
  0x4f   : > { %p13862_p4 = scmp.lt.s32.totalorder %s13860_s4, %s13853_s21 }
  0x50   : > { %p13856_p5 = pnand %p13854_p3, %p14179_p13 }
  0x51   : > { %p13863_p7 = por %p13862_p4, %p13861_p10 }
  0x52   : > { %p13857_p6 = pneg %p13856_p5 }
  0x54   : > { %p13864_p8 = pnand %p13863_p7, %p13857_p6 }
  0x56   : > { %13867 = shalt.err (!%p13864_p8)
}
  0x57   : > { %13556 = dma.hbm_to_vmem [thread:$0]  (!%p14171_p12), %s16638_s3, 16, %s378_s22, [#allocation9]  }
  0x58   : > { %s13879_s14 = scalar_lea.vmem %s399_s2, 2304  ;;  %p13887_p2 = scmp.lt.s32.totalorder %s399_s2, %s399_s2 }
  0x59   : > { %p13880_p11 = scmp.ne.s32.totalorder %s399_s2, %s13879_s14  ;;  %p13888_p9 = scmp.lt.s32.totalorder %s13879_s14, %s13879_s14 }
  0x5b   : > { %p13882_p0 = pnand %p13880_p11, %p14179_p13  ;;  %p13889_p3 = por %p13888_p9, %p13887_p2 }
  0x5d   : > { %p13883_p1 = pneg %p13882_p0 }
  0x5f   : > { %p13890_p5 = pnand %p13889_p3, %p13883_p1 }
  0x61   : > { %13893 = shalt.err (!%p13890_p5)
}
  0x62   : > { %13562 = dma.hbm_to_vmem [thread:$0]  (!%p14171_p12), %s16640_s5, 2304, %s399_s2, [#allocation12], %s14032_s23, %s14032_s23, %s14033_s27  }
  0x63   : > { %s14036_s22 = smov [#allocation16]   ;;  %s14037_s21 = smov [#allocation17]  }
  0x64   : > { %s423_s24 = sshll.u32 %s14036_s22, 4  ;;  %s434_s15 = sshll.u32 %s14037_s21, 4  ;;  %s424_s24 = int_to_ptr.vmem [resolvable:$true] %s423_s24  ;;  %s435_s15 = int_to_ptr.vmem [resolvable:$true] %s434_s15 }
  0x65   : > { %s13905_s16 = scalar_lea.vmem %s424_s24, 16  ;;  %s13912_s14 = scalar_lea.vmem %s424_s24, 32 }
  0x66   : > { %p13906_p6 = scmp.ne.s32.totalorder %s424_s24, %s13905_s16  ;;  %p13913_p7 = scmp.lt.s32.totalorder %s424_s24, %s424_s24 }
  0x67   : > { %p13914_p8 = scmp.lt.s32.totalorder %s13912_s14, %s13905_s16 }
  0x68   : > { %p13908_p10 = pnand %p13906_p6, %p14179_p13 }
  0x69   : > { %p13915_p11 = por %p13914_p8, %p13913_p7 }
  0x6a   : > { %p13909_p4 = pneg %p13908_p10 }
  0x6c   : > { %p13916_p0 = pnand %p13915_p11, %p13909_p4 }
  0x6e   : > { %13919 = shalt.err (!%p13916_p0)
}
  0x6f   : > { %13568 = dma.hbm_to_vmem [thread:$0]  (!%p14171_p12), %s16642_s7, 16, %s424_s24, [#allocation15]  }
  0x70   : > { %s13931_s27 = scalar_lea.vmem %s435_s15, 16  ;;  %s13938_s4 = scalar_lea.vmem %s435_s15, 32 }
  0x71   : > { %p13932_p1 = scmp.ne.s32.totalorder %s435_s15, %s13931_s27  ;;  %p13939_p3 = scmp.lt.s32.totalorder %s435_s15, %s435_s15 }
  0x72   : > { %p13940_p5 = scmp.lt.s32.totalorder %s13938_s4, %s13931_s27 }
  0x73   : > { %p13934_p2 = pnand %p13932_p1, %p14179_p13 }
  0x74   : > { %p13941_p6 = por %p13940_p5, %p13939_p3 }
  0x75   : > { %p13935_p9 = pneg %p13934_p2 }
  0x77   : > { %p13942_p10 = pnand %p13941_p6, %p13935_p9 }
  0x79   : > { %13945 = shalt.err (!%p13942_p10)
}
  0x7a   : > { %13571 = dma.hbm_to_vmem [thread:$0]  (!%p14171_p12), %s16643_s8, 16, %s435_s15, [#allocation18]  }
  0x7b   : > { %p16684_p4 = scmp.ne.s32.totalorder %s16679_s20, 0 }
  0x7c   : > { %p16685_p7 = scmp.eq.s32.totalorder (!%p16684_p4), %s14135_s29, 0 }
  0x7d   : > { %467 = sbr.rel (%p16684_p4) target bundleno = 3452 (0xd7c), region = 72 }
  0x82   : > { %13989 = dma.done.wait (%p16685_p7), [#allocation6], 6400   ;;  %p16686_p13 = pmov %p16685_p7 }
  0x83   : > { %p16687_p8 = pmov %p16685_p7 }
  0x84   : > { %13991 = vsyncadd (%p16686_p13), [#allocation6], 4294960896 }
  0x85   : > { %13993 = dma.done.wait (%p16687_p8), [#allocation9], 32   ;;  %p16688_p11 = pmov %p16685_p7 }
  0x86   : > { %p16689_p0 = pmov %p16685_p7 }
  0x87   : > { %13995 = vsyncadd (%p16688_p11), [#allocation9], 4294967264 }
  0x88   : > { %13997 = dma.done.wait (%p16689_p0), [#allocation12], 2320   ;;  %p16690_p12 = pmov %p16689_p0 }
  0x89   : > { %p16691_p1 = pmov %p16689_p0 }
  0x8a   : > { %13999 = vsyncadd (%p16690_p12), [#allocation12], 4294964976 }
  0x8b   : > { %14001 = dma.done.wait (%p16691_p1), [#allocation15], 32   ;;  %p16692_p2 = pmov %p16689_p0 }
  0x8c   : > { %p16693_p9 = pmov %p16689_p0 }
  0x8d   : > { %14003 = vsyncadd (%p16692_p2), [#allocation15], 4294967264 }
  0x8e   : > { %14005 = dma.done.wait (%p16693_p9), [#allocation18], 16   ;;  %p16694_p3 = pmov %p16689_p0 }
  0x8f   : > { %vm16659_vm0 = vcmask 261120   ;;  %p539_p5 = scmp.lt.s32.totalorder %s14135_s29, 1  ;;  %v14038_v0 = vmov 0.0   ;;  %v13640_v1 = vld [vmem:[#allocation5 + $0x8] sm:$0xff]   ;;  %v13641_v2 = vld [vmem:[#allocation5] sm:$0xff]   ;;  %v13643_v15 = vld [vmem:[#allocation5 + $0x18] sm:$0xff]  }
  0x90   : > { %14007 = vsyncadd (%p16694_p3), [#allocation18], 4294967280  ;;  %824 = vst.msk [vmem:[#allocation2 + $0x8] sm:$0xff] %vm16659_vm0, %v14038_v0  ;;  %12410 = vmatprep.subr.bf16.mxu0 %v13640_v1  ;;  %13509 = vmatprep.subr.bf16.mxu1 %v13640_v1  ;;  %v13642_v11 = vld [vmem:[#allocation5 + $0x28] sm:$0xff]   ;;  %v13645_v23 = vld [vmem:[#allocation5 + $0x20] sm:$0xff]   ;;  %vm16657_vm1 = vmmov 0  }
  0x91   : > { %825 = vst.msk [vmem:[#allocation2 + $0x10] sm:$0xff] %vm16659_vm0, %v14038_v0  ;;  %826 = vst.msk [vmem:[#allocation2 + $0x18] sm:$0xff] %vm16659_vm0, %v14038_v0  ;;  %s540_s17 = scalar_select %p539_p5, %s14135_s29, 1  ;;  %12411 = vmatpush3.bf16.msra.mxu0 %v13640_v1  ;;  %13511 = vmatpush3.bf16.msra.mxu1 %v13640_v1  ;;  %v13644_v28 = vld [vmem:[#allocation5 + $0x10] sm:$0xff]   ;;  %v13646_v42 = vld [vmem:[#allocation5 + $0x38] sm:$0xff]   ;;  %vm16656_vm5 = vcmask 64512  }
  0x92   : > { %827 = vst.msk [vmem:[#allocation2 + $0x20] sm:$0xff] %vm16659_vm0, %v14038_v0  ;;  %828 = vst.msk [vmem:[#allocation2 + $0x28] sm:$0xff] %vm16659_vm0, %v14038_v0  ;;  %12412 = vmatprep.subr.bf16.mxu0 %v13641_v2  ;;  %13510 = vmatprep.subr.bf16.mxu1 %v13641_v2  ;;  %v13647_v45 = vld [vmem:[#allocation5 + $0x48] sm:$0xff]   ;;  %v13648_v49 = vld [vmem:[#allocation5 + $0x30] sm:$0xff]   ;;  %s536_s4 = sand.u32 1, %s14018_s26   ;;  %p17028_p10 = scmp.ne.s32.totalorder %s16676_s18, 0 }
  0x93   : > { %829 = vst.msk [vmem:[#allocation2 + $0xb0] sm:$0xff] %vm16659_vm0, %v14038_v0  ;;  %830 = vst.msk [vmem:[#allocation2 + $0xb8] sm:$0xff] %vm16659_vm0, %v14038_v0  ;;  %s11864_s20 = sshll.u32 %s540_s17, 7  ;;  %s11378_s19 = sshll.u32 %s536_s4, 4 }
  0x94   : > { %831 = vst.msk [vmem:[#allocation2 + $0xc0] sm:$0xff] %vm16659_vm0, %v14038_v0  ;;  %832 = vst.msk [vmem:[#allocation2 + $0xc8] sm:$0xff] %vm16659_vm0, %v14038_v0  ;;  %s14298_s21 = scalar_lea.vmem %s16635_s0, %s11864_s20  ;;  %s538_s22 = scalar_lea.vmem [#allocation19], %s11378_s19 }
  0x95   : > { %833 = vst.msk [vmem:[#allocation2 + $0xd0] sm:$0xff] %vm16659_vm0, %v14038_v0  ;;  %v842_v8 = vld [vmem:[%s14298_s21 + $0x38] sm:$0xff]  ;;  %v843_v9 = vld [vmem:[%s14298_s21 + $0x40] sm:$0xff]  ;;  %v844_v10 = vld [vmem:[%s14298_s21 + $0x48] sm:$0xff]  ;;  %12413 = vmatpush3.bf16.msra.mxu0 %v13641_v2  ;;  %13512 = vmatpush3.bf16.msra.mxu1 %v13641_v2  ;;  %s11865_s17 = sshll.u32 %s14135_s29, 8  ;;  %s16595_s15 = scalar_lea.sflag [#allocation7], %s536_s4 }
  0x96   : > { %858 = vst.msk [vmem:[#allocation2 + $0x68] sm:$0xff] %vm16659_vm0, %v842_v8  ;;  %859 = vst.msk [vmem:[#allocation2 + $0x70] sm:$0xff] %vm16659_vm0, %v843_v9  ;;  %v845_v12 = vld [vmem:[%s14298_s21 + $0x50] sm:$0xff]  ;;  %v846_v13 = vld [vmem:[%s14298_s21 + $0x58] sm:$0xff]  ;;  %12450 = vmatprep.subr.bf16.mxu0 %v13642_v11  ;;  %12430 = vmatprep.subr.bf16.mxu1 %v13643_v15  ;;  %s16592_s24 = scalar_lea.hbm %s16648_s13, %s11865_s17  ;;  %s14041_s29 = smov [#allocation19]  }
  0x97   : > { %860 = vst.msk [vmem:[#allocation2 + $0x78] sm:$0xff] %vm16659_vm0, %v844_v10  ;;  %861 = vst.msk [vmem:[#allocation2 + $0x80] sm:$0xff] %vm16659_vm0, %v845_v12  ;;  %v835_v16 = vld [vmem:[%s14298_s21] sm:$0xff]  ;;  %v836_v17 = vld [vmem:[%s14298_s21 + $0x8] sm:$0xff]  ;;  %s13950_s14 = sshll.u32 %s14041_s29, 4  ;;  %s13951_s14 = int_to_ptr.vmem [resolvable:$false] %s13950_s14 }
  0x98   : > { %v867_v3 = vld [vmem:[#allocation2 + $0xe] sm:$0xff]  ;;  %v868_v4 = vld [vmem:[#allocation2 + $0x16] sm:$0xff]  ;;  %862 = vst.msk [vmem:[#allocation2 + $0x88] sm:$0xff] %vm16659_vm0, %v846_v13  ;;  %851 = vst.msk [vmem:[#allocation2 + $0x30] sm:$0xff] %vm16659_vm0, %v835_v16  ;;  %s13952_s2 = scalar_lea.vmem %s13951_s14, 512 }
  0x99   : > { %v869_v5 = vld [vmem:[#allocation2 + $0x1e] sm:$0xff]  ;;  %v883_v6 = vpack.c.bf16 %v868_v4, %v867_v3  ;;  %v870_v7 = vld [vmem:[#allocation2 + $0x26] sm:$0xff]  ;;  %v837_v18 = vld [vmem:[%s14298_s21 + $0x10] sm:$0xff]  ;;  %852 = vst.msk [vmem:[#allocation2 + $0x38] sm:$0xff] %vm16659_vm0, %v836_v17 }
  0x9a   : > { %v14309_v14 = vpack.c.bf16 %v870_v7, %v869_v5  ;;  %v838_v19 = vld [vmem:[%s14298_s21 + $0x18] sm:$0xff]  ;;  %853 = vst.msk [vmem:[#allocation2 + $0x40] sm:$0xff] %vm16659_vm0, %v837_v18  ;;  %v1044_v20 = vld [vmem:[#allocation2 + $0xf] sm:$0xff]  ;;  %v839_v31 = vld [vmem:[%s14298_s21 + $0x20] sm:$0xff] }
  0x9b   : > { %12414 = vmatprep.mubr.msk.bf16.mxu0 %vm16659_vm0, %v883_v6  ;;  %854 = vst.msk [vmem:[#allocation2 + $0x48] sm:$0xff] %vm16659_vm0, %v838_v19  ;;  %v1045_v21 = vld [vmem:[#allocation2 + $0x17] sm:$0xff]  ;;  %v840_v32 = vld [vmem:[%s14298_s21 + $0x28] sm:$0xff]  ;;  %855 = vst.msk [vmem:[#allocation2 + $0x50] sm:$0xff] %vm16659_vm0, %v839_v31 }
  0x9c   : > { %12415 = vmatmul.mubr.msk.bf16.vlgmr.msra.gmra.mxu0 %vm16659_vm0, %v14309_v14  ;;  %v1060_v29 = vpack.c.bf16 %v1045_v21, %v1044_v20  ;;  %v841_v33 = vld [vmem:[%s14298_s21 + $0x30] sm:$0xff]  ;;  %856 = vst.msk [vmem:[#allocation2 + $0x58] sm:$0xff] %vm16659_vm0, %v840_v32  ;;  %v1046_v39 = vld [vmem:[#allocation2 + $0x1f] sm:$0xff]  ;;  %v1047_v40 = vld [vmem:[#allocation2 + $0x27] sm:$0xff] }
  0x9d   : > { %v879_v22 = vld [vmem:[#allocation2 + $0x6e] sm:$0xff]  ;;  %12451 = vmatpush3.bf16.msra.mxu0 %v13642_v11  ;;  %857 = vst.msk [vmem:[#allocation2 + $0x60] sm:$0xff] %vm16659_vm0, %v841_v33  ;;  %v14346_v46 = vpack.c.bf16 %v1047_v40, %v1046_v39  ;;  %v1255_v48 = vld [vmem:[#allocation2 + $0x18] sm:$0xff]  ;;  %v1256_v63 = vld [vmem:[#allocation2 + $0x20] sm:$0xff] }
  0x9e   : > { %v880_v24 = vld [vmem:[#allocation2 + $0x76] sm:$0xff]  ;;  %v881_v26 = vld [vmem:[#allocation2 + $0x7e] sm:$0xff]  ;;  %12452 = vmatprep.subr.bf16.mxu0 %v13645_v23  ;;  %v1257_v2 = vld [vmem:[#allocation2 + $0x28] sm:$0xff] }
  0x9f   : > { %v14323_v25 = vpack.c.bf16 %v880_v24, %v879_v22  ;;  %v882_v27 = vld [vmem:[#allocation2 + $0x86] sm:$0xff]  ;;  %v871_v34 = vld [vmem:[#allocation2 + $0x2e] sm:$0xff]  ;;  %v14367_v5 = vld [vmem:[#allocation5 + $0x58] sm:$0xff]   ;;  %v14371_v6 = vpack.c.bf16 %v1257_v2, %v1256_v63 }
  0xa0   : > { %v14325_v30 = vpack.c.bf16 %v882_v27, %v881_v26  ;;  %v872_v35 = vld [vmem:[#allocation2 + $0x36] sm:$0xff]  ;;  %v13649_v12 = vld [vmem:[#allocation5 + $0x40] sm:$0xff]   ;;  %v14386_v20 = vld [vmem:[#allocation5 + $0x68] sm:$0xff]  }
  0xa1   : > { %12426 = vmatprep.mubr.msk.bf16.mxu1 %vm16659_vm0, %v14323_v25  ;;  %12453 = vmatpush3.bf16.msra.mxu0 %v13645_v23  ;;  %v873_v36 = vld [vmem:[#allocation2 + $0x3e] sm:$0xff]  ;;  %v14337_v37 = vpack.c.bf16 %v872_v35, %v871_v34  ;;  %v1048_v43 = vld [vmem:[#allocation2 + $0x2f] sm:$0xff]  ;;  %v1059_v24 = vld [vmem:[#allocation2 + $0x87] sm:$0xff] }
  0xa2   : > { %12427 = vmatmul.mubr.msk.bf16.vlgmr.msra.gmra.mxu1 %vm16659_vm0, %v14325_v30  ;;  %v874_v38 = vld [vmem:[#allocation2 + $0x46] sm:$0xff]  ;;  %v1049_v44 = vld [vmem:[#allocation2 + $0x37] sm:$0xff]  ;;  %12490 = vmatprep.subr.bf16.mxu0 %v13647_v45  ;;  %v875_v50 = vld [vmem:[#allocation2 + $0x4e] sm:$0xff] }
  0xa3   : > { %12431 = vmatpush3.bf16.msra.mxu1 %v13643_v15  ;;  %12434 = vmatprep.mubr.msk.bf16.mxu1 %vm16659_vm0, %v1060_v29  ;;  %v14340_v41 = vpack.c.bf16 %v874_v38, %v873_v36  ;;  %v1254_v47 = vld [vmem:[#allocation2 + $0x10] sm:$0xff]  ;;  %v14348_v53 = vpack.c.bf16 %v1049_v44, %v1048_v43  ;;  %v1050_v57 = vld [vmem:[#allocation2 + $0x3f] sm:$0xff]  ;;  %v1051_v58 = vld [vmem:[#allocation2 + $0x47] sm:$0xff] }
  0xa4   : > { %12432 = vmatprep.subr.bf16.mxu1 %v13644_v28  ;;  %12418 = vmatprep.mubr.msk.bf16.mxu0 %vm16659_vm0, %v14337_v37  ;;  %v876_v51 = vld [vmem:[#allocation2 + $0x56] sm:$0xff]  ;;  %v877_v52 = vld [vmem:[#allocation2 + $0x5e] sm:$0xff]  ;;  %v878_v55 = vld [vmem:[#allocation2 + $0x66] sm:$0xff]  ;;  %v1270_v59 = vpack.c.bf16 %v1255_v48, %v1254_v47  ;;  %v14362_v62 = vpack.c.bf16 %v1051_v58, %v1050_v57 }
  0xa5   : > { %12419 = vmatmul.mubr.msk.bf16.gmra.mxu0 %vm16659_vm0, %v14340_v41  ;;  %v14350_v54 = vpack.c.bf16 %v876_v51, %v875_v50  ;;  %v14354_v56 = vpack.c.bf16 %v878_v55, %v877_v52  ;;  %v1052_v60 = vld [vmem:[#allocation2 + $0x4f] sm:$0xff]  ;;  %v1053_v61 = vld [vmem:[#allocation2 + $0x57] sm:$0xff]  ;;  %v1054_v7 = vld [vmem:[#allocation2 + $0x5f] sm:$0xff] }
  0xa6   : > { %v14365_v1 = vpack.c.bf16 %v1053_v61, %v1052_v60  ;;  %v1258_v3 = vld [vmem:[#allocation2 + $0x30] sm:$0xff]  ;;  %v1259_v4 = vld [vmem:[#allocation2 + $0x38] sm:$0xff]  ;;  %v1055_v8 = vld [vmem:[#allocation2 + $0x67] sm:$0xff] }
  0xa7   : > { %12433 = vmatpush3.bf16.msra.mxu1 %v13644_v28  ;;  %12422 = vmatprep.mubr.msk.bf16.mxu0 %vm16659_vm0, %v14350_v54  ;;  %v14376_v9 = vpack.c.bf16 %v1259_v4, %v1258_v3  ;;  %v1056_v10 = vld [vmem:[#allocation2 + $0x6f] sm:$0xff]  ;;  %v1057_v11 = vld [vmem:[#allocation2 + $0x77] sm:$0xff]  ;;  %v14380_v13 = vpack.c.bf16 %v1055_v8, %v1054_v7  ;;  %v1260_v15 = vld [vmem:[#allocation2 + $0x40] sm:$0xff] }
  0xa8   : > { %12470 = vmatprep.subr.bf16.mxu1 %v13646_v42  ;;  %v14384_v16 = vpack.c.bf16 %v1057_v11, %v1056_v10  ;;  %v1261_v17 = vld [vmem:[#allocation2 + $0x48] sm:$0xff]  ;;  %v1262_v18 = vld [vmem:[#allocation2 + $0x50] sm:$0xff]  ;;  %v1263_v19 = vld [vmem:[#allocation2 + $0x58] sm:$0xff] }
  0xa9   : > { %v14390_v21 = vpack.c.bf16 %v1261_v17, %v1260_v15  ;;  %v847_v22 = vld [vmem:[%s14298_s21 + $0x60] sm:$0xff]  ;;  %v14395_v26 = vpack.c.bf16 %v1263_v19, %v1262_v18  ;;  %v1464_v27 = vld [vmem:[#allocation2 + $0x11] sm:$0xff]  ;;  %v1265_v32 = vld [vmem:[#allocation2 + $0x68] sm:$0xff] }
  0xaa   : > { %12435 = vmatmul.mubr.msk.bf16.vlgmr.msra.gmra.mxu1 %vm16659_vm0, %v14346_v46  ;;  %v1058_v23 = vld [vmem:[#allocation2 + $0x7f] sm:$0xff]  ;;  %863 = vst.msk [vmem:[#allocation2 + $0x90] sm:$0xff] %vm16659_vm0, %v847_v22  ;;  %v1266_v34 = vld [vmem:[#allocation2 + $0x70] sm:$0xff]  ;;  %v848_v36 = vld [vmem:[%s14298_s21 + $0x68] sm:$0xff] }
  0xab   : > { %12471 = vmatpush3.bf16.msra.mxu1 %v13646_v42  ;;  %12438 = vmatprep.mubr.msk.bf16.mxu1 %vm16659_vm0, %v14348_v53  ;;  %v1465_v28 = vld [vmem:[#allocation2 + $0x19] sm:$0xff]  ;;  %v14401_v29 = vpack.c.bf16 %v1059_v24, %v1058_v23  ;;  %v1466_v39 = vld [vmem:[#allocation2 + $0x21] sm:$0xff]  ;;  %864 = vst.msk [vmem:[#allocation2 + $0x98] sm:$0xff] %vm16659_vm0, %v848_v36  ;;  %v1467_v40 = vld [vmem:[#allocation2 + $0x29] sm:$0xff] }
  0xac   : > { %12472 = vmatprep.subr.bf16.mxu1 %v13648_v49  ;;  %v1264_v31 = vld [vmem:[#allocation2 + $0x60] sm:$0xff]  ;;  %v1480_v33 = vpack.c.bf16 %v1465_v28, %v1464_v27  ;;  %v1267_v35 = vld [vmem:[#allocation2 + $0x78] sm:$0xff]  ;;  %v1269_v47 = vld [vmem:[#allocation2 + $0x88] sm:$0xff]  ;;  %v14416_v48 = vpack.c.bf16 %v1467_v40, %v1466_v39 }
  0xad   : > { %12423 = vmatmul.mubr.msk.bf16.gmra.mxu0 %vm16659_vm0, %v14354_v56  ;;  %v14408_v38 = vpack.c.bf16 %v1265_v32, %v1264_v31  ;;  %v14412_v42 = vpack.c.bf16 %v1267_v35, %v1266_v34  ;;  %v1468_v43 = vld [vmem:[#allocation2 + $0x31] sm:$0xff]  ;;  %v1469_v44 = vld [vmem:[#allocation2 + $0x39] sm:$0xff]  ;;  %v1470_v55 = vld [vmem:[#allocation2 + $0x41] sm:$0xff] }
  0xae   : > { %12454 = vmatprep.mubr.msk.bf16.mxu0 %vm16659_vm0, %v1270_v59  ;;  %v14420_v50 = vpack.c.bf16 %v1469_v44, %v1468_v43  ;;  %v1675_v51 = vld [vmem:[#allocation2 + $0x1a] sm:$0xff]  ;;  %v13652_v52 = vld [vmem:[#allocation5 + $0x50] sm:$0xff]   ;;  %v1676_v3 = vld [vmem:[#allocation2 + $0x22] sm:$0xff] }
  0xaf   : > { %12473 = vmatpush3.bf16.msra.mxu1 %v13648_v49  ;;  %v1674_v49 = vld [vmem:[#allocation2 + $0x12] sm:$0xff]  ;;  %v1471_v58 = vld [vmem:[#allocation2 + $0x49] sm:$0xff]  ;;  %v1679_v10 = vld [vmem:[#allocation2 + $0x3a] sm:$0xff] }
  0xb0   : > { %12510 = vmatprep.subr.bf16.mxu1 %v14367_v5  ;;  %v1472_v59 = vld [vmem:[#allocation2 + $0x51] sm:$0xff]  ;;  %v1690_v61 = vpack.c.bf16 %v1675_v51, %v1674_v49  ;;  %v1473_v63 = vld [vmem:[#allocation2 + $0x59] sm:$0xff]  ;;  %v14433_v7 = vpack.c.bf16 %v1471_v58, %v1470_v55  ;;  %v1475_v15 = vld [vmem:[#allocation2 + $0x69] sm:$0xff] }
  0xb1   : > { %v849_v60 = vld [vmem:[%s14298_s21 + $0x70] sm:$0xff]  ;;  %v13654_v2 = vld [vmem:[#allocation5 + $0x78] sm:$0xff]   ;;  %v13653_v22 = vld [vmem:[#allocation5 + $0x60] sm:$0xff]  }
  0xb2   : > { %12439 = vmatmul.mubr.msk.bf16.gmra.mxu1 %vm16659_vm0, %v14362_v62  ;;  %865 = vst.msk [vmem:[#allocation2 + $0xa0] sm:$0xff] %vm16659_vm0, %v849_v60  ;;  %v1677_v4 = vld [vmem:[#allocation2 + $0x2a] sm:$0xff]  ;;  %v1678_v8 = vld [vmem:[#allocation2 + $0x32] sm:$0xff]  ;;  %v1680_v24 = vld [vmem:[#allocation2 + $0x42] sm:$0xff] }
  0xb3   : > { %12442 = vmatprep.mubr.msk.bf16.mxu1 %vm16659_vm0, %v14365_v1  ;;  %v850_v11 = vld [vmem:[%s14298_s21 + $0x78] sm:$0xff]  ;;  %v14442_v17 = vpack.c.bf16 %v1677_v4, %v1676_v3  ;;  %v14446_v23 = vpack.c.bf16 %v1679_v10, %v1678_v8  ;;  %v1681_v27 = vld [vmem:[#allocation2 + $0x4a] sm:$0xff]  ;;  %v1478_v35 = vld [vmem:[#allocation2 + $0x81] sm:$0xff] }
  0xb4   : > { %866 = vst.msk [vmem:[#allocation2 + $0xa8] sm:$0xff] %vm16659_vm0, %v850_v11  ;;  %v1476_v18 = vld [vmem:[#allocation2 + $0x71] sm:$0xff]  ;;  %v1477_v19 = vld [vmem:[#allocation2 + $0x79] sm:$0xff]  ;;  %v13655_v34 = vld [vmem:[#allocation5 + $0x88] sm:$0xff]   ;;  %v14459_v36 = vpack.c.bf16 %v1681_v27, %v1680_v24 }
  0xb5   : > { %12455 = vmatmul.mubr.msk.bf16.vlgmr.msra.gmra.mxu0 %vm16659_vm0, %v14371_v6  ;;  %v1682_v31 = vld [vmem:[#allocation2 + $0x52] sm:$0xff]  ;;  %v1683_v32 = vld [vmem:[#allocation2 + $0x5a] sm:$0xff]  ;;  %v1479_v39 = vld [vmem:[#allocation2 + $0x89] sm:$0xff] }
  0xb6   : > { %12491 = vmatpush3.bf16.msra.mxu0 %v13647_v45  ;;  %12458 = vmatprep.mubr.msk.bf16.mxu0 %vm16659_vm0, %v14376_v9  ;;  %v1268_v45 = vld [vmem:[#allocation2 + $0x80] sm:$0xff]  ;;  %v14463_v40 = vpack.c.bf16 %v1683_v32, %v1682_v31  ;;  %v1685_v43 = vld [vmem:[#allocation2 + $0x6a] sm:$0xff]  ;;  %v14467_v44 = vpack.c.bf16 %v1479_v39, %v1478_v35  ;;  %v13658_v60 = vld [vmem:[#allocation5 + $0x98] sm:$0xff]  }
  0xb7   : > { %12492 = vmatprep.subr.bf16.mxu0 %v13649_v12  ;;  %v14424_v57 = vpack.c.bf16 %v1269_v47, %v1268_v45  ;;  %v1686_v45 = vld [vmem:[#allocation2 + $0x72] sm:$0xff]  ;;  %v1687_v47 = vld [vmem:[#allocation2 + $0x7a] sm:$0xff]  ;;  %v1689_v55 = vld [vmem:[#allocation2 + $0x8a] sm:$0xff] }
  0xb8   : > { %v14477_v51 = vpack.c.bf16 %v1687_v47, %v1686_v45  ;;  %v13656_v58 = vld [vmem:[#allocation5 + $0x70] sm:$0xff]   ;;  %v13661_v11 = vld [vmem:[#allocation5 + $0xa0] sm:$0xff]   ;;  %v13667_v32 = vld [vmem:[#allocation5 + $0xe8] sm:$0xff]  }
  0xb9   : > { %v2108_v3 = vld [vmem:[#allocation2 + $0x8f] sm:$0xff]  ;;  %v2109_v4 = vld [vmem:[#allocation2 + $0x97] sm:$0xff]  ;;  %v13665_v31 = vld [vmem:[#allocation5 + $0xc0] sm:$0xff]  }
  0xba   : > { %12443 = vmatmul.mubr.msk.bf16.gmra.mxu1 %vm16659_vm0, %v14380_v13  ;;  %12493 = vmatpush3.bf16.msra.mxu0 %v13649_v12  ;;  %v1474_v12 = vld [vmem:[#allocation2 + $0x61] sm:$0xff]  ;;  %v13660_v8 = vld [vmem:[#allocation5 + $0x90] sm:$0xff]   ;;  %v14521_v10 = vpack.c.bf16 %v2109_v4, %v2108_v3 }
  0xbb   : > { %12446 = vmatprep.mubr.msk.bf16.mxu1 %vm16659_vm0, %v14384_v16  ;;  %12530 = vmatprep.subr.bf16.mxu0 %v14386_v20  ;;  %v14450_v28 = vpack.c.bf16 %v1475_v15, %v1474_v12  ;;  %v13663_v12 = vld [vmem:[#allocation5 + $0xc8] sm:$0xff]   ;;  %v2319_v15 = vld [vmem:[#allocation2 + $0x98] sm:$0xff]  ;;  %v13664_v24 = vld [vmem:[#allocation5 + $0xb0] sm:$0xff]  }
  0xbc   : > { %v2949_v35 = vld [vmem:[#allocation2 + $0xa6] sm:$0xff] }
  0xbd   : > { %12459 = vmatmul.mubr.msk.bf16.gmra.mxu0 %vm16659_vm0, %v14390_v21  ;;  %v3369_v45 = vld [vmem:[#allocation2 + $0xa8] sm:$0xff] }
  0xbe   : > { %12462 = vmatprep.mubr.msk.bf16.mxu0 %vm16659_vm0, %v14395_v26 }
  0xc2   : > { %12447 = vmatmul.mubr.msk.bf16.gmra.mxu1 %vm16659_vm0, %v14401_v29 }
  0xc3   : > { %12474 = vmatprep.mubr.msk.bf16.mxu1 %vm16659_vm0, %v1480_v33  ;;  %v14455_v33 = vpack.c.bf16 %v1477_v19, %v1476_v18  ;;  %v2528_v19 = vld [vmem:[#allocation2 + $0x91] sm:$0xff] }
  0xc5   : > { %12463 = vmatmul.mubr.msk.bf16.gmra.mxu0 %vm16659_vm0, %v14408_v38 }
  0xc6   : > { %12466 = vmatprep.mubr.msk.bf16.mxu0 %vm16659_vm0, %v14412_v42 }
  0xca   : > { %12475 = vmatmul.mubr.msk.bf16.vlgmr.msra.gmra.mxu1 %vm16659_vm0, %v14416_v48 }
  0xcb   : > { %12511 = vmatpush3.bf16.msra.mxu1 %v14367_v5  ;;  %12478 = vmatprep.mubr.msk.bf16.mxu1 %vm16659_vm0, %v14420_v50  ;;  %v14436_v5 = vpack.c.bf16 %v1473_v63, %v1472_v59  ;;  %v1899_v63 = vld [vmem:[#allocation2 + $0x96] sm:$0xff] }
  0xcc   : > { %12512 = vmatprep.subr.bf16.mxu1 %v13652_v52 }
  0xcd   : > { %12467 = vmatmul.mubr.msk.bf16.gmra.mxu0 %vm16659_vm0, %v14424_v57 }
  0xce   : > { %12494 = vmatprep.mubr.msk.bf16.mxu0 %vm16659_vm0, %v1690_v61  ;;  %v13659_v61 = vld [vmem:[#allocation5 + $0xa8] sm:$0xff]  }
  0xcf   : > { %12513 = vmatpush3.bf16.msra.mxu1 %v13652_v52  ;;  %v1688_v52 = vld [vmem:[#allocation2 + $0x82] sm:$0xff] }
  0xd0   : > { %12550 = vmatprep.subr.bf16.mxu1 %v13654_v2  ;;  %v14485_v59 = vpack.c.bf16 %v1689_v55, %v1688_v52 }
  0xd2   : > { %12479 = vmatmul.mubr.msk.bf16.gmra.mxu1 %vm16659_vm0, %v14433_v7 }
  0xd3   : > { %12482 = vmatprep.mubr.msk.bf16.mxu1 %vm16659_vm0, %v14436_v5 }
  0xd5   : > { %12495 = vmatmul.mubr.msk.bf16.vlgmr.msra.gmra.mxu0 %vm16659_vm0, %v14442_v17 }
  0xd6   : > { %12531 = vmatpush3.bf16.msra.mxu0 %v14386_v20  ;;  %12498 = vmatprep.mubr.msk.bf16.mxu0 %vm16659_vm0, %v14446_v23  ;;  %v1684_v20 = vld [vmem:[#allocation2 + $0x62] sm:$0xff] }
  0xd7   : > { %12532 = vmatprep.subr.bf16.mxu0 %v13653_v22  ;;  %v14473_v49 = vpack.c.bf16 %v1685_v43, %v1684_v20  ;;  %v3368_v43 = vld [vmem:[#allocation2 + $0xa0] sm:$0xff] }
  0xd8   : > { %v3377_v55 = vpack.c.bf16 %v3369_v45, %v3368_v43  ;;  %v3984_v45 = vld [vmem:[#allocation2 + $0x3e] sm:$0xff] }
  0xda   : > { %12483 = vmatmul.mubr.msk.bf16.gmra.mxu1 %vm16659_vm0, %v14450_v28  ;;  %12533 = vmatpush3.bf16.msra.mxu0 %v13653_v22  ;;  %v2529_v22 = vld [vmem:[#allocation2 + $0x99] sm:$0xff] }
  0xdb   : > { %12486 = vmatprep.mubr.msk.bf16.mxu1 %vm16659_vm0, %v14455_v33  ;;  %12570 = vmatprep.subr.bf16.mxu0 %v13655_v34  ;;  %v14557_v27 = vpack.c.bf16 %v2529_v22, %v2528_v19  ;;  %v13673_v19 = vld [vmem:[#allocation5 + $0x100] sm:$0xff]  }
  0xdd   : > { %12499 = vmatmul.mubr.msk.bf16.gmra.mxu0 %vm16659_vm0, %v14459_v36 }
  0xde   : > { %12502 = vmatprep.mubr.msk.bf16.mxu0 %vm16659_vm0, %v14463_v40 }
  0xe2   : > { %12487 = vmatmul.mubr.msk.bf16.gmra.mxu1 %vm16659_vm0, %v14467_v44 }
  0xe3   : > { %12514 = vmatprep.mubr.msk.bf16.mxu1 %vm16659_vm0, %v14309_v14  ;;  %v13657_v14 = vld [vmem:[#allocation5 + $0x80] sm:$0xff]  }
  0xe5   : > { %12503 = vmatmul.mubr.msk.bf16.gmra.mxu0 %vm16659_vm0, %v14473_v49 }
  0xe6   : > { %12506 = vmatprep.mubr.msk.bf16.mxu0 %vm16659_vm0, %v14477_v51 }
  0xea   : > { %12515 = vmatmul.mubr.msk.bf16.vlgmr.msra.gmra.mxu1 %vm16659_vm0, %v14337_v37 }
  0xeb   : > { %12551 = vmatpush3.bf16.msra.mxu1 %v13654_v2  ;;  %12518 = vmatprep.mubr.msk.bf16.mxu1 %vm16659_vm0, %v14340_v41 }
  0xec   : > { %12552 = vmatprep.subr.bf16.mxu1 %v13656_v58 }
  0xed   : > { %12507 = vmatmul.mubr.msk.bf16.gmra.mxu0 %vm16659_vm0, %v14485_v59 }
  0xee   : > { %12534 = vmatprep.mubr.msk.bf16.mxu0 %vm16659_vm0, %v14346_v46  ;;  %v1898_v46 = vld [vmem:[#allocation2 + $0x8e] sm:$0xff] }
  0xef   : > { %12553 = vmatpush3.bf16.msra.mxu1 %v13656_v58  ;;  %v14507_v2 = vpack.c.bf16 %v1899_v63, %v1898_v46 }
  0xf0   : > { %12590 = vmatprep.subr.bf16.mxu1 %v13658_v60 }
  0xf2   : > { %12519 = vmatmul.mubr.msk.bf16.gmra.mxu1 %vm16659_vm0, %v14350_v54 }
  0xf3   : > { %12522 = vmatprep.mubr.msk.bf16.mxu1 %vm16659_vm0, %v14354_v56 }
  0xf5   : > { %12535 = vmatmul.mubr.msk.bf16.vlgmr.msra.gmra.mxu0 %vm16659_vm0, %v14348_v53 }
  0xf6   : > { %12571 = vmatpush3.bf16.msra.mxu0 %v13655_v34  ;;  %12538 = vmatprep.mubr.msk.bf16.mxu0 %vm16659_vm0, %v14362_v62  ;;  %v2739_v34 = vld [vmem:[#allocation2 + $0x9a] sm:$0xff] }
  0xf7   : > { %12572 = vmatprep.subr.bf16.mxu0 %v13657_v14 }
  0xfa   : > { %12523 = vmatmul.mubr.msk.bf16.gmra.mxu1 %vm16659_vm0, %v14323_v25  ;;  %12573 = vmatpush3.bf16.msra.mxu0 %v13657_v14 }
  0xfb   : > { %12526 = vmatprep.mubr.msk.bf16.mxu1 %vm16659_vm0, %v14325_v30  ;;  %12610 = vmatprep.subr.bf16.mxu0 %v13659_v61 }
  0xfd   : > { %12539 = vmatmul.mubr.msk.bf16.gmra.mxu0 %vm16659_vm0, %v14365_v1 }
  0xfe   : > { %12542 = vmatprep.mubr.msk.bf16.mxu0 %vm16659_vm0, %v14380_v13 }
 0x102   : > { %12527 = vmatmul.mubr.msk.bf16.gmra.mxu1 %vm16659_vm0, %v14507_v2 }
 0x103   : > { %12554 = vmatprep.mubr.msk.bf16.mxu1 %vm16659_vm0, %v14371_v6  ;;  %v13662_v6 = vld [vmem:[#allocation5 + $0xb8] sm:$0xff]  }
 0x105   : > { %12543 = vmatmul.mubr.msk.bf16.gmra.mxu0 %vm16659_vm0, %v14384_v16 }
 0x106   : > { %12546 = vmatprep.mubr.msk.bf16.mxu0 %vm16659_vm0, %v14401_v29 }
 0x10a   : > { %12555 = vmatmul.mubr.msk.bf16.vlgmr.msra.gmra.mxu1 %vm16659_vm0, %v14376_v9 }
 0x10b   : > { %12591 = vmatpush3.bf16.msra.mxu1 %v13658_v60  ;;  %12558 = vmatprep.mubr.msk.bf16.mxu1 %vm16659_vm0, %v14390_v21 }
 0x10c   : > { %12592 = vmatprep.subr.bf16.mxu1 %v13660_v8 }
 0x10d   : > { %12547 = vmatmul.mubr.msk.bf16.gmra.mxu0 %vm16659_vm0, %v14521_v10 }
 0x10e   : > { %12574 = vmatprep.mubr.msk.bf16.mxu0 %vm16659_vm0, %v14416_v48  ;;  %v2318_v48 = vld [vmem:[#allocation2 + $0x90] sm:$0xff] }
 0x10f   : > { %12593 = vmatpush3.bf16.msra.mxu1 %v13660_v8  ;;  %v14543_v18 = vpack.c.bf16 %v2319_v15, %v2318_v48 }
 0x110   : > { %12630 = vmatprep.subr.bf16.mxu1 %v13662_v6 }
 0x112   : > { %12559 = vmatmul.mubr.msk.bf16.gmra.mxu1 %vm16659_vm0, %v14395_v26 }
 0x113   : > { %12562 = vmatprep.mubr.msk.bf16.mxu1 %vm16659_vm0, %v14408_v38 }
 0x115   : > { %12575 = vmatmul.mubr.msk.bf16.vlgmr.msra.gmra.mxu0 %vm16659_vm0, %v14420_v50 }
 0x116   : > { %12611 = vmatpush3.bf16.msra.mxu0 %v13659_v61  ;;  %12578 = vmatprep.mubr.msk.bf16.mxu0 %vm16659_vm0, %v14433_v7  ;;  %v14645_v61 = vld [vmem:[#allocation5 + $0x118] sm:$0xff]  }
 0x117   : > { %12612 = vmatprep.subr.bf16.mxu0 %v13661_v11 }
 0x11a   : > { %12563 = vmatmul.mubr.msk.bf16.gmra.mxu1 %vm16659_vm0, %v14412_v42  ;;  %12613 = vmatpush3.bf16.msra.mxu0 %v13661_v11 }
 0x11b   : > { %12566 = vmatprep.mubr.msk.bf16.mxu1 %vm16659_vm0, %v14424_v57  ;;  %12650 = vmatprep.subr.bf16.mxu0 %v13663_v12 }
 0x11d   : > { %12579 = vmatmul.mubr.msk.bf16.gmra.mxu0 %vm16659_vm0, %v14436_v5 }
 0x11e   : > { %12582 = vmatprep.mubr.msk.bf16.mxu0 %vm16659_vm0, %v14450_v28 }
 0x122   : > { %12567 = vmatmul.mubr.msk.bf16.gmra.mxu1 %vm16659_vm0, %v14543_v18 }
 0x123   : > { %12594 = vmatprep.mubr.msk.bf16.mxu1 %vm16659_vm0, %v14442_v17  ;;  %v13666_v17 = vld [vmem:[#allocation5 + $0xd8] sm:$0xff]  }
 0x125   : > { %12583 = vmatmul.mubr.msk.bf16.gmra.mxu0 %vm16659_vm0, %v14455_v33 }
 0x126   : > { %12586 = vmatprep.mubr.msk.bf16.mxu0 %vm16659_vm0, %v14467_v44 }
 0x12a   : > { %12595 = vmatmul.mubr.msk.bf16.vlgmr.msra.gmra.mxu1 %vm16659_vm0, %v14446_v23 }
 0x12b   : > { %12631 = vmatpush3.bf16.msra.mxu1 %v13662_v6  ;;  %12598 = vmatprep.mubr.msk.bf16.mxu1 %vm16659_vm0, %v14459_v36 }
 0x12c   : > { %12632 = vmatprep.subr.bf16.mxu1 %v13664_v24 }
 0x12d   : > { %12587 = vmatmul.mubr.msk.bf16.gmra.mxu0 %vm16659_vm0, %v14557_v27 }
 0x12e   : > { %12614 = vmatprep.mubr.msk.bf16.mxu0 %vm16659_vm0, %v14337_v37  ;;  %v2738_v37 = vld [vmem:[#allocation2 + $0x92] sm:$0xff] }
 0x12f   : > { %12633 = vmatpush3.bf16.msra.mxu1 %v13664_v24 }
 0x130   : > { %12670 = vmatprep.subr.bf16.mxu1 %v13666_v17 }
 0x132   : > { %12599 = vmatmul.mubr.msk.bf16.gmra.mxu1 %vm16659_vm0, %v14463_v40 }
 0x133   : > { %12602 = vmatprep.mubr.msk.bf16.mxu1 %vm16659_vm0, %v14473_v49 }
 0x135   : > { %12615 = vmatmul.mubr.msk.bf16.vlgmr.msra.gmra.mxu0 %vm16659_vm0, %v14340_v41  ;;  %v14579_v41 = vpack.c.bf16 %v2739_v34, %v2738_v37  ;;  %v3781_v34 = vld [vmem:[#allocation2 + $0x6a] sm:$0xff] }
 0x136   : > { %12651 = vmatpush3.bf16.msra.mxu0 %v13663_v12  ;;  %12618 = vmatprep.mubr.msk.bf16.mxu0 %vm16659_vm0, %v14350_v54  ;;  %v2948_v54 = vld [vmem:[#allocation2 + $0x9e] sm:$0xff] }
 0x137   : > { %12652 = vmatprep.subr.bf16.mxu0 %v13665_v31  ;;  %v14593_v39 = vpack.c.bf16 %v2949_v35, %v2948_v54  ;;  %v3782_v54 = vld [vmem:[#allocation2 + $0x72] sm:$0xff]  ;;  %v3783_v35 = vld [vmem:[#allocation2 + $0x7a] sm:$0xff] }
 0x138   : > { %v14681_v43 = vpack.c.bf16 %v3783_v35, %v3782_v54 }
 0x13a   : > { %12603 = vmatmul.mubr.msk.bf16.gmra.mxu1 %vm16659_vm0, %v14477_v51  ;;  %12653 = vmatpush3.bf16.msra.mxu0 %v13665_v31 }
 0x13b   : > { %12606 = vmatprep.mubr.msk.bf16.mxu1 %vm16659_vm0, %v14485_v59  ;;  %12690 = vmatprep.subr.bf16.mxu0 %v13667_v32 }
 0x13d   : > { %12619 = vmatmul.mubr.msk.bf16.gmra.mxu0 %vm16659_vm0, %v14354_v56  ;;  %v13668_v56 = vld [vmem:[#allocation5 + $0xd0] sm:$0xff]  }
 0x13e   : > { %12622 = vmatprep.mubr.msk.bf16.mxu0 %vm16659_vm0, %v14323_v25  ;;  %v13670_v25 = vld [vmem:[#allocation5 + $0xf8] sm:$0xff]  }
 0x142   : > { %12607 = vmatmul.mubr.msk.bf16.gmra.mxu1 %vm16659_vm0, %v14579_v41 }
 0x143   : > { %12634 = vmatprep.mubr.msk.bf16.mxu1 %vm16659_vm0, %v14348_v53  ;;  %v14609_v53 = vld [vmem:[#allocation5 + $0x108] sm:$0xff]  }
 0x145   : > { %12623 = vmatmul.mubr.msk.bf16.gmra.mxu0 %vm16659_vm0, %v14325_v30  ;;  %v13669_v30 = vld [vmem:[#allocation5 + $0xe0] sm:$0xff]  }
 0x146   : > { %12626 = vmatprep.mubr.msk.bf16.mxu0 %vm16659_vm0, %v14507_v2 }
 0x14a   : > { %12635 = vmatmul.mubr.msk.bf16.vlgmr.msra.gmra.mxu1 %vm16659_vm0, %v14362_v62  ;;  %v3158_v62 = vld [vmem:[#allocation2 + $0x9f] sm:$0xff] }
 0x14b   : > { %12671 = vmatpush3.bf16.msra.mxu1 %v13666_v17  ;;  %12638 = vmatprep.mubr.msk.bf16.mxu1 %vm16659_vm0, %v14365_v1  ;;  %v3159_v1 = vld [vmem:[#allocation2 + $0xa7] sm:$0xff] }
 0x14c   : > { %12672 = vmatprep.subr.bf16.mxu1 %v13668_v56 }
 0x14d   : > { %12627 = vmatmul.mubr.msk.bf16.gmra.mxu0 %vm16659_vm0, %v14593_v39 }
 0x14e   : > { %12654 = vmatprep.mubr.msk.bf16.mxu0 %vm16659_vm0, %v14376_v9 }
 0x14f   : > { %12673 = vmatpush3.bf16.msra.mxu1 %v13668_v56 }
 0x150   : > { %12710 = vmatprep.subr.bf16.mxu1 %v13670_v25 }
 0x152   : > { %12639 = vmatmul.mubr.msk.bf16.gmra.mxu1 %vm16659_vm0, %v14380_v13  ;;  %v14619_v13 = vpack.c.bf16 %v3159_v1, %v3158_v62  ;;  %v14671_v1 = vld [vmem:[#allocation5 + $0x128] sm:$0xff]  }
 0x153   : > { %12642 = vmatprep.mubr.msk.bf16.mxu1 %vm16659_vm0, %v14384_v16 }
 0x155   : > { %12655 = vmatmul.mubr.msk.bf16.vlgmr.msra.gmra.mxu0 %vm16659_vm0, %v14390_v21 }
 0x156   : > { %12691 = vmatpush3.bf16.msra.mxu0 %v13667_v32  ;;  %12658 = vmatprep.mubr.msk.bf16.mxu0 %vm16659_vm0, %v14395_v26  ;;  %v3780_v32 = vld [vmem:[#allocation2 + $0x62] sm:$0xff] }
 0x157   : > { %12692 = vmatprep.subr.bf16.mxu0 %v13669_v30 }
 0x15a   : > { %12643 = vmatmul.mubr.msk.bf16.gmra.mxu1 %vm16659_vm0, %v14401_v29  ;;  %12693 = vmatpush3.bf16.msra.mxu0 %v13669_v30 }
 0x15b   : > { %12646 = vmatprep.mubr.msk.bf16.mxu1 %vm16659_vm0, %v14521_v10  ;;  %12730 = vmatprep.subr.bf16.mxu0 %v14609_v53 }
 0x15c   : > { %v12416_v9 = vpop.f32.mrf.mxu0 }
 0x15d   : > { %1030 = vst.msk [vmem:[#allocation3 + $0x10] sm:$0xff] %vm16659_vm0, %v12416_v9  ;;  %12659 = vmatmul.mubr.msk.bf16.gmra.mxu0 %vm16659_vm0, %v14408_v38 }
 0x15e   : > { %v965_v16 = vpop.f32.mrf.mxu0  ;;  %12662 = vmatprep.mubr.msk.bf16.mxu0 %vm16659_vm0, %v14412_v42 }
 0x15f   : > { %1028 = vst.msk [vmem:[#allocation3] sm:$0xff] %vm16659_vm0, %v965_v16 }
 0x160   : > { %v12417_v21 = vpop.f32.mrf.mxu0 }
 0x161   : > { %1031 = vst.msk [vmem:[#allocation3 + $0x18] sm:$0xff] %vm16659_vm0, %v12417_v21 }
 0x162   : > { %v12428_v26 = vpop.f32.mrf.mxu1  ;;  %12647 = vmatmul.mubr.msk.bf16.gmra.mxu1 %vm16659_vm0, %v14619_v13  ;;  %v968_v29 = vpop.f32.mrf.mxu0 }
 0x163   : > { %1042 = vst.msk [vmem:[#allocation3 + $0x70] sm:$0xff] %vm16659_vm0, %v12428_v26  ;;  %1029 = vst.msk [vmem:[#allocation3 + $0x8] sm:$0xff] %vm16659_vm0, %v968_v29  ;;  %12674 = vmatprep.mubr.msk.bf16.mxu1 %vm16659_vm0, %v14420_v50  ;;  %v13672_v50 = vld [vmem:[#allocation5 + $0xf0] sm:$0xff]   ;;  %v3793_v26 = vpack.c.bf16 %v3781_v34, %v3780_v32 }
 0x164   : > { %v1013_v38 = vpop.f32.mrf.mxu1  ;;  %v1208_v52 = vld [vmem:[#allocation3 + $0x10] sm:$0xff] }
 0x165   : > { %1040 = vst.msk [vmem:[#allocation3 + $0x60] sm:$0xff] %vm16659_vm0, %v1013_v38  ;;  %v12420_v42 = vpop.f32.mrf.mxu0  ;;  %12663 = vmatmul.mubr.msk.bf16.gmra.mxu0 %vm16659_vm0, %v14424_v57 }
 0x166   : > { %v12429_v20 = vpop.f32.mrf.mxu1  ;;  %1034 = vst.msk [vmem:[#allocation3 + $0x30] sm:$0xff] %vm16659_vm0, %v12420_v42  ;;  %12666 = vmatprep.mubr.msk.bf16.mxu0 %vm16659_vm0, %v14543_v18  ;;  %v1206_v60 = vld [vmem:[#allocation3] sm:$0xff]  ;;  %v3579_v42 = vld [vmem:[#allocation2 + $0xa9] sm:$0xff] }
 0x167   : > { %1043 = vst.msk [vmem:[#allocation3 + $0x78] sm:$0xff] %vm16659_vm0, %v12429_v20  ;;  %v981_v49 = vpop.f32.mrf.mxu0  ;;  %v3578_v20 = vld [vmem:[#allocation2 + $0xa1] sm:$0xff] }
 0x168   : > { %v1016_v47 = vpop.f32.mrf.mxu1  ;;  %1032 = vst.msk [vmem:[#allocation3 + $0x20] sm:$0xff] %vm16659_vm0, %v981_v49  ;;  %v1209_v63 = vld [vmem:[#allocation3 + $0x18] sm:$0xff] }
 0x169   : > { %1041 = vst.msk [vmem:[#allocation3 + $0x68] sm:$0xff] %vm16659_vm0, %v1016_v47  ;;  %v12421_v57 = vpop.f32.mrf.mxu0 }
 0x16a   : > { %v12436_v51 = vpop.f32.mrf.mxu1  ;;  %12675 = vmatmul.mubr.msk.bf16.vlgmr.msra.gmra.mxu1 %vm16659_vm0, %v14433_v7  ;;  %1035 = vst.msk [vmem:[#allocation3 + $0x38] sm:$0xff] %vm16659_vm0, %v12421_v57  ;;  %v1207_v4 = vld [vmem:[#allocation3 + $0x8] sm:$0xff] }
 0x16b   : > { %v1224_v58 = vadd.f32 %v12436_v51, %v1208_v52  ;;  %12711 = vmatpush3.bf16.msra.mxu1 %v13670_v25  ;;  %12678 = vmatprep.mubr.msk.bf16.mxu1 %vm16659_vm0, %v14436_v5  ;;  %v984_v14 = vpop.f32.mrf.mxu0  ;;  %v3985_v51 = vld [vmem:[#allocation2 + $0x46] sm:$0xff] }
 0x16c   : > { %v1143_v59 = vpop.f32.mrf.mxu1  ;;  %12712 = vmatprep.subr.bf16.mxu1 %v13672_v50  ;;  %1033 = vst.msk [vmem:[#allocation3 + $0x28] sm:$0xff] %vm16659_vm0, %v984_v14 }
 0x16d   : > { %1240 = vst.msk [vmem:[#allocation3 + $0x10] sm:$0xff] %vm16659_vm0, %v1224_v58  ;;  %v1222_v46 = vadd.f32 %v1206_v60, %v1143_v59  ;;  %v12424_v2 = vpop.f32.mrf.mxu0  ;;  %12667 = vmatmul.mubr.msk.bf16.gmra.mxu0 %vm16659_vm0, %v3377_v55  ;;  %v1212_v11 = vld [vmem:[#allocation3 + $0x30] sm:$0xff]  ;;  %v14687_v60 = vpack.c.bf16 %v3579_v42, %v3578_v20 }
 0x16e   : > { %v12437_v7 = vpop.f32.mrf.mxu1  ;;  %1038 = vst.msk [vmem:[#allocation3 + $0x50] sm:$0xff] %vm16659_vm0, %v12424_v2  ;;  %12694 = vmatprep.mubr.msk.bf16.mxu0 %vm16659_vm0, %v14446_v23  ;;  %v4000_v2 = vpack.c.bf16 %v3985_v51, %v3984_v45  ;;  %v13676_v45 = vld [vmem:[#allocation5 + $0x110] sm:$0xff]  }
 0x16f   : > { %1238 = vst.msk [vmem:[#allocation3] sm:$0xff] %vm16659_vm0, %v1222_v46  ;;  %v1225_v3 = vadd.f32 %v12437_v7, %v1209_v63  ;;  %12713 = vmatpush3.bf16.msra.mxu1 %v13672_v50  ;;  %v997_v8 = vpop.f32.mrf.mxu0  ;;  %v1210_v15 = vld [vmem:[#allocation3 + $0x20] sm:$0xff]  ;;  %v3785_v63 = vld [vmem:[#allocation2 + $0x8a] sm:$0xff] }
 0x170   : > { %v1146_v5 = vpop.f32.mrf.mxu1  ;;  %12750 = vmatprep.subr.bf16.mxu1 %v14645_v61  ;;  %1036 = vst.msk [vmem:[#allocation3 + $0x40] sm:$0xff] %vm16659_vm0, %v997_v8  ;;  %v3784_v7 = vld [vmem:[#allocation2 + $0x82] sm:$0xff] }
 0x171   : > { %1241 = vst.msk [vmem:[#allocation3 + $0x18] sm:$0xff] %vm16659_vm0, %v1225_v3  ;;  %v1223_v10 = vadd.f32 %v1207_v4, %v1146_v5  ;;  %v12425_v12 = vpop.f32.mrf.mxu0 }
 0x172   : > { %v12440_v6 = vpop.f32.mrf.mxu1  ;;  %12679 = vmatmul.mubr.msk.bf16.gmra.mxu1 %vm16659_vm0, %v14450_v28  ;;  %1039 = vst.msk [vmem:[#allocation3 + $0x58] sm:$0xff] %vm16659_vm0, %v12425_v12  ;;  %v1213_v28 = vld [vmem:[#allocation3 + $0x38] sm:$0xff]  ;;  %v1220_v12 = vld [vmem:[#allocation3 + $0x70] sm:$0xff] }
 0x173   : > { %1239 = vst.msk [vmem:[#allocation3 + $0x8] sm:$0xff] %vm16659_vm0, %v1223_v10  ;;  %v1228_v23 = vadd.f32 %v12440_v6, %v1212_v11  ;;  %12682 = vmatprep.mubr.msk.bf16.mxu1 %vm16659_vm0, %v14455_v33  ;;  %v1000_v18 = vpop.f32.mrf.mxu0  ;;  %v1211_v25 = vld [vmem:[#allocation3 + $0x28] sm:$0xff] }
 0x174   : > { %v1159_v48 = vpop.f32.mrf.mxu1  ;;  %1037 = vst.msk [vmem:[#allocation3 + $0x48] sm:$0xff] %vm16659_vm0, %v1000_v18  ;;  %v1418_v31 = vld [vmem:[#allocation3 + $0x10] sm:$0xff] }
 0x175   : > { %1244 = vst.msk [vmem:[#allocation3 + $0x30] sm:$0xff] %vm16659_vm0, %v1228_v23  ;;  %v1226_v22 = vadd.f32 %v1210_v15, %v1159_v48  ;;  %v12456_v17 = vpop.f32.mrf.mxu0  ;;  %12695 = vmatmul.mubr.msk.bf16.vlgmr.msra.gmra.mxu0 %vm16659_vm0, %v14459_v36  ;;  %v1216_v16 = vld [vmem:[#allocation3 + $0x50] sm:$0xff]  ;;  %v3795_v15 = vpack.c.bf16 %v3785_v63, %v3784_v7 }
 0x176   : > { %v12441_v24 = vpop.f32.mrf.mxu1  ;;  %v1434_v37 = vadd.f32 %v12456_v17, %v1418_v31  ;;  %12731 = vmatpush3.bf16.msra.mxu0 %v14609_v53  ;;  %12698 = vmatprep.mubr.msk.bf16.mxu0 %vm16659_vm0, %v14463_v40  ;;  %v1416_v62 = vld [vmem:[#allocation3] sm:$0xff] }
 0x177   : > { %1242 = vst.msk [vmem:[#allocation3 + $0x20] sm:$0xff] %vm16659_vm0, %v1226_v22  ;;  %v1229_v33 = vadd.f32 %v12441_v24, %v1213_v28  ;;  %v1353_v30 = vpop.f32.mrf.mxu0  ;;  %12732 = vmatprep.subr.bf16.mxu0 %v13673_v19  ;;  %v3986_v22 = vld [vmem:[#allocation2 + $0x4e] sm:$0xff]  ;;  %v3987_v24 = vld [vmem:[#allocation2 + $0x56] sm:$0xff]  ;;  %v3988_v28 = vld [vmem:[#allocation2 + $0x5e] sm:$0xff] }
 0x178   : > { %v1162_v56 = vpop.f32.mrf.mxu1  ;;  %1450 = vst.msk [vmem:[#allocation3 + $0x10] sm:$0xff] %vm16659_vm0, %v1434_v37  ;;  %v1432_v9 = vadd.f32 %v1416_v62, %v1353_v30  ;;  %v1419_v21 = vld [vmem:[#allocation3 + $0x18] sm:$0xff]  ;;  %v1218_v31 = vld [vmem:[#allocation3 + $0x60] sm:$0xff]  ;;  %v14703_v62 = vpack.c.bf16 %v3987_v24, %v3986_v22 }
 0x179   : > { %1245 = vst.msk [vmem:[#allocation3 + $0x38] sm:$0xff] %vm16659_vm0, %v1229_v33  ;;  %v1227_v36 = vadd.f32 %v1211_v25, %v1162_v56  ;;  %v12457_v40 = vpop.f32.mrf.mxu0  ;;  %v1217_v55 = vld [vmem:[#allocation3 + $0x58] sm:$0xff]  ;;  %v3989_v37 = vld [vmem:[#allocation2 + $0x66] sm:$0xff] }
 0x17a   : > { %v12444_v53 = vpop.f32.mrf.mxu1  ;;  %12683 = vmatmul.mubr.msk.bf16.gmra.mxu1 %vm16659_vm0, %v14467_v44  ;;  %1448 = vst.msk [vmem:[#allocation3] sm:$0xff] %vm16659_vm0, %v1432_v9  ;;  %v1435_v38 = vadd.f32 %v12457_v40, %v1419_v21  ;;  %12733 = vmatpush3.bf16.msra.mxu0 %v13673_v19  ;;  %v1214_v44 = vld [vmem:[#allocation3 + $0x40] sm:$0xff]  ;;  %v1417_v50 = vld [vmem:[#allocation3 + $0x8] sm:$0xff]  ;;  %v1221_v56 = vld [vmem:[#allocation3 + $0x78] sm:$0xff]  ;;  %v14709_v40 = vpack.c.bf16 %v3989_v37, %v3988_v28 }
 0x17b   : > { %1243 = vst.msk [vmem:[#allocation3 + $0x28] sm:$0xff] %vm16659_vm0, %v1227_v36  ;;  %v1232_v29 = vadd.f32 %v12444_v53, %v1216_v16  ;;  %12686 = vmatprep.mubr.msk.bf16.mxu1 %vm16659_vm0, %v14557_v27  ;;  %v1356_v49 = vpop.f32.mrf.mxu0  ;;  %12770 = vmatprep.subr.bf16.mxu0 %v14671_v1  ;;  %v1215_v5 = vld [vmem:[#allocation3 + $0x48] sm:$0xff]  ;;  %v4194_v21 = vld [vmem:[#allocation2 + $0x3f] sm:$0xff] }
 0x17c   : > { %v1175_v47 = vpop.f32.mrf.mxu1  ;;  %1451 = vst.msk [vmem:[#allocation3 + $0x18] sm:$0xff] %vm16659_vm0, %v1435_v38  ;;  %v1433_v57 = vadd.f32 %v1417_v50, %v1356_v49  ;;  %v1422_v59 = vld [vmem:[#allocation3 + $0x30] sm:$0xff]  ;;  %v3788_v36 = vld [vmem:[#allocation2 + $0xa2] sm:$0xff] }
 0x17d   : > { %1248 = vst.msk [vmem:[#allocation3 + $0x50] sm:$0xff] %vm16659_vm0, %v1232_v29  ;;  %v1230_v52 = vadd.f32 %v1214_v44, %v1175_v47  ;;  %v12460_v58 = vpop.f32.mrf.mxu0  ;;  %12699 = vmatmul.mubr.msk.bf16.gmra.mxu0 %vm16659_vm0, %v3793_v26  ;;  %v3789_v16 = vld [vmem:[#allocation2 + $0xaa] sm:$0xff]  ;;  %v4198_v22 = vld [vmem:[#allocation2 + $0x5f] sm:$0xff] }
 0x17e   : > { %v12445_v27 = vpop.f32.mrf.mxu1  ;;  %1449 = vst.msk [vmem:[#allocation3 + $0x8] sm:$0xff] %vm16659_vm0, %v1433_v57  ;;  %v1438_v46 = vadd.f32 %v12460_v58, %v1422_v59  ;;  %12702 = vmatprep.mubr.msk.bf16.mxu0 %vm16659_vm0, %v14681_v43  ;;  %v1420_v8 = vld [vmem:[#allocation3 + $0x20] sm:$0xff]  ;;  %v1219_v38 = vld [vmem:[#allocation3 + $0x68] sm:$0xff]  ;;  %v3991_v58 = vld [vmem:[#allocation2 + $0x76] sm:$0xff] }
 0x17f   : > { %1246 = vst.msk [vmem:[#allocation3 + $0x40] sm:$0xff] %vm16659_vm0, %v1230_v52  ;;  %v1233_v14 = vadd.f32 %v12445_v27, %v1217_v55  ;;  %v1369_v4 = vpop.f32.mrf.mxu0  ;;  %v4195_v26 = vld [vmem:[#allocation2 + $0x47] sm:$0xff]  ;;  %v1628_v50 = vld [vmem:[#allocation3 + $0x10] sm:$0xff]  ;;  %v3797_v52 = vpack.c.bf16 %v3789_v16, %v3788_v36 }
 0x180   : > { %v1178_v3 = vpop.f32.mrf.mxu1  ;;  %1454 = vst.msk [vmem:[#allocation3 + $0x30] sm:$0xff] %vm16659_vm0, %v1438_v46  ;;  %v1436_v6 = vadd.f32 %v1420_v8, %v1369_v4  ;;  %v1423_v48 = vld [vmem:[#allocation3 + $0x38] sm:$0xff]  ;;  %v3990_v57 = vld [vmem:[#allocation2 + $0x6e] sm:$0xff]  ;;  %v4210_v59 = vpack.c.bf16 %v4195_v26, %v4194_v21  ;;  %v3993_v46 = vld [vmem:[#allocation2 + $0x86] sm:$0xff] }
 0x181   : > { %1249 = vst.msk [vmem:[#allocation3 + $0x58] sm:$0xff] %vm16659_vm0, %v1233_v14  ;;  %v1231_v10 = vadd.f32 %v1215_v5, %v1178_v3  ;;  %v12461_v23 = vpop.f32.mrf.mxu0  ;;  %v3992_v14 = vld [vmem:[#allocation2 + $0x7e] sm:$0xff] }
 0x182   : > { %v12448_v11 = vpop.f32.mrf.mxu1  ;;  %12687 = vmatmul.mubr.msk.bf16.gmra.mxu1 %vm16659_vm0, %v14687_v60  ;;  %1452 = vst.msk [vmem:[#allocation3 + $0x20] sm:$0xff] %vm16659_vm0, %v1436_v6  ;;  %v1439_v19 = vadd.f32 %v12461_v23, %v1423_v48  ;;  %v1421_v33 = vld [vmem:[#allocation3 + $0x28] sm:$0xff]  ;;  %v1626_v63 = vld [vmem:[#allocation3] sm:$0xff]  ;;  %v14720_v5 = vld [vmem:[#allocation5 + $0x138] sm:$0xff]  }
 0x183   : > { %1247 = vst.msk [vmem:[#allocation3 + $0x48] sm:$0xff] %vm16659_vm0, %v1231_v10  ;;  %v1236_v18 = vadd.f32 %v12448_v11, %v1220_v12  ;;  %12714 = vmatprep.mubr.msk.bf16.mxu1 %vm16659_vm0, %v4000_v2  ;;  %v1372_v32 = vpop.f32.mrf.mxu0  ;;  %v1629_v10 = vld [vmem:[#allocation3 + $0x18] sm:$0xff]  ;;  %v14725_v12 = vpack.c.bf16 %v3991_v58, %v3990_v57  ;;  %v4203_v58 = vld [vmem:[#allocation2 + $0x87] sm:$0xff] }
 0x184   : > { %v1191_v17 = vpop.f32.mrf.mxu1  ;;  %1455 = vst.msk [vmem:[#allocation3 + $0x38] sm:$0xff] %vm16659_vm0, %v1439_v19  ;;  %v1437_v54 = vadd.f32 %v1421_v33, %v1372_v32  ;;  %v1426_v30 = vld [vmem:[#allocation3 + $0x50] sm:$0xff]  ;;  %v4199_v32 = vld [vmem:[#allocation2 + $0x67] sm:$0xff] }
 0x185   : > { %1252 = vst.msk [vmem:[#allocation3 + $0x70] sm:$0xff] %vm16659_vm0, %v1236_v18  ;;  %v1234_v34 = vadd.f32 %v1218_v31, %v1191_v17  ;;  %v12464_v25 = vpop.f32.mrf.mxu0  ;;  %12703 = vmatmul.mubr.msk.bf16.gmra.mxu0 %vm16659_vm0, %v3795_v15  ;;  %v14730_v15 = vpack.c.bf16 %v3993_v46, %v3992_v14  ;;  %v4196_v18 = vld [vmem:[#allocation2 + $0x4f] sm:$0xff]  ;;  %v4197_v19 = vld [vmem:[#allocation2 + $0x57] sm:$0xff]  ;;  %v14741_v16 = vpack.c.bf16 %v4199_v32, %v4198_v22 }
 0x186   : > { %v12449_v35 = vpop.f32.mrf.mxu1  ;;  %1453 = vst.msk [vmem:[#allocation3 + $0x28] sm:$0xff] %vm16659_vm0, %v1437_v54  ;;  %v1442_v53 = vadd.f32 %v12464_v25, %v1426_v30  ;;  %12706 = vmatprep.mubr.msk.bf16.mxu0 %vm16659_vm0, %v14579_v41  ;;  %v1424_v42 = vld [vmem:[#allocation3 + $0x40] sm:$0xff]  ;;  %v1627_v28 = vld [vmem:[#allocation3 + $0x8] sm:$0xff]  ;;  %v4211_v25 = vpack.c.bf16 %v4197_v19, %v4196_v18 }
 0x187   : > { %1250 = vst.msk [vmem:[#allocation3 + $0x60] sm:$0xff] %vm16659_vm0, %v1234_v34  ;;  %v1237_v9 = vadd.f32 %v12449_v35, %v1221_v56  ;;  %v1385_v20 = vpop.f32.mrf.mxu0  ;;  %v1632_v54 = vld [vmem:[#allocation3 + $0x30] sm:$0xff]  ;;  %v4404_v19 = vld [vmem:[#allocation2 + $0x40] sm:$0xff] }
 0x188   : > { %v1194_v29 = vpop.f32.mrf.mxu1  ;;  %1458 = vst.msk [vmem:[#allocation3 + $0x50] sm:$0xff] %vm16659_vm0, %v1442_v53  ;;  %v1440_v44 = vadd.f32 %v1424_v42, %v1385_v20  ;;  %v1427_v51 = vld [vmem:[#allocation3 + $0x58] sm:$0xff]  ;;  %v13677_v20 = vld [vmem:[#allocation5 + $0x120] sm:$0xff]  }
 0x189   : > { %1253 = vst.msk [vmem:[#allocation3 + $0x78] sm:$0xff] %vm16659_vm0, %v1237_v9  ;;  %v1235_v47 = vadd.f32 %v1219_v38, %v1194_v29  ;;  %v12465_v41 = vpop.f32.mrf.mxu0  ;;  %v3994_v9 = vld [vmem:[#allocation2 + $0x8e] sm:$0xff]  ;;  %v3995_v53 = vld [vmem:[#allocation2 + $0x96] sm:$0xff]  ;;  %v1630_v26 = vld [vmem:[#allocation3 + $0x20] sm:$0xff] }
 0x18a   : > { %v12476_v49 = vpop.f32.mrf.mxu1  ;;  %12715 = vmatmul.mubr.msk.bf16.vlgmr.msra.gmra.mxu1 %vm16659_vm0, %v14703_v62  ;;  %1456 = vst.msk [vmem:[#allocation3 + $0x40] sm:$0xff] %vm16659_vm0, %v1440_v44  ;;  %v1443_v55 = vadd.f32 %v12465_v41, %v1427_v51  ;;  %v1425_v3 = vld [vmem:[#allocation3 + $0x48] sm:$0xff]  ;;  %v14746_v41 = vpack.c.bf16 %v3995_v53, %v3994_v9 }
 0x18b   : > { %1251 = vst.msk [vmem:[#allocation3 + $0x68] sm:$0xff] %vm16659_vm0, %v1235_v47  ;;  %v1644_v27 = vadd.f32 %v12476_v49, %v1628_v50  ;;  %12751 = vmatpush3.bf16.msra.mxu1 %v14645_v61  ;;  %12718 = vmatprep.mubr.msk.bf16.mxu1 %vm16659_vm0, %v14709_v40  ;;  %v1388_v2 = vpop.f32.mrf.mxu0  ;;  %v1633_v44 = vld [vmem:[#allocation3 + $0x38] sm:$0xff]  ;;  %v4200_v51 = vld [vmem:[#allocation2 + $0x6f] sm:$0xff] }
 0x18c   : > { %v1563_v7 = vpop.f32.mrf.mxu1  ;;  %12752 = vmatprep.subr.bf16.mxu1 %v13676_v45  ;;  %1459 = vst.msk [vmem:[#allocation3 + $0x58] sm:$0xff] %vm16659_vm0, %v1443_v55  ;;  %v1441_v61 = vadd.f32 %v1425_v3, %v1388_v2  ;;  %v1430_v11 = vld [vmem:[#allocation3 + $0x70] sm:$0xff]  ;;  %v4202_v55 = vld [vmem:[#allocation2 + $0x7f] sm:$0xff] }
 0x18d   : > { %1660 = vst.msk [vmem:[#allocation3 + $0x10] sm:$0xff] %vm16659_vm0, %v1644_v27  ;;  %v1642_v4 = vadd.f32 %v1626_v63, %v1563_v7  ;;  %v12468_v6 = vpop.f32.mrf.mxu0  ;;  %12707 = vmatmul.mubr.msk.bf16.gmra.mxu0 %vm16659_vm0, %v3797_v52  ;;  %v4201_v27 = vld [vmem:[#allocation2 + $0x77] sm:$0xff]  ;;  %v1631_v14 = vld [vmem:[#allocation3 + $0x28] sm:$0xff]  ;;  %v14763_v18 = vpack.c.bf16 %v4203_v58, %v4202_v55 }
 0x18e   : > { %v12477_v8 = vpop.f32.mrf.mxu1  ;;  %1457 = vst.msk [vmem:[#allocation3 + $0x48] sm:$0xff] %vm16659_vm0, %v1441_v61  ;;  %v1446_v48 = vadd.f32 %v12468_v6, %v1430_v11  ;;  %12734 = vmatprep.mubr.msk.bf16.mxu0 %vm16659_vm0, %v4210_v59  ;;  %v1428_v31 = vld [vmem:[#allocation3 + $0x60] sm:$0xff]  ;;  %v14753_v63 = vld [vmem:[#allocation5 + $0x148] sm:$0xff]  }
 0x18f   : > { %1658 = vst.msk [vmem:[#allocation3] sm:$0xff] %vm16659_vm0, %v1642_v4  ;;  %v1645_v23 = vadd.f32 %v12477_v8, %v1629_v10  ;;  %12753 = vmatpush3.bf16.msra.mxu1 %v13676_v45  ;;  %v1401_v17 = vpop.f32.mrf.mxu0  ;;  %v1636_v4 = vld [vmem:[#allocation3 + $0x50] sm:$0xff]  ;;  %v4213_v10 = vpack.c.bf16 %v4201_v27, %v4200_v51  ;;  %v4408_v27 = vld [vmem:[#allocation2 + $0x60] sm:$0xff] }
 0x190   : > { %v1566_v24 = vpop.f32.mrf.mxu1  ;;  %12790 = vmatprep.subr.bf16.mxu1 %v14720_v5  ;;  %1462 = vst.msk [vmem:[#allocation3 + $0x70] sm:$0xff] %vm16659_vm0, %v1446_v48  ;;  %v1444_v37 = vadd.f32 %v1428_v31, %v1401_v17  ;;  %v1431_v56 = vld [vmem:[#allocation3 + $0x78] sm:$0xff]  ;;  %v4405_v31 = vld [vmem:[#allocation2 + $0x48] sm:$0xff] }
 0x191   : > { %1661 = vst.msk [vmem:[#allocation3 + $0x18] sm:$0xff] %vm16659_vm0, %v1645_v23  ;;  %v1643_v33 = vadd.f32 %v1627_v28, %v1566_v24  ;;  %v12469_v35 = vpop.f32.mrf.mxu0  ;;  %v3998_v23 = vld [vmem:[#allocation2 + $0xae] sm:$0xff]  ;;  %v3999_v48 = vld [vmem:[#allocation2 + $0xb6] sm:$0xff]  ;;  %v1634_v24 = vld [vmem:[#allocation3 + $0x40] sm:$0xff]  ;;  %v4420_v9 = vpack.c.bf16 %v4405_v31, %v4404_v19 }
 0x192   : > { %v12480_v34 = vpop.f32.mrf.mxu1  ;;  %12719 = vmatmul.mubr.msk.bf16.gmra.mxu1 %vm16659_vm0, %v14725_v12  ;;  %1460 = vst.msk [vmem:[#allocation3 + $0x60] sm:$0xff] %vm16659_vm0, %v1444_v37  ;;  %v1447_v36 = vadd.f32 %v12469_v35, %v1431_v56  ;;  %v1429_v38 = vld [vmem:[#allocation3 + $0x68] sm:$0xff]  ;;  %v14769_v35 = vpack.c.bf16 %v3999_v48, %v3998_v23  ;;  %v4209_v23 = vld [vmem:[#allocation2 + $0xb7] sm:$0xff] }
 0x193   : > { %1659 = vst.msk [vmem:[#allocation3 + $0x8] sm:$0xff] %vm16659_vm0, %v1643_v33  ;;  %v1648_v30 = vadd.f32 %v12480_v34, %v1632_v54  ;;  %12722 = vmatprep.mubr.msk.bf16.mxu1 %vm16659_vm0, %v14730_v15  ;;  %v1404_v29 = vpop.f32.mrf.mxu0  ;;  %v1637_v37 = vld [vmem:[#allocation3 + $0x58] sm:$0xff]  ;;  %v4614_v19 = vld [vmem:[#allocation2 + $0x41] sm:$0xff] }
 0x194   : > { %v1579_v21 = vpop.f32.mrf.mxu1  ;;  %1463 = vst.msk [vmem:[#allocation3 + $0x78] sm:$0xff] %vm16659_vm0, %v1447_v36  ;;  %v1445_v45 = vadd.f32 %v1429_v38, %v1404_v29  ;;  %v1838_v50 = vld [vmem:[#allocation3 + $0x10] sm:$0xff] }
 0x195   : > { %1664 = vst.msk [vmem:[#allocation3 + $0x30] sm:$0xff] %vm16659_vm0, %v1648_v30  ;;  %v1646_v42 = vadd.f32 %v1630_v26, %v1579_v21  ;;  %v12496_v49 = vpop.f32.mrf.mxu0  ;;  %12735 = vmatmul.mubr.msk.bf16.vlgmr.msra.gmra.mxu0 %vm16659_vm0, %v4211_v25  ;;  %v4204_v30 = vld [vmem:[#allocation2 + $0x8f] sm:$0xff]  ;;  %v4205_v36 = vld [vmem:[#allocation2 + $0x97] sm:$0xff] }
 0x196   : > { %v12481_v47 = vpop.f32.mrf.mxu1  ;;  %1461 = vst.msk [vmem:[#allocation3 + $0x68] sm:$0xff] %vm16659_vm0, %v1445_v45  ;;  %v1854_v57 = vadd.f32 %v12496_v49, %v1838_v50  ;;  %12771 = vmatpush3.bf16.msra.mxu0 %v14671_v1  ;;  %12738 = vmatprep.mubr.msk.bf16.mxu0 %vm16659_vm0, %v14741_v16  ;;  %v1836_v7 = vld [vmem:[#allocation3] sm:$0xff]  ;;  %v1635_v21 = vld [vmem:[#allocation3 + $0x48] sm:$0xff]  ;;  %v4215_v49 = vpack.c.bf16 %v4205_v36, %v4204_v30 }
 0x197   : > { %1662 = vst.msk [vmem:[#allocation3 + $0x20] sm:$0xff] %vm16659_vm0, %v1646_v42  ;;  %v1649_v52 = vadd.f32 %v12481_v47, %v1633_v44  ;;  %v1773_v46 = vpop.f32.mrf.mxu0  ;;  %12772 = vmatprep.subr.bf16.mxu0 %v13677_v20  ;;  %v1640_v45 = vld [vmem:[#allocation3 + $0x70] sm:$0xff] }
 0x198   : > { %v1582_v59 = vpop.f32.mrf.mxu1  ;;  %1870 = vst.msk [vmem:[#allocation3 + $0x10] sm:$0xff] %vm16659_vm0, %v1854_v57  ;;  %v1852_v3 = vadd.f32 %v1836_v7, %v1773_v46  ;;  %v1839_v8 = vld [vmem:[#allocation3 + $0x18] sm:$0xff]  ;;  %v4409_v46 = vld [vmem:[#allocation2 + $0x68] sm:$0xff] }
 0x199   : > { %1665 = vst.msk [vmem:[#allocation3 + $0x38] sm:$0xff] %vm16659_vm0, %v1649_v52  ;;  %v1647_v2 = vadd.f32 %v1631_v14, %v1582_v59  ;;  %v12497_v61 = vpop.f32.mrf.mxu0  ;;  %v4406_v52 = vld [vmem:[#allocation2 + $0x50] sm:$0xff]  ;;  %v4407_v57 = vld [vmem:[#allocation2 + $0x58] sm:$0xff]  ;;  %v1638_v58 = vld [vmem:[#allocation3 + $0x60] sm:$0xff]  ;;  %v14791_v48 = vpack.c.bf16 %v4409_v46, %v4408_v27 }
 0x19a   : > { %v12484_v1 = vpop.f32.mrf.mxu1  ;;  %12723 = vmatmul.mubr.msk.bf16.gmra.mxu1 %vm16659_vm0, %v14746_v41  ;;  %1868 = vst.msk [vmem:[#allocation3] sm:$0xff] %vm16659_vm0, %v1852_v3  ;;  %v1855_v11 = vadd.f32 %v12497_v61, %v1839_v8  ;;  %12773 = vmatpush3.bf16.msra.mxu0 %v13677_v20  ;;  %v1837_v17 = vld [vmem:[#allocation3 + $0x8] sm:$0xff]  ;;  %v14785_v8 = vpack.c.bf16 %v4407_v57, %v4406_v52 }
 0x19b   : > { %1663 = vst.msk [vmem:[#allocation3 + $0x28] sm:$0xff] %vm16659_vm0, %v1647_v2  ;;  %v1652_v6 = vadd.f32 %v12484_v1, %v1636_v4  ;;  %12726 = vmatprep.mubr.msk.bf16.mxu1 %vm16659_vm0, %v14593_v39  ;;  %v1776_v28 = vpop.f32.mrf.mxu0  ;;  %12810 = vmatprep.subr.bf16.mxu0 %v14753_v63  ;;  %v1641_v1 = vld [vmem:[#allocation3 + $0x78] sm:$0xff] }
 0x19c   : > { %v1595_v22 = vpop.f32.mrf.mxu1  ;;  %1871 = vst.msk [vmem:[#allocation3 + $0x18] sm:$0xff] %vm16659_vm0, %v1855_v11  ;;  %v1853_v33 = vadd.f32 %v1837_v17, %v1776_v28  ;;  %v1842_v54 = vld [vmem:[#allocation3 + $0x30] sm:$0xff] }
 0x19d   : > { %1668 = vst.msk [vmem:[#allocation3 + $0x50] sm:$0xff] %vm16659_vm0, %v1652_v6  ;;  %v1650_v32 = vadd.f32 %v1634_v24, %v1595_v22  ;;  %v12500_v34 = vpop.f32.mrf.mxu0  ;;  %12739 = vmatmul.mubr.msk.bf16.gmra.mxu0 %vm16659_vm0, %v4213_v10  ;;  %v4208_v10 = vld [vmem:[#allocation2 + $0xaf] sm:$0xff] }
 0x19e   : > { %v12485_v39 = vpop.f32.mrf.mxu1  ;;  %1869 = vst.msk [vmem:[#allocation3 + $0x8] sm:$0xff] %vm16659_vm0, %v1853_v33  ;;  %v1858_v25 = vadd.f32 %v12500_v34, %v1842_v54  ;;  %12742 = vmatprep.mubr.msk.bf16.mxu0 %vm16659_vm0, %v14763_v18  ;;  %v1840_v29 = vld [vmem:[#allocation3 + $0x20] sm:$0xff]  ;;  %v4615_v22 = vld [vmem:[#allocation2 + $0x49] sm:$0xff] }
 0x19f   : > { %1666 = vst.msk [vmem:[#allocation3 + $0x40] sm:$0xff] %vm16659_vm0, %v1650_v32  ;;  %v1653_v56 = vadd.f32 %v12485_v39, %v1637_v37  ;;  %v1789_v26 = vpop.f32.mrf.mxu0  ;;  %v1639_v28 = vld [vmem:[#allocation3 + $0x68] sm:$0xff]  ;;  %v13680_v32 = vld [vmem:[#allocation5 + $0x130] sm:$0xff]  }
 0x1a0   : > { %v1598_v53 = vpop.f32.mrf.mxu1  ;;  %1874 = vst.msk [vmem:[#allocation3 + $0x30] sm:$0xff] %vm16659_vm0, %v1858_v25  ;;  %v1856_v20 = vadd.f32 %v1840_v29, %v1789_v26  ;;  %v1843_v44 = vld [vmem:[#allocation3 + $0x38] sm:$0xff]  ;;  %v2048_v34 = vld [vmem:[#allocation3 + $0x10] sm:$0xff]  ;;  %v4413_v26 = vld [vmem:[#allocation2 + $0x88] sm:$0xff] }
 0x1a1   : > { %1669 = vst.msk [vmem:[#allocation3 + $0x58] sm:$0xff] %vm16659_vm0, %v1653_v56  ;;  %v1651_v38 = vadd.f32 %v1635_v21, %v1598_v53  ;;  %v12501_v47 = vpop.f32.mrf.mxu0  ;;  %v4217_v56 = vpack.c.bf16 %v4209_v23, %v4208_v10  ;;  %v4410_v25 = vld [vmem:[#allocation2 + $0x70] sm:$0xff]  ;;  %v4630_v53 = vpack.c.bf16 %v4615_v22, %v4614_v19  ;;  %v4412_v21 = vld [vmem:[#allocation2 + $0x80] sm:$0xff] }
 0x1a2   : > { %v12488_v42 = vpop.f32.mrf.mxu1  ;;  %12727 = vmatmul.mubr.msk.bf16.gmra.mxu1 %vm16659_vm0, %v14769_v35  ;;  %1872 = vst.msk [vmem:[#allocation3 + $0x20] sm:$0xff] %vm16659_vm0, %v1856_v20  ;;  %v1859_v51 = vadd.f32 %v12501_v47, %v1843_v44  ;;  %v1841_v14 = vld [vmem:[#allocation3 + $0x28] sm:$0xff]  ;;  %v4414_v22 = vld [vmem:[#allocation2 + $0x90] sm:$0xff] }
 0x1a3   : > { %1667 = vst.msk [vmem:[#allocation3 + $0x48] sm:$0xff] %vm16659_vm0, %v1651_v38  ;;  %v1656_v50 = vadd.f32 %v12488_v42, %v1640_v45  ;;  %12754 = vmatprep.mubr.msk.bf16.mxu1 %vm16659_vm0, %v4420_v9  ;;  %v1792_v59 = vpop.f32.mrf.mxu0  ;;  %v4411_v9 = vld [vmem:[#allocation2 + $0x78] sm:$0xff]  ;;  %v2046_v38 = vld [vmem:[#allocation3] sm:$0xff] }
 0x1a4   : > { %v1611_v55 = vpop.f32.mrf.mxu1  ;;  %1875 = vst.msk [vmem:[#allocation3 + $0x38] sm:$0xff] %vm16659_vm0, %v1859_v51  ;;  %v1857_v2 = vadd.f32 %v1841_v14, %v1792_v59  ;;  %v1846_v61 = vld [vmem:[#allocation3 + $0x50] sm:$0xff]  ;;  %v14802_v45 = vld [vmem:[#allocation5 + $0x158] sm:$0xff]   ;;  %v14807_v52 = vpack.c.bf16 %v4411_v9, %v4410_v25  ;;  %v4618_v14 = vld [vmem:[#allocation2 + $0x61] sm:$0xff] }
 0x1a5   : > { %1672 = vst.msk [vmem:[#allocation3 + $0x70] sm:$0xff] %vm16659_vm0, %v1656_v50  ;;  %v1654_v7 = vadd.f32 %v1638_v58, %v1611_v55  ;;  %v12504_v4 = vpop.f32.mrf.mxu0  ;;  %12743 = vmatmul.mubr.msk.bf16.gmra.mxu0 %vm16659_vm0, %v4215_v49  ;;  %v2049_v49 = vld [vmem:[#allocation3 + $0x18] sm:$0xff]  ;;  %v14812_v55 = vpack.c.bf16 %v4413_v26, %v4412_v21 }
 0x1a6   : > { %v12489_v3 = vpop.f32.mrf.mxu1  ;;  %1873 = vst.msk [vmem:[#allocation3 + $0x28] sm:$0xff] %vm16659_vm0, %v1857_v2  ;;  %v1862_v11 = vadd.f32 %v12504_v4, %v1846_v61  ;;  %12746 = vmatprep.mubr.msk.bf16.mxu0 %vm16659_vm0, %v14619_v13  ;;  %v1844_v31 = vld [vmem:[#allocation3 + $0x40] sm:$0xff]  ;;  %v4616_v58 = vld [vmem:[#allocation2 + $0x51] sm:$0xff] }
 0x1a7   : > { %1670 = vst.msk [vmem:[#allocation3 + $0x60] sm:$0xff] %vm16659_vm0, %v1654_v7  ;;  %v1657_v6 = vadd.f32 %v12489_v3, %v1641_v1  ;;  %v1805_v17 = vpop.f32.mrf.mxu0  ;;  %v4617_v59 = vld [vmem:[#allocation2 + $0x59] sm:$0xff]  ;;  %v2047_v7 = vld [vmem:[#allocation3 + $0x8] sm:$0xff]  ;;  %v4620_v26 = vld [vmem:[#allocation2 + $0x71] sm:$0xff] }
 0x1a8   : > { %v1614_v24 = vpop.f32.mrf.mxu1  ;;  %1878 = vst.msk [vmem:[#allocation3 + $0x50] sm:$0xff] %vm16659_vm0, %v1862_v11  ;;  %v1860_v39 = vadd.f32 %v1844_v31, %v1805_v17  ;;  %v1847_v54 = vld [vmem:[#allocation3 + $0x58] sm:$0xff]  ;;  %v4619_v1 = vld [vmem:[#allocation2 + $0x69] sm:$0xff]  ;;  %v4631_v19 = vpack.c.bf16 %v4617_v59, %v4616_v58 }
 0x1a9   : > { %1673 = vst.msk [vmem:[#allocation3 + $0x78] sm:$0xff] %vm16659_vm0, %v1657_v6  ;;  %v1655_v33 = vadd.f32 %v1639_v28, %v1614_v24  ;;  %v12505_v13 = vpop.f32.mrf.mxu0  ;;  %v2052_v6 = vld [vmem:[#allocation3 + $0x30] sm:$0xff]  ;;  %v4415_v17 = vld [vmem:[#allocation2 + $0x98] sm:$0xff]  ;;  %v14823_v31 = vpack.c.bf16 %v4619_v1, %v4618_v14 }
 0x1aa   : > { %v12516_v37 = vpop.f32.mrf.mxu1  ;;  %12755 = vmatmul.mubr.msk.bf16.vlgmr.msra.gmra.mxu1 %vm16659_vm0, %v14785_v8  ;;  %1876 = vst.msk [vmem:[#allocation3 + $0x40] sm:$0xff] %vm16659_vm0, %v1860_v39  ;;  %v1863_v36 = vadd.f32 %v12505_v13, %v1847_v54  ;;  %v1845_v42 = vld [vmem:[#allocation3 + $0x48] sm:$0xff]  ;;  %v13681_v54 = vld [vmem:[#allocation5 + $0x140] sm:$0xff]   ;;  %v14828_v21 = vpack.c.bf16 %v4415_v17, %v4414_v22  ;;  %v4418_v1 = vld [vmem:[#allocation2 + $0xb0] sm:$0xff] }
 0x1ab   : > { %1671 = vst.msk [vmem:[#allocation3 + $0x68] sm:$0xff] %vm16659_vm0, %v1655_v33  ;;  %v2064_v30 = vadd.f32 %v12516_v37, %v2048_v34  ;;  %12791 = vmatpush3.bf16.msra.mxu1 %v14720_v5  ;;  %12758 = vmatprep.mubr.msk.bf16.mxu1 %vm16659_vm0, %v14791_v48  ;;  %v1808_v20 = vpop.f32.mrf.mxu0  ;;  %v4417_v33 = vld [vmem:[#allocation2 + $0xa8] sm:$0xff]  ;;  %v2050_v37 = vld [vmem:[#allocation3 + $0x20] sm:$0xff] }
 0x1ac   : > { %v1983_v29 = vpop.f32.mrf.mxu1  ;;  %12792 = vmatprep.subr.bf16.mxu1 %v13680_v32  ;;  %1879 = vst.msk [vmem:[#allocation3 + $0x58] sm:$0xff] %vm16659_vm0, %v1863_v36  ;;  %v1861_v5 = vadd.f32 %v1845_v42, %v1808_v20  ;;  %v1850_v51 = vld [vmem:[#allocation3 + $0x70] sm:$0xff]  ;;  %v2053_v36 = vld [vmem:[#allocation3 + $0x38] sm:$0xff] }
 0x1ad   : > { %2080 = vst.msk [vmem:[#allocation3 + $0x10] sm:$0xff] %vm16659_vm0, %v2064_v30  ;;  %v2062_v47 = vadd.f32 %v2046_v38, %v1983_v29  ;;  %v12508_v50 = vpop.f32.mrf.mxu0  ;;  %12747 = vmatmul.mubr.msk.bf16.gmra.mxu0 %vm16659_vm0, %v4217_v56  ;;  %v4621_v42 = vld [vmem:[#allocation2 + $0x79] sm:$0xff]  ;;  %v4825_v22 = vld [vmem:[#allocation2 + $0x4a] sm:$0xff] }
 0x1ae   : > { %v12517_v44 = vpop.f32.mrf.mxu1  ;;  %1877 = vst.msk [vmem:[#allocation3 + $0x48] sm:$0xff] %vm16659_vm0, %v1861_v5  ;;  %v1866_v27 = vadd.f32 %v12508_v50, %v1850_v51  ;;  %12774 = vmatprep.mubr.msk.bf16.mxu0 %vm16659_vm0, %v4630_v53  ;;  %v1848_v3 = vld [vmem:[#allocation3 + $0x60] sm:$0xff]  ;;  %v4623_v5 = vld [vmem:[#allocation2 + $0x89] sm:$0xff] }
 0x1af   : > { %2078 = vst.msk [vmem:[#allocation3] sm:$0xff] %vm16659_vm0, %v2062_v47  ;;  %v2065_v57 = vadd.f32 %v12517_v44, %v2049_v49  ;;  %12793 = vmatpush3.bf16.msra.mxu1 %v13680_v32  ;;  %v1821_v2 = vpop.f32.mrf.mxu0  ;;  %v4416_v32 = vld [vmem:[#allocation2 + $0xa0] sm:$0xff]  ;;  %v2051_v49 = vld [vmem:[#allocation3 + $0x28] sm:$0xff]  ;;  %v2056_v59 = vld [vmem:[#allocation3 + $0x50] sm:$0xff] }
 0x1b0   : > { %v1986_v46 = vpop.f32.mrf.mxu1  ;;  %12830 = vmatprep.subr.bf16.mxu1 %v14802_v45  ;;  %1882 = vst.msk [vmem:[#allocation3 + $0x70] sm:$0xff] %vm16659_vm0, %v1866_v27  ;;  %v1864_v61 = vadd.f32 %v1848_v3, %v1821_v2  ;;  %v1851_v23 = vld [vmem:[#allocation3 + $0x78] sm:$0xff]  ;;  %v14835_v20 = vpack.c.bf16 %v4417_v33, %v4416_v32  ;;  %v4622_v47 = vld [vmem:[#allocation2 + $0x81] sm:$0xff] }
 0x1b1   : > { %2081 = vst.msk [vmem:[#allocation3 + $0x18] sm:$0xff] %vm16659_vm0, %v2065_v57  ;;  %v2063_v4 = vadd.f32 %v2047_v7, %v1986_v46  ;;  %v12509_v11 = vpop.f32.mrf.mxu0  ;;  %v14837_v57 = vld [vmem:[#allocation5 + $0x168] sm:$0xff]   ;;  %v4633_v7 = vpack.c.bf16 %v4621_v42, %v4620_v26 }
 0x1b2   : > { %v12520_v10 = vpop.f32.mrf.mxu1  ;;  %12759 = vmatmul.mubr.msk.bf16.gmra.mxu1 %vm16659_vm0, %v14807_v52  ;;  %1880 = vst.msk [vmem:[#allocation3 + $0x60] sm:$0xff] %vm16659_vm0, %v1864_v61  ;;  %v1867_v28 = vadd.f32 %v12509_v11, %v1851_v23  ;;  %v1849_v13 = vld [vmem:[#allocation3 + $0x68] sm:$0xff]  ;;  %v14847_v61 = vpack.c.bf16 %v4623_v5, %v4622_v47  ;;  %v2054_v11 = vld [vmem:[#allocation3 + $0x40] sm:$0xff] }
 0x1b3   : > { %2079 = vst.msk [vmem:[#allocation3 + $0x8] sm:$0xff] %vm16659_vm0, %v2063_v4  ;;  %v2068_v24 = vadd.f32 %v12520_v10, %v2052_v6  ;;  %12762 = vmatprep.mubr.msk.bf16.mxu1 %vm16659_vm0, %v14812_v55  ;;  %v1824_v34 = vpop.f32.mrf.mxu0  ;;  %v4419_v4 = vld [vmem:[#allocation2 + $0xb8] sm:$0xff]  ;;  %v4824_v10 = vld [vmem:[#allocation2 + $0x42] sm:$0xff] }
 0x1b4   : > { %v1999_v39 = vpop.f32.mrf.mxu1  ;;  %1883 = vst.msk [vmem:[#allocation3 + $0x78] sm:$0xff] %vm16659_vm0, %v1867_v28  ;;  %v1865_v25 = vadd.f32 %v1849_v13, %v1824_v34  ;;  %v2258_v53 = vld [vmem:[#allocation3 + $0x10] sm:$0xff]  ;;  %v2057_v32 = vld [vmem:[#allocation3 + $0x58] sm:$0xff] }
 0x1b5   : > { %2084 = vst.msk [vmem:[#allocation3 + $0x30] sm:$0xff] %vm16659_vm0, %v2068_v24  ;;  %v2066_v56 = vadd.f32 %v2050_v37, %v1999_v39  ;;  %v12536_v9 = vpop.f32.mrf.mxu0  ;;  %12775 = vmatmul.mubr.msk.bf16.vlgmr.msra.gmra.mxu0 %vm16659_vm0, %v4631_v19  ;;  %v14853_v37 = vpack.c.bf16 %v4419_v4, %v4418_v1 }
 0x1b6   : > { %v12521_v30 = vpop.f32.mrf.mxu1  ;;  %1881 = vst.msk [vmem:[#allocation3 + $0x68] sm:$0xff] %vm16659_vm0, %v1865_v25  ;;  %v2274_v38 = vadd.f32 %v12536_v9, %v2258_v53  ;;  %12811 = vmatpush3.bf16.msra.mxu0 %v14753_v63  ;;  %12778 = vmatprep.mubr.msk.bf16.mxu0 %vm16659_vm0, %v14823_v31  ;;  %v2256_v51 = vld [vmem:[#allocation3] sm:$0xff]  ;;  %v4840_v25 = vpack.c.bf16 %v4825_v22, %v4824_v10  ;;  %v4628_v22 = vld [vmem:[#allocation2 + $0xb1] sm:$0xff] }
 0x1b7   : > { %2082 = vst.msk [vmem:[#allocation3 + $0x20] sm:$0xff] %vm16659_vm0, %v2066_v56  ;;  %v2069_v29 = vadd.f32 %v12521_v30, %v2053_v36  ;;  %v2193_v50 = vpop.f32.mrf.mxu0  ;;  %12812 = vmatprep.subr.bf16.mxu0 %v13681_v54  ;;  %v4625_v56 = vld [vmem:[#allocation2 + $0x99] sm:$0xff]  ;;  %v2055_v36 = vld [vmem:[#allocation3 + $0x48] sm:$0xff]  ;;  %v2060_v42 = vld [vmem:[#allocation3 + $0x70] sm:$0xff] }
 0x1b8   : > { %v2002_v44 = vpop.f32.mrf.mxu1  ;;  %2290 = vst.msk [vmem:[#allocation3 + $0x10] sm:$0xff] %vm16659_vm0, %v2274_v38  ;;  %v2272_v63 = vadd.f32 %v2256_v51, %v2193_v50  ;;  %v2259_v46 = vld [vmem:[#allocation3 + $0x18] sm:$0xff] }
 0x1b9   : > { %2085 = vst.msk [vmem:[#allocation3 + $0x38] sm:$0xff] %vm16659_vm0, %v2069_v29  ;;  %v2067_v27 = vadd.f32 %v2051_v49, %v2002_v44  ;;  %v12537_v14 = vpop.f32.mrf.mxu0  ;;  %v4826_v51 = vld [vmem:[#allocation2 + $0x52] sm:$0xff] }
 0x1ba   : > { %v12524_v58 = vpop.f32.mrf.mxu1  ;;  %12763 = vmatmul.mubr.msk.bf16.gmra.mxu1 %vm16659_vm0, %v14828_v21  ;;  %2288 = vst.msk [vmem:[#allocation3] sm:$0xff] %vm16659_vm0, %v2272_v63  ;;  %v2275_v3 = vadd.f32 %v12537_v14, %v2259_v46  ;;  %12813 = vmatpush3.bf16.msra.mxu0 %v13681_v54  ;;  %v2257_v19 = vld [vmem:[#allocation3 + $0x8] sm:$0xff]  ;;  %v4624_v54 = vld [vmem:[#allocation2 + $0x91] sm:$0xff] }
 0x1bb   : > { %2083 = vst.msk [vmem:[#allocation3 + $0x28] sm:$0xff] %vm16659_vm0, %v2067_v27  ;;  %v2072_v2 = vadd.f32 %v12524_v58, %v2056_v59  ;;  %12766 = vmatprep.mubr.msk.bf16.mxu1 %vm16659_vm0, %v14835_v20  ;;  %v2196_v23 = vpop.f32.mrf.mxu0  ;;  %12850 = vmatprep.subr.bf16.mxu0 %v14837_v57  ;;  %v4635_v44 = vpack.c.bf16 %v4625_v56, %v4624_v54  ;;  %v4827_v27 = vld [vmem:[#allocation2 + $0x5a] sm:$0xff]  ;;  %v4828_v63 = vld [vmem:[#allocation2 + $0x62] sm:$0xff] }
 0x1bc   : > { %v2015_v6 = vpop.f32.mrf.mxu1  ;;  %2291 = vst.msk [vmem:[#allocation3 + $0x18] sm:$0xff] %vm16659_vm0, %v2275_v3  ;;  %v2273_v28 = vadd.f32 %v2257_v19, %v2196_v23  ;;  %v2262_v39 = vld [vmem:[#allocation3 + $0x30] sm:$0xff]  ;;  %v2058_v59 = vld [vmem:[#allocation3 + $0x60] sm:$0xff]  ;;  %v2061_v4 = vld [vmem:[#allocation3 + $0x78] sm:$0xff] }
 0x1bd   : > { %2088 = vst.msk [vmem:[#allocation3 + $0x50] sm:$0xff] %vm16659_vm0, %v2072_v2  ;;  %v2070_v24 = vadd.f32 %v2054_v11, %v2015_v6  ;;  %v12540_v33 = vpop.f32.mrf.mxu0  ;;  %12779 = vmatmul.mubr.msk.bf16.gmra.mxu0 %vm16659_vm0, %v4633_v7  ;;  %v4829_v7 = vld [vmem:[#allocation2 + $0x6a] sm:$0xff]  ;;  %v14869_v11 = vpack.c.bf16 %v4827_v27, %v4826_v51 }
 0x1be   : > { %v12525_v17 = vpop.f32.mrf.mxu1  ;;  %2289 = vst.msk [vmem:[#allocation3 + $0x8] sm:$0xff] %vm16659_vm0, %v2273_v28  ;;  %v2278_v13 = vadd.f32 %v12540_v33, %v2262_v39  ;;  %12782 = vmatprep.mubr.msk.bf16.mxu0 %vm16659_vm0, %v14847_v61  ;;  %v2260_v53 = vld [vmem:[#allocation3 + $0x20] sm:$0xff]  ;;  %v14875_v28 = vpack.c.bf16 %v4829_v7, %v4828_v63 }
 0x1bf   : > { %2086 = vst.msk [vmem:[#allocation3 + $0x40] sm:$0xff] %vm16659_vm0, %v2070_v24  ;;  %v2073_v34 = vadd.f32 %v12525_v17, %v2057_v32  ;;  %v2209_v9 = vpop.f32.mrf.mxu0  ;;  %v4629_v24 = vld [vmem:[#allocation2 + $0xb9] sm:$0xff]  ;;  %v2059_v32 = vld [vmem:[#allocation3 + $0x68] sm:$0xff] }
 0x1c0   : > { %v2018_v30 = vpop.f32.mrf.mxu1  ;;  %2294 = vst.msk [vmem:[#allocation3 + $0x30] sm:$0xff] %vm16659_vm0, %v2278_v13  ;;  %v2276_v29 = vadd.f32 %v2260_v53, %v2209_v9  ;;  %v2263_v5 = vld [vmem:[#allocation3 + $0x38] sm:$0xff] }
 0x1c1   : > { %2089 = vst.msk [vmem:[#allocation3 + $0x58] sm:$0xff] %vm16659_vm0, %v2073_v34  ;;  %v2071_v26 = vadd.f32 %v2055_v36, %v2018_v30  ;;  %v12541_v47 = vpop.f32.mrf.mxu0  ;;  %v13684_v34 = vld [vmem:[#allocation5 + $0x150] sm:$0xff]   ;;  %v4637_v36 = vpack.c.bf16 %v4629_v24, %v4628_v22 }
 0x1c2   : > { %v12528_v38 = vpop.f32.mrf.mxu1  ;;  %12767 = vmatmul.mubr.msk.bf16.gmra.mxu1 %vm16659_vm0, %v14853_v37  ;;  %2292 = vst.msk [vmem:[#allocation3 + $0x20] sm:$0xff] %vm16659_vm0, %v2276_v29  ;;  %v2279_v50 = vadd.f32 %v12541_v47, %v2263_v5  ;;  %v2261_v46 = vld [vmem:[#allocation3 + $0x28] sm:$0xff] }
 0x1c3   : > { %2087 = vst.msk [vmem:[#allocation3 + $0x48] sm:$0xff] %vm16659_vm0, %v2071_v26  ;;  %v2076_v49 = vadd.f32 %v12528_v38, %v2060_v42  ;;  %12794 = vmatprep.mubr.msk.bf16.mxu1 %vm16659_vm0, %v4840_v25  ;;  %v2212_v14 = vpop.f32.mrf.mxu0  ;;  %v2468_v25 = vld [vmem:[#allocation3 + $0x10] sm:$0xff]  ;;  %v4832_v26 = vld [vmem:[#allocation2 + $0x82] sm:$0xff] }
 0x1c4   : > { %v2031_v58 = vpop.f32.mrf.mxu1  ;;  %2295 = vst.msk [vmem:[#allocation3 + $0x38] sm:$0xff] %vm16659_vm0, %v2279_v50  ;;  %v2277_v3 = vadd.f32 %v2261_v46, %v2212_v14  ;;  %v2266_v6 = vld [vmem:[#allocation3 + $0x50] sm:$0xff]  ;;  %v2466_v42 = vld [vmem:[#allocation3] sm:$0xff] }
 0x1c5   : > { %2092 = vst.msk [vmem:[#allocation3 + $0x70] sm:$0xff] %vm16659_vm0, %v2076_v49  ;;  %v2074_v2 = vadd.f32 %v2058_v59, %v2031_v58  ;;  %v12544_v10 = vpop.f32.mrf.mxu0  ;;  %12783 = vmatmul.mubr.msk.bf16.gmra.mxu0 %vm16659_vm0, %v4635_v44  ;;  %v4833_v29 = vld [vmem:[#allocation2 + $0x8a] sm:$0xff]  ;;  %v14886_v44 = vld [vmem:[#allocation5 + $0x178] sm:$0xff]  }
 0x1c6   : > { %v12529_v1 = vpop.f32.mrf.mxu1  ;;  %2293 = vst.msk [vmem:[#allocation3 + $0x28] sm:$0xff] %vm16659_vm0, %v2277_v3  ;;  %v2282_v19 = vadd.f32 %v12544_v10, %v2266_v6  ;;  %12786 = vmatprep.mubr.msk.bf16.mxu0 %vm16659_vm0, %v14687_v60  ;;  %v2264_v39 = vld [vmem:[#allocation3 + $0x40] sm:$0xff]  ;;  %v14895_v14 = vpack.c.bf16 %v4833_v29, %v4832_v26  ;;  %v2467_v7 = vld [vmem:[#allocation3 + $0x8] sm:$0xff] }
 0x1c7   : > { %2090 = vst.msk [vmem:[#allocation3 + $0x60] sm:$0xff] %vm16659_vm0, %v2074_v2  ;;  %v2077_v23 = vadd.f32 %v12529_v1, %v2061_v4  ;;  %v2225_v33 = vpop.f32.mrf.mxu0  ;;  %v2472_v6 = vld [vmem:[#allocation3 + $0x30] sm:$0xff] }
 0x1c8   : > { %v2034_v17 = vpop.f32.mrf.mxu1  ;;  %2298 = vst.msk [vmem:[#allocation3 + $0x50] sm:$0xff] %vm16659_vm0, %v2282_v19  ;;  %v2280_v54 = vadd.f32 %v2264_v39, %v2225_v33  ;;  %v2267_v30 = vld [vmem:[#allocation3 + $0x58] sm:$0xff]  ;;  %v4837_v33 = vld [vmem:[#allocation2 + $0xaa] sm:$0xff] }
 0x1c9   : > { %2093 = vst.msk [vmem:[#allocation3 + $0x78] sm:$0xff] %vm16659_vm0, %v2077_v23  ;;  %v2075_v13 = vadd.f32 %v2059_v32, %v2034_v17  ;;  %v12545_v60 = vpop.f32.mrf.mxu0  ;;  %v4834_v19 = vld [vmem:[#allocation2 + $0x92] sm:$0xff]  ;;  %v4835_v17 = vld [vmem:[#allocation2 + $0x9a] sm:$0xff]  ;;  %v4836_v32 = vld [vmem:[#allocation2 + $0xa2] sm:$0xff] }
 0x1ca   : > { %v12556_v56 = vpop.f32.mrf.mxu1  ;;  %12795 = vmatmul.mubr.msk.bf16.vlgmr.msra.gmra.mxu1 %vm16659_vm0, %v14869_v11  ;;  %2296 = vst.msk [vmem:[#allocation3 + $0x40] sm:$0xff] %vm16659_vm0, %v2280_v54  ;;  %v2283_v53 = vadd.f32 %v12545_v60, %v2267_v30  ;;  %v2265_v5 = vld [vmem:[#allocation3 + $0x48] sm:$0xff] }
 0x1cb   : > { %2091 = vst.msk [vmem:[#allocation3 + $0x68] sm:$0xff] %vm16659_vm0, %v2075_v13  ;;  %v2484_v9 = vadd.f32 %v12556_v56, %v2468_v25  ;;  %12831 = vmatpush3.bf16.msra.mxu1 %v14802_v45  ;;  %12798 = vmatprep.mubr.msk.bf16.mxu1 %vm16659_vm0, %v14875_v28  ;;  %v2228_v47 = vpop.f32.mrf.mxu0  ;;  %v2469_v45 = vld [vmem:[#allocation3 + $0x18] sm:$0xff] }
 0x1cc   : > { %v2403_v38 = vpop.f32.mrf.mxu1  ;;  %12832 = vmatprep.subr.bf16.mxu1 %v13684_v34  ;;  %2299 = vst.msk [vmem:[#allocation3 + $0x58] sm:$0xff] %vm16659_vm0, %v2283_v53  ;;  %v2281_v50 = vadd.f32 %v2265_v5, %v2228_v47  ;;  %v2270_v63 = vld [vmem:[#allocation3 + $0x70] sm:$0xff]  ;;  %v2473_v30 = vld [vmem:[#allocation3 + $0x38] sm:$0xff]  ;;  %v14910_v53 = vpack.c.bf16 %v4835_v17, %v4834_v19 }
 0x1cd   : > { %2500 = vst.msk [vmem:[#allocation3 + $0x10] sm:$0xff] %vm16659_vm0, %v2484_v9  ;;  %v2482_v49 = vadd.f32 %v2466_v42, %v2403_v38  ;;  %v12548_v27 = vpop.f32.mrf.mxu0  ;;  %12787 = vmatmul.mubr.msk.bf16.gmra.mxu0 %vm16659_vm0, %v4637_v36  ;;  %v14917_v38 = vpack.c.bf16 %v4837_v33, %v4836_v32  ;;  %v2471_v47 = vld [vmem:[#allocation3 + $0x28] sm:$0xff] }
 0x1ce   : > { %v12557_v51 = vpop.f32.mrf.mxu1  ;;  %2297 = vst.msk [vmem:[#allocation3 + $0x48] sm:$0xff] %vm16659_vm0, %v2281_v50  ;;  %v2286_v59 = vadd.f32 %v12548_v27, %v2270_v63  ;;  %12814 = vmatprep.mubr.msk.bf16.mxu0 %vm16659_vm0, %v14703_v62  ;;  %v2268_v3 = vld [vmem:[#allocation3 + $0x60] sm:$0xff] }
 0x1cf   : > { %2498 = vst.msk [vmem:[#allocation3] sm:$0xff] %vm16659_vm0, %v2482_v49  ;;  %v2485_v58 = vadd.f32 %v12557_v51, %v2469_v45  ;;  %12833 = vmatpush3.bf16.msra.mxu1 %v13684_v34  ;;  %v2241_v2 = vpop.f32.mrf.mxu0  ;;  %v2470_v34 = vld [vmem:[#allocation3 + $0x20] sm:$0xff] }
 0x1d0   : > { %v2406_v46 = vpop.f32.mrf.mxu1  ;;  %12870 = vmatprep.subr.bf16.mxu1 %v14886_v44  ;;  %2302 = vst.msk [vmem:[#allocation3 + $0x70] sm:$0xff] %vm16659_vm0, %v2286_v59  ;;  %v2284_v4 = vadd.f32 %v2268_v3, %v2241_v2  ;;  %v2271_v23 = vld [vmem:[#allocation3 + $0x78] sm:$0xff] }
 0x1d1   : > { %2501 = vst.msk [vmem:[#allocation3 + $0x18] sm:$0xff] %vm16659_vm0, %v2485_v58  ;;  %v2483_v1 = vadd.f32 %v2467_v7, %v2406_v46  ;;  %v12549_v62 = vpop.f32.mrf.mxu0  ;;  %v4838_v59 = vld [vmem:[#allocation2 + $0xb2] sm:$0xff]  ;;  %v4839_v46 = vld [vmem:[#allocation2 + $0xba] sm:$0xff] }
 0x1d2   : > { %v12560_v10 = vpop.f32.mrf.mxu1  ;;  %12799 = vmatmul.mubr.msk.bf16.gmra.mxu1 %vm16659_vm0, %v14681_v43  ;;  %2300 = vst.msk [vmem:[#allocation3 + $0x60] sm:$0xff] %vm16659_vm0, %v2284_v4  ;;  %v2287_v24 = vadd.f32 %v12549_v62, %v2271_v23  ;;  %v2269_v54 = vld [vmem:[#allocation3 + $0x68] sm:$0xff]  ;;  %v13685_v43 = vld [vmem:[#allocation5 + $0x160] sm:$0xff]   ;;  %v14934_v17 = vpack.c.bf16 %v4839_v46, %v4838_v59 }
 0x1d3   : > { %2499 = vst.msk [vmem:[#allocation3 + $0x8] sm:$0xff] %vm16659_vm0, %v2483_v1  ;;  %v2488_v22 = vadd.f32 %v12560_v10, %v2472_v6  ;;  %12802 = vmatprep.mubr.msk.bf16.mxu1 %vm16659_vm0, %v14895_v14  ;;  %v2244_v13 = vpop.f32.mrf.mxu0  ;;  %v5244_v7 = vld [vmem:[#allocation2 + $0x4f] sm:$0xff]  ;;  %v2474_v3 = vld [vmem:[#allocation3 + $0x40] sm:$0xff]  ;;  %v5245_v10 = vld [vmem:[#allocation2 + $0x57] sm:$0xff] }
 0x1d4   : > { %v2419_v39 = vpop.f32.mrf.mxu1  ;;  %2303 = vst.msk [vmem:[#allocation3 + $0x78] sm:$0xff] %vm16659_vm0, %v2287_v24  ;;  %v2285_v25 = vadd.f32 %v2269_v54, %v2244_v13  ;;  %v2678_v9 = vld [vmem:[#allocation3 + $0x10] sm:$0xff]  ;;  %v2477_v19 = vld [vmem:[#allocation3 + $0x58] sm:$0xff]  ;;  %v5260_v13 = vpack.c.bf16 %v5245_v10, %v5244_v7 }
 0x1d5   : > { %2504 = vst.msk [vmem:[#allocation3 + $0x30] sm:$0xff] %vm16659_vm0, %v2488_v22  ;;  %v2486_v56 = vadd.f32 %v2470_v34, %v2419_v39  ;;  %v12576_v36 = vpop.f32.mrf.mxu0  ;;  %12815 = vmatmul.mubr.msk.bf16.vlgmr.msra.gmra.mxu0 %vm16659_vm0, %v14709_v40  ;;  %v14919_v40 = vld [vmem:[#allocation5 + $0x188] sm:$0xff]   ;;  %v5044_v39 = vld [vmem:[#allocation2 + $0x9e] sm:$0xff] }
 0x1d6   : > { %v12561_v60 = vpop.f32.mrf.mxu1  ;;  %2301 = vst.msk [vmem:[#allocation3 + $0x68] sm:$0xff] %vm16659_vm0, %v2285_v25  ;;  %v2694_v29 = vadd.f32 %v12576_v36, %v2678_v9  ;;  %12851 = vmatpush3.bf16.msra.mxu0 %v14837_v57  ;;  %12818 = vmatprep.mubr.msk.bf16.mxu0 %vm16659_vm0, %v14725_v12  ;;  %v2676_v49 = vld [vmem:[#allocation3] sm:$0xff]  ;;  %v2476_v57 = vld [vmem:[#allocation3 + $0x50] sm:$0xff] }
 0x1d7   : > { %2502 = vst.msk [vmem:[#allocation3 + $0x20] sm:$0xff] %vm16659_vm0, %v2486_v56  ;;  %v2489_v26 = vadd.f32 %v12561_v60, %v2473_v30  ;;  %v2613_v5 = vpop.f32.mrf.mxu0  ;;  %12852 = vmatprep.subr.bf16.mxu0 %v13685_v43  ;;  %v5045_v34 = vld [vmem:[#allocation2 + $0xa6] sm:$0xff]  ;;  %v2480_v36 = vld [vmem:[#allocation3 + $0x70] sm:$0xff] }
 0x1d8   : > { %v2422_v42 = vpop.f32.mrf.mxu1  ;;  %2710 = vst.msk [vmem:[#allocation3 + $0x10] sm:$0xff] %vm16659_vm0, %v2694_v29  ;;  %v2692_v51 = vadd.f32 %v2676_v49, %v2613_v5  ;;  %v2679_v27 = vld [vmem:[#allocation3 + $0x18] sm:$0xff] }
 0x1d9   : > { %2505 = vst.msk [vmem:[#allocation3 + $0x38] sm:$0xff] %vm16659_vm0, %v2489_v26  ;;  %v2487_v50 = vadd.f32 %v2471_v47, %v2422_v42  ;;  %v12577_v12 = vpop.f32.mrf.mxu0  ;;  %v5055_v26 = vpack.c.bf16 %v5045_v34, %v5044_v39  ;;  %v5248_v47 = vld [vmem:[#allocation2 + $0x6f] sm:$0xff]  ;;  %v2478_v49 = vld [vmem:[#allocation3 + $0x60] sm:$0xff] }
 0x1da   : > { %v12564_v45 = vpop.f32.mrf.mxu1  ;;  %12803 = vmatmul.mubr.msk.bf16.gmra.mxu1 %vm16659_vm0, %v14910_v53  ;;  %2708 = vst.msk [vmem:[#allocation3] sm:$0xff] %vm16659_vm0, %v2692_v51  ;;  %v2695_v58 = vadd.f32 %v12577_v12, %v2679_v27  ;;  %12853 = vmatpush3.bf16.msra.mxu0 %v13685_v43  ;;  %v2677_v4 = vld [vmem:[#allocation3 + $0x8] sm:$0xff] }
 0x1db   : > { %2503 = vst.msk [vmem:[#allocation3 + $0x28] sm:$0xff] %vm16659_vm0, %v2487_v50  ;;  %v2492_v63 = vadd.f32 %v12564_v45, %v2476_v57  ;;  %12806 = vmatprep.mubr.msk.bf16.mxu1 %vm16659_vm0, %v14917_v38  ;;  %v2616_v1 = vpop.f32.mrf.mxu0  ;;  %12890 = vmatprep.subr.bf16.mxu0 %v14919_v40  ;;  %v2475_v43 = vld [vmem:[#allocation3 + $0x48] sm:$0xff]  ;;  %v5249_v45 = vld [vmem:[#allocation2 + $0x77] sm:$0xff] }
 0x1dc   : > { %v2435_v2 = vpop.f32.mrf.mxu1  ;;  %2711 = vst.msk [vmem:[#allocation3 + $0x18] sm:$0xff] %vm16659_vm0, %v2695_v58  ;;  %v2693_v62 = vadd.f32 %v2677_v4, %v2616_v1  ;;  %v2682_v24 = vld [vmem:[#allocation3 + $0x30] sm:$0xff]  ;;  %v5262_v1 = vpack.c.bf16 %v5249_v45, %v5248_v47 }
 0x1dd   : > { %2508 = vst.msk [vmem:[#allocation3 + $0x50] sm:$0xff] %vm16659_vm0, %v2492_v63  ;;  %v2490_v6 = vadd.f32 %v2474_v3, %v2435_v2  ;;  %v12580_v22 = vpop.f32.mrf.mxu0  ;;  %12819 = vmatmul.mubr.msk.bf16.gmra.mxu0 %vm16659_vm0, %v14730_v15  ;;  %v2481_v63 = vld [vmem:[#allocation3 + $0x78] sm:$0xff]  ;;  %v5049_v3 = vld [vmem:[#allocation2 + $0xc6] sm:$0xff] }
 0x1de   : > { %v12565_v23 = vpop.f32.mrf.mxu1  ;;  %2709 = vst.msk [vmem:[#allocation3 + $0x8] sm:$0xff] %vm16659_vm0, %v2693_v62  ;;  %v2698_v33 = vadd.f32 %v12580_v22, %v2682_v24  ;;  %12822 = vmatprep.mubr.msk.bf16.mxu0 %vm16659_vm0, %v14746_v41  ;;  %v2680_v25 = vld [vmem:[#allocation3 + $0x20] sm:$0xff]  ;;  %v2479_v10 = vld [vmem:[#allocation3 + $0x68] sm:$0xff] }
 0x1df   : > { %2506 = vst.msk [vmem:[#allocation3 + $0x40] sm:$0xff] %vm16659_vm0, %v2490_v6  ;;  %v2493_v32 = vadd.f32 %v12565_v23, %v2477_v19  ;;  %v2629_v56 = vpop.f32.mrf.mxu0  ;;  %v5048_v2 = vld [vmem:[#allocation2 + $0xbe] sm:$0xff]  ;;  %v13688_v23 = vld [vmem:[#allocation5 + $0x170] sm:$0xff]  }
 0x1e0   : > { %v2438_v54 = vpop.f32.mrf.mxu1  ;;  %2714 = vst.msk [vmem:[#allocation3 + $0x30] sm:$0xff] %vm16659_vm0, %v2698_v33  ;;  %v2696_v60 = vadd.f32 %v2680_v25, %v2629_v56  ;;  %v2683_v41 = vld [vmem:[#allocation3 + $0x38] sm:$0xff]  ;;  %v5057_v39 = vpack.c.bf16 %v5049_v3, %v5048_v2 }
 0x1e1   : > { %2509 = vst.msk [vmem:[#allocation3 + $0x58] sm:$0xff] %vm16659_vm0, %v2493_v32  ;;  %v2491_v15 = vadd.f32 %v2475_v43, %v2438_v54  ;;  %v12581_v9 = vpop.f32.mrf.mxu0  ;;  %v2888_v32 = vld [vmem:[#allocation3 + $0x10] sm:$0xff]  ;;  %v2886_v56 = vld [vmem:[#allocation3] sm:$0xff] }
 0x1e2   : > { %v12568_v30 = vpop.f32.mrf.mxu1  ;;  %12807 = vmatmul.mubr.msk.bf16.gmra.mxu1 %vm16659_vm0, %v14934_v17  ;;  %2712 = vst.msk [vmem:[#allocation3 + $0x20] sm:$0xff] %vm16659_vm0, %v2696_v60  ;;  %v2699_v42 = vadd.f32 %v12581_v9, %v2683_v41  ;;  %v2681_v51 = vld [vmem:[#allocation3 + $0x28] sm:$0xff]  ;;  %v5253_v60 = vld [vmem:[#allocation2 + $0x97] sm:$0xff] }
 0x1e3   : > { %2507 = vst.msk [vmem:[#allocation3 + $0x48] sm:$0xff] %vm16659_vm0, %v2491_v15  ;;  %v2496_v29 = vadd.f32 %v12568_v30, %v2480_v36  ;;  %12834 = vmatprep.mubr.msk.bf16.mxu1 %vm16659_vm0, %v5260_v13  ;;  %v2632_v50 = vpop.f32.mrf.mxu0  ;;  %v5252_v54 = vld [vmem:[#allocation2 + $0x8f] sm:$0xff]  ;;  %v2889_v9 = vld [vmem:[#allocation3 + $0x18] sm:$0xff] }
 0x1e4   : > { %v2451_v5 = vpop.f32.mrf.mxu1  ;;  %2715 = vst.msk [vmem:[#allocation3 + $0x38] sm:$0xff] %vm16659_vm0, %v2699_v42  ;;  %v2697_v12 = vadd.f32 %v2681_v51, %v2632_v50  ;;  %v2686_v59 = vld [vmem:[#allocation3 + $0x50] sm:$0xff]  ;;  %v5264_v42 = vpack.c.bf16 %v5253_v60, %v5252_v54 }
 0x1e5   : > { %2512 = vst.msk [vmem:[#allocation3 + $0x70] sm:$0xff] %vm16659_vm0, %v2496_v29  ;;  %v2494_v57 = vadd.f32 %v2478_v49, %v2451_v5  ;;  %v12584_v58 = vpop.f32.mrf.mxu0  ;;  %12823 = vmatmul.mubr.msk.bf16.gmra.mxu0 %vm16659_vm0, %v5055_v26  ;;  %v2887_v5 = vld [vmem:[#allocation3 + $0x8] sm:$0xff]  ;;  %v5257_v2 = vld [vmem:[#allocation2 + $0xb7] sm:$0xff] }
 0x1e6   : > { %v12569_v27 = vpop.f32.mrf.mxu1  ;;  %2713 = vst.msk [vmem:[#allocation3 + $0x28] sm:$0xff] %vm16659_vm0, %v2697_v12  ;;  %v2702_v7 = vadd.f32 %v12584_v58, %v2686_v59  ;;  %12826 = vmatprep.mubr.msk.bf16.mxu0 %vm16659_vm0, %v14769_v35  ;;  %v2684_v62 = vld [vmem:[#allocation3 + $0x40] sm:$0xff] }
 0x1e7   : > { %2510 = vst.msk [vmem:[#allocation3 + $0x60] sm:$0xff] %vm16659_vm0, %v2494_v57  ;;  %v2497_v46 = vadd.f32 %v12569_v27, %v2481_v63  ;;  %v2645_v6 = vpop.f32.mrf.mxu0  ;;  %v2892_v12 = vld [vmem:[#allocation3 + $0x30] sm:$0xff]  ;;  %v5254_v63 = vld [vmem:[#allocation2 + $0x9f] sm:$0xff] }
 0x1e8   : > { %v2454_v4 = vpop.f32.mrf.mxu1  ;;  %2718 = vst.msk [vmem:[#allocation3 + $0x50] sm:$0xff] %vm16659_vm0, %v2702_v7  ;;  %v2700_v22 = vadd.f32 %v2684_v62, %v2645_v6  ;;  %v2687_v33 = vld [vmem:[#allocation3 + $0x58] sm:$0xff]  ;;  %v5256_v7 = vld [vmem:[#allocation2 + $0xaf] sm:$0xff]  ;;  %v13689_v6 = vld [vmem:[#allocation5 + $0x180] sm:$0xff]  }
 0x1e9   : > { %2513 = vst.msk [vmem:[#allocation3 + $0x78] sm:$0xff] %vm16659_vm0, %v2497_v46  ;;  %v2495_v19 = vadd.f32 %v2479_v10, %v2454_v4  ;;  %v12585_v35 = vpop.f32.mrf.mxu0  ;;  %v5255_v46 = vld [vmem:[#allocation2 + $0xa7] sm:$0xff] }
 0x1ea   : > { %v12596_v24 = vpop.f32.mrf.mxu1  ;;  %12835 = vmatmul.mubr.msk.bf16.vlgmr.msra.gmra.mxu1 %vm16659_vm0, %v14741_v16  ;;  %2716 = vst.msk [vmem:[#allocation3 + $0x40] sm:$0xff] %vm16659_vm0, %v2700_v22  ;;  %v2703_v13 = vadd.f32 %v12585_v35, %v2687_v33  ;;  %v2685_v15 = vld [vmem:[#allocation3 + $0x48] sm:$0xff] }
 0x1eb   : > { %2511 = vst.msk [vmem:[#allocation3 + $0x68] sm:$0xff] %vm16659_vm0, %v2495_v19  ;;  %v2904_v34 = vadd.f32 %v12596_v24, %v2888_v32  ;;  %12871 = vmatpush3.bf16.msra.mxu1 %v14886_v44  ;;  %12838 = vmatprep.mubr.msk.bf16.mxu1 %vm16659_vm0, %v5262_v1  ;;  %v2648_v25 = vpop.f32.mrf.mxu0  ;;  %v2890_v1 = vld [vmem:[#allocation3 + $0x20] sm:$0xff]  ;;  %v2893_v19 = vld [vmem:[#allocation3 + $0x38] sm:$0xff]  ;;  %v5265_v32 = vpack.c.bf16 %v5255_v46, %v5254_v63 }
 0x1ec   : > { %v2823_v43 = vpop.f32.mrf.mxu1  ;;  %12872 = vmatprep.subr.bf16.mxu1 %v13688_v23  ;;  %2719 = vst.msk [vmem:[#allocation3 + $0x58] sm:$0xff] %vm16659_vm0, %v2703_v13  ;;  %v2701_v30 = vadd.f32 %v2685_v15, %v2648_v25  ;;  %v2690_v26 = vld [vmem:[#allocation3 + $0x70] sm:$0xff] }
 0x1ed   : > { %2920 = vst.msk [vmem:[#allocation3 + $0x10] sm:$0xff] %vm16659_vm0, %v2904_v34  ;;  %v2902_v16 = vadd.f32 %v2886_v56, %v2823_v43  ;;  %v12588_v41 = vpop.f32.mrf.mxu0  ;;  %12827 = vmatmul.mubr.msk.bf16.gmra.mxu0 %vm16659_vm0, %v5057_v39  ;;  %v5266_v39 = vpack.c.bf16 %v5257_v2, %v5256_v7  ;;  %v2891_v13 = vld [vmem:[#allocation3 + $0x28] sm:$0xff] }
 0x1ee   : > { %v12597_v36 = vpop.f32.mrf.mxu1  ;;  %2717 = vst.msk [vmem:[#allocation3 + $0x48] sm:$0xff] %vm16659_vm0, %v2701_v30  ;;  %v2706_v29 = vadd.f32 %v12588_v41, %v2690_v26  ;;  %12854 = vmatprep.mubr.msk.bf16.mxu0 %vm16659_vm0, %v14785_v8  ;;  %v2688_v50 = vld [vmem:[#allocation3 + $0x60] sm:$0xff] }
 0x1ef   : > { %2918 = vst.msk [vmem:[#allocation3] sm:$0xff] %vm16659_vm0, %v2902_v16  ;;  %v2905_v44 = vadd.f32 %v12597_v36, %v2889_v9  ;;  %12873 = vmatpush3.bf16.msra.mxu1 %v13688_v23  ;;  %v2661_v49 = vpop.f32.mrf.mxu0  ;;  %v2896_v15 = vld [vmem:[#allocation3 + $0x50] sm:$0xff]  ;;  %v5258_v30 = vld [vmem:[#allocation2 + $0xbf] sm:$0xff]  ;;  %v5259_v36 = vld [vmem:[#allocation2 + $0xc7] sm:$0xff] }
 0x1f0   : > { %v2826_v47 = vpop.f32.mrf.mxu1  ;;  %12910 = vmatprep.subr.mxu1 %v14038_v0  ;;  %2722 = vst.msk [vmem:[#allocation3 + $0x70] sm:$0xff] %vm16659_vm0, %v2706_v29  ;;  %v2704_v45 = vadd.f32 %v2688_v50, %v2661_v49  ;;  %v2691_v27 = vld [vmem:[#allocation3 + $0x78] sm:$0xff] }
 0x1f1   : > { %2921 = vst.msk [vmem:[#allocation3 + $0x18] sm:$0xff] %vm16659_vm0, %v2905_v44  ;;  %v2903_v51 = vadd.f32 %v2887_v5, %v2826_v47  ;;  %v12589_v8 = vpop.f32.mrf.mxu0  ;;  %v5664_v9 = vld [vmem:[#allocation2 + $0x51] sm:$0xff]  ;;  %v2894_v26 = vld [vmem:[#allocation3 + $0x40] sm:$0xff] }
 0x1f2   : > { %v12600_v57 = vpop.f32.mrf.mxu1  ;;  %12839 = vmatmul.mubr.msk.bf16.gmra.mxu1 %vm16659_vm0, %v14763_v18  ;;  %2720 = vst.msk [vmem:[#allocation3 + $0x60] sm:$0xff] %vm16659_vm0, %v2704_v45  ;;  %v2707_v59 = vadd.f32 %v12589_v8, %v2691_v27  ;;  %v2689_v10 = vld [vmem:[#allocation3 + $0x68] sm:$0xff] }
 0x1f3   : > { %2919 = vst.msk [vmem:[#allocation3 + $0x8] sm:$0xff] %vm16659_vm0, %v2903_v51  ;;  %v2908_v58 = vadd.f32 %v12600_v57, %v2892_v12  ;;  %12842 = vmatprep.mubr.msk.bf16.mxu1 %vm16659_vm0, %v5264_v42  ;;  %v2664_v4 = vpop.f32.mrf.mxu0  ;;  %v5665_v42 = vld [vmem:[#allocation2 + $0x59] sm:$0xff]  ;;  %v5267_v57 = vpack.c.bf16 %v5259_v36, %v5258_v30 }
 0x1f4   : > { %v2839_v3 = vpop.f32.mrf.mxu1  ;;  %2723 = vst.msk [vmem:[#allocation3 + $0x78] sm:$0xff] %vm16659_vm0, %v2707_v59  ;;  %v2705_v62 = vadd.f32 %v2689_v10, %v2664_v4  ;;  %v3098_v24 = vld [vmem:[#allocation3 + $0x10] sm:$0xff]  ;;  %v2897_v50 = vld [vmem:[#allocation3 + $0x58] sm:$0xff]  ;;  %v5680_v27 = vpack.c.bf16 %v5665_v42, %v5664_v9 }
 0x1f5   : > { %2924 = vst.msk [vmem:[#allocation3 + $0x30] sm:$0xff] %vm16659_vm0, %v2908_v58  ;;  %v2906_v18 = vadd.f32 %v2890_v1, %v2839_v3  ;;  %v12616_v22 = vpop.f32.mrf.mxu0  ;;  %12855 = vmatmul.mubr.msk.bf16.vlgmr.msra.gmra.mxu0 %vm16659_vm0, %v14791_v48  ;;  %v2895_v58 = vld [vmem:[#allocation3 + $0x48] sm:$0xff] }
 0x1f6   : > { %v12601_v23 = vpop.f32.mrf.mxu1  ;;  %2721 = vst.msk [vmem:[#allocation3 + $0x68] sm:$0xff] %vm16659_vm0, %v2705_v62  ;;  %v3114_v33 = vadd.f32 %v12616_v22, %v3098_v24  ;;  %12891 = vmatpush3.bf16.msra.mxu0 %v14919_v40  ;;  %12858 = vmatprep.mubr.msk.bf16.mxu0 %vm16659_vm0, %v14807_v52  ;;  %v3096_v43 = vld [vmem:[#allocation3] sm:$0xff] }
 0x1f7   : > { %2922 = vst.msk [vmem:[#allocation3 + $0x20] sm:$0xff] %vm16659_vm0, %v2906_v18  ;;  %v2909_v35 = vadd.f32 %v12601_v23, %v2893_v19  ;;  %v3033_v54 = vpop.f32.mrf.mxu0  ;;  %12892 = vmatprep.subr.bf16.mxu0 %v13689_v6  ;;  %v2900_v3 = vld [vmem:[#allocation3 + $0x70] sm:$0xff]  ;;  %v5669_v22 = vld [vmem:[#allocation2 + $0x79] sm:$0xff] }
 0x1f8   : > { %v2842_v34 = vpop.f32.mrf.mxu1  ;;  %3130 = vst.msk [vmem:[#allocation3 + $0x10] sm:$0xff] %vm16659_vm0, %v3114_v33  ;;  %v3112_v56 = vadd.f32 %v3096_v43, %v3033_v54  ;;  %v3099_v60 = vld [vmem:[#allocation3 + $0x18] sm:$0xff]  ;;  %v5468_v43 = vld [vmem:[#allocation2 + $0xc0] sm:$0xff] }
 0x1f9   : > { %2925 = vst.msk [vmem:[#allocation3 + $0x38] sm:$0xff] %vm16659_vm0, %v2909_v35  ;;  %v2907_v48 = vadd.f32 %v2891_v13, %v2842_v34  ;;  %v12617_v40 = vpop.f32.mrf.mxu0  ;;  %v2898_v62 = vld [vmem:[#allocation3 + $0x60] sm:$0xff] }
 0x1fa   : > { %v12604_v25 = vpop.f32.mrf.mxu1  ;;  %12843 = vmatmul.mubr.msk.bf16.gmra.mxu1 %vm16659_vm0, %v5265_v32  ;;  %3128 = vst.msk [vmem:[#allocation3] sm:$0xff] %vm16659_vm0, %v3112_v56  ;;  %v3115_v16 = vadd.f32 %v12617_v40, %v3099_v60  ;;  %12893 = vmatpush3.bf16.msra.mxu0 %v13689_v6  ;;  %v3097_v29 = vld [vmem:[#allocation3 + $0x8] sm:$0xff]  ;;  %v5668_v6 = vld [vmem:[#allocation2 + $0x71] sm:$0xff] }
 0x1fb   : > { %2923 = vst.msk [vmem:[#allocation3 + $0x28] sm:$0xff] %vm16659_vm0, %v2907_v48  ;;  %v2912_v52 = vadd.f32 %v12604_v25, %v2896_v15  ;;  %12846 = vmatprep.mubr.msk.bf16.mxu1 %vm16659_vm0, %v5266_v39  ;;  %v3036_v44 = vpop.f32.mrf.mxu0  ;;  %12945 = vmatprep.subr.mxu0 %v14038_v0  ;;  %v2901_v33 = vld [vmem:[#allocation3 + $0x78] sm:$0xff]  ;;  %v5469_v48 = vld [vmem:[#allocation2 + $0xc8] sm:$0xff]  ;;  %v5682_v56 = vpack.c.bf16 %v5669_v22, %v5668_v6 }
 0x1fc   : > { %v2855_v41 = vpop.f32.mrf.mxu1  ;;  %3131 = vst.msk [vmem:[#allocation3 + $0x18] sm:$0xff] %vm16659_vm0, %v3115_v16  ;;  %v3113_v5 = vadd.f32 %v3097_v29, %v3036_v44  ;;  %v3102_v45 = vld [vmem:[#allocation3 + $0x30] sm:$0xff]  ;;  %v5477_v9 = vpack.c.bf16 %v5469_v48, %v5468_v43 }
 0x1fd   : > { %2928 = vst.msk [vmem:[#allocation3 + $0x50] sm:$0xff] %vm16659_vm0, %v2912_v52  ;;  %v2910_v47 = vadd.f32 %v2894_v26, %v2855_v41  ;;  %v12620_v51 = vpop.f32.mrf.mxu0  ;;  %12859 = vmatmul.mubr.msk.bf16.gmra.mxu0 %vm16659_vm0, %v14812_v55  ;;  %v2899_v15 = vld [vmem:[#allocation3 + $0x68] sm:$0xff]  ;;  %v5672_v44 = vld [vmem:[#allocation2 + $0x91] sm:$0xff] }
 0x1fe   : > { %v12605_v49 = vpop.f32.mrf.mxu1  ;;  %3129 = vst.msk [vmem:[#allocation3 + $0x8] sm:$0xff] %vm16659_vm0, %v3113_v5  ;;  %v3118_v8 = vadd.f32 %v12620_v51, %v3102_v45  ;;  %12862 = vmatprep.mubr.msk.bf16.mxu0 %vm16659_vm0, %v14828_v21  ;;  %v3100_v46 = vld [vmem:[#allocation3 + $0x20] sm:$0xff]  ;;  %v5676_v22 = vld [vmem:[#allocation2 + $0xb1] sm:$0xff] }
 0x1ff   : > { %2926 = vst.msk [vmem:[#allocation3 + $0x40] sm:$0xff] %vm16659_vm0, %v2910_v47  ;;  %v2913_v12 = vadd.f32 %v12605_v49, %v2897_v50  ;;  %v3049_v59 = vpop.f32.mrf.mxu0  ;;  %v3308_v30 = vld [vmem:[#allocation3 + $0x10] sm:$0xff]  ;;  %v5673_v49 = vld [vmem:[#allocation2 + $0x99] sm:$0xff] }
 0x200   : > { %v2858_v63 = vpop.f32.mrf.mxu1  ;;  %3134 = vst.msk [vmem:[#allocation3 + $0x30] sm:$0xff] %vm16659_vm0, %v3118_v8  ;;  %v3116_v55 = vadd.f32 %v3100_v46, %v3049_v59  ;;  %v3103_v4 = vld [vmem:[#allocation3 + $0x38] sm:$0xff] }
 0x201   : > { %2929 = vst.msk [vmem:[#allocation3 + $0x58] sm:$0xff] %vm16659_vm0, %v2913_v12  ;;  %v2911_v7 = vadd.f32 %v2895_v58, %v2858_v63  ;;  %v12621_v1 = vpop.f32.mrf.mxu0  ;;  %v3306_v42 = vld [vmem:[#allocation3] sm:$0xff]  ;;  %v5684_v63 = vpack.c.bf16 %v5673_v49, %v5672_v44  ;;  %v5878_v58 = vld [vmem:[#allocation2 + $0x72] sm:$0xff] }
 0x202   : > { %v12608_v2 = vpop.f32.mrf.mxu1  ;;  %12847 = vmatmul.mubr.msk.bf16.gmra.mxu1 %vm16659_vm0, %v5267_v57  ;;  %3132 = vst.msk [vmem:[#allocation3 + $0x20] sm:$0xff] %vm16659_vm0, %v3116_v55  ;;  %v3119_v10 = vadd.f32 %v12621_v1, %v3103_v4  ;;  %v3101_v19 = vld [vmem:[#allocation3 + $0x28] sm:$0xff] }
 0x203   : > { %2927 = vst.msk [vmem:[#allocation3 + $0x48] sm:$0xff] %vm16659_vm0, %v2911_v7  ;;  %v2916_v21 = vadd.f32 %v12608_v2, %v2900_v3  ;;  %12874 = vmatprep.mubr.msk.bf16.mxu1 %vm16659_vm0, %v5680_v27  ;;  %v3052_v23 = vpop.f32.mrf.mxu0  ;;  %v3309_v45 = vld [vmem:[#allocation3 + $0x18] sm:$0xff] }
 0x204   : > { %v2871_v18 = vpop.f32.mrf.mxu1  ;;  %3135 = vst.msk [vmem:[#allocation3 + $0x38] sm:$0xff] %vm16659_vm0, %v3119_v10  ;;  %v3117_v32 = vadd.f32 %v3101_v19, %v3052_v23  ;;  %v3106_v34 = vld [vmem:[#allocation3 + $0x50] sm:$0xff]  ;;  %v5879_v2 = vld [vmem:[#allocation2 + $0x7a] sm:$0xff] }
 0x205   : > { %2932 = vst.msk [vmem:[#allocation3 + $0x70] sm:$0xff] %vm16659_vm0, %v2916_v21  ;;  %v2914_v24 = vadd.f32 %v2898_v62, %v2871_v18  ;;  %v12624_v39 = vpop.f32.mrf.mxu0  ;;  %12863 = vmatmul.mubr.msk.bf16.gmra.mxu0 %vm16659_vm0, %v14835_v20  ;;  %v3307_v46 = vld [vmem:[#allocation3 + $0x8] sm:$0xff]  ;;  %v5892_v19 = vpack.c.bf16 %v5879_v2, %v5878_v58 }
 0x206   : > { %v12609_v35 = vpop.f32.mrf.mxu1  ;;  %3133 = vst.msk [vmem:[#allocation3 + $0x28] sm:$0xff] %vm16659_vm0, %v3117_v32  ;;  %v3122_v54 = vadd.f32 %v12624_v39, %v3106_v34  ;;  %12866 = vmatprep.mubr.msk.bf16.mxu0 %vm16659_vm0, %v14853_v37  ;;  %v3104_v60 = vld [vmem:[#allocation3 + $0x40] sm:$0xff]  ;;  %v5675_v23 = vld [vmem:[#allocation2 + $0xa9] sm:$0xff] }
 0x207   : > { %2930 = vst.msk [vmem:[#allocation3 + $0x60] sm:$0xff] %vm16659_vm0, %v2914_v24  ;;  %v2917_v13 = vadd.f32 %v12609_v35, %v2901_v33  ;;  %v3065_v40 = vpop.f32.mrf.mxu0  ;;  %v3312_v21 = vld [vmem:[#allocation3 + $0x30] sm:$0xff]  ;;  %v5674_v62 = vld [vmem:[#allocation2 + $0xa1] sm:$0xff]  ;;  %v5677_v39 = vld [vmem:[#allocation2 + $0xb9] sm:$0xff] }
 0x208   : > { %v2874_v25 = vpop.f32.mrf.mxu1  ;;  %3138 = vst.msk [vmem:[#allocation3 + $0x50] sm:$0xff] %vm16659_vm0, %v3122_v54  ;;  %v3120_v20 = vadd.f32 %v3104_v60, %v3065_v40  ;;  %v3107_v37 = vld [vmem:[#allocation3 + $0x58] sm:$0xff]  ;;  %v5686_v40 = vpack.c.bf16 %v5677_v39, %v5676_v22 }
 0x209   : > { %2933 = vst.msk [vmem:[#allocation3 + $0x78] sm:$0xff] %vm16659_vm0, %v2917_v13  ;;  %v2915_v52 = vadd.f32 %v2899_v15, %v2874_v25  ;;  %v12625_v36 = vpop.f32.mrf.mxu0  ;;  %v3310_v32 = vld [vmem:[#allocation3 + $0x20] sm:$0xff] }
 0x20a   : > { %v12636_v16 = vpop.f32.mrf.mxu1  ;;  %12875 = vmatmul.mubr.msk.bf16.vlgmr.msra.gmra.mxu1 %vm16659_vm0, %v14823_v31  ;;  %3136 = vst.msk [vmem:[#allocation3 + $0x40] sm:$0xff] %vm16659_vm0, %v3120_v20  ;;  %v3123_v26 = vadd.f32 %v12625_v36, %v3107_v37  ;;  %v3105_v5 = vld [vmem:[#allocation3 + $0x48] sm:$0xff] }
 0x20b   : > { %2931 = vst.msk [vmem:[#allocation3 + $0x68] sm:$0xff] %vm16659_vm0, %v2915_v52  ;;  %v3324_v41 = vadd.f32 %v12636_v16, %v3308_v30  ;;  %12878 = vmatprep.mubr.msk.bf16.mxu1 %vm16659_vm0, %v5682_v56  ;;  %v3068_v47 = vpop.f32.mrf.mxu0  ;;  %v3313_v54 = vld [vmem:[#allocation3 + $0x38] sm:$0xff]  ;;  %v5685_v56 = vpack.c.bf16 %v5675_v23, %v5674_v62 }
 0x20c   : > { %v3243_v29 = vpop.f32.mrf.mxu1  ;;  %3139 = vst.msk [vmem:[#allocation3 + $0x58] sm:$0xff] %vm16659_vm0, %v3123_v26  ;;  %v3121_v50 = vadd.f32 %v3105_v5, %v3068_v47  ;;  %v3110_v12 = vld [vmem:[#allocation3 + $0x70] sm:$0xff] }
 0x20d   : > { %3340 = vst.msk [vmem:[#allocation3 + $0x10] sm:$0xff] %vm16659_vm0, %v3324_v41  ;;  %v3322_v31 = vadd.f32 %v3306_v42, %v3243_v29  ;;  %v12628_v57 = vpop.f32.mrf.mxu0  ;;  %12867 = vmatmul.mubr.msk.bf16.gmra.mxu0 %vm16659_vm0, %v5477_v9  ;;  %v3311_v52 = vld [vmem:[#allocation3 + $0x28] sm:$0xff] }
 0x20e   : > { %v12637_v51 = vpop.f32.mrf.mxu1  ;;  %3137 = vst.msk [vmem:[#allocation3 + $0x48] sm:$0xff] %vm16659_vm0, %v3121_v50  ;;  %v3126_v27 = vadd.f32 %v12628_v57, %v3110_v12  ;;  %12894 = vmatprep.mubr.msk.bf16.mxu0 %vm16659_vm0, %v14869_v11  ;;  %v3108_v55 = vld [vmem:[#allocation3 + $0x60] sm:$0xff]  ;;  %v5679_v42 = vld [vmem:[#allocation2 + $0xc9] sm:$0xff] }
 0x20f   : > { %3338 = vst.msk [vmem:[#allocation3] sm:$0xff] %vm16659_vm0, %v3322_v31  ;;  %v3325_v8 = vadd.f32 %v12637_v51, %v3309_v45  ;;  %v3081_v7 = vpop.f32.mrf.mxu0  ;;  %v3316_v37 = vld [vmem:[#allocation3 + $0x50] sm:$0xff]  ;;  %v5678_v29 = vld [vmem:[#allocation2 + $0xc1] sm:$0xff] }
 0x210   : > { %v3246_v59 = vpop.f32.mrf.mxu1  ;;  %3142 = vst.msk [vmem:[#allocation3 + $0x70] sm:$0xff] %vm16659_vm0, %v3126_v27  ;;  %v3124_v1 = vadd.f32 %v3108_v55, %v3081_v7  ;;  %v3111_v11 = vld [vmem:[#allocation3 + $0x78] sm:$0xff]  ;;  %v5687_v27 = vpack.c.bf16 %v5679_v42, %v5678_v29 }
 0x211   : > { %3341 = vst.msk [vmem:[#allocation3 + $0x18] sm:$0xff] %vm16659_vm0, %v3325_v8  ;;  %v3323_v3 = vadd.f32 %v3307_v46, %v3246_v59  ;;  %v12629_v10 = vpop.f32.mrf.mxu0  ;;  %v3314_v5 = vld [vmem:[#allocation3 + $0x40] sm:$0xff] }
 0x212   : > { %v12640_v4 = vpop.f32.mrf.mxu1  ;;  %12879 = vmatmul.mubr.msk.bf16.gmra.mxu1 %vm16659_vm0, %v14847_v61  ;;  %3140 = vst.msk [vmem:[#allocation3 + $0x60] sm:$0xff] %vm16659_vm0, %v3124_v1  ;;  %v3127_v18 = vadd.f32 %v12629_v10, %v3111_v11  ;;  %v3109_v33 = vld [vmem:[#allocation3 + $0x68] sm:$0xff] }
 0x213   : > { %3339 = vst.msk [vmem:[#allocation3 + $0x8] sm:$0xff] %vm16659_vm0, %v3323_v3  ;;  %v3328_v6 = vadd.f32 %v12640_v4, %v3312_v21  ;;  %12882 = vmatprep.mubr.msk.bf16.mxu1 %vm16659_vm0, %v5684_v63  ;;  %v3084_v35 = vpop.f32.mrf.mxu0  ;;  %v3317_v57 = vld [vmem:[#allocation3 + $0x58] sm:$0xff] }
 0x214   : > { %v3259_v24 = vpop.f32.mrf.mxu1  ;;  %3143 = vst.msk [vmem:[#allocation3 + $0x78] sm:$0xff] %vm16659_vm0, %v3127_v18  ;;  %v3125_v34 = vadd.f32 %v3109_v33, %v3084_v35  ;;  %v3518_v48 = vld [vmem:[#allocation3 + $0x10] sm:$0xff] }
 0x215   : > { %3344 = vst.msk [vmem:[#allocation3 + $0x30] sm:$0xff] %vm16659_vm0, %v3328_v6  ;;  %v3326_v61 = vadd.f32 %v3310_v32, %v3259_v24  ;;  %v12656_v43 = vpop.f32.mrf.mxu0  ;;  %12895 = vmatmul.mubr.msk.bf16.vlgmr.msra.gmra.mxu0 %vm16659_vm0, %v14875_v28  ;;  %v3315_v46 = vld [vmem:[#allocation3 + $0x48] sm:$0xff] }
 0x216   : > { %v12641_v13 = vpop.f32.mrf.mxu1  ;;  %3141 = vst.msk [vmem:[#allocation3 + $0x68] sm:$0xff] %vm16659_vm0, %v3125_v34  ;;  %v3534_v15 = vadd.f32 %v12656_v43, %v3518_v48  ;;  %12898 = vmatprep.mubr.msk.bf16.mxu0 %vm16659_vm0, %v5892_v19  ;;  %v3516_v16 = vld [vmem:[#allocation3] sm:$0xff]  ;;  %v5889_v34 = vld [vmem:[#allocation2 + $0xca] sm:$0xff] }
 0x217   : > { %3342 = vst.msk [vmem:[#allocation3 + $0x20] sm:$0xff] %vm16659_vm0, %v3326_v61  ;;  %v3329_v25 = vadd.f32 %v12641_v13, %v3313_v54  ;;  %v3453_v20 = vpop.f32.mrf.mxu0  ;;  %v3320_v1 = vld [vmem:[#allocation3 + $0x70] sm:$0xff]  ;;  %v5888_v61 = vld [vmem:[#allocation2 + $0xc2] sm:$0xff] }
 0x218   : > { %v3262_v60 = vpop.f32.mrf.mxu1  ;;  %3550 = vst.msk [vmem:[#allocation3 + $0x10] sm:$0xff] %vm16659_vm0, %v3534_v15  ;;  %v3532_v28 = vadd.f32 %v3516_v16, %v3453_v20  ;;  %v3519_v41 = vld [vmem:[#allocation3 + $0x18] sm:$0xff] }
 0x219   : > { %3345 = vst.msk [vmem:[#allocation3 + $0x38] sm:$0xff] %vm16659_vm0, %v3329_v25  ;;  %v3327_v30 = vadd.f32 %v3311_v52, %v3262_v60  ;;  %v12657_v9 = vpop.f32.mrf.mxu0  ;;  %v3318_v6 = vld [vmem:[#allocation3 + $0x60] sm:$0xff]  ;;  %v5897_v52 = vpack.c.bf16 %v5889_v34, %v5888_v61 }
 0x21a   : > { %v12644_v36 = vpop.f32.mrf.mxu1  ;;  %12883 = vmatmul.mubr.msk.bf16.gmra.mxu1 %vm16659_vm0, %v5685_v56  ;;  %3548 = vst.msk [vmem:[#allocation3] sm:$0xff] %vm16659_vm0, %v3532_v28  ;;  %v3535_v44 = vadd.f32 %v12657_v9, %v3519_v41  ;;  %v3517_v31 = vld [vmem:[#allocation3 + $0x8] sm:$0xff] }
 0x21b   : > { %3343 = vst.msk [vmem:[#allocation3 + $0x28] sm:$0xff] %vm16659_vm0, %v3327_v30  ;;  %v3332_v26 = vadd.f32 %v12644_v36, %v3316_v37  ;;  %12886 = vmatprep.mubr.msk.bf16.mxu1 %vm16659_vm0, %v5686_v40  ;;  %v3456_v49 = vpop.f32.mrf.mxu0  ;;  %v3321_v24 = vld [vmem:[#allocation3 + $0x78] sm:$0xff] }
 0x21c   : > { %v3275_v47 = vpop.f32.mrf.mxu1  ;;  %3551 = vst.msk [vmem:[#allocation3 + $0x18] sm:$0xff] %vm16659_vm0, %v3535_v44  ;;  %v3533_v51 = vadd.f32 %v3517_v31, %v3456_v49  ;;  %v3522_v8 = vld [vmem:[#allocation3 + $0x30] sm:$0xff] }
 0x21d   : > { %3348 = vst.msk [vmem:[#allocation3 + $0x50] sm:$0xff] %vm16659_vm0, %v3332_v26  ;;  %v3330_v50 = vadd.f32 %v3314_v5, %v3275_v47  ;;  %v12660_v12 = vpop.f32.mrf.mxu0  ;;  %12899 = vmatmul.mubr.msk.bf16.gmra.mxu0 %vm16659_vm0, %v14895_v14  ;;  %v3319_v54 = vld [vmem:[#allocation3 + $0x68] sm:$0xff] }
 0x21e   : > { %v12645_v45 = vpop.f32.mrf.mxu1  ;;  %3549 = vst.msk [vmem:[#allocation3 + $0x8] sm:$0xff] %vm16659_vm0, %v3533_v51  ;;  %v3538_v58 = vadd.f32 %v12660_v12, %v3522_v8  ;;  %12902 = vmatprep.mubr.msk.bf16.mxu0 %vm16659_vm0, %v14910_v53  ;;  %v3520_v55 = vld [vmem:[#allocation3 + $0x20] sm:$0xff] }
 0x21f   : > { %3346 = vst.msk [vmem:[#allocation3 + $0x40] sm:$0xff] %vm16659_vm0, %v3330_v50  ;;  %v3333_v63 = vadd.f32 %v12645_v45, %v3317_v57  ;;  %v3469_v7 = vpop.f32.mrf.mxu0  ;;  %v3728_v15 = vld [vmem:[#allocation3 + $0x10] sm:$0xff] }
 0x220   : > { %v3278_v59 = vpop.f32.mrf.mxu1  ;;  %3554 = vst.msk [vmem:[#allocation3 + $0x30] sm:$0xff] %vm16659_vm0, %v3538_v58  ;;  %v3536_v14 = vadd.f32 %v3520_v55, %v3469_v7  ;;  %v3523_v21 = vld [vmem:[#allocation3 + $0x38] sm:$0xff] }
 0x221   : > { %3349 = vst.msk [vmem:[#allocation3 + $0x58] sm:$0xff] %vm16659_vm0, %v3333_v63  ;;  %v3331_v2 = vadd.f32 %v3315_v46, %v3278_v59  ;;  %v12661_v4 = vpop.f32.mrf.mxu0  ;;  %v3726_v30 = vld [vmem:[#allocation3] sm:$0xff] }
 0x222   : > { %v12648_v3 = vpop.f32.mrf.mxu1  ;;  %12887 = vmatmul.mubr.msk.bf16.gmra.mxu1 %vm16659_vm0, %v5687_v27  ;;  %3552 = vst.msk [vmem:[#allocation3 + $0x20] sm:$0xff] %vm16659_vm0, %v3536_v14  ;;  %v3539_v53 = vadd.f32 %v12661_v4, %v3523_v21  ;;  %v3521_v62 = vld [vmem:[#allocation3 + $0x28] sm:$0xff] }
 0x223   : > { %3347 = vst.msk [vmem:[#allocation3 + $0x48] sm:$0xff] %vm16659_vm0, %v3331_v2  ;;  %v3336_v10 = vadd.f32 %v12648_v3, %v3320_v1  ;;  %v3472_v18 = vpop.f32.mrf.mxu0  ;;  %v3729_v26 = vld [vmem:[#allocation3 + $0x18] sm:$0xff]  ;;  %12942 = vmatprep.mubr.msk.f32.mxu1 %vm16657_vm1, %v14038_v0 }
 0x224   : > { %v3291_v11 = vpop.f32.mrf.mxu1  ;;  %3555 = vst.msk [vmem:[#allocation3 + $0x38] sm:$0xff] %vm16659_vm0, %v3539_v53  ;;  %v3537_v19 = vadd.f32 %v3521_v62, %v3472_v18  ;;  %v3526_v35 = vld [vmem:[#allocation3 + $0x50] sm:$0xff] }
 0x225   : > { %3352 = vst.msk [vmem:[#allocation3 + $0x70] sm:$0xff] %vm16659_vm0, %v3336_v10  ;;  %v3334_v23 = vadd.f32 %v3318_v6, %v3291_v11  ;;  %v12664_v32 = vpop.f32.mrf.mxu0  ;;  %12903 = vmatmul.mubr.msk.bf16.gmra.mxu0 %vm16659_vm0, %v14917_v38  ;;  %v3727_v49 = vld [vmem:[#allocation3 + $0x8] sm:$0xff] }
 0x226   : > { %v12649_v22 = vpop.f32.mrf.mxu1  ;;  %3553 = vst.msk [vmem:[#allocation3 + $0x28] sm:$0xff] %vm16659_vm0, %v3537_v19  ;;  %v3542_v39 = vadd.f32 %v12664_v32, %v3526_v35  ;;  %12906 = vmatprep.mubr.msk.bf16.mxu0 %vm16659_vm0, %v14934_v17  ;;  %v3524_v48 = vld [vmem:[#allocation3 + $0x40] sm:$0xff] }
 0x227   : > { %3350 = vst.msk [vmem:[#allocation3 + $0x60] sm:$0xff] %vm16659_vm0, %v3334_v23  ;;  %v3337_v33 = vadd.f32 %v12649_v22, %v3321_v24  ;;  %v3485_v43 = vpop.f32.mrf.mxu0  ;;  %v3732_v12 = vld [vmem:[#allocation3 + $0x30] sm:$0xff] }
 0x228   : > { %v3294_v13 = vpop.f32.mrf.mxu1  ;;  %3558 = vst.msk [vmem:[#allocation3 + $0x50] sm:$0xff] %vm16659_vm0, %v3542_v39  ;;  %v3540_v38 = vadd.f32 %v3524_v48, %v3485_v43  ;;  %v3527_v60 = vld [vmem:[#allocation3 + $0x58] sm:$0xff] }
 0x229   : > { %3353 = vst.msk [vmem:[#allocation3 + $0x78] sm:$0xff] %vm16659_vm0, %v3337_v33  ;;  %v3335_v56 = vadd.f32 %v3319_v54, %v3294_v13  ;;  %v12665_v40 = vpop.f32.mrf.mxu0  ;;  %v3730_v46 = vld [vmem:[#allocation3 + $0x20] sm:$0xff] }
 0x22a   : > { %v12676_v25 = vpop.f32.mrf.mxu1  ;;  %3556 = vst.msk [vmem:[#allocation3 + $0x40] sm:$0xff] %vm16659_vm0, %v3540_v38  ;;  %v3543_v20 = vadd.f32 %v12665_v40, %v3527_v60  ;;  %v3525_v36 = vld [vmem:[#allocation3 + $0x48] sm:$0xff] }
 0x22b   : > { %3351 = vst.msk [vmem:[#allocation3 + $0x68] sm:$0xff] %vm16659_vm0, %v3335_v56  ;;  %v3744_v17 = vadd.f32 %v12676_v25, %v3728_v15  ;;  %v3488_v28 = vpop.f32.mrf.mxu0  ;;  %v3733_v1 = vld [vmem:[#allocation3 + $0x38] sm:$0xff] }
 0x22c   : > { %v3663_v16 = vpop.f32.mrf.mxu1  ;;  %3559 = vst.msk [vmem:[#allocation3 + $0x58] sm:$0xff] %vm16659_vm0, %v3543_v20  ;;  %v3541_v9 = vadd.f32 %v3525_v36, %v3488_v28  ;;  %v3530_v29 = vld [vmem:[#allocation3 + $0x70] sm:$0xff] }
 0x22d   : > { %3760 = vst.msk [vmem:[#allocation3 + $0x10] sm:$0xff] %vm16659_vm0, %v3744_v17  ;;  %v3742_v37 = vadd.f32 %v3726_v30, %v3663_v16  ;;  %v12668_v44 = vpop.f32.mrf.mxu0  ;;  %12907 = vmatmul.mubr.msk.bf16.gmra.mxu0 %vm16659_vm0, %v5897_v52  ;;  %v3731_v6 = vld [vmem:[#allocation3 + $0x28] sm:$0xff] }
 0x22e   : > { %v12677_v41 = vpop.f32.mrf.mxu1  ;;  %3557 = vst.msk [vmem:[#allocation3 + $0x48] sm:$0xff] %vm16659_vm0, %v3541_v9  ;;  %v3546_v47 = vadd.f32 %v12668_v44, %v3530_v29  ;;  %v3528_v50 = vld [vmem:[#allocation3 + $0x60] sm:$0xff]  ;;  %12977 = vmatprep.mubr.msk.f32.mxu0 %vm16657_vm1, %v14038_v0 }
 0x22f   : > { %3758 = vst.msk [vmem:[#allocation3] sm:$0xff] %vm16659_vm0, %v3742_v37  ;;  %v3745_v42 = vadd.f32 %v12677_v41, %v3729_v26  ;;  %v3501_v31 = vpop.f32.mrf.mxu0  ;;  %v3736_v24 = vld [vmem:[#allocation3 + $0x50] sm:$0xff] }
 0x230   : > { %v3666_v5 = vpop.f32.mrf.mxu1  ;;  %3562 = vst.msk [vmem:[#allocation3 + $0x70] sm:$0xff] %vm16659_vm0, %v3546_v47  ;;  %v3544_v45 = vadd.f32 %v3528_v50, %v3501_v31  ;;  %v3531_v27 = vld [vmem:[#allocation3 + $0x78] sm:$0xff] }
 0x231   : > { %3761 = vst.msk [vmem:[#allocation3 + $0x18] sm:$0xff] %vm16659_vm0, %v3745_v42  ;;  %v3743_v51 = vadd.f32 %v3727_v49, %v3666_v5  ;;  %v12669_v8 = vpop.f32.mrf.mxu0  ;;  %v3734_v34 = vld [vmem:[#allocation3 + $0x40] sm:$0xff] }
 0x232   : > { %v12680_v57 = vpop.f32.mrf.mxu1  ;;  %3560 = vst.msk [vmem:[#allocation3 + $0x60] sm:$0xff] %vm16659_vm0, %v3544_v45  ;;  %v3547_v58 = vadd.f32 %v12669_v8, %v3531_v27  ;;  %v3529_v55 = vld [vmem:[#allocation3 + $0x68] sm:$0xff] }
 0x233   : > { %3759 = vst.msk [vmem:[#allocation3 + $0x8] sm:$0xff] %vm16659_vm0, %v3743_v51  ;;  %v3748_v63 = vadd.f32 %v12680_v57, %v3732_v12  ;;  %v3504_v7 = vpop.f32.mrf.mxu0  ;;  %v3737_v38 = vld [vmem:[#allocation3 + $0x58] sm:$0xff] }
 0x234   : > { %v3679_v59 = vpop.f32.mrf.mxu1  ;;  %3563 = vst.msk [vmem:[#allocation3 + $0x78] sm:$0xff] %vm16659_vm0, %v3547_v58  ;;  %v3545_v14 = vadd.f32 %v3529_v55, %v3504_v7  ;;  %v3938_v21 = vld [vmem:[#allocation3 + $0x10] sm:$0xff] }
 0x235   : > { %3764 = vst.msk [vmem:[#allocation3 + $0x30] sm:$0xff] %vm16659_vm0, %v3748_v63  ;;  %v3746_v2 = vadd.f32 %v3730_v46, %v3679_v59  ;;  %v12696_v4 = vpop.f32.mrf.mxu0  ;;  %v3735_v17 = vld [vmem:[#allocation3 + $0x48] sm:$0xff] }
 0x236   : > { %v12681_v3 = vpop.f32.mrf.mxu1  ;;  %3561 = vst.msk [vmem:[#allocation3 + $0x68] sm:$0xff] %vm16659_vm0, %v3545_v14  ;;  %v3954_v53 = vadd.f32 %v12696_v4, %v3938_v21  ;;  %v3936_v62 = vld [vmem:[#allocation3] sm:$0xff] }
 0x237   : > { %3762 = vst.msk [vmem:[#allocation3 + $0x20] sm:$0xff] %vm16659_vm0, %v3746_v2  ;;  %v3749_v10 = vadd.f32 %v12681_v3, %v3733_v1  ;;  %v3873_v18 = vpop.f32.mrf.mxu0  ;;  %v3740_v37 = vld [vmem:[#allocation3 + $0x70] sm:$0xff] }
 0x238   : > { %v3682_v11 = vpop.f32.mrf.mxu1  ;;  %3970 = vst.msk [vmem:[#allocation3 + $0x10] sm:$0xff] %vm16659_vm0, %v3954_v53  ;;  %v3952_v19 = vadd.f32 %v3936_v62, %v3873_v18  ;;  %v3939_v35 = vld [vmem:[#allocation3 + $0x18] sm:$0xff] }
 0x239   : > { %3765 = vst.msk [vmem:[#allocation3 + $0x38] sm:$0xff] %vm16659_vm0, %v3749_v10  ;;  %v3747_v23 = vadd.f32 %v3731_v6, %v3682_v11  ;;  %v12697_v32 = vpop.f32.mrf.mxu0  ;;  %v3738_v42 = vld [vmem:[#allocation3 + $0x60] sm:$0xff] }
 0x23a   : > { %v12684_v22 = vpop.f32.mrf.mxu1  ;;  %3968 = vst.msk [vmem:[#allocation3] sm:$0xff] %vm16659_vm0, %v3952_v19  ;;  %v3955_v39 = vadd.f32 %v12697_v32, %v3939_v35  ;;  %v3937_v54 = vld [vmem:[#allocation3 + $0x8] sm:$0xff] }
 0x23b   : > { %3763 = vst.msk [vmem:[#allocation3 + $0x28] sm:$0xff] %vm16659_vm0, %v3747_v23  ;;  %v3752_v33 = vadd.f32 %v12684_v22, %v3736_v24  ;;  %v3876_v13 = vpop.f32.mrf.mxu0  ;;  %v3741_v51 = vld [vmem:[#allocation3 + $0x78] sm:$0xff] }
 0x23c   : > { %v3695_v61 = vpop.f32.mrf.mxu1  ;;  %3971 = vst.msk [vmem:[#allocation3 + $0x18] sm:$0xff] %vm16659_vm0, %v3955_v39  ;;  %v3953_v48 = vadd.f32 %v3937_v54, %v3876_v13  ;;  %v3942_v15 = vld [vmem:[#allocation3 + $0x30] sm:$0xff] }
 0x23d   : > { %3768 = vst.msk [vmem:[#allocation3 + $0x50] sm:$0xff] %vm16659_vm0, %v3752_v33  ;;  %v3750_v43 = vadd.f32 %v3734_v34, %v3695_v61  ;;  %v12700_v25 = vpop.f32.mrf.mxu0  ;;  %v3739_v63 = vld [vmem:[#allocation3 + $0x68] sm:$0xff] }
 0x23e   : > { %v12685_v56 = vpop.f32.mrf.mxu1  ;;  %3969 = vst.msk [vmem:[#allocation3 + $0x8] sm:$0xff] %vm16659_vm0, %v3953_v48  ;;  %v3958_v60 = vadd.f32 %v12700_v25, %v3942_v15  ;;  %v3940_v16 = vld [vmem:[#allocation3 + $0x20] sm:$0xff] }
 0x23f   : > { %3766 = vst.msk [vmem:[#allocation3 + $0x40] sm:$0xff] %vm16659_vm0, %v3750_v43  ;;  %v3753_v40 = vadd.f32 %v12685_v56, %v3737_v38  ;;  %v3889_v20 = vpop.f32.mrf.mxu0  ;;  %v4148_v2 = vld [vmem:[#allocation3 + $0x10] sm:$0xff] }
 0x240   : > { %v3698_v52 = vpop.f32.mrf.mxu1  ;;  %3974 = vst.msk [vmem:[#allocation3 + $0x30] sm:$0xff] %vm16659_vm0, %v3958_v60  ;;  %v3956_v28 = vadd.f32 %v3940_v16, %v3889_v20  ;;  %v3943_v41 = vld [vmem:[#allocation3 + $0x38] sm:$0xff] }
 0x241   : > { %3769 = vst.msk [vmem:[#allocation3 + $0x58] sm:$0xff] %vm16659_vm0, %v3753_v40  ;;  %v3751_v30 = vadd.f32 %v3735_v17, %v3698_v52  ;;  %v12701_v9 = vpop.f32.mrf.mxu0  ;;  %v4146_v10 = vld [vmem:[#allocation3] sm:$0xff] }
 0x242   : > { %v12688_v36 = vpop.f32.mrf.mxu1  ;;  %3972 = vst.msk [vmem:[#allocation3 + $0x20] sm:$0xff] %vm16659_vm0, %v3956_v28  ;;  %v3959_v44 = vadd.f32 %v12701_v9, %v3943_v41  ;;  %v3941_v5 = vld [vmem:[#allocation3 + $0x28] sm:$0xff] }
 0x243   : > { %3767 = vst.msk [vmem:[#allocation3 + $0x48] sm:$0xff] %vm16659_vm0, %v3751_v30  ;;  %v3756_v26 = vadd.f32 %v12688_v36, %v3740_v37  ;;  %v3892_v47 = vpop.f32.mrf.mxu0  ;;  %v4149_v23 = vld [vmem:[#allocation3 + $0x18] sm:$0xff] }
 0x244   : > { %v3711_v29 = vpop.f32.mrf.mxu1  ;;  %3975 = vst.msk [vmem:[#allocation3 + $0x38] sm:$0xff] %vm16659_vm0, %v3959_v44  ;;  %v3957_v31 = vadd.f32 %v3941_v5, %v3892_v47  ;;  %v3946_v57 = vld [vmem:[#allocation3 + $0x50] sm:$0xff] }
 0x245   : > { %3772 = vst.msk [vmem:[#allocation3 + $0x70] sm:$0xff] %vm16659_vm0, %v3756_v26  ;;  %v3754_v49 = vadd.f32 %v3738_v42, %v3711_v29  ;;  %v12704_v45 = vpop.f32.mrf.mxu0  ;;  %v4147_v33 = vld [vmem:[#allocation3 + $0x8] sm:$0xff] }
 0x246   : > { %v12689_v50 = vpop.f32.mrf.mxu1  ;;  %3973 = vst.msk [vmem:[#allocation3 + $0x28] sm:$0xff] %vm16659_vm0, %v3957_v31  ;;  %v3962_v8 = vadd.f32 %v12704_v45, %v3946_v57  ;;  %v3944_v59 = vld [vmem:[#allocation3 + $0x40] sm:$0xff] }
 0x247   : > { %3770 = vst.msk [vmem:[#allocation3 + $0x60] sm:$0xff] %vm16659_vm0, %v3754_v49  ;;  %v3757_v12 = vadd.f32 %v12689_v50, %v3741_v51  ;;  %v3905_v58 = vpop.f32.mrf.mxu0  ;;  %v4152_v43 = vld [vmem:[#allocation3 + $0x30] sm:$0xff] }
 0x248   : > { %v3714_v27 = vpop.f32.mrf.mxu1  ;;  %3978 = vst.msk [vmem:[#allocation3 + $0x50] sm:$0xff] %vm16659_vm0, %v3962_v8  ;;  %v3960_v7 = vadd.f32 %v3944_v59, %v3905_v58  ;;  %v3947_v3 = vld [vmem:[#allocation3 + $0x58] sm:$0xff] }
 0x249   : > { %3773 = vst.msk [vmem:[#allocation3 + $0x78] sm:$0xff] %vm16659_vm0, %v3757_v12  ;;  %v3755_v46 = vadd.f32 %v3739_v63, %v3714_v27  ;;  %v12705_v14 = vpop.f32.mrf.mxu0  ;;  %v4150_v40 = vld [vmem:[#allocation3 + $0x20] sm:$0xff] }
 0x24a   : > { %v12716_v55 = vpop.f32.mrf.mxu1  ;;  %3976 = vst.msk [vmem:[#allocation3 + $0x40] sm:$0xff] %vm16659_vm0, %v3960_v7  ;;  %v3963_v4 = vadd.f32 %v12705_v14, %v3947_v3  ;;  %v3945_v11 = vld [vmem:[#allocation3 + $0x48] sm:$0xff] }
 0x24b   : > { %3771 = vst.msk [vmem:[#allocation3 + $0x68] sm:$0xff] %vm16659_vm0, %v3755_v46  ;;  %v4164_v1 = vadd.f32 %v12716_v55, %v4148_v2  ;;  %v3908_v53 = vpop.f32.mrf.mxu0  ;;  %v4153_v30 = vld [vmem:[#allocation3 + $0x38] sm:$0xff] }
 0x24c   : > { %v4083_v21 = vpop.f32.mrf.mxu1  ;;  %3979 = vst.msk [vmem:[#allocation3 + $0x58] sm:$0xff] %vm16659_vm0, %v3963_v4  ;;  %v3961_v18 = vadd.f32 %v3945_v11, %v3908_v53  ;;  %v3950_v22 = vld [vmem:[#allocation3 + $0x70] sm:$0xff] }
 0x24d   : > { %4180 = vst.msk [vmem:[#allocation3 + $0x10] sm:$0xff] %vm16659_vm0, %v4164_v1  ;;  %v4162_v6 = vadd.f32 %v4146_v10, %v4083_v21  ;;  %v12708_v19 = vpop.f32.mrf.mxu0  ;;  %v4151_v26 = vld [vmem:[#allocation3 + $0x28] sm:$0xff] }
 0x24e   : > { %v12717_v62 = vpop.f32.mrf.mxu1  ;;  %3977 = vst.msk [vmem:[#allocation3 + $0x48] sm:$0xff] %vm16659_vm0, %v3961_v18  ;;  %v3966_v32 = vadd.f32 %v12708_v19, %v3950_v22  ;;  %v3948_v61 = vld [vmem:[#allocation3 + $0x60] sm:$0xff] }
 0x24f   : > { %4178 = vst.msk [vmem:[#allocation3] sm:$0xff] %vm16659_vm0, %v4162_v6  ;;  %v4165_v24 = vadd.f32 %v12717_v62, %v4149_v23  ;;  %v3921_v39 = vpop.f32.mrf.mxu0  ;;  %v4156_v49 = vld [vmem:[#allocation3 + $0x50] sm:$0xff] }
 0x250   : > { %v4086_v35 = vpop.f32.mrf.mxu1  ;;  %3982 = vst.msk [vmem:[#allocation3 + $0x70] sm:$0xff] %vm16659_vm0, %v3966_v32  ;;  %v3964_v13 = vadd.f32 %v3948_v61, %v3921_v39  ;;  %v3951_v56 = vld [vmem:[#allocation3 + $0x78] sm:$0xff] }
 0x251   : > { %4181 = vst.msk [vmem:[#allocation3 + $0x18] sm:$0xff] %vm16659_vm0, %v4165_v24  ;;  %v4163_v34 = vadd.f32 %v4147_v33, %v4086_v35  ;;  %v12709_v48 = vpop.f32.mrf.mxu0  ;;  %v4154_v12 = vld [vmem:[#allocation3 + $0x40] sm:$0xff] }
 0x252   : > { %v12720_v54 = vpop.f32.mrf.mxu1  ;;  %3980 = vst.msk [vmem:[#allocation3 + $0x60] sm:$0xff] %vm16659_vm0, %v3964_v13  ;;  %v3967_v25 = vadd.f32 %v12709_v48, %v3951_v56  ;;  %v3949_v52 = vld [vmem:[#allocation3 + $0x68] sm:$0xff] }
 0x253   : > { %4179 = vst.msk [vmem:[#allocation3 + $0x8] sm:$0xff] %vm16659_vm0, %v4163_v34  ;;  %v4168_v38 = vadd.f32 %v12720_v54, %v4152_v43  ;;  %v3924_v60 = vpop.f32.mrf.mxu0  ;;  %v4157_v46 = vld [vmem:[#allocation3 + $0x58] sm:$0xff] }
 0x254   : > { %v4099_v15 = vpop.f32.mrf.mxu1  ;;  %3983 = vst.msk [vmem:[#allocation3 + $0x78] sm:$0xff] %vm16659_vm0, %v3967_v25  ;;  %v3965_v20 = vadd.f32 %v3949_v52, %v3924_v60  ;;  %v4358_v36 = vld [vmem:[#allocation3 + $0x10] sm:$0xff] }
 0x255   : > { %4184 = vst.msk [vmem:[#allocation3 + $0x30] sm:$0xff] %vm16659_vm0, %v4168_v38  ;;  %v4166_v17 = vadd.f32 %v4150_v40, %v4099_v15  ;;  %v12736_v28 = vpop.f32.mrf.mxu0  ;;  %v4155_v1 = vld [vmem:[#allocation3 + $0x48] sm:$0xff] }
 0x256   : > { %v12721_v16 = vpop.f32.mrf.mxu1  ;;  %3981 = vst.msk [vmem:[#allocation3 + $0x68] sm:$0xff] %vm16659_vm0, %v3965_v20  ;;  %v4374_v9 = vadd.f32 %v12736_v28, %v4358_v36  ;;  %v4356_v29 = vld [vmem:[#allocation3] sm:$0xff] }
 0x257   : > { %4182 = vst.msk [vmem:[#allocation3 + $0x20] sm:$0xff] %vm16659_vm0, %v4166_v17  ;;  %v4169_v37 = vadd.f32 %v12721_v16, %v4153_v30  ;;  %v4293_v44 = vpop.f32.mrf.mxu0  ;;  %v4160_v6 = vld [vmem:[#allocation3 + $0x70] sm:$0xff] }
 0x258   : > { %v4102_v41 = vpop.f32.mrf.mxu1  ;;  %4390 = vst.msk [vmem:[#allocation3 + $0x10] sm:$0xff] %vm16659_vm0, %v4374_v9  ;;  %v4372_v47 = vadd.f32 %v4356_v29, %v4293_v44  ;;  %v4359_v50 = vld [vmem:[#allocation3 + $0x18] sm:$0xff] }
 0x259   : > { %4185 = vst.msk [vmem:[#allocation3 + $0x38] sm:$0xff] %vm16659_vm0, %v4169_v37  ;;  %v4167_v42 = vadd.f32 %v4151_v26, %v4102_v41  ;;  %v12737_v31 = vpop.f32.mrf.mxu0  ;;  %v4158_v24 = vld [vmem:[#allocation3 + $0x60] sm:$0xff] }
 0x25a   : > { %v12724_v5 = vpop.f32.mrf.mxu1  ;;  %4388 = vst.msk [vmem:[#allocation3] sm:$0xff] %vm16659_vm0, %v4372_v47  ;;  %v4375_v45 = vadd.f32 %v12737_v31, %v4359_v50  ;;  %v4357_v27 = vld [vmem:[#allocation3 + $0x8] sm:$0xff] }
 0x25b   : > { %4183 = vst.msk [vmem:[#allocation3 + $0x28] sm:$0xff] %vm16659_vm0, %v4167_v42  ;;  %v4172_v51 = vadd.f32 %v12724_v5, %v4156_v49  ;;  %v4296_v8 = vpop.f32.mrf.mxu0  ;;  %v4161_v34 = vld [vmem:[#allocation3 + $0x78] sm:$0xff] }
 0x25c   : > { %v4115_v57 = vpop.f32.mrf.mxu1  ;;  %4391 = vst.msk [vmem:[#allocation3 + $0x18] sm:$0xff] %vm16659_vm0, %v4375_v45  ;;  %v4373_v58 = vadd.f32 %v4357_v27, %v4296_v8  ;;  %v4362_v55 = vld [vmem:[#allocation3 + $0x30] sm:$0xff] }
 0x25d   : > { %4188 = vst.msk [vmem:[#allocation3 + $0x50] sm:$0xff] %vm16659_vm0, %v4172_v51  ;;  %v4170_v63 = vadd.f32 %v4154_v12, %v4115_v57  ;;  %v12740_v7 = vpop.f32.mrf.mxu0  ;;  %v4159_v38 = vld [vmem:[#allocation3 + $0x68] sm:$0xff] }
 0x25e   : > { %v12725_v59 = vpop.f32.mrf.mxu1  ;;  %4389 = vst.msk [vmem:[#allocation3 + $0x8] sm:$0xff] %vm16659_vm0, %v4373_v58  ;;  %v4378_v14 = vadd.f32 %v12740_v7, %v4362_v55  ;;  %v4360_v21 = vld [vmem:[#allocation3 + $0x20] sm:$0xff] }
 0x25f   : > { %4186 = vst.msk [vmem:[#allocation3 + $0x40] sm:$0xff] %vm16659_vm0, %v4170_v63  ;;  %v4173_v2 = vadd.f32 %v12725_v59, %v4157_v46  ;;  %v4309_v4 = vpop.f32.mrf.mxu0  ;;  %v4568_v17 = vld [vmem:[#allocation3 + $0x10] sm:$0xff] }
 0x260   : > { %v4118_v3 = vpop.f32.mrf.mxu1  ;;  %4394 = vst.msk [vmem:[#allocation3 + $0x30] sm:$0xff] %vm16659_vm0, %v4378_v14  ;;  %v4376_v53 = vadd.f32 %v4360_v21, %v4309_v4  ;;  %v4363_v62 = vld [vmem:[#allocation3 + $0x38] sm:$0xff] }
 0x261   : > { %4189 = vst.msk [vmem:[#allocation3 + $0x58] sm:$0xff] %vm16659_vm0, %v4173_v2  ;;  %v4171_v10 = vadd.f32 %v4155_v1, %v4118_v3  ;;  %v12741_v18 = vpop.f32.mrf.mxu0  ;;  %v4566_v37 = vld [vmem:[#allocation3] sm:$0xff] }
 0x262   : > { %v12728_v11 = vpop.f32.mrf.mxu1  ;;  %4392 = vst.msk [vmem:[#allocation3 + $0x20] sm:$0xff] %vm16659_vm0, %v4376_v53  ;;  %v4379_v19 = vadd.f32 %v12741_v18, %v4363_v62  ;;  %v4361_v35 = vld [vmem:[#allocation3 + $0x28] sm:$0xff] }
 0x263   : > { %4187 = vst.msk [vmem:[#allocation3 + $0x48] sm:$0xff] %vm16659_vm0, %v4171_v10  ;;  %v4176_v23 = vadd.f32 %v12728_v11, %v4160_v6  ;;  %v4312_v32 = vpop.f32.mrf.mxu0  ;;  %v4569_v42 = vld [vmem:[#allocation3 + $0x18] sm:$0xff] }
 0x264   : > { %v4131_v22 = vpop.f32.mrf.mxu1  ;;  %4395 = vst.msk [vmem:[#allocation3 + $0x38] sm:$0xff] %vm16659_vm0, %v4379_v19  ;;  %v4377_v39 = vadd.f32 %v4361_v35, %v4312_v32  ;;  %v4366_v54 = vld [vmem:[#allocation3 + $0x50] sm:$0xff] }
 0x265   : > { %4192 = vst.msk [vmem:[#allocation3 + $0x70] sm:$0xff] %vm16659_vm0, %v4176_v23  ;;  %v4174_v33 = vadd.f32 %v4158_v24, %v4131_v22  ;;  %v12744_v13 = vpop.f32.mrf.mxu0  ;;  %v4567_v51 = vld [vmem:[#allocation3 + $0x8] sm:$0xff] }
 0x266   : > { %v12729_v61 = vpop.f32.mrf.mxu1  ;;  %4393 = vst.msk [vmem:[#allocation3 + $0x28] sm:$0xff] %vm16659_vm0, %v4377_v39  ;;  %v4382_v48 = vadd.f32 %v12744_v13, %v4366_v54  ;;  %v4364_v15 = vld [vmem:[#allocation3 + $0x40] sm:$0xff] }
 0x267   : > { %4190 = vst.msk [vmem:[#allocation3 + $0x60] sm:$0xff] %vm16659_vm0, %v4174_v33  ;;  %v4177_v43 = vadd.f32 %v12729_v61, %v4161_v34  ;;  %v4325_v25 = vpop.f32.mrf.mxu0  ;;  %v4572_v63 = vld [vmem:[#allocation3 + $0x30] sm:$0xff] }
 0x268   : > { %v4134_v56 = vpop.f32.mrf.mxu1  ;;  %4398 = vst.msk [vmem:[#allocation3 + $0x50] sm:$0xff] %vm16659_vm0, %v4382_v48  ;;  %v4380_v60 = vadd.f32 %v4364_v15, %v4325_v25  ;;  %v4367_v16 = vld [vmem:[#allocation3 + $0x58] sm:$0xff] }
 0x269   : > { %4193 = vst.msk [vmem:[#allocation3 + $0x78] sm:$0xff] %vm16659_vm0, %v4177_v43  ;;  %v4175_v40 = vadd.f32 %v4159_v38, %v4134_v56  ;;  %v12745_v20 = vpop.f32.mrf.mxu0  ;;  %v4570_v2 = vld [vmem:[#allocation3 + $0x20] sm:$0xff] }
 0x26a   : > { %v12756_v52 = vpop.f32.mrf.mxu1  ;;  %4396 = vst.msk [vmem:[#allocation3 + $0x40] sm:$0xff] %vm16659_vm0, %v4380_v60  ;;  %v4383_v28 = vadd.f32 %v12745_v20, %v4367_v16  ;;  %v4365_v41 = vld [vmem:[#allocation3 + $0x48] sm:$0xff] }
 0x26b   : > { %4191 = vst.msk [vmem:[#allocation3 + $0x68] sm:$0xff] %vm16659_vm0, %v4175_v40  ;;  %v4584_v30 = vadd.f32 %v12756_v52, %v4568_v17  ;;  %v4328_v9 = vpop.f32.mrf.mxu0  ;;  %v4573_v10 = vld [vmem:[#allocation3 + $0x38] sm:$0xff] }
 0x26c   : > { %v4503_v36 = vpop.f32.mrf.mxu1  ;;  %4399 = vst.msk [vmem:[#allocation3 + $0x58] sm:$0xff] %vm16659_vm0, %v4383_v28  ;;  %v4381_v44 = vadd.f32 %v4365_v41, %v4328_v9  ;;  %v4370_v5 = vld [vmem:[#allocation3 + $0x70] sm:$0xff] }
 0x26d   : > { %4600 = vst.msk [vmem:[#allocation3 + $0x10] sm:$0xff] %vm16659_vm0, %v4584_v30  ;;  %v4582_v26 = vadd.f32 %v4566_v37, %v4503_v36  ;;  %v12748_v47 = vpop.f32.mrf.mxu0  ;;  %v4571_v23 = vld [vmem:[#allocation3 + $0x28] sm:$0xff] }
 0x26e   : > { %v12757_v29 = vpop.f32.mrf.mxu1  ;;  %4397 = vst.msk [vmem:[#allocation3 + $0x48] sm:$0xff] %vm16659_vm0, %v4381_v44  ;;  %v4386_v31 = vadd.f32 %v12748_v47, %v4370_v5  ;;  %v4368_v57 = vld [vmem:[#allocation3 + $0x60] sm:$0xff] }
 0x26f   : > { %4598 = vst.msk [vmem:[#allocation3] sm:$0xff] %vm16659_vm0, %v4582_v26  ;;  %v4585_v49 = vadd.f32 %v12757_v29, %v4569_v42  ;;  %v4341_v45 = vpop.f32.mrf.mxu0  ;;  %v4576_v33 = vld [vmem:[#allocation3 + $0x50] sm:$0xff] }
 0x270   : > { %v4506_v50 = vpop.f32.mrf.mxu1  ;;  %4402 = vst.msk [vmem:[#allocation3 + $0x70] sm:$0xff] %vm16659_vm0, %v4386_v31  ;;  %v4384_v8 = vadd.f32 %v4368_v57, %v4341_v45  ;;  %v4371_v59 = vld [vmem:[#allocation3 + $0x78] sm:$0xff] }
 0x271   : > { %4601 = vst.msk [vmem:[#allocation3 + $0x18] sm:$0xff] %vm16659_vm0, %v4585_v49  ;;  %v4583_v12 = vadd.f32 %v4567_v51, %v4506_v50  ;;  %v12749_v58 = vpop.f32.mrf.mxu0  ;;  %v4574_v43 = vld [vmem:[#allocation3 + $0x40] sm:$0xff] }
 0x272   : > { %v12760_v27 = vpop.f32.mrf.mxu1  ;;  %4400 = vst.msk [vmem:[#allocation3 + $0x60] sm:$0xff] %vm16659_vm0, %v4384_v8  ;;  %v4387_v7 = vadd.f32 %v12749_v58, %v4371_v59  ;;  %v4369_v3 = vld [vmem:[#allocation3 + $0x68] sm:$0xff] }
 0x273   : > { %4599 = vst.msk [vmem:[#allocation3 + $0x8] sm:$0xff] %vm16659_vm0, %v4583_v12  ;;  %v4588_v46 = vadd.f32 %v12760_v27, %v4572_v63  ;;  %v4344_v14 = vpop.f32.mrf.mxu0  ;;  %v4577_v40 = vld [vmem:[#allocation3 + $0x58] sm:$0xff] }
 0x274   : > { %v4519_v55 = vpop.f32.mrf.mxu1  ;;  %4403 = vst.msk [vmem:[#allocation3 + $0x78] sm:$0xff] %vm16659_vm0, %v4387_v7  ;;  %v4385_v4 = vadd.f32 %v4369_v3, %v4344_v14  ;;  %v4778_v11 = vld [vmem:[#allocation3 + $0x10] sm:$0xff] }
 0x275   : > { %4604 = vst.msk [vmem:[#allocation3 + $0x30] sm:$0xff] %vm16659_vm0, %v4588_v46  ;;  %v4586_v1 = vadd.f32 %v4570_v2, %v4519_v55  ;;  %v12776_v53 = vpop.f32.mrf.mxu0  ;;  %v4575_v30 = vld [vmem:[#allocation3 + $0x48] sm:$0xff] }
 0x276   : > { %v12761_v21 = vpop.f32.mrf.mxu1  ;;  %4401 = vst.msk [vmem:[#allocation3 + $0x68] sm:$0xff] %vm16659_vm0, %v4385_v4  ;;  %v4794_v18 = vadd.f32 %v12776_v53, %v4778_v11  ;;  %v4776_v22 = vld [vmem:[#allocation3] sm:$0xff] }
 0x277   : > { %4602 = vst.msk [vmem:[#allocation3 + $0x20] sm:$0xff] %vm16659_vm0, %v4586_v1  ;;  %v4589_v6 = vadd.f32 %v12761_v21, %v4573_v10  ;;  %v4713_v19 = vpop.f32.mrf.mxu0  ;;  %v4580_v26 = vld [vmem:[#allocation3 + $0x70] sm:$0xff] }
 0x278   : > { %v4522_v62 = vpop.f32.mrf.mxu1  ;;  %4810 = vst.msk [vmem:[#allocation3 + $0x10] sm:$0xff] %vm16659_vm0, %v4794_v18  ;;  %v4792_v32 = vadd.f32 %v4776_v22, %v4713_v19  ;;  %v4779_v61 = vld [vmem:[#allocation3 + $0x18] sm:$0xff] }
 0x279   : > { %4605 = vst.msk [vmem:[#allocation3 + $0x38] sm:$0xff] %vm16659_vm0, %v4589_v6  ;;  %v4587_v24 = vadd.f32 %v4571_v23, %v4522_v62  ;;  %v12777_v39 = vpop.f32.mrf.mxu0  ;;  %v4578_v49 = vld [vmem:[#allocation3 + $0x60] sm:$0xff] }
 0x27a   : > { %v12764_v35 = vpop.f32.mrf.mxu1  ;;  %4808 = vst.msk [vmem:[#allocation3] sm:$0xff] %vm16659_vm0, %v4792_v32  ;;  %v4795_v13 = vadd.f32 %v12777_v39, %v4779_v61  ;;  %v4777_v56 = vld [vmem:[#allocation3 + $0x8] sm:$0xff] }
 0x27b   : > { %4603 = vst.msk [vmem:[#allocation3 + $0x28] sm:$0xff] %vm16659_vm0, %v4587_v24  ;;  %v4592_v34 = vadd.f32 %v12764_v35, %v4576_v33  ;;  %v4716_v48 = vpop.f32.mrf.mxu0  ;;  %v4581_v12 = vld [vmem:[#allocation3 + $0x78] sm:$0xff] }
 0x27c   : > { %v4535_v54 = vpop.f32.mrf.mxu1  ;;  %4811 = vst.msk [vmem:[#allocation3 + $0x18] sm:$0xff] %vm16659_vm0, %v4795_v13  ;;  %v4793_v25 = vadd.f32 %v4777_v56, %v4716_v48  ;;  %v4782_v52 = vld [vmem:[#allocation3 + $0x30] sm:$0xff] }
 0x27d   : > { %4608 = vst.msk [vmem:[#allocation3 + $0x50] sm:$0xff] %vm16659_vm0, %v4592_v34  ;;  %v4590_v38 = vadd.f32 %v4574_v43, %v4535_v54  ;;  %v12780_v60 = vpop.f32.mrf.mxu0  ;;  %v4579_v46 = vld [vmem:[#allocation3 + $0x68] sm:$0xff] }
 0x27e   : > { %v12765_v15 = vpop.f32.mrf.mxu1  ;;  %4809 = vst.msk [vmem:[#allocation3 + $0x8] sm:$0xff] %vm16659_vm0, %v4793_v25  ;;  %v4798_v20 = vadd.f32 %v12780_v60, %v4782_v52  ;;  %v4780_v36 = vld [vmem:[#allocation3 + $0x20] sm:$0xff] }
 0x27f   : > { %4606 = vst.msk [vmem:[#allocation3 + $0x40] sm:$0xff] %vm16659_vm0, %v4590_v38  ;;  %v4593_v17 = vadd.f32 %v12765_v15, %v4577_v40  ;;  %v4729_v28 = vpop.f32.mrf.mxu0  ;;  %v4988_v1 = vld [vmem:[#allocation3 + $0x10] sm:$0xff] }
 0x280   : > { %v4538_v16 = vpop.f32.mrf.mxu1  ;;  %4814 = vst.msk [vmem:[#allocation3 + $0x30] sm:$0xff] %vm16659_vm0, %v4798_v20  ;;  %v4796_v9 = vadd.f32 %v4780_v36, %v4729_v28  ;;  %v4783_v29 = vld [vmem:[#allocation3 + $0x38] sm:$0xff] }
 0x281   : > { %4609 = vst.msk [vmem:[#allocation3 + $0x58] sm:$0xff] %vm16659_vm0, %v4593_v17  ;;  %v4591_v37 = vadd.f32 %v4575_v30, %v4538_v16  ;;  %v12781_v44 = vpop.f32.mrf.mxu0  ;;  %v4986_v6 = vld [vmem:[#allocation3] sm:$0xff] }
 0x282   : > { %v12768_v41 = vpop.f32.mrf.mxu1  ;;  %4812 = vst.msk [vmem:[#allocation3 + $0x20] sm:$0xff] %vm16659_vm0, %v4796_v9  ;;  %v4799_v47 = vadd.f32 %v12781_v44, %v4783_v29  ;;  %v4781_v50 = vld [vmem:[#allocation3 + $0x28] sm:$0xff] }
 0x283   : > { %4607 = vst.msk [vmem:[#allocation3 + $0x48] sm:$0xff] %vm16659_vm0, %v4591_v37  ;;  %v4596_v42 = vadd.f32 %v12768_v41, %v4580_v26  ;;  %v4732_v31 = vpop.f32.mrf.mxu0  ;;  %v4989_v24 = vld [vmem:[#allocation3 + $0x18] sm:$0xff] }
 0x284   : > { %v4551_v5 = vpop.f32.mrf.mxu1  ;;  %4815 = vst.msk [vmem:[#allocation3 + $0x38] sm:$0xff] %vm16659_vm0, %v4799_v47  ;;  %v4797_v45 = vadd.f32 %v4781_v50, %v4732_v31  ;;  %v4786_v27 = vld [vmem:[#allocation3 + $0x50] sm:$0xff] }
 0x285   : > { %4612 = vst.msk [vmem:[#allocation3 + $0x70] sm:$0xff] %vm16659_vm0, %v4596_v42  ;;  %v4594_v51 = vadd.f32 %v4578_v49, %v4551_v5  ;;  %v12784_v8 = vpop.f32.mrf.mxu0  ;;  %v4987_v34 = vld [vmem:[#allocation3 + $0x8] sm:$0xff] }
 0x286   : > { %v12769_v57 = vpop.f32.mrf.mxu1  ;;  %4813 = vst.msk [vmem:[#allocation3 + $0x28] sm:$0xff] %vm16659_vm0, %v4797_v45  ;;  %v4802_v58 = vadd.f32 %v12784_v8, %v4786_v27  ;;  %v4784_v55 = vld [vmem:[#allocation3 + $0x40] sm:$0xff] }
 0x287   : > { %4610 = vst.msk [vmem:[#allocation3 + $0x60] sm:$0xff] %vm16659_vm0, %v4594_v51  ;;  %v4597_v63 = vadd.f32 %v12769_v57, %v4581_v12  ;;  %v4745_v7 = vpop.f32.mrf.mxu0  ;;  %v4992_v38 = vld [vmem:[#allocation3 + $0x30] sm:$0xff] }
 0x288   : > { %v4554_v59 = vpop.f32.mrf.mxu1  ;;  %4818 = vst.msk [vmem:[#allocation3 + $0x50] sm:$0xff] %vm16659_vm0, %v4802_v58  ;;  %v4800_v14 = vadd.f32 %v4784_v55, %v4745_v7  ;;  %v4787_v21 = vld [vmem:[#allocation3 + $0x58] sm:$0xff] }
 0x289   : > { %4613 = vst.msk [vmem:[#allocation3 + $0x78] sm:$0xff] %vm16659_vm0, %v4597_v63  ;;  %v4595_v2 = vadd.f32 %v4579_v46, %v4554_v59  ;;  %v12785_v4 = vpop.f32.mrf.mxu0  ;;  %v4990_v17 = vld [vmem:[#allocation3 + $0x20] sm:$0xff] }
 0x28a   : > { %v12796_v3 = vpop.f32.mrf.mxu1  ;;  %4816 = vst.msk [vmem:[#allocation3 + $0x40] sm:$0xff] %vm16659_vm0, %v4800_v14  ;;  %v4803_v53 = vadd.f32 %v12785_v4, %v4787_v21  ;;  %v4785_v62 = vld [vmem:[#allocation3 + $0x48] sm:$0xff] }
 0x28b   : > { %4611 = vst.msk [vmem:[#allocation3 + $0x68] sm:$0xff] %vm16659_vm0, %v4595_v2  ;;  %v5004_v10 = vadd.f32 %v12796_v3, %v4988_v1  ;;  %v4748_v18 = vpop.f32.mrf.mxu0  ;;  %v4993_v37 = vld [vmem:[#allocation3 + $0x38] sm:$0xff] }
 0x28c   : > { %v4923_v11 = vpop.f32.mrf.mxu1  ;;  %4819 = vst.msk [vmem:[#allocation3 + $0x58] sm:$0xff] %vm16659_vm0, %v4803_v53  ;;  %v4801_v19 = vadd.f32 %v4785_v62, %v4748_v18  ;;  %v4790_v35 = vld [vmem:[#allocation3 + $0x70] sm:$0xff] }
 0x28d   : > { %5020 = vst.msk [vmem:[#allocation3 + $0x10] sm:$0xff] %vm16659_vm0, %v5004_v10  ;;  %v5002_v23 = vadd.f32 %v4986_v6, %v4923_v11  ;;  %v12788_v32 = vpop.f32.mrf.mxu0  ;;  %v4991_v42 = vld [vmem:[#allocation3 + $0x28] sm:$0xff] }
 0x28e   : > { %v12797_v22 = vpop.f32.mrf.mxu1  ;;  %4817 = vst.msk [vmem:[#allocation3 + $0x48] sm:$0xff] %vm16659_vm0, %v4801_v19  ;;  %v4806_v39 = vadd.f32 %v12788_v32, %v4790_v35  ;;  %v4788_v54 = vld [vmem:[#allocation3 + $0x60] sm:$0xff] }
 0x28f   : > { %5018 = vst.msk [vmem:[#allocation3] sm:$0xff] %vm16659_vm0, %v5002_v23  ;;  %v5005_v33 = vadd.f32 %v12797_v22, %v4989_v24  ;;  %v4761_v13 = vpop.f32.mrf.mxu0  ;;  %v4996_v51 = vld [vmem:[#allocation3 + $0x50] sm:$0xff] }
 0x290   : > { %v4926_v61 = vpop.f32.mrf.mxu1  ;;  %4822 = vst.msk [vmem:[#allocation3 + $0x70] sm:$0xff] %vm16659_vm0, %v4806_v39  ;;  %v4804_v48 = vadd.f32 %v4788_v54, %v4761_v13  ;;  %v4791_v15 = vld [vmem:[#allocation3 + $0x78] sm:$0xff] }
 0x291   : > { %5021 = vst.msk [vmem:[#allocation3 + $0x18] sm:$0xff] %vm16659_vm0, %v5005_v33  ;;  %v5003_v43 = vadd.f32 %v4987_v34, %v4926_v61  ;;  %v12789_v25 = vpop.f32.mrf.mxu0  ;;  %v4994_v63 = vld [vmem:[#allocation3 + $0x40] sm:$0xff] }
 0x292   : > { %v12800_v56 = vpop.f32.mrf.mxu1  ;;  %4820 = vst.msk [vmem:[#allocation3 + $0x60] sm:$0xff] %vm16659_vm0, %v4804_v48  ;;  %v4807_v60 = vadd.f32 %v12789_v25, %v4791_v15  ;;  %v4789_v16 = vld [vmem:[#allocation3 + $0x68] sm:$0xff] }
 0x293   : > { %5019 = vst.msk [vmem:[#allocation3 + $0x8] sm:$0xff] %vm16659_vm0, %v5003_v43  ;;  %v5008_v40 = vadd.f32 %v12800_v56, %v4992_v38  ;;  %v4764_v20 = vpop.f32.mrf.mxu0  ;;  %v4997_v2 = vld [vmem:[#allocation3 + $0x58] sm:$0xff] }
 0x294   : > { %v4939_v52 = vpop.f32.mrf.mxu1  ;;  %4823 = vst.msk [vmem:[#allocation3 + $0x78] sm:$0xff] %vm16659_vm0, %v4807_v60  ;;  %v4805_v28 = vadd.f32 %v4789_v16, %v4764_v20  ;;  %v5198_v41 = vld [vmem:[#allocation3 + $0x10] sm:$0xff] }
 0x295   : > { %5024 = vst.msk [vmem:[#allocation3 + $0x30] sm:$0xff] %vm16659_vm0, %v5008_v40  ;;  %v5006_v30 = vadd.f32 %v4990_v17, %v4939_v52  ;;  %v12816_v9 = vpop.f32.mrf.mxu0  ;;  %v4995_v10 = vld [vmem:[#allocation3 + $0x48] sm:$0xff] }
 0x296   : > { %v12801_v36 = vpop.f32.mrf.mxu1  ;;  %4821 = vst.msk [vmem:[#allocation3 + $0x68] sm:$0xff] %vm16659_vm0, %v4805_v28  ;;  %v5214_v44 = vadd.f32 %v12816_v9, %v5198_v41  ;;  %v5196_v5 = vld [vmem:[#allocation3] sm:$0xff] }
 0x297   : > { %5022 = vst.msk [vmem:[#allocation3 + $0x20] sm:$0xff] %vm16659_vm0, %v5006_v30  ;;  %v5009_v26 = vadd.f32 %v12801_v36, %v4993_v37  ;;  %v5133_v47 = vpop.f32.mrf.mxu0  ;;  %v5000_v23 = vld [vmem:[#allocation3 + $0x70] sm:$0xff] }
 0x298   : > { %v4942_v29 = vpop.f32.mrf.mxu1  ;;  %5230 = vst.msk [vmem:[#allocation3 + $0x10] sm:$0xff] %vm16659_vm0, %v5214_v44  ;;  %v5212_v31 = vadd.f32 %v5196_v5, %v5133_v47  ;;  %v5199_v57 = vld [vmem:[#allocation3 + $0x18] sm:$0xff] }
 0x299   : > { %5025 = vst.msk [vmem:[#allocation3 + $0x38] sm:$0xff] %vm16659_vm0, %v5009_v26  ;;  %v5007_v49 = vadd.f32 %v4991_v42, %v4942_v29  ;;  %v12817_v45 = vpop.f32.mrf.mxu0  ;;  %v4998_v33 = vld [vmem:[#allocation3 + $0x60] sm:$0xff] }
 0x29a   : > { %v12804_v50 = vpop.f32.mrf.mxu1  ;;  %5228 = vst.msk [vmem:[#allocation3] sm:$0xff] %vm16659_vm0, %v5212_v31  ;;  %v5215_v8 = vadd.f32 %v12817_v45, %v5199_v57  ;;  %v5197_v59 = vld [vmem:[#allocation3 + $0x8] sm:$0xff] }
 0x29b   : > { %5023 = vst.msk [vmem:[#allocation3 + $0x28] sm:$0xff] %vm16659_vm0, %v5007_v49  ;;  %v5012_v12 = vadd.f32 %v12804_v50, %v4996_v51  ;;  %v5136_v58 = vpop.f32.mrf.mxu0  ;;  %v5001_v43 = vld [vmem:[#allocation3 + $0x78] sm:$0xff] }
 0x29c   : > { %v4955_v27 = vpop.f32.mrf.mxu1  ;;  %5231 = vst.msk [vmem:[#allocation3 + $0x18] sm:$0xff] %vm16659_vm0, %v5215_v8  ;;  %v5213_v7 = vadd.f32 %v5197_v59, %v5136_v58  ;;  %v5202_v3 = vld [vmem:[#allocation3 + $0x30] sm:$0xff] }
 0x29d   : > { %5028 = vst.msk [vmem:[#allocation3 + $0x50] sm:$0xff] %vm16659_vm0, %v5012_v12  ;;  %v5010_v46 = vadd.f32 %v4994_v63, %v4955_v27  ;;  %v12820_v14 = vpop.f32.mrf.mxu0  ;;  %v4999_v40 = vld [vmem:[#allocation3 + $0x68] sm:$0xff] }
 0x29e   : > { %v12805_v55 = vpop.f32.mrf.mxu1  ;;  %5229 = vst.msk [vmem:[#allocation3 + $0x8] sm:$0xff] %vm16659_vm0, %v5213_v7  ;;  %v5218_v4 = vadd.f32 %v12820_v14, %v5202_v3  ;;  %v5200_v11 = vld [vmem:[#allocation3 + $0x20] sm:$0xff] }
 0x29f   : > { %5026 = vst.msk [vmem:[#allocation3 + $0x40] sm:$0xff] %vm16659_vm0, %v5010_v46  ;;  %v5013_v1 = vadd.f32 %v12805_v55, %v4997_v2  ;;  %v5149_v53 = vpop.f32.mrf.mxu0  ;;  %v5408_v30 = vld [vmem:[#allocation3 + $0x10] sm:$0xff] }
 0x2a0   : > { %v4958_v21 = vpop.f32.mrf.mxu1  ;;  %5234 = vst.msk [vmem:[#allocation3 + $0x30] sm:$0xff] %vm16659_vm0, %v5218_v4  ;;  %v5216_v18 = vadd.f32 %v5200_v11, %v5149_v53  ;;  %v5203_v22 = vld [vmem:[#allocation3 + $0x38] sm:$0xff] }
 0x2a1   : > { %5029 = vst.msk [vmem:[#allocation3 + $0x58] sm:$0xff] %vm16659_vm0, %v5013_v1  ;;  %v5011_v6 = vadd.f32 %v4995_v10, %v4958_v21  ;;  %v12821_v19 = vpop.f32.mrf.mxu0  ;;  %v5406_v26 = vld [vmem:[#allocation3] sm:$0xff] }
 0x2a2   : > { %v12808_v62 = vpop.f32.mrf.mxu1  ;;  %5232 = vst.msk [vmem:[#allocation3 + $0x20] sm:$0xff] %vm16659_vm0, %v5216_v18  ;;  %v5219_v32 = vadd.f32 %v12821_v19, %v5203_v22  ;;  %v5201_v61 = vld [vmem:[#allocation3 + $0x28] sm:$0xff] }
 0x2a3   : > { %5027 = vst.msk [vmem:[#allocation3 + $0x48] sm:$0xff] %vm16659_vm0, %v5011_v6  ;;  %v5016_v24 = vadd.f32 %v12808_v62, %v5000_v23  ;;  %v5152_v39 = vpop.f32.mrf.mxu0  ;;  %v5409_v49 = vld [vmem:[#allocation3 + $0x18] sm:$0xff] }
 0x2a4   : > { %v4971_v35 = vpop.f32.mrf.mxu1  ;;  %5235 = vst.msk [vmem:[#allocation3 + $0x38] sm:$0xff] %vm16659_vm0, %v5219_v32  ;;  %v5217_v13 = vadd.f32 %v5201_v61, %v5152_v39  ;;  %v5206_v56 = vld [vmem:[#allocation3 + $0x50] sm:$0xff] }
 0x2a5   : > { %5032 = vst.msk [vmem:[#allocation3 + $0x70] sm:$0xff] %vm16659_vm0, %v5016_v24  ;;  %v5014_v34 = vadd.f32 %v4998_v33, %v4971_v35  ;;  %v12824_v48 = vpop.f32.mrf.mxu0  ;;  %v5407_v12 = vld [vmem:[#allocation3 + $0x8] sm:$0xff] }
 0x2a6   : > { %v12809_v54 = vpop.f32.mrf.mxu1  ;;  %5233 = vst.msk [vmem:[#allocation3 + $0x28] sm:$0xff] %vm16659_vm0, %v5217_v13  ;;  %v5222_v25 = vadd.f32 %v12824_v48, %v5206_v56  ;;  %v5204_v52 = vld [vmem:[#allocation3 + $0x40] sm:$0xff] }
 0x2a7   : > { %5030 = vst.msk [vmem:[#allocation3 + $0x60] sm:$0xff] %vm16659_vm0, %v5014_v34  ;;  %v5017_v38 = vadd.f32 %v12809_v54, %v5001_v43  ;;  %v5165_v60 = vpop.f32.mrf.mxu0  ;;  %v5412_v46 = vld [vmem:[#allocation3 + $0x30] sm:$0xff] }
 0x2a8   : > { %v4974_v15 = vpop.f32.mrf.mxu1  ;;  %5238 = vst.msk [vmem:[#allocation3 + $0x50] sm:$0xff] %vm16659_vm0, %v5222_v25  ;;  %v5220_v20 = vadd.f32 %v5204_v52, %v5165_v60  ;;  %v5207_v36 = vld [vmem:[#allocation3 + $0x58] sm:$0xff] }
 0x2a9   : > { %5033 = vst.msk [vmem:[#allocation3 + $0x78] sm:$0xff] %vm16659_vm0, %v5017_v38  ;;  %v5015_v17 = vadd.f32 %v4999_v40, %v4974_v15  ;;  %v12825_v28 = vpop.f32.mrf.mxu0  ;;  %v5410_v1 = vld [vmem:[#allocation3 + $0x20] sm:$0xff] }
 0x2aa   : > { %v12836_v16 = vpop.f32.mrf.mxu1  ;;  %5236 = vst.msk [vmem:[#allocation3 + $0x40] sm:$0xff] %vm16659_vm0, %v5220_v20  ;;  %v5223_v9 = vadd.f32 %v12825_v28, %v5207_v36  ;;  %v5205_v29 = vld [vmem:[#allocation3 + $0x48] sm:$0xff] }
 0x2ab   : > { %5031 = vst.msk [vmem:[#allocation3 + $0x68] sm:$0xff] %vm16659_vm0, %v5015_v17  ;;  %v5424_v37 = vadd.f32 %v12836_v16, %v5408_v30  ;;  %v5168_v44 = vpop.f32.mrf.mxu0  ;;  %v5413_v6 = vld [vmem:[#allocation3 + $0x38] sm:$0xff] }
 0x2ac   : > { %v5343_v41 = vpop.f32.mrf.mxu1  ;;  %5239 = vst.msk [vmem:[#allocation3 + $0x58] sm:$0xff] %vm16659_vm0, %v5223_v9  ;;  %v5221_v47 = vadd.f32 %v5205_v29, %v5168_v44  ;;  %v5210_v50 = vld [vmem:[#allocation3 + $0x70] sm:$0xff] }
 0x2ad   : > { %5440 = vst.msk [vmem:[#allocation3 + $0x10] sm:$0xff] %vm16659_vm0, %v5424_v37  ;;  %v5422_v42 = vadd.f32 %v5406_v26, %v5343_v41  ;;  %v12828_v31 = vpop.f32.mrf.mxu0  ;;  %v5411_v24 = vld [vmem:[#allocation3 + $0x28] sm:$0xff] }
 0x2ae   : > { %v12837_v5 = vpop.f32.mrf.mxu1  ;;  %5237 = vst.msk [vmem:[#allocation3 + $0x48] sm:$0xff] %vm16659_vm0, %v5221_v47  ;;  %v5226_v45 = vadd.f32 %v12828_v31, %v5210_v50  ;;  %v5208_v27 = vld [vmem:[#allocation3 + $0x60] sm:$0xff] }
 0x2af   : > { %5438 = vst.msk [vmem:[#allocation3] sm:$0xff] %vm16659_vm0, %v5422_v42  ;;  %v5425_v51 = vadd.f32 %v12837_v5, %v5409_v49  ;;  %v5181_v8 = vpop.f32.mrf.mxu0  ;;  %v5416_v34 = vld [vmem:[#allocation3 + $0x50] sm:$0xff] }
 0x2b0   : > { %v5346_v57 = vpop.f32.mrf.mxu1  ;;  %5242 = vst.msk [vmem:[#allocation3 + $0x70] sm:$0xff] %vm16659_vm0, %v5226_v45  ;;  %v5224_v58 = vadd.f32 %v5208_v27, %v5181_v8  ;;  %v5211_v55 = vld [vmem:[#allocation3 + $0x78] sm:$0xff] }
 0x2b1   : > { %5441 = vst.msk [vmem:[#allocation3 + $0x18] sm:$0xff] %vm16659_vm0, %v5425_v51  ;;  %v5423_v63 = vadd.f32 %v5407_v12, %v5346_v57  ;;  %v12829_v7 = vpop.f32.mrf.mxu0  ;;  %v5414_v38 = vld [vmem:[#allocation3 + $0x40] sm:$0xff] }
 0x2b2   : > { %v12840_v59 = vpop.f32.mrf.mxu1  ;;  %5240 = vst.msk [vmem:[#allocation3 + $0x60] sm:$0xff] %vm16659_vm0, %v5224_v58  ;;  %v5227_v14 = vadd.f32 %v12829_v7, %v5211_v55  ;;  %v5209_v21 = vld [vmem:[#allocation3 + $0x68] sm:$0xff] }
 0x2b3   : > { %5439 = vst.msk [vmem:[#allocation3 + $0x8] sm:$0xff] %vm16659_vm0, %v5423_v63  ;;  %v5428_v2 = vadd.f32 %v12840_v59, %v5412_v46  ;;  %v5184_v4 = vpop.f32.mrf.mxu0  ;;  %v5417_v17 = vld [vmem:[#allocation3 + $0x58] sm:$0xff] }
 0x2b4   : > { %v5359_v3 = vpop.f32.mrf.mxu1  ;;  %5243 = vst.msk [vmem:[#allocation3 + $0x78] sm:$0xff] %vm16659_vm0, %v5227_v14  ;;  %v5225_v53 = vadd.f32 %v5209_v21, %v5184_v4  ;;  %v5618_v62 = vld [vmem:[#allocation3 + $0x10] sm:$0xff] }
 0x2b5   : > { %5444 = vst.msk [vmem:[#allocation3 + $0x30] sm:$0xff] %vm16659_vm0, %v5428_v2  ;;  %v5426_v10 = vadd.f32 %v5410_v1, %v5359_v3  ;;  %v12856_v18 = vpop.f32.mrf.mxu0  ;;  %v5415_v37 = vld [vmem:[#allocation3 + $0x48] sm:$0xff] }
 0x2b6   : > { %v12841_v11 = vpop.f32.mrf.mxu1  ;;  %5241 = vst.msk [vmem:[#allocation3 + $0x68] sm:$0xff] %vm16659_vm0, %v5225_v53  ;;  %v5634_v19 = vadd.f32 %v12856_v18, %v5618_v62  ;;  %v5616_v35 = vld [vmem:[#allocation3] sm:$0xff] }
 0x2b7   : > { %5442 = vst.msk [vmem:[#allocation3 + $0x20] sm:$0xff] %vm16659_vm0, %v5426_v10  ;;  %v5429_v23 = vadd.f32 %v12841_v11, %v5413_v6  ;;  %v5553_v32 = vpop.f32.mrf.mxu0  ;;  %v5420_v42 = vld [vmem:[#allocation3 + $0x70] sm:$0xff] }
 0x2b8   : > { %v5362_v22 = vpop.f32.mrf.mxu1  ;;  %5650 = vst.msk [vmem:[#allocation3 + $0x10] sm:$0xff] %vm16659_vm0, %v5634_v19  ;;  %v5632_v39 = vadd.f32 %v5616_v35, %v5553_v32  ;;  %v5619_v54 = vld [vmem:[#allocation3 + $0x18] sm:$0xff] }
 0x2b9   : > { %5445 = vst.msk [vmem:[#allocation3 + $0x38] sm:$0xff] %vm16659_vm0, %v5429_v23  ;;  %v5427_v33 = vadd.f32 %v5411_v24, %v5362_v22  ;;  %v12857_v13 = vpop.f32.mrf.mxu0  ;;  %v5418_v51 = vld [vmem:[#allocation3 + $0x60] sm:$0xff] }
 0x2ba   : > { %v12844_v61 = vpop.f32.mrf.mxu1  ;;  %5648 = vst.msk [vmem:[#allocation3] sm:$0xff] %vm16659_vm0, %v5632_v39  ;;  %v5635_v48 = vadd.f32 %v12857_v13, %v5619_v54  ;;  %v5617_v15 = vld [vmem:[#allocation3 + $0x8] sm:$0xff] }
 0x2bb   : > { %5443 = vst.msk [vmem:[#allocation3 + $0x28] sm:$0xff] %vm16659_vm0, %v5427_v33  ;;  %v5432_v43 = vadd.f32 %v12844_v61, %v5416_v34  ;;  %v5556_v25 = vpop.f32.mrf.mxu0  ;;  %v5421_v63 = vld [vmem:[#allocation3 + $0x78] sm:$0xff] }
 0x2bc   : > { %v5375_v56 = vpop.f32.mrf.mxu1  ;;  %5651 = vst.msk [vmem:[#allocation3 + $0x18] sm:$0xff] %vm16659_vm0, %v5635_v48  ;;  %v5633_v60 = vadd.f32 %v5617_v15, %v5556_v25  ;;  %v5622_v16 = vld [vmem:[#allocation3 + $0x30] sm:$0xff] }
 0x2bd   : > { %5448 = vst.msk [vmem:[#allocation3 + $0x50] sm:$0xff] %vm16659_vm0, %v5432_v43  ;;  %v5430_v40 = vadd.f32 %v5414_v38, %v5375_v56  ;;  %v12860_v20 = vpop.f32.mrf.mxu0  ;;  %v5419_v2 = vld [vmem:[#allocation3 + $0x68] sm:$0xff] }
 0x2be   : > { %v12845_v52 = vpop.f32.mrf.mxu1  ;;  %5649 = vst.msk [vmem:[#allocation3 + $0x8] sm:$0xff] %vm16659_vm0, %v5633_v60  ;;  %v5638_v28 = vadd.f32 %v12860_v20, %v5622_v16  ;;  %v5620_v41 = vld [vmem:[#allocation3 + $0x20] sm:$0xff] }
 0x2bf   : > { %5446 = vst.msk [vmem:[#allocation3 + $0x40] sm:$0xff] %vm16659_vm0, %v5430_v40  ;;  %v5433_v30 = vadd.f32 %v12845_v52, %v5417_v17  ;;  %v5569_v9 = vpop.f32.mrf.mxu0  ;;  %v5828_v10 = vld [vmem:[#allocation3 + $0x10] sm:$0xff] }
 0x2c0   : > { %v5378_v36 = vpop.f32.mrf.mxu1  ;;  %5654 = vst.msk [vmem:[#allocation3 + $0x30] sm:$0xff] %vm16659_vm0, %v5638_v28  ;;  %v5636_v44 = vadd.f32 %v5620_v41, %v5569_v9  ;;  %v5623_v5 = vld [vmem:[#allocation3 + $0x38] sm:$0xff] }
 0x2c1   : > { %5449 = vst.msk [vmem:[#allocation3 + $0x58] sm:$0xff] %vm16659_vm0, %v5433_v30  ;;  %v5431_v26 = vadd.f32 %v5415_v37, %v5378_v36  ;;  %v12861_v47 = vpop.f32.mrf.mxu0  ;;  %v5826_v23 = vld [vmem:[#allocation3] sm:$0xff] }
 0x2c2   : > { %v12848_v29 = vpop.f32.mrf.mxu1  ;;  %5652 = vst.msk [vmem:[#allocation3 + $0x20] sm:$0xff] %vm16659_vm0, %v5636_v44  ;;  %v5639_v31 = vadd.f32 %v12861_v47, %v5623_v5  ;;  %v5621_v57 = vld [vmem:[#allocation3 + $0x28] sm:$0xff] }
 0x2c3   : > { %5447 = vst.msk [vmem:[#allocation3 + $0x48] sm:$0xff] %vm16659_vm0, %v5431_v26  ;;  %v5436_v49 = vadd.f32 %v12848_v29, %v5420_v42  ;;  %v5572_v45 = vpop.f32.mrf.mxu0  ;;  %v5829_v33 = vld [vmem:[#allocation3 + $0x18] sm:$0xff] }
 0x2c4   : > { %v5391_v50 = vpop.f32.mrf.mxu1  ;;  %5655 = vst.msk [vmem:[#allocation3 + $0x38] sm:$0xff] %vm16659_vm0, %v5639_v31  ;;  %v5637_v8 = vadd.f32 %v5621_v57, %v5572_v45  ;;  %v5626_v59 = vld [vmem:[#allocation3 + $0x50] sm:$0xff] }
 0x2c5   : > { %5452 = vst.msk [vmem:[#allocation3 + $0x70] sm:$0xff] %vm16659_vm0, %v5436_v49  ;;  %v5434_v12 = vadd.f32 %v5418_v51, %v5391_v50  ;;  %v12864_v58 = vpop.f32.mrf.mxu0  ;;  %v5827_v43 = vld [vmem:[#allocation3 + $0x8] sm:$0xff] }
 0x2c6   : > { %v12849_v27 = vpop.f32.mrf.mxu1  ;;  %5653 = vst.msk [vmem:[#allocation3 + $0x28] sm:$0xff] %vm16659_vm0, %v5637_v8  ;;  %v5642_v7 = vadd.f32 %v12864_v58, %v5626_v59  ;;  %v5624_v3 = vld [vmem:[#allocation3 + $0x40] sm:$0xff] }
 0x2c7   : > { %5450 = vst.msk [vmem:[#allocation3 + $0x60] sm:$0xff] %vm16659_vm0, %v5434_v12  ;;  %v5437_v46 = vadd.f32 %v12849_v27, %v5421_v63  ;;  %v5585_v14 = vpop.f32.mrf.mxu0  ;;  %v5832_v40 = vld [vmem:[#allocation3 + $0x30] sm:$0xff] }
 0x2c8   : > { %v5394_v55 = vpop.f32.mrf.mxu1  ;;  %5658 = vst.msk [vmem:[#allocation3 + $0x50] sm:$0xff] %vm16659_vm0, %v5642_v7  ;;  %v5640_v4 = vadd.f32 %v5624_v3, %v5585_v14  ;;  %v5627_v11 = vld [vmem:[#allocation3 + $0x58] sm:$0xff] }
 0x2c9   : > { %5453 = vst.msk [vmem:[#allocation3 + $0x78] sm:$0xff] %vm16659_vm0, %v5437_v46  ;;  %v5435_v1 = vadd.f32 %v5419_v2, %v5394_v55  ;;  %v12865_v53 = vpop.f32.mrf.mxu0  ;;  %v5830_v30 = vld [vmem:[#allocation3 + $0x20] sm:$0xff] }
 0x2ca   : > { %v12876_v21 = vpop.f32.mrf.mxu1  ;;  %5656 = vst.msk [vmem:[#allocation3 + $0x40] sm:$0xff] %vm16659_vm0, %v5640_v4  ;;  %v5643_v18 = vadd.f32 %v12865_v53, %v5627_v11  ;;  %v5625_v22 = vld [vmem:[#allocation3 + $0x48] sm:$0xff] }
 0x2cb   : > { %5451 = vst.msk [vmem:[#allocation3 + $0x68] sm:$0xff] %vm16659_vm0, %v5435_v1  ;;  %v5844_v6 = vadd.f32 %v12876_v21, %v5828_v10  ;;  %v5588_v19 = vpop.f32.mrf.mxu0  ;;  %v5833_v26 = vld [vmem:[#allocation3 + $0x38] sm:$0xff] }
 0x2cc   : > { %v5763_v62 = vpop.f32.mrf.mxu1  ;;  %5659 = vst.msk [vmem:[#allocation3 + $0x58] sm:$0xff] %vm16659_vm0, %v5643_v18  ;;  %v5641_v32 = vadd.f32 %v5625_v22, %v5588_v19  ;;  %v5630_v61 = vld [vmem:[#allocation3 + $0x70] sm:$0xff] }
 0x2cd   : > { %5860 = vst.msk [vmem:[#allocation3 + $0x10] sm:$0xff] %vm16659_vm0, %v5844_v6  ;;  %v5842_v24 = vadd.f32 %v5826_v23, %v5763_v62  ;;  %v12868_v39 = vpop.f32.mrf.mxu0  ;;  %v5831_v49 = vld [vmem:[#allocation3 + $0x28] sm:$0xff] }
 0x2ce   : > { %v12877_v35 = vpop.f32.mrf.mxu1  ;;  %5657 = vst.msk [vmem:[#allocation3 + $0x48] sm:$0xff] %vm16659_vm0, %v5641_v32  ;;  %v5646_v13 = vadd.f32 %v12868_v39, %v5630_v61  ;;  %v5628_v56 = vld [vmem:[#allocation3 + $0x60] sm:$0xff] }
 0x2cf   : > { %5858 = vst.msk [vmem:[#allocation3] sm:$0xff] %vm16659_vm0, %v5842_v24  ;;  %v5845_v34 = vadd.f32 %v12877_v35, %v5829_v33  ;;  %v5601_v48 = vpop.f32.mrf.mxu0  ;;  %v5836_v12 = vld [vmem:[#allocation3 + $0x50] sm:$0xff] }
 0x2d0   : > { %v5766_v54 = vpop.f32.mrf.mxu1  ;;  %5662 = vst.msk [vmem:[#allocation3 + $0x70] sm:$0xff] %vm16659_vm0, %v5646_v13  ;;  %v5644_v25 = vadd.f32 %v5628_v56, %v5601_v48  ;;  %v5631_v52 = vld [vmem:[#allocation3 + $0x78] sm:$0xff] }
 0x2d1   : > { %5861 = vst.msk [vmem:[#allocation3 + $0x18] sm:$0xff] %vm16659_vm0, %v5845_v34  ;;  %v5843_v38 = vadd.f32 %v5827_v43, %v5766_v54  ;;  %v12869_v60 = vpop.f32.mrf.mxu0  ;;  %v5834_v46 = vld [vmem:[#allocation3 + $0x40] sm:$0xff] }
 0x2d2   : > { %v12880_v15 = vpop.f32.mrf.mxu1  ;;  %5660 = vst.msk [vmem:[#allocation3 + $0x60] sm:$0xff] %vm16659_vm0, %v5644_v25  ;;  %v5647_v20 = vadd.f32 %v12869_v60, %v5631_v52  ;;  %v5629_v36 = vld [vmem:[#allocation3 + $0x68] sm:$0xff] }
 0x2d3   : > { %5859 = vst.msk [vmem:[#allocation3 + $0x8] sm:$0xff] %vm16659_vm0, %v5843_v38  ;;  %v5848_v17 = vadd.f32 %v12880_v15, %v5832_v40  ;;  %v5604_v28 = vpop.f32.mrf.mxu0  ;;  %v5837_v1 = vld [vmem:[#allocation3 + $0x58] sm:$0xff] }
 0x2d4   : > { %v5779_v16 = vpop.f32.mrf.mxu1  ;;  %5663 = vst.msk [vmem:[#allocation3 + $0x78] sm:$0xff] %vm16659_vm0, %v5647_v20  ;;  %v5645_v9 = vadd.f32 %v5629_v36, %v5604_v28  ;;  %v6038_v29 = vld [vmem:[#allocation3 + $0x10] sm:$0xff] }
 0x2d5   : > { %5864 = vst.msk [vmem:[#allocation3 + $0x30] sm:$0xff] %vm16659_vm0, %v5848_v17  ;;  %v5846_v37 = vadd.f32 %v5830_v30, %v5779_v16  ;;  %v12896_v44 = vpop.f32.mrf.mxu0  ;;  %v5835_v6 = vld [vmem:[#allocation3 + $0x48] sm:$0xff] }
 0x2d6   : > { %v12881_v41 = vpop.f32.mrf.mxu1  ;;  %5661 = vst.msk [vmem:[#allocation3 + $0x68] sm:$0xff] %vm16659_vm0, %v5645_v9  ;;  %v6054_v47 = vadd.f32 %v12896_v44, %v6038_v29  ;;  %v6036_v50 = vld [vmem:[#allocation3] sm:$0xff] }
 0x2d7   : > { %5862 = vst.msk [vmem:[#allocation3 + $0x20] sm:$0xff] %vm16659_vm0, %v5846_v37  ;;  %v5849_v42 = vadd.f32 %v12881_v41, %v5833_v26  ;;  %v5973_v31 = vpop.f32.mrf.mxu0  ;;  %v5840_v24 = vld [vmem:[#allocation3 + $0x70] sm:$0xff] }
 0x2d8   : > { %v5782_v5 = vpop.f32.mrf.mxu1  ;;  %6070 = vst.msk [vmem:[#allocation3 + $0x10] sm:$0xff] %vm16659_vm0, %v6054_v47  ;;  %v6052_v45 = vadd.f32 %v6036_v50, %v5973_v31  ;;  %v6039_v27 = vld [vmem:[#allocation3 + $0x18] sm:$0xff] }
 0x2d9   : > { %5865 = vst.msk [vmem:[#allocation3 + $0x38] sm:$0xff] %vm16659_vm0, %v5849_v42  ;;  %v5847_v51 = vadd.f32 %v5831_v49, %v5782_v5  ;;  %v12897_v8 = vpop.f32.mrf.mxu0  ;;  %v5838_v34 = vld [vmem:[#allocation3 + $0x60] sm:$0xff] }
 0x2da   : > { %v12884_v57 = vpop.f32.mrf.mxu1  ;;  %6068 = vst.msk [vmem:[#allocation3] sm:$0xff] %vm16659_vm0, %v6052_v45  ;;  %v6055_v58 = vadd.f32 %v12897_v8, %v6039_v27  ;;  %v6037_v55 = vld [vmem:[#allocation3 + $0x8] sm:$0xff] }
 0x2db   : > { %5863 = vst.msk [vmem:[#allocation3 + $0x28] sm:$0xff] %vm16659_vm0, %v5847_v51  ;;  %v5852_v63 = vadd.f32 %v12884_v57, %v5836_v12  ;;  %v5976_v7 = vpop.f32.mrf.mxu0  ;;  %v5841_v38 = vld [vmem:[#allocation3 + $0x78] sm:$0xff] }
 0x2dc   : > { %v5795_v59 = vpop.f32.mrf.mxu1  ;;  %6071 = vst.msk [vmem:[#allocation3 + $0x18] sm:$0xff] %vm16659_vm0, %v6055_v58  ;;  %v6053_v14 = vadd.f32 %v6037_v55, %v5976_v7  ;;  %v6042_v21 = vld [vmem:[#allocation3 + $0x30] sm:$0xff] }
 0x2dd   : > { %5868 = vst.msk [vmem:[#allocation3 + $0x50] sm:$0xff] %vm16659_vm0, %v5852_v63  ;;  %v5850_v2 = vadd.f32 %v5834_v46, %v5795_v59  ;;  %v12900_v4 = vpop.f32.mrf.mxu0  ;;  %v5839_v17 = vld [vmem:[#allocation3 + $0x68] sm:$0xff]  ;;  %v15277_v63 = vld [vmem:[#allocation8] ss:$0 sm:$0xff] }
 0x2de   : > { %v12885_v3 = vpop.f32.mrf.mxu1  ;;  %6069 = vst.msk [vmem:[#allocation3 + $0x8] sm:$0xff] %vm16659_vm0, %v6053_v14  ;;  %v6058_v53 = vadd.f32 %v12900_v4, %v6042_v21  ;;  %v6040_v62 = vld [vmem:[#allocation3 + $0x20] sm:$0xff] }
 0x2df   : > { %5866 = vst.msk [vmem:[#allocation3 + $0x40] sm:$0xff] %vm16659_vm0, %v5850_v2  ;;  %v5853_v10 = vadd.f32 %v12885_v3, %v5837_v1  ;;  %v5989_v18 = vpop.f32.mrf.mxu0 }
 0x2e0   : > { %v5798_v11 = vpop.f32.mrf.mxu1  ;;  %6074 = vst.msk [vmem:[#allocation3 + $0x30] sm:$0xff] %vm16659_vm0, %v6058_v53  ;;  %v6056_v19 = vadd.f32 %v6040_v62, %v5989_v18  ;;  %v6043_v35 = vld [vmem:[#allocation3 + $0x38] sm:$0xff] }
 0x2e1   : > { %5869 = vst.msk [vmem:[#allocation3 + $0x58] sm:$0xff] %vm16659_vm0, %v5853_v10  ;;  %v5851_v23 = vadd.f32 %v5835_v6, %v5798_v11  ;;  %v12901_v32 = vpop.f32.mrf.mxu0 }
 0x2e2   : > { %v12888_v22 = vpop.f32.mrf.mxu1  ;;  %6072 = vst.msk [vmem:[#allocation3 + $0x20] sm:$0xff] %vm16659_vm0, %v6056_v19  ;;  %v6059_v39 = vadd.f32 %v12901_v32, %v6043_v35  ;;  %v6041_v54 = vld [vmem:[#allocation3 + $0x28] sm:$0xff] }
 0x2e3   : > { %5867 = vst.msk [vmem:[#allocation3 + $0x48] sm:$0xff] %vm16659_vm0, %v5851_v23  ;;  %v5856_v33 = vadd.f32 %v12888_v22, %v5840_v24  ;;  %v5992_v13 = vpop.f32.mrf.mxu0 }
 0x2e4   : > { %v5811_v61 = vpop.f32.mrf.mxu1  ;;  %6075 = vst.msk [vmem:[#allocation3 + $0x38] sm:$0xff] %vm16659_vm0, %v6059_v39  ;;  %v6057_v48 = vadd.f32 %v6041_v54, %v5992_v13  ;;  %v6046_v15 = vld [vmem:[#allocation3 + $0x50] sm:$0xff] }
 0x2e5   : > { %5872 = vst.msk [vmem:[#allocation3 + $0x70] sm:$0xff] %vm16659_vm0, %v5856_v33  ;;  %v5854_v43 = vadd.f32 %v5838_v34, %v5811_v61  ;;  %v12904_v25 = vpop.f32.mrf.mxu0  ;;  %v546_v34 = vlaneseq }
 0x2e6   : > { %v12889_v56 = vpop.f32.mrf.mxu1  ;;  %6073 = vst.msk [vmem:[#allocation3 + $0x28] sm:$0xff] %vm16659_vm0, %v6057_v48  ;;  %v6062_v60 = vadd.f32 %v12904_v25, %v6046_v15  ;;  %v6044_v16 = vld [vmem:[#allocation3 + $0x40] sm:$0xff] }
 0x2e7   : > { %5870 = vst.msk [vmem:[#allocation3 + $0x60] sm:$0xff] %vm16659_vm0, %v5854_v43  ;;  %v5857_v40 = vadd.f32 %v12889_v56, %v5841_v38  ;;  %v6005_v20 = vpop.f32.mrf.mxu0  ;;  %v6093_v35 = vld [vmem:[#allocation3 + $0x30] sm:$0xff]  ;;  %v6090_v38 = vld [vmem:[#allocation3 + $0x18] sm:$0xff]  ;;  %v804_v25 = vand.u32 127, %v546_v34 }
 0x2e8   : > { %v5814_v52 = vpop.f32.mrf.mxu1  ;;  %6078 = vst.msk [vmem:[#allocation3 + $0x50] sm:$0xff] %vm16659_vm0, %v6062_v60  ;;  %v6060_v28 = vadd.f32 %v6044_v16, %v6005_v20  ;;  %v6047_v37 = vld [vmem:[#allocation3 + $0x58] sm:$0xff]  ;;  %v15344_v54 = vadd.f32 %v15277_v63, %v6093_v35  ;;  %v6089_v60 = vld [vmem:[#allocation3 + $0x10] sm:$0xff]  ;;  %v6088_v20 = vld [vmem:[#allocation3 + $0x8] sm:$0xff] }
 0x2e9   : > { %5873 = vst.msk [vmem:[#allocation3 + $0x78] sm:$0xff] %vm16659_vm0, %v5857_v40  ;;  %v5855_v30 = vadd.f32 %v5839_v17, %v5814_v52  ;;  %v12905_v36 = vpop.f32.mrf.mxu0  ;;  %v6091_v43 = vld [vmem:[#allocation3 + $0x20] sm:$0xff]  ;;  %v15369_v17 = vadd.f32 %v15277_v63, %v6090_v38  ;;  %v809_v16 = vand.u32 15, %v804_v25 }
 0x2ea   : > { %6076 = vst.msk [vmem:[#allocation3 + $0x40] sm:$0xff] %vm16659_vm0, %v6060_v28  ;;  %v6063_v9 = vadd.f32 %v12905_v36, %v6047_v37  ;;  %v6045_v26 = vld [vmem:[#allocation3 + $0x48] sm:$0xff]  ;;  %v6201_v15 = vmul.f32 %v15344_v54, %v15344_v54  ;;  %v15361_v40 = vadd.f32 %v15277_v63, %v6091_v43  ;;  %v15377_v28 = vadd.f32 %v15277_v63, %v6089_v60  ;;  %v6087_v36 = vld [vmem:[#allocation3] sm:$0xff] }
 0x2eb   : > { %5871 = vst.msk [vmem:[#allocation3 + $0x68] sm:$0xff] %vm16659_vm0, %v5855_v30  ;;  %v6008_v41 = vpop.f32.mrf.mxu0  ;;  %v6094_v22 = vld [vmem:[#allocation3 + $0x38] sm:$0xff]  ;;  %v6198_v37 = vmul.f32 %v15369_v17, %v15369_v17  ;;  %vm817_vm2 = vcmp.ge.s32.totalorder %v809_v16, 2  ;;  %vm818_vm3 = vcmp.lt.s32.totalorder %v809_v16, 10  ;;  %v6887_v35 = vld [vmem:[#allocation2 + $0x20] sm:$0xff]  ;;  %v15458_v43 = vld [vmem:[#allocation13 + $0x38] sm:$0xff]  }
 0x2ec   : > { %6079 = vst.msk [vmem:[#allocation3 + $0x58] sm:$0xff] %vm16659_vm0, %v6063_v9  ;;  %v6061_v44 = vadd.f32 %v6045_v26, %v6008_v41  ;;  %v6050_v42 = vld [vmem:[#allocation3 + $0x70] sm:$0xff]  ;;  %v15336_v39 = vadd.f32 %v15277_v63, %v6094_v22  ;;  %v6199_v30 = vmul.f32 %v15361_v40, %v15361_v40  ;;  %v15385_v9 = vadd.f32 %v15277_v63, %v6088_v20  ;;  %vm15400_vm4 = vmand %vm817_vm2, %vm818_vm3  ;;  %v6711_v22 = vld [vmem:[#allocation2 + $0x27] sm:$0xff] }
 0x2ed   : > { %v12908_v29 = vpop.f32.mrf.mxu0  ;;  %v6092_v61 = vld [vmem:[#allocation3 + $0x28] sm:$0xff]  ;;  %v6197_v41 = vmul.f32 %v15377_v28, %v15377_v28  ;;  %v15393_v26 = vadd.f32 %v15277_v63, %v6087_v36 }
 0x2ee   : > { %6077 = vst.msk [vmem:[#allocation3 + $0x48] sm:$0xff] %vm16659_vm0, %v6061_v44  ;;  %v6066_v47 = vadd.f32 %v12908_v29, %v6050_v42  ;;  %v6048_v49 = vld [vmem:[#allocation3 + $0x60] sm:$0xff]  ;;  %v6202_v48 = vmul.f32 %v15336_v39, %v15336_v39  ;;  %v15352_v56 = vadd.f32 %v15277_v63, %v6092_v61  ;;  %v6196_v44 = vmul.f32 %v15385_v9, %v15385_v9 }
 0x2ef   : > { %v6021_v5 = vpop.f32.mrf.mxu0  ;;  %v6097_v21 = vld [vmem:[#allocation3 + $0x50] sm:$0xff]  ;;  %v16695_v29 = vmov 0  ;;  %v6195_v42 = vmul.f32 %v15393_v26, %v15393_v26 }
 0x2f0   : > { %6082 = vst.msk [vmem:[#allocation3 + $0x70] sm:$0xff] %vm16659_vm0, %v6066_v47  ;;  %v6064_v31 = vadd.f32 %v6048_v49, %v6021_v5  ;;  %v6051_v51 = vld [vmem:[#allocation3 + $0x78] sm:$0xff]  ;;  %v15312_v18 = vadd.f32 %v15277_v63, %v6097_v21  ;;  %v6200_v52 = vmul.f32 %v15352_v56, %v15352_v56  ;;  %v16696_v29 = vsel %vm15400_vm4, 4294967295, %v16695_v29  ;;  %v6283_v49 = vld [vmem:[%s16646_s11 + $0x10] sm:$0xff] }
 0x2f1   : > { %v12909_v50 = vpop.f32.mrf.mxu0  ;;  %v6095_v62 = vld [vmem:[#allocation3 + $0x40] sm:$0xff]  ;;  %v6284_v47 = vld [vmem:[%s16646_s11 + $0x18] sm:$0xff]  ;;  %v14040_v5 = vmov 1.0  }
 0x2f2   : > { %6080 = vst.msk [vmem:[#allocation3 + $0x60] sm:$0xff] %vm16659_vm0, %v6064_v31  ;;  %v6067_v45 = vadd.f32 %v12909_v50, %v6051_v51  ;;  %v6049_v12 = vld [vmem:[#allocation3 + $0x68] sm:$0xff]  ;;  %v6205_v24 = vmul.f32 %v15312_v18, %v15312_v18  ;;  %v15328_v32 = vadd.f32 %v15277_v63, %v6095_v62  ;;  %v6281_v50 = vld [vmem:[%s16646_s11] sm:$0xff] }
 0x2f3   : > { %v6024_v57 = vpop.f32.mrf.mxu0  ;;  %v6098_v3 = vld [vmem:[#allocation3 + $0x58] sm:$0xff]  ;;  %v6282_v31 = vld [vmem:[%s16646_s11 + $0x8] sm:$0xff] }
 0x2f4   : > { %6083 = vst.msk [vmem:[#allocation3 + $0x78] sm:$0xff] %vm16659_vm0, %v6067_v45  ;;  %v6065_v8 = vadd.f32 %v6049_v12, %v6024_v57  ;;  %v15304_v53 = vadd.f32 %v15277_v63, %v6098_v3  ;;  %v6203_v13 = vmul.f32 %v15328_v32, %v15328_v32  ;;  %v13693_v62 = vld [vmem:[#allocation13 + $0x10] sm:$0xff]  }
 0x2f5   : > { %v6096_v11 = vld [vmem:[#allocation3 + $0x48] sm:$0xff] }
 0x2f6   : > { %6081 = vst.msk [vmem:[#allocation3 + $0x68] sm:$0xff] %vm16659_vm0, %v6065_v8  ;;  %v6206_v23 = vmul.f32 %v15304_v53, %v15304_v53  ;;  %v15320_v19 = vadd.f32 %v15277_v63, %v6096_v11  ;;  %v6436_v8 = vld [vmem:[%s16647_s12] sm:$0xff]  ;;  %v13691_v11 = vld [vmem:[#allocation13 + $0x18] sm:$0xff]  }
 0x2f7   : > { %v6101_v27 = vld [vmem:[#allocation3 + $0x70] sm:$0xff] }
 0x2f8   : > { %v15283_v46 = vadd.f32 %v15277_v63, %v6101_v27  ;;  %v6204_v33 = vmul.f32 %v15320_v19, %v15320_v19 }
 0x2f9   : > { %v6099_v55 = vld [vmem:[#allocation3 + $0x60] sm:$0xff] }
 0x2fa   : > { %v6209_v1 = vmul.f32 %v15283_v46, %v15283_v46  ;;  %v15296_v4 = vadd.f32 %v15277_v63, %v6099_v55 }
 0x2fb   : > { %v6102_v58 = vld [vmem:[#allocation3 + $0x78] sm:$0xff] }
 0x2fc   : > { %v15280_v59 = vadd.f32 %v15277_v63, %v6102_v58  ;;  %v6207_v6 = vmul.f32 %v15296_v4, %v15296_v4 }
 0x2fd   : > { %v6100_v7 = vld [vmem:[#allocation3 + $0x68] sm:$0xff] }
 0x2fe   : > { %12911 = vmatpush3.msra.mxu1 %v15280_v59  ;;  %v6210_v2 = vmul.f32 %v15280_v59, %v15280_v59  ;;  %v15289_v14 = vadd.f32 %v15277_v63, %v6100_v7 }
 0x2ff   : > { %12912 = vmatprep.subr.mxu1 %v14038_v0 }
 0x300   : > { %12913 = vmatpush3.msra.mxu1 %v15283_v46  ;;  %12946 = vmatpush3.msra.mxu0 %v6210_v2  ;;  %v6208_v10 = vmul.f32 %v15289_v14, %v15289_v14 }
 0x301   : > { %12914 = vmatprep.subr.mxu1 %v14038_v0  ;;  %12947 = vmatprep.subr.mxu0 %v14038_v0 }
 0x302   : > { %12915 = vmatpush3.msra.mxu1 %v15289_v14  ;;  %12948 = vmatpush3.msra.mxu0 %v6209_v1 }
 0x303   : > { %12916 = vmatprep.subr.mxu1 %v14038_v0  ;;  %12949 = vmatprep.subr.mxu0 %v14038_v0 }
 0x304   : > { %12917 = vmatpush3.msra.mxu1 %v15296_v4  ;;  %12950 = vmatpush3.msra.mxu0 %v6208_v10  ;;  %v13690_v10 = vld [vmem:[#allocation13 + $0x8] sm:$0xff]  }
 0x305   : > { %12918 = vmatprep.subr.mxu1 %v14038_v0  ;;  %12951 = vmatprep.subr.mxu0 %v14038_v0 }
 0x306   : > { %12919 = vmatpush3.msra.mxu1 %v15304_v53  ;;  %12952 = vmatpush3.msra.mxu0 %v6207_v6  ;;  %v13692_v6 = vld [vmem:[#allocation13] sm:$0xff]  }
 0x307   : > { %12920 = vmatprep.subr.mxu1 %v14038_v0  ;;  %12953 = vmatprep.subr.mxu0 %v14038_v0 }
 0x308   : > { %12921 = vmatpush3.msra.mxu1 %v15312_v18  ;;  %12954 = vmatpush3.msra.mxu0 %v6206_v23  ;;  %v6710_v23 = vld [vmem:[#allocation2 + $0x1f] sm:$0xff] }
 0x309   : > { %12922 = vmatprep.subr.mxu1 %v14038_v0  ;;  %12955 = vmatprep.subr.mxu0 %v14038_v0 }
 0x30a   : > { %12923 = vmatpush3.msra.mxu1 %v15320_v19  ;;  %12956 = vmatpush3.msra.mxu0 %v6205_v24  ;;  %v6726_v24 = vpack.c.bf16 %v6711_v22, %v6710_v23 }
 0x30b   : > { %12924 = vmatprep.subr.mxu1 %v14038_v0  ;;  %12957 = vmatprep.subr.mxu0 %v14038_v0 }
 0x30c   : > { %12925 = vmatpush3.msra.mxu1 %v15328_v32  ;;  %12958 = vmatpush3.msra.mxu0 %v6204_v33  ;;  %v6888_v33 = vld [vmem:[#allocation2 + $0x28] sm:$0xff] }
 0x30d   : > { %12926 = vmatprep.subr.mxu1 %v14038_v0  ;;  %12959 = vmatprep.subr.mxu0 %v14038_v0  ;;  %v6903_v61 = vpack.c.bf16 %v6888_v33, %v6887_v35 }
 0x30e   : > { %12927 = vmatpush3.msra.mxu1 %v15336_v39  ;;  %12960 = vmatpush3.msra.mxu0 %v6203_v13  ;;  %v15455_v13 = vld [vmem:[#allocation13 + $0x28] sm:$0xff]  }
 0x30f   : > { %12928 = vmatprep.subr.mxu1 %v14038_v0  ;;  %12961 = vmatprep.subr.mxu0 %v14038_v0 }
 0x310   : > { %12929 = vmatpush3.msra.mxu1 %v15344_v54  ;;  %12962 = vmatpush3.msra.mxu0 %v6202_v48 }
 0x311   : > { %12930 = vmatprep.subr.mxu1 %v14038_v0  ;;  %12963 = vmatprep.subr.mxu0 %v14038_v0 }
 0x312   : > { %12931 = vmatpush3.msra.mxu1 %v15352_v56  ;;  %12964 = vmatpush3.msra.mxu0 %v6201_v15 }
 0x313   : > { %12932 = vmatprep.subr.mxu1 %v14038_v0  ;;  %12965 = vmatprep.subr.mxu0 %v14038_v0 }
 0x314   : > { %12933 = vmatpush3.msra.mxu1 %v15361_v40  ;;  %12966 = vmatpush3.msra.mxu0 %v6200_v52  ;;  %v547_v52 = vshrl.u32 %v546_v34, 7 }
 0x315   : > { %12934 = vmatprep.subr.mxu1 %v14038_v0  ;;  %12967 = vmatprep.subr.mxu0 %v14038_v0 }
 0x316   : > { %12935 = vmatpush3.msra.mxu1 %v15369_v17  ;;  %12968 = vmatpush3.msra.mxu0 %v6199_v30  ;;  %v548_v20 = vadd.s32 8, %v547_v52  ;;  %v549_v16 = vadd.s32 16, %v547_v52  ;;  %v550_v30 = vadd.s32 24, %v547_v52  ;;  %v551_v36 = vadd.s32 32, %v547_v52 }
 0x317   : > { %12936 = vmatprep.subr.mxu1 %v14038_v0  ;;  %12969 = vmatprep.subr.mxu0 %v14038_v0 }
 0x318   : > { %12937 = vmatpush3.msra.mxu1 %v15377_v28  ;;  %12970 = vmatpush3.msra.mxu0 %v6198_v37  ;;  %v552_v37 = vadd.s32 40, %v547_v52 }
 0x319   : > { %12938 = vmatprep.subr.mxu1 %v14038_v0  ;;  %12971 = vmatprep.subr.mxu0 %v14038_v0 }
 0x31a   : > { %12939 = vmatpush3.msra.mxu1 %v15385_v9  ;;  %12972 = vmatpush3.msra.mxu0 %v6197_v41  ;;  %v6085_v41 = vld [vmem:[#allocation10] sm:$0x1] }
 0x31b   : > { %12940 = vmatprep.subr.mxu1 %v14038_v0  ;;  %12973 = vmatprep.subr.mxu0 %v14038_v0 }
 0x31c   : > { %12941 = vmatpush3.msra.mxu1 %v15393_v26  ;;  %12974 = vmatpush3.msra.mxu0 %v6196_v44  ;;  %v553_v44 = vadd.s32 48, %v547_v52 }
 0x31d   : > { %12943 = vmatmul.mubr.msk.f32.vlgmr.msra.gmra.mxu1 %vm15400_vm4, %v14040_v5  ;;  %12975 = vmatprep.subr.mxu0 %v14038_v0 }
 0x31e   : > { %12976 = vmatpush3.msra.mxu0 %v6195_v42  ;;  %12980 = vmatprep.subr.mxu1 %v14038_v0  ;;  %v554_v42 = vadd.s32 56, %v547_v52 }
 0x31f   : > { %12978 = vmatmul.mubr.msk.f32.vlgmr.msra.gmra.mxu0 %vm15400_vm4, %v14040_v5  ;;  %12981 = vmatpush3.msra.mxu1 %v6284_v47 }
 0x320   : > { %12982 = vmatprep.subr.mxu1 %v14038_v0  ;;  %12988 = vmatprep.mubr.msk.f32.mxu1 %vm16657_vm1, %v14038_v0 }
 0x321   : > { %12983 = vmatpush3.msra.mxu1 %v6283_v49  ;;  %13032 = vmatprep.subr.bf16.mxu0 %v13691_v11 }
 0x322   : > { %12984 = vmatprep.subr.mxu1 %v14038_v0  ;;  %13033 = vmatpush3.bf16.msra.mxu0 %v13691_v11  ;;  %v609_v11 = vand.u32 15, %v553_v44 }
 0x323   : > { %12985 = vmatpush3.msra.mxu1 %v6282_v31  ;;  %13034 = vmatprep.subr.bf16.mxu0 %v13693_v62 }
 0x324   : > { %12986 = vmatprep.subr.mxu1 %v14038_v0  ;;  %13036 = vmatprep.mubr.msk.bf16.mxu0 %vm16659_vm0, %v6903_v61  ;;  %vm15494_vm11 = vcmp.ge.s32.totalorder %v609_v11, 2 }
 0x325   : > { %12987 = vmatpush3.msra.mxu1 %v6281_v50 }
 0x326   : > { %12991 = vmatprep.subr.mxu1 %v14038_v0  ;;  %13035 = vmatpush3.bf16.msra.mxu0 %v13693_v62 }
 0x327   : > { %13072 = vmatprep.subr.bf16.mxu0 %v15458_v43 }
 0x3dd   : > { %v6191_v51 = vpop.f32.mrf.mxu1 }
 0x3de   : > { %12989 = vmatmul.mubr.msk.f32.vlgmr.msra.gmra.mxu1 %vm16659_vm0, %v6191_v51  ;;  %v557_v51 = vadd.s32 80, %v547_v52 }
 0x3df   : > { %12992 = vmatpush3.msra.mxu1 %v6284_v47  ;;  %v12944_v45 = vpop.f32.mrf.mxu1  ;;  %v6277_v57 = vpop.f32.mrf.mxu0  ;;  %12999 = vmatprep.mubr.msk.f32.mxu1 %vm16657_vm1, %v14038_v0  ;;  %v555_v47 = vadd.s32 64, %v547_v52 }
 0x3e0   : > { %12993 = vmatprep.subr.mxu1 %v14038_v0  ;;  %v558_v45 = vadd.s32 88, %v547_v52  ;;  %v637_v22 = vand.u32 15, %v557_v51 }
 0x3e1   : > { %12994 = vmatpush3.msra.mxu1 %v6283_v49  ;;  %v12979_v12 = vpop.f32.mrf.mxu0  ;;  %v15462_v49 = vsub.s32 0, %v547_v52  ;;  %v623_v62 = vand.u32 15, %v555_v47 }
 0x3e2   : > { %12995 = vmatprep.subr.mxu1 %v14038_v0  ;;  %v560_v12 = vadd.s32 104, %v547_v52  ;;  %vm15514_vm15 = vcmp.ge.s32.totalorder %v637_v22, 2 }
 0x3e3   : > { %12996 = vmatpush3.msra.mxu1 %v6282_v31  ;;  %vm15510_vm14 = vcmp.ge.s32.totalorder %v623_v62, 2 }
 0x3e4   : > { %12997 = vmatprep.subr.mxu1 %v14038_v0  ;;  %v658_v61 = vand.u32 15, %v560_v12 }
 0x3e5   : > { %12998 = vmatpush3.msra.mxu1 %v6281_v50  ;;  %v556_v50 = vadd.s32 72, %v547_v52 }
 0x3e6   : > { %13000 = vmatmul.mubr.msk.f32.vlgmr.msra.gmra.mxu1 %vm16659_vm0, %v6277_v57  ;;  %13002 = vmatprep.subr.mxu1 %v14038_v0  ;;  %v559_v57 = vadd.s32 96, %v547_v52 }
 0x3e7   : > { %13004 = vmatprep.mubr.msk.f32.mxu1 %vm16657_vm1, %v14038_v0  ;;  %13003 = vmatpush3.msra.mxu1 %v6436_v8  ;;  %v630_v23 = vand.u32 15, %v556_v50 }
 0x3e8   : > { %13007 = vmatprep.subr.mxu1 %v14038_v0  ;;  %v651_v35 = vand.u32 15, %v559_v57  ;;  %v16721_v57 = vmov 0 }
 0x3e9   : > { %vm15518_vm2 = vcmp.lt.s32.totalorder %v630_v23, 10 }
 0x49e   : > { %v6354_v27 = vpop.f32.mrf.mxu1 }
 0x49f   : > { %v6358_v63 = vmul.f32 0.00390625, %v6354_v27  ;;  %v562_v27 = vadd.s32 120, %v547_v52 }
 0x4a0   : > { %v12990_v58 = vpop.f32.mrf.mxu1 }
 0x4a1   : > { %13005 = vmatmul.mubr.msk.f32.vlgmr.msra.gmra.mxu1 %vm16656_vm5, %v6358_v63  ;;  %v6433_v55 = vmul.f32 %v6358_v63, %v6358_v63  ;;  %v567_v63 = vand.u32 15, %v547_v52  ;;  %v574_v58 = vand.u32 15, %v548_v20 }
 0x4a2   : > { %13008 = vmatpush3.msra.mxu1 %v6436_v8  ;;  %13009 = vmatprep.mubr.msk.f32.mxu1 %vm16657_vm1, %v14038_v0  ;;  %v561_v8 = vadd.s32 112, %v547_v52 }
 0x4a3   : > { %13012 = vmatprep.subr.bf16.mxu1 %v13690_v10  ;;  %vm15470_vm6 = vcmp.ge.s32.totalorder %v567_v63, 2  ;;  %vm15478_vm8 = vcmp.lt.s32.totalorder %v574_v58, 10 }
 0x4a6   : > { %v6428_v7 = vpop.f32.mrf.mxu1 }
 0x4a7   : > { %v6432_v2 = vmul.f32 0.00390625, %v6428_v7  ;;  %v581_v7 = vand.u32 15, %v549_v16  ;;  %v16697_v16 = vmov 0 }
 0x4a8   : > { %v13001_v3 = vpop.f32.mrf.mxu1  ;;  %v16698_v16 = vsel %vm15470_vm6, 4294967295, %v16697_v16 }
 0x4a9   : > { %v6434_v1 = vsub.f32 %v6432_v2, %v6433_v55  ;;  %v588_v55 = vand.u32 15, %v550_v30  ;;  %v6086_v2 = vld [vmem:[#allocation11] sm:$0x1]  ;;  %v595_v3 = vand.u32 15, %v551_v36  ;;  %vm15474_vm7 = vcmp.ge.s32.totalorder %v581_v7, 2 }
 0x4aa   : > { %v16699_v30 = vmov 0  ;;  %v16701_v36 = vmov 0 }
 0x4ab   : > { %v6435_v21 = vmax.f32 %v6434_v1, 0.0  ;;  %v602_v1 = vand.u32 15, %v552_v37  ;;  %v16700_v30 = vsel %vm15474_vm7, 4294967295, %v16699_v30  ;;  %v16702_v36 = vsel %vm15478_vm8, 4294967295, %v16701_v36 }
 0x4ac   : > { %vm15482_vm9 = vcmp.lt.s32.totalorder %v588_v55, 10  ;;  %vm15490_vm10 = vcmp.ge.s32.totalorder %v595_v3, 2 }
 0x4ad   : > { %13010 = vmatmul.mubr.msk.f32.vlgmr.msra.gmra.mxu1 %vm16656_vm5, %v6435_v21  ;;  %vm15498_vm12 = vcmp.lt.s32.totalorder %v602_v1, 10  ;;  %vm15530_vm5 = vcmp.ge.s32.totalorder %v651_v35, 2 }
 0x4ae   : > { %13013 = vmatpush3.bf16.msra.mxu1 %v13690_v10  ;;  %13016 = vmatprep.mubr.msk.bf16.mxu1 %vm16659_vm0, %v6726_v24  ;;  %v644_v24 = vand.u32 15, %v558_v45  ;;  %v16722_v57 = vsel %vm15530_vm5, 4294967295, %v16721_v57  ;;  %vm15538_vm0 = vcmp.lt.s32.totalorder %v658_v61, 10 }
 0x4af   : > { %13014 = vmatprep.subr.bf16.mxu1 %v13692_v6 }
 0x4b0   : > { %vm15522_vm3 = vcmp.lt.s32.totalorder %v644_v24, 10 }
 0x4b2   : > { %13015 = vmatpush3.bf16.msra.mxu1 %v13692_v6  ;;  %v616_v6 = vand.u32 15, %v554_v42 }
 0x4b3   : > { %13052 = vmatprep.subr.bf16.mxu1 %v15455_v13 }
 0x4b4   : > { %vm15502_vm13 = vcmp.lt.s32.totalorder %v616_v6, 10 }
 0x561   : > { %v6507_v48 = vpop.f32.mrf.mxu1 }
 0x563   : > { %v13006_v38 = vpop.f32.mrf.mxu1 }
 0x564   : > { %v665_v38 = vand.u32 15, %v561_v8  ;;  %v16725_v8 = vmov 0 }
 0x565   : > { %v16726_v8 = vsel %vm15538_vm0, 4294967295, %v16725_v8 }
 0x566   : > { %vm15534_vm1 = vcmp.ge.s32.totalorder %v665_v38, 2 }
 0x56d   : > { %v6580_v25 = vpop.f32.mrf.mxu1 }
 0x56e   : > { %v6581_v15 = vadd.f32 1e-05, %v6580_v25  ;;  %v672_v25 = vand.u32 15, %v562_v27 }
 0x56f   : > { %v13011_v60 = vpop.f32.mrf.mxu1 }
 0x570   : > { %13726 = vrsqrt.f32 %v6581_v15  ;;  %vm15542_vm4 = vcmp.lt.s32.totalorder %v672_v25, 10 }
 0x57d   : > { %v13727_v31 = vpop.eup %13726 }
 0x57e   : > { %v6585_v34 = vmul.f32 %v13727_v31, %v6085_v41  ;;  %v16715_v31 = vmov 0 }
 0x57f   : > { %v16716_v31 = vsel %vm15514_vm15, 4294967295, %v16715_v31 }
 0x580   : > { %v6586_v21 = vmul.f32 %v6585_v34, %v6507_v48  ;;  %v6591_v10 = vrot.slane %v6585_v34, %v15462_v49 }
 0x582   : > { %v6587_v33 = vsub.f32 %v6086_v2, %v6586_v21  ;;  %v6592_v15 = vmul.f32 %v6591_v10, %v15393_v26  ;;  %v6593_v60 = vmul.f32 %v6591_v10, %v15385_v9  ;;  %v6594_v52 = vmul.f32 %v6591_v10, %v15377_v28 }
 0x583   : > { %v6595_v48 = vmul.f32 %v6591_v10, %v15369_v17  ;;  %v6596_v20 = vmul.f32 %v6591_v10, %v15361_v40  ;;  %v6597_v17 = vmul.f32 %v6591_v10, %v15352_v56  ;;  %v6598_v40 = vmul.f32 %v6591_v10, %v15344_v54 }
 0x584   : > { %v6599_v28 = vmul.f32 %v6591_v10, %v15336_v39  ;;  %v6600_v26 = vmul.f32 %v6591_v10, %v15328_v32  ;;  %v16711_v56 = vmov 0  ;;  %v6601_v39 = vmul.f32 %v6591_v10, %v15320_v19 }
 0x585   : > { %v16712_v56 = vsel %vm15502_vm13, 4294967295, %v16711_v56  ;;  %v6602_v32 = vmul.f32 %v6591_v10, %v15312_v18  ;;  %v6603_v54 = vmul.f32 %v6591_v10, %v15304_v53  ;;  %v6612_v42 = vrot.slane %v6587_v33, %v15462_v49 }
 0x586   : > { %v16719_v19 = vmov 0  ;;  %v6604_v53 = vmul.f32 %v6591_v10, %v15296_v4  ;;  %v6605_v18 = vmul.f32 %v6591_v10, %v15289_v14  ;;  %v6606_v51 = vmul.f32 %v6591_v10, %v15283_v46 }
 0x587   : > { %v16720_v19 = vsel %vm15522_vm3, 4294967295, %v16719_v19  ;;  %v6607_v45 = vmul.f32 %v6591_v10, %v15280_v59  ;;  %v16727_v4 = vmov 0  ;;  %v6614_v14 = vadd.f32 %v6612_v42, %v6592_v15 }
 0x588   : > { %v16728_v4 = vsel %vm15542_vm4, 4294967295, %v16727_v4  ;;  %v6615_v46 = vadd.f32 %v6612_v42, %v6593_v60  ;;  %v6616_v27 = vadd.f32 %v6612_v42, %v6594_v52  ;;  %v6617_v59 = vadd.f32 %v6612_v42, %v6595_v48 }
 0x589   : > { %v6618_v34 = vadd.f32 %v6612_v42, %v6596_v20  ;;  %v6619_v63 = vadd.f32 %v6612_v42, %v6597_v17  ;;  %v6620_v58 = vadd.f32 %v6612_v42, %v6598_v40  ;;  %v6621_v7 = vadd.f32 %v6612_v42, %v6599_v28 }
 0x58a   : > { %v6622_v55 = vadd.f32 %v6612_v42, %v6600_v26  ;;  %v6623_v2 = vadd.f32 %v6612_v42, %v6601_v39  ;;  %v6624_v3 = vadd.f32 %v6612_v42, %v6602_v32  ;;  %v6625_v1 = vadd.f32 %v6612_v42, %v6603_v54 }
 0x58b   : > { %v6626_v21 = vadd.f32 %v6612_v42, %v6604_v53  ;;  %v6627_v10 = vadd.f32 %v6612_v42, %v6605_v18  ;;  %v6628_v11 = vadd.f32 %v6612_v42, %v6606_v51  ;;  %v6629_v6 = vadd.f32 %v6612_v42, %v6607_v45 }
 0x58c   : > { %v6630_v62 = vmax.f32 %v6614_v14, 0.0  ;;  %v6631_v23 = vmax.f32 %v6615_v46, 0.0  ;;  %v6632_v22 = vmax.f32 %v6616_v27, 0.0  ;;  %v6633_v24 = vmax.f32 %v6617_v59, 0.0 }
 0x58d   : > { %v6634_v35 = vmax.f32 %v6618_v34, 0.0  ;;  %v6635_v33 = vmax.f32 %v6619_v63, 0.0  ;;  %v6636_v61 = vmax.f32 %v6620_v58, 0.0  ;;  %v6637_v38 = vmax.f32 %v6621_v7, 0.0 }
 0x58e   : > { %v6638_v25 = vmax.f32 %v6622_v55, 0.0  ;;  %v6639_v15 = vmax.f32 %v6623_v2, 0.0  ;;  %v6640_v60 = vmax.f32 %v6624_v3, 0.0  ;;  %v6641_v52 = vmax.f32 %v6625_v1, 0.0 }
 0x58f   : > { %v6642_v48 = vmax.f32 %v6626_v21, 0.0  ;;  %v6643_v20 = vmax.f32 %v6627_v10, 0.0  ;;  %v6644_v17 = vmax.f32 %v6628_v11, 0.0  ;;  %v6645_v40 = vmax.f32 %v6629_v6, 0.0 }
 0x590   : > { %v6678_v28 = vsel %vm15470_vm6, %v6630_v62, 0.0  ;;  %v6679_v26 = vsel %vm15478_vm8, %v6631_v23, 0.0  ;;  %v6680_v39 = vsel %vm15474_vm7, %v6632_v22, 0.0  ;;  %v6681_v32 = vsel %vm15482_vm9, %v6633_v24, 0.0  ;;  %v13695_v23 = vld [vmem:[#allocation13 + $0x20] sm:$0xff]   ;;  %v13697_v24 = vld [vmem:[#allocation13 + $0x30] sm:$0xff]  }
 0x591   : > { %v6682_v54 = vsel %vm15490_vm10, %v6634_v35, 0.0  ;;  %v6683_v42 = vsel %vm15498_vm12, %v6635_v33, 0.0  ;;  %v6684_v53 = vsel %vm15494_vm11, %v6636_v61, 0.0  ;;  %v6685_v18 = vsel %vm15502_vm13, %v6637_v38, 0.0  ;;  %v15611_v35 = vld [vmem:[#allocation13 + $0x48] sm:$0xff]   ;;  %v15613_v33 = vld [vmem:[#allocation13 + $0x58] sm:$0xff]  }
 0x592   : > { %vm16729_vm6 = vcmask 261120   ;;  %v6686_v51 = vsel %vm15510_vm14, %v6638_v25, 0.0  ;;  %v6687_v45 = vsel %vm15518_vm2, %v6639_v15, 0.0  ;;  %v6688_v14 = vsel %vm15514_vm15, %v6640_v60, 0.0 }
 0x593   : > { %6694 = vst.msk [vmem:[#allocation2 + $0x30] sm:$0xff] %vm16729_vm6, %v6678_v28  ;;  %vm16730_vm8 = vmmov %vm16729_vm6  ;;  %v6689_v46 = vsel %vm15522_vm3, %v6641_v52, 0.0  ;;  %v6690_v27 = vsel %vm15530_vm5, %v6642_v48, 0.0  ;;  %v6691_v59 = vsel %vm15538_vm0, %v6643_v20, 0.0  ;;  %v6692_v34 = vsel %vm15534_vm1, %v6644_v17, 0.0 }
 0x594   : > { %6695 = vst.msk [vmem:[#allocation2 + $0x38] sm:$0xff] %vm16730_vm8, %v6679_v26  ;;  %vm16731_vm7 = vmmov %vm16729_vm6 }
 0x595   : > { %6696 = vst.msk [vmem:[#allocation2 + $0x40] sm:$0xff] %vm16731_vm7, %v6680_v39  ;;  %vm16732_vm4 = vmmov %vm16729_vm6 }
 0x596   : > { %6697 = vst.msk [vmem:[#allocation2 + $0x48] sm:$0xff] %vm16732_vm4, %v6681_v32  ;;  %vm16733_vm13 = vmmov %vm16732_vm4 }
 0x597   : > { %6698 = vst.msk [vmem:[#allocation2 + $0x50] sm:$0xff] %vm16733_vm13, %v6682_v54  ;;  %vm16734_vm6 = vmmov %vm16732_vm4 }
 0x598   : > { %6699 = vst.msk [vmem:[#allocation2 + $0x58] sm:$0xff] %vm16734_vm6, %v6683_v42  ;;  %vm16735_vm8 = vmmov %vm16732_vm4 }
 0x599   : > { %6700 = vst.msk [vmem:[#allocation2 + $0x60] sm:$0xff] %vm16735_vm8, %v6684_v53  ;;  %vm16736_vm7 = vmmov %vm16732_vm4  ;;  %vm16737_vm4 = vnez %v16728_v4 }
 0x59a   : > { %6701 = vst.msk [vmem:[#allocation2 + $0x68] sm:$0xff] %vm16736_vm7, %v6685_v18  ;;  %v6693_v63 = vsel %vm16737_vm4, %v6645_v40, 0.0  ;;  %vm16738_vm3 = vmmov %vm16734_vm6  ;;  %v6712_v58 = vld [vmem:[#allocation2 + $0x2f] sm:$0xff] }
 0x59b   : > { %6702 = vst.msk [vmem:[#allocation2 + $0x70] sm:$0xff] %vm16738_vm3, %v6686_v51  ;;  %vm16739_vm13 = vmmov %vm16738_vm3  ;;  %v6713_v7 = vld [vmem:[#allocation2 + $0x37] sm:$0xff] }
 0x59c   : > { %6703 = vst.msk [vmem:[#allocation2 + $0x78] sm:$0xff] %vm16739_vm13, %v6687_v45  ;;  %vm16740_vm6 = vmmov %vm16738_vm3  ;;  %v6889_v55 = vld [vmem:[#allocation2 + $0x30] sm:$0xff]  ;;  %v15594_v2 = vpack.c.bf16 %v6713_v7, %v6712_v58  ;;  %v6890_v3 = vld [vmem:[#allocation2 + $0x38] sm:$0xff] }
 0x59d   : > { %6704 = vst.msk [vmem:[#allocation2 + $0x80] sm:$0xff] %vm16740_vm6, %v6688_v14  ;;  %vm16741_vm8 = vmmov %vm16738_vm3  ;;  %v6714_v1 = vld [vmem:[#allocation2 + $0x3f] sm:$0xff]  ;;  %v6715_v21 = vld [vmem:[#allocation2 + $0x47] sm:$0xff]  ;;  %v15596_v10 = vpack.c.bf16 %v6890_v3, %v6889_v55 }
 0x59e   : > { %6705 = vst.msk [vmem:[#allocation2 + $0x88] sm:$0xff] %vm16741_vm8, %v6689_v46  ;;  %vm16742_vm7 = vmmov %vm16738_vm3  ;;  %v15598_v11 = vpack.c.bf16 %v6715_v21, %v6714_v1  ;;  %v6891_v6 = vld [vmem:[#allocation2 + $0x40] sm:$0xff]  ;;  %v6892_v62 = vld [vmem:[#allocation2 + $0x48] sm:$0xff] }
 0x59f   : > { %6706 = vst.msk [vmem:[#allocation2 + $0x90] sm:$0xff] %vm16742_vm7, %v6690_v27  ;;  %vm16743_vm5 = vmmov %vm16738_vm3  ;;  %v15602_v22 = vpack.c.bf16 %v6892_v62, %v6891_v6  ;;  %v6716_v61 = vld [vmem:[#allocation2 + $0x4f] sm:$0xff]  ;;  %v6717_v38 = vld [vmem:[#allocation2 + $0x57] sm:$0xff] }
 0x5a0   : > { %6707 = vst.msk [vmem:[#allocation2 + $0x98] sm:$0xff] %vm16743_vm5, %v6691_v59  ;;  %vm16744_vm15 = vmmov %vm16738_vm3  ;;  %v6893_v25 = vld [vmem:[#allocation2 + $0x50] sm:$0xff]  ;;  %v6894_v15 = vld [vmem:[#allocation2 + $0x58] sm:$0xff]  ;;  %v15616_v17 = vpack.c.bf16 %v6717_v38, %v6716_v61 }
 0x5a1   : > { %6708 = vst.msk [vmem:[#allocation2 + $0xa0] sm:$0xff] %vm16744_vm15, %v6692_v34  ;;  %vm16745_vm0 = vmmov %vm16738_vm3  ;;  %v6718_v60 = vld [vmem:[#allocation2 + $0x5f] sm:$0xff]  ;;  %v6719_v52 = vld [vmem:[#allocation2 + $0x67] sm:$0xff] }
 0x5a2   : > { %6709 = vst.msk [vmem:[#allocation2 + $0xa8] sm:$0xff] %vm16745_vm0, %v6693_v63  ;;  %vm16746_vm5 = vmmov %vm16745_vm0  ;;  %13037 = vmatmul.mubr.msk.bf16.vlgmr.msra.gmra.mxu0 %vm16745_vm0, %v15596_v10  ;;  %v6895_v48 = vld [vmem:[#allocation2 + $0x60] sm:$0xff]  ;;  %v6896_v20 = vld [vmem:[#allocation2 + $0x68] sm:$0xff]  ;;  %v15620_v40 = vpack.c.bf16 %v6719_v52, %v6718_v60 }
 0x5a3   : > { %13017 = vmatmul.mubr.msk.bf16.vlgmr.msra.gmra.mxu1 %vm16746_vm5, %v15594_v2  ;;  %vm16747_vm15 = vmmov %vm16745_vm0  ;;  %13073 = vmatpush3.bf16.msra.mxu0 %v15458_v43  ;;  %v15625_v43 = vpack.c.bf16 %v6896_v20, %v6895_v48  ;;  %v6720_v28 = vld [vmem:[#allocation2 + $0x6f] sm:$0xff]  ;;  %v6721_v26 = vld [vmem:[#allocation2 + $0x77] sm:$0xff] }
 0x5a4   : > { %13020 = vmatprep.mubr.msk.bf16.mxu1 %vm16747_vm15, %v15598_v11  ;;  %vm16748_vm3 = vmmov %vm16745_vm0  ;;  %13053 = vmatpush3.bf16.msra.mxu1 %v15455_v13  ;;  %v15618_v13 = vpack.c.bf16 %v6894_v15, %v6893_v25  ;;  %v6897_v39 = vld [vmem:[#allocation2 + $0x70] sm:$0xff]  ;;  %v6898_v32 = vld [vmem:[#allocation2 + $0x78] sm:$0xff]  ;;  %v15634_v51 = vpack.c.bf16 %v6721_v26, %v6720_v28 }
 0x5a5   : > { %13040 = vmatprep.mubr.msk.bf16.mxu0 %vm16748_vm3, %v15602_v22  ;;  %13054 = vmatprep.subr.bf16.mxu1 %v13695_v23  ;;  %vm16749_vm13 = vmmov %vm16745_vm0  ;;  %v6722_v54 = vld [vmem:[#allocation2 + $0x7f] sm:$0xff]  ;;  %v6723_v42 = vld [vmem:[#allocation2 + $0x87] sm:$0xff]  ;;  %v15636_v45 = vpack.c.bf16 %v6898_v32, %v6897_v39 }
 0x5a6   : > { %13074 = vmatprep.subr.bf16.mxu0 %v13697_v24  ;;  %vm16750_vm6 = vmmov %vm16745_vm0  ;;  %v6899_v53 = vld [vmem:[#allocation2 + $0x80] sm:$0xff]  ;;  %v6900_v18 = vld [vmem:[#allocation2 + $0x88] sm:$0xff]  ;;  %v15638_v14 = vpack.c.bf16 %v6723_v42, %v6722_v54 }
 0x5a7   : > { %13075 = vmatpush3.bf16.msra.mxu0 %v13697_v24  ;;  %vm16751_vm8 = vmmov %vm16745_vm0  ;;  %v15642_v46 = vpack.c.bf16 %v6900_v18, %v6899_v53  ;;  %v6724_v27 = vld [vmem:[#allocation2 + $0x8f] sm:$0xff]  ;;  %v6725_v59 = vld [vmem:[#allocation2 + $0x97] sm:$0xff] }
 0x5a8   : > { %13055 = vmatpush3.bf16.msra.mxu1 %v13695_v23  ;;  %13112 = vmatprep.subr.bf16.mxu0 %v15613_v33  ;;  %vm16752_vm7 = vmmov %vm16745_vm0  ;;  %v7097_v34 = vld [vmem:[#allocation2 + $0x21] sm:$0xff]  ;;  %v6901_v63 = vld [vmem:[#allocation2 + $0x90] sm:$0xff]  ;;  %v15650_v55 = vpack.c.bf16 %v6725_v59, %v6724_v27 }
 0x5a9   : > { %13092 = vmatprep.subr.bf16.mxu1 %v15611_v35  ;;  %vm16753_vm5 = vmmov %vm16745_vm0  ;;  %v6902_v58 = vld [vmem:[#allocation2 + $0x98] sm:$0xff]  ;;  %v7098_v7 = vld [vmem:[#allocation2 + $0x29] sm:$0xff] }
 0x5aa   : > { %13041 = vmatmul.mubr.msk.bf16.gmra.mxu0 %vm16750_vm6, %v15618_v13  ;;  %vm16754_vm15 = vmmov %vm16745_vm0  ;;  %v15652_v3 = vpack.c.bf16 %v6902_v58, %v6901_v63  ;;  %v7113_v1 = vpack.c.bf16 %v7098_v7, %v7097_v34  ;;  %v7099_v21 = vld [vmem:[#allocation2 + $0x31] sm:$0xff]  ;;  %v7100_v6 = vld [vmem:[#allocation2 + $0x39] sm:$0xff] }
 0x5ab   : > { %13021 = vmatmul.mubr.msk.bf16.gmra.mxu1 %vm16749_vm13, %v15616_v17  ;;  %13044 = vmatprep.mubr.msk.bf16.mxu0 %vm16752_vm7, %v15625_v43  ;;  %vm16755_vm3 = vmmov %vm16745_vm0  ;;  %v7101_v62 = vld [vmem:[#allocation2 + $0x41] sm:$0xff]  ;;  %v7102_v23 = vld [vmem:[#allocation2 + $0x49] sm:$0xff]  ;;  %v7114_v24 = vpack.c.bf16 %v7100_v6, %v7099_v21 }
 0x5ac   : > { %13024 = vmatprep.mubr.msk.bf16.mxu1 %vm16751_vm8, %v15620_v40  ;;  %vm16756_vm13 = vmmov %vm16745_vm0  ;;  %v15661_v61 = vpack.c.bf16 %v7102_v23, %v7101_v62  ;;  %v13699_v38 = vld [vmem:[#allocation13 + $0x40] sm:$0xff]   ;;  %v13701_v25 = vld [vmem:[#allocation13 + $0x50] sm:$0xff]  }
 0x5ad   : > { %vm16757_vm6 = vmmov %vm16745_vm0  ;;  %v7104_v15 = vld [vmem:[#allocation2 + $0x59] sm:$0xff]  ;;  %v7105_v52 = vld [vmem:[#allocation2 + $0x61] sm:$0xff] }
 0x5ae   : > { %vm16758_vm8 = vmmov %vm16745_vm0  ;;  %v13702_v60 = vld [vmem:[#allocation13 + $0x68] sm:$0xff]   ;;  %v7106_v48 = vld [vmem:[#allocation2 + $0x69] sm:$0xff] }
 0x5af   : > { %vm16759_vm7 = vmmov %vm16745_vm0  ;;  %v13704_v20 = vld [vmem:[#allocation13 + $0x78] sm:$0xff]   ;;  %v15674_v26 = vpack.c.bf16 %v7106_v48, %v7105_v52  ;;  %v7109_v39 = vld [vmem:[#allocation2 + $0x81] sm:$0xff] }
 0x5b0   : > { %v7110_v32 = vld [vmem:[#allocation2 + $0x89] sm:$0xff]  ;;  %v7111_v53 = vld [vmem:[#allocation2 + $0x91] sm:$0xff]  ;;  %v7112_v18 = vld [vmem:[#allocation2 + $0x99] sm:$0xff] }
 0x5b1   : > { %v15686_v42 = vpack.c.bf16 %v7110_v32, %v7109_v39  ;;  %v7321_v27 = vld [vmem:[#allocation2 + $0x9f] sm:$0xff]  ;;  %v7322_v59 = vld [vmem:[#allocation2 + $0xa7] sm:$0xff]  ;;  %v15696_v34 = vpack.c.bf16 %v7112_v18, %v7111_v53  ;;  %v13703_v58 = vld [vmem:[#allocation13 + $0x60] sm:$0xff]  }
 0x5b2   : > { %13045 = vmatmul.mubr.msk.bf16.gmra.mxu0 %vm16745_vm0, %v15636_v45  ;;  %v7330_v63 = vpack.c.bf16 %v7322_v59, %v7321_v27  ;;  %v13705_v7 = vld [vmem:[#allocation13 + $0x70] sm:$0xff]  }
 0x5b3   : > { %13025 = vmatmul.mubr.msk.bf16.gmra.mxu1 %vm16753_vm5, %v15634_v51  ;;  %13048 = vmatprep.mubr.msk.bf16.mxu0 %vm16755_vm3, %v15642_v46  ;;  %vm16760_vm5 = vmmov %vm16745_vm0  ;;  %v7532_v21 = vld [vmem:[#allocation2 + $0xa8] sm:$0xff] }
 0x5b4   : > { %13028 = vmatprep.mubr.msk.bf16.mxu1 %vm16754_vm15, %v15638_v14  ;;  %vm16761_vm15 = vmmov %vm16745_vm0  ;;  %v7741_v6 = vld [vmem:[#allocation2 + $0xa1] sm:$0xff]  ;;  %v7742_v62 = vld [vmem:[#allocation2 + $0xa9] sm:$0xff] }
 0x5b5   : > { %vm16762_vm3 = vmmov %vm16745_vm0 }
 0x5ba   : > { %13049 = vmatmul.mubr.msk.bf16.gmra.mxu0 %vm16757_vm6, %v15652_v3  ;;  %vm16764_vm6 = vmmov %vm16745_vm0 }
 0x5bb   : > { %13029 = vmatmul.mubr.msk.bf16.gmra.mxu1 %vm16756_vm13, %v15650_v55  ;;  %13076 = vmatprep.mubr.msk.bf16.mxu0 %vm16759_vm7, %v15594_v2  ;;  %v7103_v2 = vld [vmem:[#allocation2 + $0x51] sm:$0xff]  ;;  %vm16763_vm13 = vmmov %vm16745_vm0 }
 0x5bc   : > { %13056 = vmatprep.mubr.msk.bf16.mxu1 %vm16758_vm8, %v7113_v1  ;;  %v15672_v28 = vpack.c.bf16 %v7104_v15, %v7103_v2  ;;  %vm16765_vm8 = vmmov %vm16745_vm0  ;;  %v7531_v1 = vld [vmem:[#allocation2 + $0xa0] sm:$0xff] }
 0x5bd   : > { %vm16766_vm7 = vmmov %vm16745_vm0  ;;  %v7540_v23 = vpack.c.bf16 %v7532_v21, %v7531_v1 }
 0x5c2   : > { %13077 = vmatmul.mubr.msk.bf16.vlgmr.msra.gmra.mxu0 %vm16745_vm0, %v15598_v11 }
 0x5c3   : > { %13057 = vmatmul.mubr.msk.bf16.vlgmr.msra.gmra.mxu1 %vm16760_vm5, %v7114_v24  ;;  %13080 = vmatprep.mubr.msk.bf16.mxu0 %vm16762_vm3, %v15616_v17  ;;  %vm16767_vm5 = vmmov %vm16745_vm0 }
 0x5c4   : > { %13060 = vmatprep.mubr.msk.bf16.mxu1 %vm16761_vm15, %v15661_v61  ;;  %13093 = vmatpush3.bf16.msra.mxu1 %v15611_v35  ;;  %v7107_v35 = vld [vmem:[#allocation2 + $0x71] sm:$0xff]  ;;  %vm16768_vm15 = vmmov %vm16745_vm0 }
 0x5c5   : > { %13094 = vmatprep.subr.bf16.mxu1 %v13699_v38  ;;  %13113 = vmatpush3.bf16.msra.mxu0 %v15613_v33  ;;  %v7108_v33 = vld [vmem:[#allocation2 + $0x79] sm:$0xff]  ;;  %vm16769_vm3 = vmmov %vm16745_vm0 }
 0x5c6   : > { %13114 = vmatprep.subr.bf16.mxu0 %v13701_v25  ;;  %v15684_v54 = vpack.c.bf16 %v7108_v33, %v7107_v35 }
 0x5c8   : > { %13095 = vmatpush3.bf16.msra.mxu1 %v13699_v38  ;;  %v13707_v38 = vld [vmem:[#allocation13 + $0x80] sm:$0xff]  }
 0x5c9   : > { %13115 = vmatpush3.bf16.msra.mxu0 %v13701_v25  ;;  %13132 = vmatprep.subr.bf16.mxu1 %v13702_v60 }
 0x5ca   : > { %13152 = vmatprep.subr.bf16.mxu0 %v13704_v20  ;;  %13081 = vmatmul.mubr.msk.bf16.gmra.mxu0 %vm16764_vm6, %v15620_v40  ;;  %vm16771_vm6 = vmmov %vm16745_vm0 }
 0x5cb   : > { %13061 = vmatmul.mubr.msk.bf16.gmra.mxu1 %vm16763_vm13, %v15672_v28  ;;  %13084 = vmatprep.mubr.msk.bf16.mxu0 %vm16766_vm7, %v15634_v51  ;;  %vm16770_vm13 = vmmov %vm16745_vm0 }
 0x5cc   : > { %13064 = vmatprep.mubr.msk.bf16.mxu1 %vm16765_vm8, %v15674_v26  ;;  %vm16772_vm8 = vmmov %vm16745_vm0 }
 0x5cd   : > { %vm16773_vm7 = vmmov %vm16745_vm0 }
 0x5d2   : > { %13085 = vmatmul.mubr.msk.bf16.gmra.mxu0 %vm16745_vm0, %v15638_v14 }
 0x5d3   : > { %13065 = vmatmul.mubr.msk.bf16.gmra.mxu1 %vm16767_vm5, %v15684_v54  ;;  %13088 = vmatprep.mubr.msk.bf16.mxu0 %vm16769_vm3, %v15650_v55  ;;  %vm16774_vm5 = vmmov %vm16745_vm0 }
 0x5d4   : > { %13068 = vmatprep.mubr.msk.bf16.mxu1 %vm16768_vm15, %v15686_v42  ;;  %vm16775_vm15 = vmmov %vm16745_vm0 }
 0x5d5   : > { %vm16776_vm3 = vmmov %vm16745_vm0 }
 0x5da   : > { %13089 = vmatmul.mubr.msk.bf16.gmra.mxu0 %vm16771_vm6, %v7330_v63  ;;  %vm16778_vm6 = vmmov %vm16745_vm0 }
 0x5db   : > { %13069 = vmatmul.mubr.msk.bf16.gmra.mxu1 %vm16770_vm13, %v15696_v34  ;;  %13116 = vmatprep.mubr.msk.bf16.mxu0 %vm16773_vm7, %v7114_v24  ;;  %vm16777_vm13 = vmmov %vm16745_vm0  ;;  %v7750_v24 = vpack.c.bf16 %v7742_v62, %v7741_v6 }
 0x5dc   : > { %13096 = vmatprep.mubr.msk.bf16.mxu1 %vm16772_vm8, %v15596_v10  ;;  %v13706_v10 = vld [vmem:[#allocation13 + $0x88] sm:$0xff]   ;;  %vm16779_vm8 = vmmov %vm16745_vm0 }
 0x5dd   : > { %vm16780_vm7 = vmmov %vm16745_vm0 }
 0x5e2   : > { %13117 = vmatmul.mubr.msk.bf16.vlgmr.msra.gmra.mxu0 %vm16745_vm0, %v15661_v61 }
 0x5e3   : > { %13097 = vmatmul.mubr.msk.bf16.vlgmr.msra.gmra.mxu1 %vm16774_vm5, %v15602_v22  ;;  %13120 = vmatprep.mubr.msk.bf16.mxu0 %vm16776_vm3, %v15672_v28  ;;  %vm16781_vm5 = vmmov %vm16745_vm0 }
 0x5e4   : > { %13100 = vmatprep.mubr.msk.bf16.mxu1 %vm16775_vm15, %v15618_v13  ;;  %13133 = vmatpush3.bf16.msra.mxu1 %v13702_v60  ;;  %vm16782_vm15 = vmmov %vm16745_vm0 }
 0x5e5   : > { %13134 = vmatprep.subr.bf16.mxu1 %v13703_v58  ;;  %13153 = vmatpush3.bf16.msra.mxu0 %v13704_v20  ;;  %vm16783_vm3 = vmmov %vm16745_vm0 }
 0x5e6   : > { %13154 = vmatprep.subr.bf16.mxu0 %v13705_v7 }
 0x5e8   : > { %13135 = vmatpush3.bf16.msra.mxu1 %v13703_v58 }
 0x5e9   : > { %13155 = vmatpush3.bf16.msra.mxu0 %v13705_v7  ;;  %13172 = vmatprep.subr.bf16.mxu1 %v13706_v10 }
 0x5ea   : > { %13192 = vmatprep.subr.mxu0 %v14038_v0  ;;  %13121 = vmatmul.mubr.msk.bf16.gmra.mxu0 %vm16778_vm6, %v15674_v26  ;;  %vm16785_vm6 = vmmov %vm16745_vm0 }
 0x5eb   : > { %13101 = vmatmul.mubr.msk.bf16.gmra.mxu1 %vm16777_vm13, %v15625_v43  ;;  %13124 = vmatprep.mubr.msk.bf16.mxu0 %vm16780_vm7, %v15684_v54  ;;  %vm16784_vm13 = vmmov %vm16745_vm0 }
 0x5ec   : > { %13104 = vmatprep.mubr.msk.bf16.mxu1 %vm16779_vm8, %v15636_v45  ;;  %vm16786_vm8 = vmmov %vm16745_vm0 }
 0x5ed   : > { %vm16787_vm7 = vmmov %vm16745_vm0 }
 0x5f2   : > { %13125 = vmatmul.mubr.msk.bf16.gmra.mxu0 %vm16745_vm0, %v15686_v42 }
 0x5f3   : > { %13105 = vmatmul.mubr.msk.bf16.gmra.mxu1 %vm16781_vm5, %v15642_v46  ;;  %13128 = vmatprep.mubr.msk.bf16.mxu0 %vm16783_vm3, %v15696_v34  ;;  %vm16788_vm5 = vmmov %vm16745_vm0 }
 0x5f4   : > { %13108 = vmatprep.mubr.msk.bf16.mxu1 %vm16782_vm15, %v15652_v3  ;;  %vm16789_vm15 = vmmov %vm16745_vm0 }
 0x5f5   : > { %vm16790_vm3 = vmmov %vm16745_vm0 }
 0x5fa   : > { %13129 = vmatmul.mubr.msk.bf16.gmra.mxu0 %vm16785_vm6, %v7750_v24  ;;  %vm16792_vm6 = vmmov %vm16745_vm0 }
 0x5fb   : > { %13109 = vmatmul.mubr.msk.bf16.gmra.mxu1 %vm16784_vm13, %v7540_v23  ;;  %13156 = vmatprep.mubr.msk.bf16.mxu0 %vm16787_vm7, %v15602_v22  ;;  %vm16791_vm13 = vmmov %vm16745_vm0  ;;  %v8162_v22 = vld [vmem:[#allocation2 + $0xb8] sm:$0xff] }
 0x5fc   : > { %13136 = vmatprep.mubr.msk.bf16.mxu1 %vm16786_vm8, %v15598_v11  ;;  %vm16793_vm8 = vmmov %vm16745_vm0  ;;  %v8161_v11 = vld [vmem:[#allocation2 + $0xb0] sm:$0xff] }
 0x5fd   : > { %vm16794_vm7 = vmmov %vm16745_vm0 }
 0x602   : > { %13157 = vmatmul.mubr.msk.bf16.vlgmr.msra.gmra.mxu0 %vm16745_vm0, %v15618_v13  ;;  %v7952_v13 = vld [vmem:[#allocation2 + $0xb7] sm:$0xff] }
 0x603   : > { %13137 = vmatmul.mubr.msk.bf16.vlgmr.msra.gmra.mxu1 %vm16788_vm5, %v15616_v17  ;;  %13160 = vmatprep.mubr.msk.bf16.mxu0 %vm16790_vm3, %v15625_v43  ;;  %vm16795_vm5 = vmmov %vm16745_vm0  ;;  %v7951_v17 = vld [vmem:[#allocation2 + $0xaf] sm:$0xff] }
 0x604   : > { %13140 = vmatprep.mubr.msk.bf16.mxu1 %vm16789_vm15, %v15620_v40  ;;  %13173 = vmatpush3.bf16.msra.mxu1 %v13706_v10  ;;  %vm16796_vm15 = vmmov %vm16745_vm0  ;;  %v8170_v40 = vpack.c.bf16 %v8162_v22, %v8161_v11  ;;  %v7960_v43 = vpack.c.bf16 %v7952_v13, %v7951_v17 }
 0x605   : > { %13174 = vmatprep.subr.bf16.mxu1 %v13707_v38  ;;  %vm16797_vm3 = vmmov %vm16745_vm0 }
 0x608   : > { %13175 = vmatpush3.bf16.msra.mxu1 %v13707_v38 }
 0x609   : > { %13227 = vmatprep.subr.mxu1 %v14038_v0 }
 0x60a   : > { %13161 = vmatmul.mubr.msk.bf16.gmra.mxu0 %vm16792_vm6, %v15636_v45  ;;  %vm16799_vm6 = vmmov %vm16745_vm0  ;;  %v8372_v45 = vld [vmem:[#allocation2 + $0xb9] sm:$0xff] }
 0x60b   : > { %13141 = vmatmul.mubr.msk.bf16.gmra.mxu1 %vm16791_vm13, %v15634_v51  ;;  %13164 = vmatprep.mubr.msk.bf16.mxu0 %vm16794_vm7, %v15642_v46  ;;  %vm16798_vm13 = vmmov %vm16745_vm0  ;;  %vm16801_vm7 = vmmov 0   ;;  %v8371_v51 = vld [vmem:[#allocation2 + $0xb1] sm:$0xff] }
 0x60c   : > { %13144 = vmatprep.mubr.msk.bf16.mxu1 %vm16793_vm8, %v15638_v14  ;;  %vm16800_vm8 = vmmov %vm16745_vm0  ;;  %v8380_v14 = vpack.c.bf16 %v8372_v45, %v8371_v51 }
 0x612   : > { %13165 = vmatmul.mubr.msk.bf16.gmra.mxu0 %vm16745_vm0, %v15652_v3 }
 0x613   : > { %13145 = vmatmul.mubr.msk.bf16.gmra.mxu1 %vm16795_vm5, %v15650_v55  ;;  %13168 = vmatprep.mubr.msk.bf16.mxu0 %vm16797_vm3, %v7540_v23  ;;  %vm16802_vm5 = vmmov %vm16745_vm0 }
 0x614   : > { %13148 = vmatprep.mubr.msk.bf16.mxu1 %vm16796_vm15, %v7330_v63  ;;  %vm16803_vm15 = vmmov %vm16745_vm0 }
 0x615   : > { %vm16804_vm3 = vmmov %vm16745_vm0 }
 0x61a   : > { %13169 = vmatmul.mubr.msk.bf16.gmra.mxu0 %vm16800_vm8, %v8170_v40  ;;  %vm16807_vm8 = vmmov %vm16745_vm0 }
 0x61b   : > { %13149 = vmatmul.mubr.msk.bf16.gmra.mxu1 %vm16798_vm13, %v7960_v43  ;;  %13224 = vmatprep.mubr.msk.f32.mxu0 %vm16801_vm7, %v14038_v0  ;;  %vm16805_vm13 = vmmov %vm16745_vm0 }
 0x61c   : > { %13176 = vmatprep.mubr.msk.bf16.mxu1 %vm16799_vm6, %v15661_v61  ;;  %vm16806_vm6 = vmmov %vm16745_vm0 }
 0x623   : > { %13177 = vmatmul.mubr.msk.bf16.vlgmr.msra.gmra.mxu1 %vm16802_vm5, %v15672_v28  ;;  %vm16808_vm5 = vmmov %vm16745_vm0 }
 0x624   : > { %13180 = vmatprep.mubr.msk.bf16.mxu1 %vm16745_vm0, %v15674_v26 }
 0x62b   : > { %13181 = vmatmul.mubr.msk.bf16.gmra.mxu1 %vm16803_vm15, %v15684_v54  ;;  %vm16809_vm15 = vmmov %vm16745_vm0 }
 0x62c   : > { %13184 = vmatprep.mubr.msk.bf16.mxu1 %vm16804_vm3, %v15686_v42  ;;  %vm16810_vm3 = vmmov %vm16745_vm0 }
 0x633   : > { %13185 = vmatmul.mubr.msk.bf16.gmra.mxu1 %vm16805_vm13, %v15696_v34  ;;  %vm16811_vm13 = vmmov %vm16745_vm0 }
 0x634   : > { %13188 = vmatprep.mubr.msk.bf16.mxu1 %vm16806_vm6, %v7750_v24  ;;  %vm16812_vm6 = vmmov %vm16745_vm0 }
 0x63b   : > { %13189 = vmatmul.mubr.msk.bf16.gmra.mxu1 %vm16807_vm8, %v8380_v14  ;;  %vm16813_vm8 = vmmov %vm16745_vm0 }
 0x63c   : > { %13259 = vmatprep.mubr.msk.f32.mxu1 %vm16801_vm7, %v14038_v0 }
 0x662   : > { %v13038_v55 = vpop.f32.mrf.mxu0 }
 0x663   : > { %v13018_v46 = vpop.f32.mrf.mxu1 }
 0x664   : > { %6873 = vst.msk [vmem:[#allocation3 + $0x10] sm:$0xff] %vm16808_vm5, %v13018_v46  ;;  %v6986_v61 = vpop.f32.mrf.mxu0  ;;  %vm16814_vm5 = vmmov %vm16745_vm0 }
 0x665   : > { %v6808_v3 = vpop.f32.mrf.mxu1 }
 0x666   : > { %6871 = vst.msk [vmem:[#allocation3] sm:$0xff] %vm16745_vm0, %v6808_v3  ;;  %v13039_v2 = vpop.f32.mrf.mxu0 }
 0x667   : > { %v13019_v25 = vpop.f32.mrf.mxu1 }
 0x668   : > { %6874 = vst.msk [vmem:[#allocation3 + $0x18] sm:$0xff] %vm16809_vm15, %v13019_v25  ;;  %v6989_v60 = vpop.f32.mrf.mxu0  ;;  %vm16815_vm15 = vmmov %vm16745_vm0 }
 0x669   : > { %v6811_v15 = vpop.f32.mrf.mxu1 }
 0x66a   : > { %6872 = vst.msk [vmem:[#allocation3 + $0x8] sm:$0xff] %vm16810_vm3, %v6811_v15  ;;  %v13042_v28 = vpop.f32.mrf.mxu0  ;;  %vm16816_vm3 = vmmov %vm16745_vm0 }
 0x66b   : > { %v7051_v52 = vld [vmem:[#allocation3 + $0x10] sm:$0xff]  ;;  %v13022_v48 = vpop.f32.mrf.mxu1 }
 0x66c   : > { %v7067_v20 = vadd.f32 %v13038_v55, %v7051_v52  ;;  %6877 = vst.msk [vmem:[#allocation3 + $0x30] sm:$0xff] %vm16811_vm13, %v13022_v48  ;;  %v7002_v39 = vpop.f32.mrf.mxu0  ;;  %vm16817_vm13 = vmmov %vm16745_vm0 }
 0x66d   : > { %v7049_v26 = vld [vmem:[#allocation3] sm:$0xff]  ;;  %v6824_v35 = vpop.f32.mrf.mxu1 }
 0x66e   : > { %7083 = vst.msk [vmem:[#allocation3 + $0x10] sm:$0xff] %vm16812_vm6, %v7067_v20  ;;  %v7065_v33 = vadd.f32 %v7049_v26, %v6986_v61  ;;  %v13043_v53 = vpop.f32.mrf.mxu0  ;;  %vm16818_vm6 = vmmov %vm16745_vm0 }
 0x66f   : > { %6875 = vst.msk [vmem:[#allocation3 + $0x20] sm:$0xff] %vm16813_vm8, %v6824_v35  ;;  %v7052_v32 = vld [vmem:[#allocation3 + $0x18] sm:$0xff]  ;;  %v13023_v54 = vpop.f32.mrf.mxu1  ;;  %vm16819_vm8 = vmmov %vm16745_vm0 }
 0x670   : > { %7081 = vst.msk [vmem:[#allocation3] sm:$0xff] %vm16814_vm5, %v7065_v33  ;;  %v7068_v42 = vadd.f32 %v13039_v2, %v7052_v32  ;;  %v7005_v34 = vpop.f32.mrf.mxu0  ;;  %vm16820_vm5 = vmmov %vm16745_vm0 }
 0x671   : > { %6878 = vst.msk [vmem:[#allocation3 + $0x38] sm:$0xff] %vm16745_vm0, %v13023_v54  ;;  %v7050_v18 = vld [vmem:[#allocation3 + $0x8] sm:$0xff]  ;;  %v6827_v27 = vpop.f32.mrf.mxu1 }
 0x672   : > { %7084 = vst.msk [vmem:[#allocation3 + $0x18] sm:$0xff] %vm16815_vm15, %v7068_v42  ;;  %v7066_v59 = vadd.f32 %v7050_v18, %v6989_v60  ;;  %v13046_v10 = vpop.f32.mrf.mxu0  ;;  %vm16821_vm15 = vmmov %vm16745_vm0 }
 0x673   : > { %6876 = vst.msk [vmem:[#allocation3 + $0x28] sm:$0xff] %vm16816_vm3, %v6827_v27  ;;  %v7055_v63 = vld [vmem:[#allocation3 + $0x30] sm:$0xff]  ;;  %v13026_v58 = vpop.f32.mrf.mxu1  ;;  %vm16822_vm3 = vmmov %vm16745_vm0 }
 0x674   : > { %7082 = vst.msk [vmem:[#allocation3 + $0x8] sm:$0xff] %vm16817_vm13, %v7066_v59  ;;  %v7071_v7 = vadd.f32 %v13042_v28, %v7055_v63  ;;  %v7018_v62 = vpop.f32.mrf.mxu0  ;;  %vm16823_vm13 = vmmov %vm16745_vm0 }
 0x675   : > { %6881 = vst.msk [vmem:[#allocation3 + $0x50] sm:$0xff] %vm16818_vm6, %v13026_v58  ;;  %v6840_v21 = vpop.f32.mrf.mxu1  ;;  %vm16824_vm6 = vmmov %vm16745_vm0  ;;  %v7261_v33 = vld [vmem:[#allocation3 + $0x10] sm:$0xff] }
 0x676   : > { %v7053_v1 = vld [vmem:[#allocation3 + $0x20] sm:$0xff]  ;;  %7087 = vst.msk [vmem:[#allocation3 + $0x30] sm:$0xff] %vm16819_vm8, %v7071_v7  ;;  %v13047_v11 = vpop.f32.mrf.mxu0  ;;  %vm16825_vm8 = vmmov %vm16745_vm0 }
 0x677   : > { %v7069_v6 = vadd.f32 %v7053_v1, %v7002_v39  ;;  %6879 = vst.msk [vmem:[#allocation3 + $0x40] sm:$0xff] %vm16820_vm5, %v6840_v21  ;;  %v13027_v24 = vpop.f32.mrf.mxu1  ;;  %vm16826_vm5 = vmmov %vm16745_vm0  ;;  %v7259_v18 = vld [vmem:[#allocation3] sm:$0xff] }
 0x678   : > { %v7056_v23 = vld [vmem:[#allocation3 + $0x38] sm:$0xff]  ;;  %6882 = vst.msk [vmem:[#allocation3 + $0x58] sm:$0xff] %vm16821_vm15, %v13027_v24  ;;  %v7021_v40 = vpop.f32.mrf.mxu0  ;;  %vm16827_vm15 = vmmov %vm16745_vm0 }
 0x679   : > { %7085 = vst.msk [vmem:[#allocation3 + $0x20] sm:$0xff] %vm16745_vm0, %v7069_v6  ;;  %v7072_v38 = vadd.f32 %v13043_v53, %v7056_v23  ;;  %v6843_v17 = vpop.f32.mrf.mxu1  ;;  %v7262_v7 = vld [vmem:[#allocation3 + $0x18] sm:$0xff] }
 0x67a   : > { %v7054_v22 = vld [vmem:[#allocation3 + $0x28] sm:$0xff]  ;;  %6880 = vst.msk [vmem:[#allocation3 + $0x48] sm:$0xff] %vm16823_vm13, %v6843_v17  ;;  %v13050_v14 = vpop.f32.mrf.mxu0  ;;  %vm16829_vm13 = vmmov %vm16745_vm0 }
 0x67b   : > { %7088 = vst.msk [vmem:[#allocation3 + $0x38] sm:$0xff] %vm16822_vm3, %v7072_v38  ;;  %v7070_v13 = vadd.f32 %v7054_v22, %v7005_v34  ;;  %v13030_v51 = vpop.f32.mrf.mxu1  ;;  %vm16828_vm3 = vmmov %vm16745_vm0  ;;  %v7260_v23 = vld [vmem:[#allocation3 + $0x8] sm:$0xff] }
 0x67c   : > { %v7059_v43 = vld [vmem:[#allocation3 + $0x50] sm:$0xff]  ;;  %6885 = vst.msk [vmem:[#allocation3 + $0x70] sm:$0xff] %vm16825_vm8, %v13030_v51  ;;  %v7034_v61 = vpop.f32.mrf.mxu0  ;;  %vm16831_vm8 = vmmov %vm16745_vm0 }
 0x67d   : > { %7086 = vst.msk [vmem:[#allocation3 + $0x28] sm:$0xff] %vm16824_vm6, %v7070_v13  ;;  %v7075_v45 = vadd.f32 %v13046_v10, %v7059_v43  ;;  %v6856_v55 = vpop.f32.mrf.mxu1  ;;  %vm16830_vm6 = vmmov %vm16745_vm0  ;;  %v7265_v17 = vld [vmem:[#allocation3 + $0x30] sm:$0xff] }
 0x67e   : > { %v7057_v46 = vld [vmem:[#allocation3 + $0x40] sm:$0xff]  ;;  %6883 = vst.msk [vmem:[#allocation3 + $0x60] sm:$0xff] %vm16745_vm0, %v6856_v55  ;;  %v13051_v60 = vpop.f32.mrf.mxu0 }
 0x67f   : > { %7091 = vst.msk [vmem:[#allocation3 + $0x50] sm:$0xff] %vm16826_vm5, %v7075_v45  ;;  %v7073_v3 = vadd.f32 %v7057_v46, %v7018_v62  ;;  %v7060_v25 = vld [vmem:[#allocation3 + $0x58] sm:$0xff]  ;;  %v13031_v2 = vpop.f32.mrf.mxu1  ;;  %vm16832_vm5 = vmmov %vm16745_vm0 }
 0x680   : > { %v7076_v15 = vadd.f32 %v13047_v11, %v7060_v25  ;;  %6886 = vst.msk [vmem:[#allocation3 + $0x78] sm:$0xff] %vm16828_vm3, %v13031_v2  ;;  %v7037_v28 = vpop.f32.mrf.mxu0  ;;  %vm16834_vm3 = vmmov %vm16745_vm0  ;;  %v7263_v45 = vld [vmem:[#allocation3 + $0x20] sm:$0xff] }
 0x681   : > { %7089 = vst.msk [vmem:[#allocation3 + $0x40] sm:$0xff] %vm16827_vm15, %v7073_v3  ;;  %v7058_v52 = vld [vmem:[#allocation3 + $0x48] sm:$0xff]  ;;  %v6859_v48 = vpop.f32.mrf.mxu1  ;;  %vm16833_vm15 = vmmov %vm16745_vm0 }
 0x682   : > { %7092 = vst.msk [vmem:[#allocation3 + $0x58] sm:$0xff] %vm16829_vm13, %v7076_v15  ;;  %v7074_v20 = vadd.f32 %v7058_v52, %v7021_v40  ;;  %v13078_v54 = vpop.f32.mrf.mxu0  ;;  %vm16835_vm13 = vmmov %vm16745_vm0  ;;  %v7266_v25 = vld [vmem:[#allocation3 + $0x38] sm:$0xff] }
 0x683   : > { %6884 = vst.msk [vmem:[#allocation3 + $0x68] sm:$0xff] %vm16830_vm6, %v6859_v48  ;;  %v7063_v26 = vld [vmem:[#allocation3 + $0x70] sm:$0xff]  ;;  %v13058_v35 = vpop.f32.mrf.mxu1  ;;  %vm16836_vm6 = vmmov %vm16745_vm0 }
 0x684   : > { %7090 = vst.msk [vmem:[#allocation3 + $0x48] sm:$0xff] %vm16831_vm8, %v7074_v20  ;;  %v7079_v39 = vadd.f32 %v13050_v14, %v7063_v26  ;;  %v7277_v32 = vadd.f32 %v13058_v35, %v7261_v33  ;;  %v7406_v34 = vpop.f32.mrf.mxu0  ;;  %vm16837_vm8 = vmmov %vm16745_vm0  ;;  %v7264_v20 = vld [vmem:[#allocation3 + $0x28] sm:$0xff] }
 0x685   : > { %v7061_v42 = vld [vmem:[#allocation3 + $0x60] sm:$0xff]  ;;  %v7196_v53 = vpop.f32.mrf.mxu1 }
 0x686   : > { %7095 = vst.msk [vmem:[#allocation3 + $0x70] sm:$0xff] %vm16832_vm5, %v7079_v39  ;;  %v7077_v27 = vadd.f32 %v7061_v42, %v7034_v61  ;;  %v7275_v59 = vadd.f32 %v7259_v18, %v7196_v53  ;;  %v13079_v21 = vpop.f32.mrf.mxu0  ;;  %vm16838_vm5 = vmmov %vm16745_vm0 }
 0x687   : > { %7293 = vst.msk [vmem:[#allocation3 + $0x10] sm:$0xff] %vm16745_vm0, %v7277_v32  ;;  %v7064_v63 = vld [vmem:[#allocation3 + $0x78] sm:$0xff]  ;;  %v13059_v58 = vpop.f32.mrf.mxu1  ;;  %v7269_v32 = vld [vmem:[#allocation3 + $0x50] sm:$0xff] }
 0x688   : > { %7093 = vst.msk [vmem:[#allocation3 + $0x60] sm:$0xff] %vm16833_vm15, %v7077_v27  ;;  %v7080_v10 = vadd.f32 %v13051_v60, %v7064_v63  ;;  %v7278_v1 = vadd.f32 %v13059_v58, %v7262_v7  ;;  %v7409_v11 = vpop.f32.mrf.mxu0  ;;  %vm16839_vm15 = vmmov %vm16745_vm0 }
 0x689   : > { %7291 = vst.msk [vmem:[#allocation3] sm:$0xff] %vm16834_vm3, %v7275_v59  ;;  %v7199_v62 = vpop.f32.mrf.mxu1  ;;  %vm16840_vm3 = vmmov %vm16745_vm0  ;;  %v7267_v59 = vld [vmem:[#allocation3 + $0x40] sm:$0xff] }
 0x68a   : > { %v7062_v6 = vld [vmem:[#allocation3 + $0x68] sm:$0xff]  ;;  %7096 = vst.msk [vmem:[#allocation3 + $0x78] sm:$0xff] %vm16835_vm13, %v7080_v10  ;;  %v7276_v38 = vadd.f32 %v7260_v23, %v7199_v62  ;;  %v13082_v40 = vpop.f32.mrf.mxu0  ;;  %vm16841_vm13 = vmmov %vm16745_vm0 }
 0x68b   : > { %v7078_v24 = vadd.f32 %v7062_v6, %v7037_v28  ;;  %7294 = vst.msk [vmem:[#allocation3 + $0x18] sm:$0xff] %vm16836_vm6, %v7278_v1  ;;  %v13062_v22 = vpop.f32.mrf.mxu1  ;;  %vm16842_vm6 = vmmov %vm16745_vm0  ;;  %v7270_v1 = vld [vmem:[#allocation3 + $0x58] sm:$0xff] }
 0x68c   : > { %7292 = vst.msk [vmem:[#allocation3 + $0x8] sm:$0xff] %vm16838_vm5, %v7276_v38  ;;  %v7281_v13 = vadd.f32 %v13062_v22, %v7265_v17  ;;  %v7422_v55 = vpop.f32.mrf.mxu0  ;;  %vm16844_vm5 = vmmov %vm16745_vm0  ;;  %v7268_v38 = vld [vmem:[#allocation3 + $0x48] sm:$0xff] }
 0x68d   : > { %7094 = vst.msk [vmem:[#allocation3 + $0x68] sm:$0xff] %vm16837_vm8, %v7078_v24  ;;  %v7212_v51 = vpop.f32.mrf.mxu1  ;;  %vm16843_vm8 = vmmov %vm16745_vm0 }
 0x68e   : > { %v7471_v43 = vld [vmem:[#allocation3 + $0x10] sm:$0xff]  ;;  %7297 = vst.msk [vmem:[#allocation3 + $0x30] sm:$0xff] %vm16745_vm0, %v7281_v13  ;;  %v7279_v46 = vadd.f32 %v7263_v45, %v7212_v51  ;;  %v13083_v60 = vpop.f32.mrf.mxu0 }
 0x68f   : > { %v7487_v14 = vadd.f32 %v13078_v54, %v7471_v43  ;;  %v13063_v61 = vpop.f32.mrf.mxu1  ;;  %v7273_v43 = vld [vmem:[#allocation3 + $0x70] sm:$0xff] }
 0x690   : > { %v7469_v3 = vld [vmem:[#allocation3] sm:$0xff]  ;;  %7295 = vst.msk [vmem:[#allocation3 + $0x20] sm:$0xff] %vm16840_vm3, %v7279_v46  ;;  %v7282_v15 = vadd.f32 %v13063_v61, %v7266_v25  ;;  %v7425_v35 = vpop.f32.mrf.mxu0  ;;  %vm16846_vm3 = vmmov %vm16745_vm0 }
 0x691   : > { %7503 = vst.msk [vmem:[#allocation3 + $0x10] sm:$0xff] %vm16839_vm15, %v7487_v14  ;;  %v7485_v2 = vadd.f32 %v7469_v3, %v7406_v34  ;;  %v7215_v48 = vpop.f32.mrf.mxu1  ;;  %vm16845_vm15 = vmmov %vm16745_vm0  ;;  %v7271_v3 = vld [vmem:[#allocation3 + $0x60] sm:$0xff] }
 0x692   : > { %v7472_v52 = vld [vmem:[#allocation3 + $0x18] sm:$0xff]  ;;  %7298 = vst.msk [vmem:[#allocation3 + $0x38] sm:$0xff] %vm16842_vm6, %v7282_v15  ;;  %v7280_v26 = vadd.f32 %v7264_v20, %v7215_v48  ;;  %v13086_v53 = vpop.f32.mrf.mxu0  ;;  %vm16848_vm6 = vmmov %vm16745_vm0 }
 0x693   : > { %7501 = vst.msk [vmem:[#allocation3] sm:$0xff] %vm16841_vm13, %v7485_v2  ;;  %v7488_v28 = vadd.f32 %v13079_v21, %v7472_v52  ;;  %v7470_v33 = vld [vmem:[#allocation3 + $0x8] sm:$0xff]  ;;  %v13066_v39 = vpop.f32.mrf.mxu1  ;;  %vm16847_vm13 = vmmov %vm16745_vm0  ;;  %v7274_v52 = vld [vmem:[#allocation3 + $0x78] sm:$0xff] }
 0x694   : > { %v7486_v54 = vadd.f32 %v7470_v33, %v7409_v11  ;;  %7296 = vst.msk [vmem:[#allocation3 + $0x28] sm:$0xff] %vm16844_vm5, %v7280_v26  ;;  %v7285_v42 = vadd.f32 %v13066_v39, %v7269_v32  ;;  %v7438_v58 = vpop.f32.mrf.mxu0  ;;  %vm16850_vm5 = vmmov %vm16745_vm0  ;;  %v7272_v33 = vld [vmem:[#allocation3 + $0x68] sm:$0xff] }
 0x695   : > { %7504 = vst.msk [vmem:[#allocation3 + $0x18] sm:$0xff] %vm16843_vm8, %v7488_v28  ;;  %v7475_v18 = vld [vmem:[#allocation3 + $0x30] sm:$0xff]  ;;  %v7228_v27 = vpop.f32.mrf.mxu1  ;;  %vm16849_vm8 = vmmov %vm16745_vm0 }
 0x696   : > { %7502 = vst.msk [vmem:[#allocation3 + $0x8] sm:$0xff] %vm16745_vm0, %v7486_v54  ;;  %v7491_v34 = vadd.f32 %v13082_v40, %v7475_v18  ;;  %v7283_v63 = vadd.f32 %v7267_v59, %v7228_v27  ;;  %v13087_v62 = vpop.f32.mrf.mxu0 }
 0x697   : > { %7301 = vst.msk [vmem:[#allocation3 + $0x50] sm:$0xff] %vm16845_vm15, %v7285_v42  ;;  %v7473_v7 = vld [vmem:[#allocation3 + $0x20] sm:$0xff]  ;;  %v13067_v10 = vpop.f32.mrf.mxu1  ;;  %vm16851_vm15 = vmmov %vm16745_vm0 }
 0x698   : > { %7507 = vst.msk [vmem:[#allocation3 + $0x30] sm:$0xff] %vm16846_vm3, %v7491_v34  ;;  %v7489_v21 = vadd.f32 %v7473_v7, %v7422_v55  ;;  %v7286_v6 = vadd.f32 %v13067_v10, %v7270_v1  ;;  %v7441_v17 = vpop.f32.mrf.mxu0  ;;  %vm16852_vm3 = vmmov %vm16745_vm0  ;;  %v7681_v18 = vld [vmem:[#allocation3 + $0x10] sm:$0xff] }
 0x699   : > { %7299 = vst.msk [vmem:[#allocation3 + $0x40] sm:$0xff] %vm16847_vm13, %v7283_v63  ;;  %v7476_v23 = vld [vmem:[#allocation3 + $0x38] sm:$0xff]  ;;  %v7231_v24 = vpop.f32.mrf.mxu1  ;;  %vm16853_vm13 = vmmov %vm16745_vm0 }
 0x69a   : > { %7505 = vst.msk [vmem:[#allocation3 + $0x20] sm:$0xff] %vm16848_vm6, %v7489_v21  ;;  %v7492_v11 = vadd.f32 %v13083_v60, %v7476_v23  ;;  %v7284_v22 = vadd.f32 %v7268_v38, %v7231_v24  ;;  %v13090_v14 = vpop.f32.mrf.mxu0  ;;  %vm16854_vm6 = vmmov %vm16745_vm0  ;;  %v7679_v7 = vld [vmem:[#allocation3] sm:$0xff] }
 0x69b   : > { %7302 = vst.msk [vmem:[#allocation3 + $0x58] sm:$0xff] %vm16849_vm8, %v7286_v6  ;;  %v7474_v13 = vld [vmem:[#allocation3 + $0x28] sm:$0xff]  ;;  %v13070_v40 = vpop.f32.mrf.mxu1  ;;  %vm16855_vm8 = vmmov %vm16745_vm0 }
 0x69c   : > { %7508 = vst.msk [vmem:[#allocation3 + $0x38] sm:$0xff] %vm16850_vm5, %v7492_v11  ;;  %v7490_v51 = vadd.f32 %v7474_v13, %v7425_v35  ;;  %v7289_v45 = vadd.f32 %v13070_v40, %v7273_v43  ;;  %v7454_v2 = vpop.f32.mrf.mxu0  ;;  %vm16856_vm5 = vmmov %vm16745_vm0  ;;  %v7682_v23 = vld [vmem:[#allocation3 + $0x18] sm:$0xff] }
 0x69d   : > { %7300 = vst.msk [vmem:[#allocation3 + $0x48] sm:$0xff] %vm16745_vm0, %v7284_v22  ;;  %v7244_v55 = vpop.f32.mrf.mxu1  ;;  %v7680_v13 = vld [vmem:[#allocation3 + $0x8] sm:$0xff] }
 0x69e   : > { %v7479_v46 = vld [vmem:[#allocation3 + $0x50] sm:$0xff]  ;;  %7506 = vst.msk [vmem:[#allocation3 + $0x28] sm:$0xff] %vm16851_vm15, %v7490_v51  ;;  %v7287_v25 = vadd.f32 %v7271_v3, %v7244_v55  ;;  %v13091_v28 = vpop.f32.mrf.mxu0  ;;  %vm16857_vm15 = vmmov %vm16745_vm0 }
 0x69f   : > { %v7495_v61 = vadd.f32 %v13086_v53, %v7479_v46  ;;  %7305 = vst.msk [vmem:[#allocation3 + $0x70] sm:$0xff] %vm16852_vm3, %v7289_v45  ;;  %v13071_v60 = vpop.f32.mrf.mxu1  ;;  %vm16858_vm3 = vmmov %vm16745_vm0  ;;  %v7685_v46 = vld [vmem:[#allocation3 + $0x30] sm:$0xff] }
 0x6a0   : > { %v7477_v15 = vld [vmem:[#allocation3 + $0x40] sm:$0xff]  ;;  %7303 = vst.msk [vmem:[#allocation3 + $0x60] sm:$0xff] %vm16854_vm6, %v7287_v25  ;;  %v7290_v20 = vadd.f32 %v13071_v60, %v7274_v52  ;;  %v7457_v54 = vpop.f32.mrf.mxu0  ;;  %vm16860_vm6 = vmmov %vm16745_vm0 }
 0x6a1   : > { %7511 = vst.msk [vmem:[#allocation3 + $0x50] sm:$0xff] %vm16853_vm13, %v7495_v61  ;;  %v7493_v48 = vadd.f32 %v7477_v15, %v7438_v58  ;;  %v7247_v35 = vpop.f32.mrf.mxu1  ;;  %vm16859_vm13 = vmmov %vm16745_vm0  ;;  %v7683_v15 = vld [vmem:[#allocation3 + $0x20] sm:$0xff] }
 0x6a2   : > { %v7480_v26 = vld [vmem:[#allocation3 + $0x58] sm:$0xff]  ;;  %7306 = vst.msk [vmem:[#allocation3 + $0x78] sm:$0xff] %vm16856_vm5, %v7290_v20  ;;  %v7288_v32 = vadd.f32 %v7272_v33, %v7247_v35  ;;  %v13118_v34 = vpop.f32.mrf.mxu0  ;;  %vm16862_vm5 = vmmov %vm16745_vm0 }
 0x6a3   : > { %7509 = vst.msk [vmem:[#allocation3 + $0x40] sm:$0xff] %vm16855_vm8, %v7493_v48  ;;  %v7496_v39 = vadd.f32 %v13087_v62, %v7480_v26  ;;  %v13098_v53 = vpop.f32.mrf.mxu1  ;;  %vm16861_vm8 = vmmov %vm16745_vm0  ;;  %v7686_v26 = vld [vmem:[#allocation3 + $0x38] sm:$0xff] }
 0x6a4   : > { %v7478_v42 = vld [vmem:[#allocation3 + $0x48] sm:$0xff]  ;;  %7304 = vst.msk [vmem:[#allocation3 + $0x68] sm:$0xff] %vm16857_vm15, %v7288_v32  ;;  %v7697_v59 = vadd.f32 %v13098_v53, %v7681_v18  ;;  %v7826_v21 = vpop.f32.mrf.mxu0  ;;  %vm16863_vm15 = vmmov %vm16745_vm0 }
 0x6a5   : > { %7512 = vst.msk [vmem:[#allocation3 + $0x58] sm:$0xff] %vm16745_vm0, %v7496_v39  ;;  %v7494_v27 = vadd.f32 %v7478_v42, %v7441_v17  ;;  %v7616_v58 = vpop.f32.mrf.mxu1  ;;  %v7684_v42 = vld [vmem:[#allocation3 + $0x28] sm:$0xff] }
 0x6a6   : > { %v7483_v63 = vld [vmem:[#allocation3 + $0x70] sm:$0xff]  ;;  %7713 = vst.msk [vmem:[#allocation3 + $0x10] sm:$0xff] %vm16859_vm13, %v7697_v59  ;;  %v7695_v1 = vadd.f32 %v7679_v7, %v7616_v58  ;;  %v13119_v11 = vpop.f32.mrf.mxu0  ;;  %vm16865_vm13 = vmmov %vm16745_vm0 }
 0x6a7   : > { %7510 = vst.msk [vmem:[#allocation3 + $0x48] sm:$0xff] %vm16858_vm3, %v7494_v27  ;;  %v7499_v10 = vadd.f32 %v13090_v14, %v7483_v63  ;;  %v7481_v6 = vld [vmem:[#allocation3 + $0x60] sm:$0xff]  ;;  %v13099_v62 = vpop.f32.mrf.mxu1  ;;  %vm16864_vm3 = vmmov %vm16745_vm0 }
 0x6a8   : > { %v7497_v24 = vadd.f32 %v7481_v6, %v7454_v2  ;;  %7711 = vst.msk [vmem:[#allocation3] sm:$0xff] %vm16861_vm8, %v7695_v1  ;;  %v7698_v38 = vadd.f32 %v13099_v62, %v7682_v23  ;;  %v7829_v51 = vpop.f32.mrf.mxu0  ;;  %vm16867_vm8 = vmmov %vm16745_vm0  ;;  %v7689_v63 = vld [vmem:[#allocation3 + $0x50] sm:$0xff] }
 0x6a9   : > { %7515 = vst.msk [vmem:[#allocation3 + $0x70] sm:$0xff] %vm16860_vm6, %v7499_v10  ;;  %v7484_v22 = vld [vmem:[#allocation3 + $0x78] sm:$0xff]  ;;  %v7619_v17 = vpop.f32.mrf.mxu1  ;;  %vm16866_vm6 = vmmov %vm16745_vm0 }
 0x6aa   : > { %7513 = vst.msk [vmem:[#allocation3 + $0x60] sm:$0xff] %vm16862_vm5, %v7497_v24  ;;  %v7500_v40 = vadd.f32 %v13091_v28, %v7484_v22  ;;  %v7696_v43 = vadd.f32 %v7680_v13, %v7619_v17  ;;  %v13122_v61 = vpop.f32.mrf.mxu0  ;;  %vm16868_vm5 = vmmov %vm16745_vm0  ;;  %v7687_v6 = vld [vmem:[#allocation3 + $0x40] sm:$0xff] }
 0x6ab   : > { %7714 = vst.msk [vmem:[#allocation3 + $0x18] sm:$0xff] %vm16745_vm0, %v7698_v38  ;;  %v7482_v45 = vld [vmem:[#allocation3 + $0x68] sm:$0xff]  ;;  %v13102_v14 = vpop.f32.mrf.mxu1 }
 0x6ac   : > { %7516 = vst.msk [vmem:[#allocation3 + $0x78] sm:$0xff] %vm16863_vm15, %v7500_v40  ;;  %v7498_v55 = vadd.f32 %v7482_v45, %v7457_v54  ;;  %v7701_v3 = vadd.f32 %v13102_v14, %v7685_v46  ;;  %v7842_v48 = vpop.f32.mrf.mxu0  ;;  %vm16869_vm15 = vmmov %vm16745_vm0  ;;  %v7690_v22 = vld [vmem:[#allocation3 + $0x58] sm:$0xff] }
 0x6ad   : > { %7712 = vst.msk [vmem:[#allocation3 + $0x8] sm:$0xff] %vm16864_vm3, %v7696_v43  ;;  %v7891_v25 = vld [vmem:[#allocation3 + $0x10] sm:$0xff]  ;;  %v7632_v2 = vpop.f32.mrf.mxu1  ;;  %vm16870_vm3 = vmmov %vm16745_vm0 }
 0x6ae   : > { %7514 = vst.msk [vmem:[#allocation3 + $0x68] sm:$0xff] %vm16865_vm13, %v7498_v55  ;;  %v7907_v60 = vadd.f32 %v13118_v34, %v7891_v25  ;;  %v7699_v52 = vadd.f32 %v7683_v15, %v7632_v2  ;;  %v13123_v39 = vpop.f32.mrf.mxu0  ;;  %vm16871_vm13 = vmmov %vm16745_vm0  ;;  %v7688_v45 = vld [vmem:[#allocation3 + $0x48] sm:$0xff] }
 0x6af   : > { %7717 = vst.msk [vmem:[#allocation3 + $0x30] sm:$0xff] %vm16866_vm6, %v7701_v3  ;;  %v7889_v20 = vld [vmem:[#allocation3] sm:$0xff]  ;;  %v13103_v28 = vpop.f32.mrf.mxu1  ;;  %vm16872_vm6 = vmmov %vm16745_vm0 }
 0x6b0   : > { %7923 = vst.msk [vmem:[#allocation3 + $0x10] sm:$0xff] %vm16867_vm8, %v7907_v60  ;;  %v7905_v35 = vadd.f32 %v7889_v20, %v7826_v21  ;;  %v7702_v33 = vadd.f32 %v13103_v28, %v7686_v26  ;;  %v7845_v27 = vpop.f32.mrf.mxu0  ;;  %vm16873_vm8 = vmmov %vm16745_vm0  ;;  %v7693_v25 = vld [vmem:[#allocation3 + $0x70] sm:$0xff] }
 0x6b1   : > { %7715 = vst.msk [vmem:[#allocation3 + $0x20] sm:$0xff] %vm16868_vm5, %v7699_v52  ;;  %v7635_v54 = vpop.f32.mrf.mxu1  ;;  %vm16874_vm5 = vmmov %vm16745_vm0  ;;  %v7691_v20 = vld [vmem:[#allocation3 + $0x60] sm:$0xff] }
 0x6b2   : > { %v7892_v32 = vld [vmem:[#allocation3 + $0x18] sm:$0xff]  ;;  %7921 = vst.msk [vmem:[#allocation3] sm:$0xff] %vm16745_vm0, %v7905_v35  ;;  %v7700_v18 = vadd.f32 %v7684_v42, %v7635_v54  ;;  %v13126_v10 = vpop.f32.mrf.mxu0 }
 0x6b3   : > { %v7908_v53 = vadd.f32 %v13119_v11, %v7892_v32  ;;  %7718 = vst.msk [vmem:[#allocation3 + $0x38] sm:$0xff] %vm16869_vm15, %v7702_v33  ;;  %v13106_v34 = vpop.f32.mrf.mxu1  ;;  %vm16875_vm15 = vmmov %vm16745_vm0  ;;  %v7694_v32 = vld [vmem:[#allocation3 + $0x78] sm:$0xff] }
 0x6b4   : > { %v7890_v59 = vld [vmem:[#allocation3 + $0x8] sm:$0xff]  ;;  %7716 = vst.msk [vmem:[#allocation3 + $0x28] sm:$0xff] %vm16871_vm13, %v7700_v18  ;;  %v7705_v7 = vadd.f32 %v13106_v34, %v7689_v63  ;;  %v7858_v24 = vpop.f32.mrf.mxu0  ;;  %vm16877_vm13 = vmmov %vm16745_vm0 }
 0x6b5   : > { %7924 = vst.msk [vmem:[#allocation3 + $0x18] sm:$0xff] %vm16870_vm3, %v7908_v53  ;;  %v7906_v58 = vadd.f32 %v7890_v59, %v7829_v51  ;;  %v7648_v21 = vpop.f32.mrf.mxu1  ;;  %vm16876_vm3 = vmmov %vm16745_vm0  ;;  %v7692_v59 = vld [vmem:[#allocation3 + $0x68] sm:$0xff] }
 0x6b6   : > { %v7895_v1 = vld [vmem:[#allocation3 + $0x30] sm:$0xff]  ;;  %7721 = vst.msk [vmem:[#allocation3 + $0x50] sm:$0xff] %vm16873_vm8, %v7705_v7  ;;  %v7703_v23 = vadd.f32 %v7687_v6, %v7648_v21  ;;  %v13127_v40 = vpop.f32.mrf.mxu0  ;;  %vm16879_vm8 = vmmov %vm16745_vm0 }
 0x6b7   : > { %7922 = vst.msk [vmem:[#allocation3 + $0x8] sm:$0xff] %vm16872_vm6, %v7906_v58  ;;  %v7911_v62 = vadd.f32 %v13122_v61, %v7895_v1  ;;  %v13107_v11 = vpop.f32.mrf.mxu1  ;;  %vm16878_vm6 = vmmov %vm16745_vm0  ;;  %v8101_v1 = vld [vmem:[#allocation3 + $0x10] sm:$0xff] }
 0x6b8   : > { %v7893_v38 = vld [vmem:[#allocation3 + $0x20] sm:$0xff]  ;;  %7719 = vst.msk [vmem:[#allocation3 + $0x40] sm:$0xff] %vm16745_vm0, %v7703_v23  ;;  %v7706_v13 = vadd.f32 %v13107_v11, %v7690_v22  ;;  %v7861_v55 = vpop.f32.mrf.mxu0 }
 0x6b9   : > { %7927 = vst.msk [vmem:[#allocation3 + $0x30] sm:$0xff] %vm16874_vm5, %v7911_v62  ;;  %v7909_v17 = vadd.f32 %v7893_v38, %v7842_v48  ;;  %v7651_v51 = vpop.f32.mrf.mxu1  ;;  %vm16880_vm5 = vmmov %vm16745_vm0  ;;  %v8099_v38 = vld [vmem:[#allocation3] sm:$0xff] }
 0x6ba   : > { %v7896_v43 = vld [vmem:[#allocation3 + $0x38] sm:$0xff]  ;;  %7722 = vst.msk [vmem:[#allocation3 + $0x58] sm:$0xff] %vm16876_vm3, %v7706_v13  ;;  %v7704_v46 = vadd.f32 %v7688_v45, %v7651_v51  ;;  %v13130_v60 = vpop.f32.mrf.mxu0  ;;  %vm16882_vm3 = vmmov %vm16745_vm0 }
 0x6bb   : > { %7925 = vst.msk [vmem:[#allocation3 + $0x20] sm:$0xff] %vm16875_vm15, %v7909_v17  ;;  %v7912_v14 = vadd.f32 %v13123_v39, %v7896_v43  ;;  %v7894_v3 = vld [vmem:[#allocation3 + $0x28] sm:$0xff]  ;;  %v13110_v61 = vpop.f32.mrf.mxu1  ;;  %vm16881_vm15 = vmmov %vm16745_vm0 }
 0x6bc   : > { %v7910_v2 = vadd.f32 %v7894_v3, %v7845_v27  ;;  %7720 = vst.msk [vmem:[#allocation3 + $0x48] sm:$0xff] %vm16878_vm6, %v7704_v46  ;;  %v7709_v15 = vadd.f32 %v13110_v61, %v7693_v25  ;;  %v7874_v35 = vpop.f32.mrf.mxu0  ;;  %vm16884_vm6 = vmmov %vm16745_vm0  ;;  %v8102_v43 = vld [vmem:[#allocation3 + $0x18] sm:$0xff] }
 0x6bd   : > { %7928 = vst.msk [vmem:[#allocation3 + $0x38] sm:$0xff] %vm16877_vm13, %v7912_v14  ;;  %v7899_v52 = vld [vmem:[#allocation3 + $0x50] sm:$0xff]  ;;  %v7664_v48 = vpop.f32.mrf.mxu1  ;;  %vm16883_vm13 = vmmov %vm16745_vm0 }
 0x6be   : > { %7926 = vst.msk [vmem:[#allocation3 + $0x28] sm:$0xff] %vm16879_vm8, %v7910_v2  ;;  %v7915_v28 = vadd.f32 %v13126_v10, %v7899_v52  ;;  %v7707_v26 = vadd.f32 %v7691_v20, %v7664_v48  ;;  %v13131_v53 = vpop.f32.mrf.mxu0  ;;  %vm16885_vm8 = vmmov %vm16745_vm0  ;;  %v8100_v3 = vld [vmem:[#allocation3 + $0x8] sm:$0xff] }
 0x6bf   : > { %7725 = vst.msk [vmem:[#allocation3 + $0x70] sm:$0xff] %vm16880_vm5, %v7709_v15  ;;  %v7897_v33 = vld [vmem:[#allocation3 + $0x40] sm:$0xff]  ;;  %v13111_v39 = vpop.f32.mrf.mxu1  ;;  %vm16886_vm5 = vmmov %vm16745_vm0 }
 0x6c0   : > { %7931 = vst.msk [vmem:[#allocation3 + $0x50] sm:$0xff] %vm16745_vm0, %v7915_v28  ;;  %v7913_v54 = vadd.f32 %v7897_v33, %v7858_v24  ;;  %v7710_v42 = vadd.f32 %v13111_v39, %v7694_v32  ;;  %v7877_v58 = vpop.f32.mrf.mxu0  ;;  %v8105_v52 = vld [vmem:[#allocation3 + $0x30] sm:$0xff] }
 0x6c1   : > { %7723 = vst.msk [vmem:[#allocation3 + $0x60] sm:$0xff] %vm16881_vm15, %v7707_v26  ;;  %v7900_v18 = vld [vmem:[#allocation3 + $0x58] sm:$0xff]  ;;  %v7667_v27 = vpop.f32.mrf.mxu1  ;;  %vm16887_vm15 = vmmov %vm16745_vm0 }
 0x6c2   : > { %7929 = vst.msk [vmem:[#allocation3 + $0x40] sm:$0xff] %vm16882_vm3, %v7913_v54  ;;  %v7916_v34 = vadd.f32 %v13127_v40, %v7900_v18  ;;  %v7708_v63 = vadd.f32 %v7692_v59, %v7667_v27  ;;  %v13158_v62 = vpop.f32.mrf.mxu0  ;;  %vm16888_vm3 = vmmov %vm16745_vm0  ;;  %v8103_v33 = vld [vmem:[#allocation3 + $0x20] sm:$0xff] }
 0x6c3   : > { %7726 = vst.msk [vmem:[#allocation3 + $0x78] sm:$0xff] %vm16883_vm13, %v7710_v42  ;;  %v7898_v7 = vld [vmem:[#allocation3 + $0x48] sm:$0xff]  ;;  %v13138_v10 = vpop.f32.mrf.mxu1  ;;  %vm16889_vm13 = vmmov %vm16745_vm0 }
 0x6c4   : > { %7932 = vst.msk [vmem:[#allocation3 + $0x58] sm:$0xff] %vm16884_vm6, %v7916_v34  ;;  %v7914_v21 = vadd.f32 %v7898_v7, %v7861_v55  ;;  %v8117_v6 = vadd.f32 %v13138_v10, %v8101_v1  ;;  %v8246_v17 = vpop.f32.mrf.mxu0  ;;  %vm16890_vm6 = vmmov %vm16745_vm0  ;;  %v8106_v18 = vld [vmem:[#allocation3 + $0x38] sm:$0xff] }
 0x6c5   : > { %7724 = vst.msk [vmem:[#allocation3 + $0x68] sm:$0xff] %vm16885_vm8, %v7708_v63  ;;  %v8036_v24 = vpop.f32.mrf.mxu1  ;;  %vm16891_vm8 = vmmov %vm16745_vm0  ;;  %v8104_v7 = vld [vmem:[#allocation3 + $0x28] sm:$0xff] }
 0x6c6   : > { %v7903_v23 = vld [vmem:[#allocation3 + $0x70] sm:$0xff]  ;;  %7930 = vst.msk [vmem:[#allocation3 + $0x48] sm:$0xff] %vm16886_vm5, %v7914_v21  ;;  %v8115_v22 = vadd.f32 %v8099_v38, %v8036_v24  ;;  %v13159_v14 = vpop.f32.mrf.mxu0  ;;  %vm16892_vm5 = vmmov %vm16745_vm0 }
 0x6c7   : > { %v7919_v11 = vadd.f32 %v13130_v60, %v7903_v23  ;;  %8133 = vst.msk [vmem:[#allocation3 + $0x10] sm:$0xff] %vm16745_vm0, %v8117_v6  ;;  %v13139_v40 = vpop.f32.mrf.mxu1  ;;  %v8109_v23 = vld [vmem:[#allocation3 + $0x50] sm:$0xff] }
 0x6c8   : > { %v7901_v13 = vld [vmem:[#allocation3 + $0x60] sm:$0xff]  ;;  %8131 = vst.msk [vmem:[#allocation3] sm:$0xff] %vm16888_vm3, %v8115_v22  ;;  %v8118_v45 = vadd.f32 %v13139_v40, %v8102_v43  ;;  %v8249_v2 = vpop.f32.mrf.mxu0  ;;  %vm16894_vm3 = vmmov %vm16745_vm0 }
 0x6c9   : > { %7935 = vst.msk [vmem:[#allocation3 + $0x70] sm:$0xff] %vm16887_vm15, %v7919_v11  ;;  %v7917_v51 = vadd.f32 %v7901_v13, %v7874_v35  ;;  %v8039_v55 = vpop.f32.mrf.mxu1  ;;  %vm16893_vm15 = vmmov %vm16745_vm0  ;;  %v8107_v13 = vld [vmem:[#allocation3 + $0x40] sm:$0xff] }
 0x6ca   : > { %v7904_v46 = vld [vmem:[#allocation3 + $0x78] sm:$0xff]  ;;  %8134 = vst.msk [vmem:[#allocation3 + $0x18] sm:$0xff] %vm16890_vm6, %v8118_v45  ;;  %v8116_v25 = vadd.f32 %v8100_v3, %v8039_v55  ;;  %v13162_v28 = vpop.f32.mrf.mxu0  ;;  %vm16896_vm6 = vmmov %vm16745_vm0 }
 0x6cb   : > { %7933 = vst.msk [vmem:[#allocation3 + $0x60] sm:$0xff] %vm16889_vm13, %v7917_v51  ;;  %v7920_v61 = vadd.f32 %v13131_v53, %v7904_v46  ;;  %v13142_v60 = vpop.f32.mrf.mxu1  ;;  %vm16895_vm13 = vmmov %vm16745_vm0  ;;  %v8110_v46 = vld [vmem:[#allocation3 + $0x58] sm:$0xff] }
 0x6cc   : > { %v7902_v15 = vld [vmem:[#allocation3 + $0x68] sm:$0xff]  ;;  %8132 = vst.msk [vmem:[#allocation3 + $0x8] sm:$0xff] %vm16892_vm5, %v8116_v25  ;;  %v8121_v20 = vadd.f32 %v13142_v60, %v8105_v52  ;;  %v8262_v54 = vpop.f32.mrf.mxu0  ;;  %vm16898_vm5 = vmmov %vm16745_vm0 }
 0x6cd   : > { %7936 = vst.msk [vmem:[#allocation3 + $0x78] sm:$0xff] %vm16891_vm8, %v7920_v61  ;;  %v7918_v48 = vadd.f32 %v7902_v15, %v7877_v58  ;;  %v8052_v35 = vpop.f32.mrf.mxu1  ;;  %vm16897_vm8 = vmmov %vm16745_vm0  ;;  %v8108_v15 = vld [vmem:[#allocation3 + $0x48] sm:$0xff] }
 0x6ce   : > { %v8311_v26 = vld [vmem:[#allocation3 + $0x10] sm:$0xff]  ;;  %8137 = vst.msk [vmem:[#allocation3 + $0x30] sm:$0xff] %vm16893_vm15, %v8121_v20  ;;  %v8119_v32 = vadd.f32 %v8103_v33, %v8052_v35  ;;  %v13163_v34 = vpop.f32.mrf.mxu0  ;;  %vm16899_vm15 = vmmov %vm16745_vm0 }
 0x6cf   : > { %7934 = vst.msk [vmem:[#allocation3 + $0x68] sm:$0xff] %vm16745_vm0, %v7918_v48  ;;  %v8327_v39 = vadd.f32 %v13158_v62, %v8311_v26  ;;  %v8309_v42 = vld [vmem:[#allocation3] sm:$0xff]  ;;  %v13143_v53 = vpop.f32.mrf.mxu1 }
 0x6d0   : > { %v8325_v27 = vadd.f32 %v8309_v42, %v8246_v17  ;;  %8135 = vst.msk [vmem:[#allocation3 + $0x20] sm:$0xff] %vm16895_vm13, %v8119_v32  ;;  %v8122_v59 = vadd.f32 %v13143_v53, %v8106_v18  ;;  %v8265_v21 = vpop.f32.mrf.mxu0  ;;  %vm16901_vm13 = vmmov %vm16745_vm0  ;;  %v8113_v26 = vld [vmem:[#allocation3 + $0x70] sm:$0xff] }
 0x6d1   : > { %8343 = vst.msk [vmem:[#allocation3 + $0x10] sm:$0xff] %vm16894_vm3, %v8327_v39  ;;  %v8312_v63 = vld [vmem:[#allocation3 + $0x18] sm:$0xff]  ;;  %v8055_v58 = vpop.f32.mrf.mxu1  ;;  %vm16900_vm3 = vmmov %vm16745_vm0 }
 0x6d2   : > { %8341 = vst.msk [vmem:[#allocation3] sm:$0xff] %vm16896_vm6, %v8325_v27  ;;  %v8328_v10 = vadd.f32 %v13159_v14, %v8312_v63  ;;  %v8120_v1 = vadd.f32 %v8104_v7, %v8055_v58  ;;  %v13166_v11 = vpop.f32.mrf.mxu0  ;;  %vm16902_vm6 = vmmov %vm16745_vm0 }
 0x6d3   : > { %8138 = vst.msk [vmem:[#allocation3 + $0x38] sm:$0xff] %vm16897_vm8, %v8122_v59  ;;  %v8310_v6 = vld [vmem:[#allocation3 + $0x8] sm:$0xff]  ;;  %v13146_v62 = vpop.f32.mrf.mxu1  ;;  %vm16903_vm8 = vmmov %vm16745_vm0 }
 0x6d4   : > { %8344 = vst.msk [vmem:[#allocation3 + $0x18] sm:$0xff] %vm16898_vm5, %v8328_v10  ;;  %v8326_v24 = vadd.f32 %v8310_v6, %v8249_v2  ;;  %v8125_v38 = vadd.f32 %v13146_v62, %v8109_v23  ;;  %v8278_v51 = vpop.f32.mrf.mxu0  ;;  %vm16904_vm5 = vmmov %vm16745_vm0 }
 0x6d5   : > { %8136 = vst.msk [vmem:[#allocation3 + $0x28] sm:$0xff] %vm16745_vm0, %v8120_v1  ;;  %v8315_v22 = vld [vmem:[#allocation3 + $0x30] sm:$0xff]  ;;  %v8068_v17 = vpop.f32.mrf.mxu1 }
 0x6d6   : > { %8342 = vst.msk [vmem:[#allocation3 + $0x8] sm:$0xff] %vm16899_vm15, %v8326_v24  ;;  %v8331_v40 = vadd.f32 %v13162_v28, %v8315_v22  ;;  %v8123_v43 = vadd.f32 %v8107_v13, %v8068_v17  ;;  %v13167_v61 = vpop.f32.mrf.mxu0  ;;  %vm16905_vm15 = vmmov %vm16745_vm0  ;;  %v8112_v1 = vld [vmem:[#allocation3 + $0x68] sm:$0xff] }
 0x6d7   : > { %8141 = vst.msk [vmem:[#allocation3 + $0x50] sm:$0xff] %vm16900_vm3, %v8125_v38  ;;  %v8313_v45 = vld [vmem:[#allocation3 + $0x20] sm:$0xff]  ;;  %v13147_v14 = vpop.f32.mrf.mxu1  ;;  %vm16906_vm3 = vmmov %vm16745_vm0 }
 0x6d8   : > { %8347 = vst.msk [vmem:[#allocation3 + $0x30] sm:$0xff] %vm16901_vm13, %v8331_v40  ;;  %v8329_v55 = vadd.f32 %v8313_v45, %v8262_v54  ;;  %v8126_v3 = vadd.f32 %v13147_v14, %v8110_v46  ;;  %v8281_v20 = vpop.f32.mrf.mxu0  ;;  %v8111_v54 = vld [vmem:[#allocation3 + $0x60] sm:$0xff]  ;;  %vm16907_vm13 = vmmov %vm16745_vm0  ;;  %v8521_v38 = vld [vmem:[#allocation3 + $0x10] sm:$0xff] }
 0x6d9   : > { %8139 = vst.msk [vmem:[#allocation3 + $0x40] sm:$0xff] %vm16902_vm6, %v8123_v43  ;;  %v8071_v2 = vpop.f32.mrf.mxu1  ;;  %vm16908_vm6 = vmmov %vm16745_vm0  ;;  %v8519_v40 = vld [vmem:[#allocation3] sm:$0xff] }
 0x6da   : > { %v8316_v25 = vld [vmem:[#allocation3 + $0x38] sm:$0xff]  ;;  %8345 = vst.msk [vmem:[#allocation3 + $0x20] sm:$0xff] %vm16903_vm8, %v8329_v55  ;;  %v8124_v52 = vadd.f32 %v8108_v15, %v8071_v2  ;;  %v13170_v42 = vpop.f32.mrf.mxu0  ;;  %vm16909_vm8 = vmmov %vm16745_vm0 }
 0x6db   : > { %v8332_v60 = vadd.f32 %v13163_v34, %v8316_v25  ;;  %8142 = vst.msk [vmem:[#allocation3 + $0x58] sm:$0xff] %vm16904_vm5, %v8126_v3  ;;  %v13150_v28 = vpop.f32.mrf.mxu1  ;;  %v8114_v34 = vld [vmem:[#allocation3 + $0x78] sm:$0xff]  ;;  %vm16910_vm5 = vmmov %vm16745_vm0 }
 0x6dc   : > { %v8314_v48 = vld [vmem:[#allocation3 + $0x28] sm:$0xff]  ;;  %8140 = vst.msk [vmem:[#allocation3 + $0x48] sm:$0xff] %vm16905_vm15, %v8124_v52  ;;  %v8129_v33 = vadd.f32 %v13150_v28, %v8113_v26  ;;  %vm16911_vm15 = vmmov %vm16745_vm0  ;;  %v8522_v55 = vld [vmem:[#allocation3 + $0x18] sm:$0xff] }
 0x6dd   : > { %8348 = vst.msk [vmem:[#allocation3 + $0x38] sm:$0xff] %vm16745_vm0, %v8332_v60  ;;  %v8330_v35 = vadd.f32 %v8314_v48, %v8265_v21  ;;  %v8084_v32 = vpop.f32.mrf.mxu1  ;;  %v8294_v21 = vpop.f32.mrf.mxu0  ;;  %v8520_v15 = vld [vmem:[#allocation3 + $0x8] sm:$0xff] }
 0x6de   : > { %v8319_v39 = vld [vmem:[#allocation3 + $0x50] sm:$0xff]  ;;  %8145 = vst.msk [vmem:[#allocation3 + $0x70] sm:$0xff] %vm16907_vm13, %v8129_v33  ;;  %v8127_v18 = vadd.f32 %v8111_v54, %v8084_v32  ;;  %vm16913_vm13 = vmmov %vm16745_vm0 }
 0x6df   : > { %8346 = vst.msk [vmem:[#allocation3 + $0x28] sm:$0xff] %vm16906_vm3, %v8330_v35  ;;  %v8335_v53 = vadd.f32 %v13166_v11, %v8319_v39  ;;  %v13151_v59 = vpop.f32.mrf.mxu1  ;;  %vm16912_vm3 = vmmov %vm16745_vm0  ;;  %v13171_v43 = vpop.f32.mrf.mxu0  ;;  %v8525_v26 = vld [vmem:[#allocation3 + $0x30] sm:$0xff] }
 0x6e0   : > { %v8317_v27 = vld [vmem:[#allocation3 + $0x40] sm:$0xff]  ;;  %8143 = vst.msk [vmem:[#allocation3 + $0x60] sm:$0xff] %vm16909_vm8, %v8127_v18  ;;  %v8130_v58 = vadd.f32 %v13151_v59, %v8114_v34  ;;  %vm16915_vm8 = vmmov %vm16745_vm0 }
 0x6e1   : > { %8351 = vst.msk [vmem:[#allocation3 + $0x50] sm:$0xff] %vm16908_vm6, %v8335_v53  ;;  %v8333_v63 = vadd.f32 %v8317_v27, %v8278_v51  ;;  %v8087_v10 = vpop.f32.mrf.mxu1  ;;  %vm16914_vm6 = vmmov %vm16745_vm0  ;;  %v8297_v60 = vpop.f32.mrf.mxu0  ;;  %v8523_v32 = vld [vmem:[#allocation3 + $0x20] sm:$0xff] }
 0x6e2   : > { %v8320_v7 = vld [vmem:[#allocation3 + $0x58] sm:$0xff]  ;;  %8146 = vst.msk [vmem:[#allocation3 + $0x78] sm:$0xff] %vm16745_vm0, %v8130_v58  ;;  %v8128_v62 = vadd.f32 %v8112_v1, %v8087_v10 }
 0x6e3   : > { %8349 = vst.msk [vmem:[#allocation3 + $0x40] sm:$0xff] %vm16910_vm5, %v8333_v63  ;;  %v8336_v6 = vadd.f32 %v13167_v61, %v8320_v7  ;;  %v8318_v23 = vld [vmem:[#allocation3 + $0x48] sm:$0xff]  ;;  %v13178_v24 = vpop.f32.mrf.mxu1  ;;  %vm16916_vm5 = vmmov %vm16745_vm0 }
 0x6e4   : > { %v8334_v11 = vadd.f32 %v8318_v23, %v8281_v20  ;;  %8144 = vst.msk [vmem:[#allocation3 + $0x68] sm:$0xff] %vm16912_vm3, %v8128_v62  ;;  %v8537_v22 = vadd.f32 %v13178_v24, %v8521_v38  ;;  %vm16918_vm3 = vmmov %vm16745_vm0  ;;  %v8526_v53 = vld [vmem:[#allocation3 + $0x38] sm:$0xff] }
 0x6e5   : > { %8352 = vst.msk [vmem:[#allocation3 + $0x58] sm:$0xff] %vm16911_vm15, %v8336_v6  ;;  %v8323_v17 = vld [vmem:[#allocation3 + $0x70] sm:$0xff]  ;;  %v8456_v13 = vpop.f32.mrf.mxu1  ;;  %vm16917_vm15 = vmmov %vm16745_vm0 }
 0x6e6   : > { %8350 = vst.msk [vmem:[#allocation3 + $0x48] sm:$0xff] %vm16913_vm13, %v8334_v11  ;;  %v8339_v51 = vadd.f32 %v13170_v42, %v8323_v17  ;;  %v8535_v45 = vadd.f32 %v8519_v40, %v8456_v13  ;;  %vm16919_vm13 = vmmov %vm16745_vm0  ;;  %v8524_v59 = vld [vmem:[#allocation3 + $0x28] sm:$0xff] }
 0x6e7   : > { %8553 = vst.msk [vmem:[#allocation3 + $0x10] sm:$0xff] %vm16914_vm6, %v8537_v22  ;;  %v8321_v14 = vld [vmem:[#allocation3 + $0x60] sm:$0xff]  ;;  %v13179_v46 = vpop.f32.mrf.mxu1  ;;  %vm16920_vm6 = vmmov %vm16745_vm0 }
 0x6e8   : > { %8355 = vst.msk [vmem:[#allocation3 + $0x70] sm:$0xff] %vm16915_vm8, %v8339_v51  ;;  %v8337_v3 = vadd.f32 %v8321_v14, %v8294_v21  ;;  %v8538_v61 = vadd.f32 %v13179_v46, %v8522_v55  ;;  %vm16921_vm8 = vmmov %vm16745_vm0  ;;  %v8529_v58 = vld [vmem:[#allocation3 + $0x50] sm:$0xff] }
 0x6e9   : > { %8551 = vst.msk [vmem:[#allocation3] sm:$0xff] %vm16916_vm5, %v8535_v45  ;;  %v8324_v25 = vld [vmem:[#allocation3 + $0x78] sm:$0xff]  ;;  %v8459_v2 = vpop.f32.mrf.mxu1  ;;  %vm16922_vm5 = vmmov %vm16745_vm0 }
 0x6ea   : > { %8353 = vst.msk [vmem:[#allocation3 + $0x60] sm:$0xff] %vm16745_vm0, %v8337_v3  ;;  %v8340_v52 = vadd.f32 %v13171_v43, %v8324_v25  ;;  %v8536_v48 = vadd.f32 %v8520_v15, %v8459_v2  ;;  %v8527_v1 = vld [vmem:[#allocation3 + $0x40] sm:$0xff] }
 0x6eb   : > { %8554 = vst.msk [vmem:[#allocation3 + $0x18] sm:$0xff] %vm16917_vm15, %v8538_v61  ;;  %v8322_v20 = vld [vmem:[#allocation3 + $0x68] sm:$0xff]  ;;  %v13182_v28 = vpop.f32.mrf.mxu1  ;;  %vm16923_vm15 = vmmov %vm16745_vm0  ;;  %v15922_v2 = vld [vmem:[#allocation14] ss:$0 sm:$0xff] }
 0x6ec   : > { %8356 = vst.msk [vmem:[#allocation3 + $0x78] sm:$0xff] %vm16918_vm3, %v8340_v52  ;;  %v8338_v35 = vadd.f32 %v8322_v20, %v8297_v60  ;;  %v8541_v33 = vadd.f32 %v13182_v28, %v8525_v26  ;;  %vm16924_vm3 = vmmov %vm16745_vm0  ;;  %v8530_v62 = vld [vmem:[#allocation3 + $0x58] sm:$0xff] }
 0x6ed   : > { %8552 = vst.msk [vmem:[#allocation3 + $0x8] sm:$0xff] %vm16919_vm13, %v8536_v48  ;;  %v8472_v39 = vpop.f32.mrf.mxu1  ;;  %vm16925_vm13 = vmmov %vm16745_vm0  ;;  %v8528_v38 = vld [vmem:[#allocation3 + $0x48] sm:$0xff] }
 0x6ee   : > { %8354 = vst.msk [vmem:[#allocation3 + $0x68] sm:$0xff] %vm16920_vm6, %v8338_v35  ;;  %v8539_v54 = vadd.f32 %v8523_v32, %v8472_v39  ;;  %vm16926_vm6 = vmmov %vm16745_vm0 }
 0x6ef   : > { %8557 = vst.msk [vmem:[#allocation3 + $0x30] sm:$0xff] %vm16921_vm8, %v8541_v33  ;;  %v13183_v42 = vpop.f32.mrf.mxu1  ;;  %v8533_v17 = vld [vmem:[#allocation3 + $0x70] sm:$0xff]  ;;  %vm16927_vm8 = vmmov %vm16745_vm0 }
 0x6f0   : > { %8555 = vst.msk [vmem:[#allocation3 + $0x20] sm:$0xff] %vm16922_vm5, %v8539_v54  ;;  %v8542_v18 = vadd.f32 %v13183_v42, %v8526_v53  ;;  %vm16928_vm5 = vmmov %vm16745_vm0 }
 0x6f1   : > { %v8475_v27 = vpop.f32.mrf.mxu1  ;;  %v8531_v43 = vld [vmem:[#allocation3 + $0x60] sm:$0xff] }
 0x6f2   : > { %8558 = vst.msk [vmem:[#allocation3 + $0x38] sm:$0xff] %vm16745_vm0, %v8542_v18  ;;  %v8540_v34 = vadd.f32 %v8524_v59, %v8475_v27 }
 0x6f3   : > { %v13186_v63 = vpop.f32.mrf.mxu1  ;;  %v8534_v14 = vld [vmem:[#allocation3 + $0x78] sm:$0xff] }
 0x6f4   : > { %8556 = vst.msk [vmem:[#allocation3 + $0x28] sm:$0xff] %vm16923_vm15, %v8540_v34  ;;  %v8545_v7 = vadd.f32 %v13186_v63, %v8529_v58  ;;  %vm16929_vm15 = vmmov %vm16745_vm0 }
 0x6f5   : > { %v8488_v10 = vpop.f32.mrf.mxu1  ;;  %v8532_v3 = vld [vmem:[#allocation3 + $0x68] sm:$0xff] }
 0x6f6   : > { %8561 = vst.msk [vmem:[#allocation3 + $0x50] sm:$0xff] %vm16924_vm3, %v8545_v7  ;;  %v8543_v21 = vadd.f32 %v8527_v1, %v8488_v10  ;;  %vm16930_vm3 = vmmov %vm16745_vm0  ;;  %v8576_v1 = vld [vmem:[#allocation3 + $0x30] sm:$0xff] }
 0x6f7   : > { %v13187_v6 = vpop.f32.mrf.mxu1 }
 0x6f8   : > { %8559 = vst.msk [vmem:[#allocation3 + $0x40] sm:$0xff] %vm16925_vm13, %v8543_v21  ;;  %v8546_v23 = vadd.f32 %v13187_v6, %v8530_v62  ;;  %vm16931_vm13 = vnez %v16696_v29 }
 0x6f9   : > { %v8491_v24 = vpop.f32.mrf.mxu1  ;;  %v8577_v58 = vld [vmem:[#allocation3 + $0x38] sm:$0xff] }
 0x6fa   : > { %8562 = vst.msk [vmem:[#allocation3 + $0x58] sm:$0xff] %vm16926_vm6, %v8546_v23  ;;  %v8544_v11 = vadd.f32 %v8528_v38, %v8491_v24  ;;  %v15981_v6 = vadd.f32 %v15922_v2, %v8577_v58  ;;  %v15989_v24 = vadd.f32 %v15922_v2, %v8576_v1  ;;  %v8574_v38 = vld [vmem:[#allocation3 + $0x20] sm:$0xff]  ;;  %vm16932_vm6 = vmmov %vm16745_vm0 }
 0x6fb   : > { %v13190_v22 = vpop.f32.mrf.mxu1  ;;  %v8575_v62 = vld [vmem:[#allocation3 + $0x28] sm:$0xff] }
 0x6fc   : > { %8560 = vst.msk [vmem:[#allocation3 + $0x48] sm:$0xff] %vm16927_vm8, %v8544_v11  ;;  %v8549_v13 = vadd.f32 %v13190_v22, %v8533_v17  ;;  %v8685_v11 = vmul.f32 %v15981_v6, %v15981_v6  ;;  %v15997_v22 = vadd.f32 %v15922_v2, %v8575_v62  ;;  %v8573_v17 = vld [vmem:[#allocation3 + $0x18] sm:$0xff]  ;;  %vm16933_vm8 = vmmov %vm16745_vm0 }
 0x6fd   : > { %v8504_v40 = vpop.f32.mrf.mxu1  ;;  %v8580_v32 = vld [vmem:[#allocation3 + $0x50] sm:$0xff] }
 0x6fe   : > { %8565 = vst.msk [vmem:[#allocation3 + $0x70] sm:$0xff] %vm16928_vm5, %v8549_v13  ;;  %v8547_v51 = vadd.f32 %v8531_v43, %v8504_v40  ;;  %v15957_v27 = vadd.f32 %v15922_v2, %v8580_v32  ;;  %v8684_v13 = vmul.f32 %v15989_v24, %v15989_v24  ;;  %v16005_v40 = vadd.f32 %v15922_v2, %v8574_v38  ;;  %v8572_v43 = vld [vmem:[#allocation3 + $0x10] sm:$0xff] }
 0x6ff   : > { %v13191_v45 = vpop.f32.mrf.mxu1  ;;  %v8578_v59 = vld [vmem:[#allocation3 + $0x40] sm:$0xff]  ;;  %vm16934_vm5 = vcmask 64512  }
 0x700   : > { %8563 = vst.msk [vmem:[#allocation3 + $0x60] sm:$0xff] %vm16745_vm0, %v8547_v51  ;;  %v8550_v46 = vadd.f32 %v13191_v45, %v8534_v14  ;;  %v8688_v7 = vmul.f32 %v15957_v27, %v15957_v27  ;;  %v15973_v10 = vadd.f32 %v15922_v2, %v8578_v59  ;;  %v8683_v51 = vmul.f32 %v15997_v22, %v15997_v22  ;;  %v8571_v14 = vld [vmem:[#allocation3 + $0x8] sm:$0xff]  ;;  %v8919_v59 = vld [vmem:[%s16647_s12] sm:$0xff]  ;;  %vm16935_vm0 = vmmov %vm16934_vm5 }
 0x701   : > { %v8507_v55 = vpop.f32.mrf.mxu1  ;;  %v8581_v35 = vld [vmem:[#allocation3 + $0x58] sm:$0xff]  ;;  %v16013_v45 = vadd.f32 %v15922_v2, %v8573_v17  ;;  %v13708_v17 = vld [vmem:[%s16644_s9 + $0x8] sm:$0xff]  }
 0x702   : > { %8566 = vst.msk [vmem:[#allocation3 + $0x78] sm:$0xff] %vm16929_vm15, %v8550_v46  ;;  %v8548_v61 = vadd.f32 %v8532_v3, %v8507_v55  ;;  %v15949_v42 = vadd.f32 %v15922_v2, %v8581_v35  ;;  %v8686_v23 = vmul.f32 %v15973_v10, %v15973_v10  ;;  %v8682_v46 = vmul.f32 %v16005_v40, %v16005_v40  ;;  %v8570_v3 = vld [vmem:[#allocation3] sm:$0xff]  ;;  %v8766_v35 = vld [vmem:[%s16646_s11 + $0x10] sm:$0xff]  ;;  %vm16937_vm15 = vmmov %vm16930_vm3 }
 0x703   : > { %v8579_v53 = vld [vmem:[#allocation3 + $0x48] sm:$0xff]  ;;  %v16021_v55 = vadd.f32 %v15922_v2, %v8572_v43  ;;  %v13710_v43 = vld [vmem:[%s16644_s9] sm:$0xff]  }
 0x704   : > { %8564 = vst.msk [vmem:[#allocation3 + $0x68] sm:$0xff] %vm16930_vm3, %v8548_v61  ;;  %v8689_v34 = vmul.f32 %v15949_v42, %v15949_v42  ;;  %v15965_v63 = vadd.f32 %v15922_v2, %v8579_v53  ;;  %v8681_v61 = vmul.f32 %v16013_v45, %v16013_v45 }
 0x705   : > { %v8584_v25 = vld [vmem:[#allocation3 + $0x70] sm:$0xff] }
 0x706   : > { %v15928_v52 = vadd.f32 %v15922_v2, %v8584_v25  ;;  %v8687_v21 = vmul.f32 %v15965_v63, %v15965_v63  ;;  %v16029_v25 = vadd.f32 %v15922_v2, %v8571_v14  ;;  %v9161_v14 = vld [vmem:[#allocation2 + $0x27] sm:$0xff] }
 0x707   : > { %v8582_v20 = vld [vmem:[#allocation3 + $0x60] sm:$0xff] }
 0x708   : > { %v8692_v33 = vmul.f32 %v15928_v52, %v15928_v52  ;;  %v15941_v39 = vadd.f32 %v15922_v2, %v8582_v20  ;;  %v8679_v20 = vmul.f32 %v16029_v25, %v16029_v25 }
 0x709   : > { %v8585_v15 = vld [vmem:[#allocation3 + $0x78] sm:$0xff] }
 0x70a   : > { %v15925_v60 = vadd.f32 %v15922_v2, %v8585_v15  ;;  %v8690_v18 = vmul.f32 %v15941_v39, %v15941_v39  ;;  %v8680_v15 = vmul.f32 %v16021_v55, %v16021_v55 }
 0x70b   : > { %v8583_v48 = vld [vmem:[#allocation3 + $0x68] sm:$0xff] }
 0x70c   : > { %13193 = vmatpush3.msra.mxu0 %v15925_v60  ;;  %v8693_v28 = vmul.f32 %v15925_v60, %v15925_v60  ;;  %v15934_v26 = vadd.f32 %v15922_v2, %v8583_v48  ;;  %v16037_v48 = vadd.f32 %v15922_v2, %v8570_v3  ;;  %v9338_v3 = vld [vmem:[#allocation2 + $0x20] sm:$0xff] }
 0x70d   : > { %13194 = vmatprep.subr.mxu0 %v14038_v0 }
 0x70e   : > { %13195 = vmatpush3.msra.mxu0 %v15928_v52  ;;  %13228 = vmatpush3.msra.mxu1 %v8693_v28  ;;  %v8691_v54 = vmul.f32 %v15934_v26, %v15934_v26  ;;  %v8678_v2 = vmul.f32 %v16037_v48, %v16037_v48  ;;  %v8767_v28 = vld [vmem:[%s16646_s11 + $0x18] sm:$0xff] }
 0x70f   : > { %13196 = vmatprep.subr.mxu0 %v14038_v0  ;;  %13229 = vmatprep.subr.mxu1 %v14038_v0 }
 0x710   : > { %13197 = vmatpush3.msra.mxu0 %v15934_v26  ;;  %13230 = vmatpush3.msra.mxu1 %v8692_v33  ;;  %v8765_v33 = vld [vmem:[%s16646_s11 + $0x8] sm:$0xff] }
 0x711   : > { %13198 = vmatprep.subr.mxu0 %v14038_v0  ;;  %13231 = vmatprep.subr.mxu1 %v14038_v0 }
 0x712   : > { %13199 = vmatpush3.msra.mxu0 %v15941_v39  ;;  %13232 = vmatpush3.msra.mxu1 %v8691_v54 }
 0x713   : > { %13200 = vmatprep.subr.mxu0 %v14038_v0  ;;  %13233 = vmatprep.subr.mxu1 %v14038_v0 }
 0x714   : > { %13201 = vmatpush3.msra.mxu0 %v15949_v42  ;;  %13234 = vmatpush3.msra.mxu1 %v8690_v18 }
 0x715   : > { %13202 = vmatprep.subr.mxu0 %v14038_v0  ;;  %13235 = vmatprep.subr.mxu1 %v14038_v0 }
 0x716   : > { %13203 = vmatpush3.msra.mxu0 %v15957_v27  ;;  %13236 = vmatpush3.msra.mxu1 %v8689_v34 }
 0x717   : > { %13204 = vmatprep.subr.mxu0 %v14038_v0  ;;  %13237 = vmatprep.subr.mxu1 %v14038_v0 }
 0x718   : > { %13205 = vmatpush3.msra.mxu0 %v15965_v63  ;;  %13238 = vmatpush3.msra.mxu1 %v8688_v7 }
 0x719   : > { %13206 = vmatprep.subr.mxu0 %v14038_v0  ;;  %13239 = vmatprep.subr.mxu1 %v14038_v0 }
 0x71a   : > { %13207 = vmatpush3.msra.mxu0 %v15973_v10  ;;  %13240 = vmatpush3.msra.mxu1 %v8687_v21 }
 0x71b   : > { %13208 = vmatprep.subr.mxu0 %v14038_v0  ;;  %13241 = vmatprep.subr.mxu1 %v14038_v0 }
 0x71c   : > { %13209 = vmatpush3.msra.mxu0 %v15981_v6  ;;  %13242 = vmatpush3.msra.mxu1 %v8686_v23 }
 0x71d   : > { %13210 = vmatprep.subr.mxu0 %v14038_v0  ;;  %13243 = vmatprep.subr.mxu1 %v14038_v0 }
 0x71e   : > { %13211 = vmatpush3.msra.mxu0 %v15989_v24  ;;  %13244 = vmatpush3.msra.mxu1 %v8685_v11 }
 0x71f   : > { %13212 = vmatprep.subr.mxu0 %v14038_v0  ;;  %13245 = vmatprep.subr.mxu1 %v14038_v0 }
 0x720   : > { %13213 = vmatpush3.msra.mxu0 %v15997_v22  ;;  %13246 = vmatpush3.msra.mxu1 %v8684_v13  ;;  %v13709_v13 = vld [vmem:[%s16644_s9 + $0x18] sm:$0xff]  }
 0x721   : > { %13214 = vmatprep.subr.mxu0 %v14038_v0  ;;  %13247 = vmatprep.subr.mxu1 %v14038_v0 }
 0x722   : > { %13215 = vmatpush3.msra.mxu0 %v16005_v40  ;;  %13248 = vmatpush3.msra.mxu1 %v8683_v51  ;;  %v9160_v51 = vld [vmem:[#allocation2 + $0x1f] sm:$0xff] }
 0x723   : > { %13216 = vmatprep.subr.mxu0 %v14038_v0  ;;  %13249 = vmatprep.subr.mxu1 %v14038_v0 }
 0x724   : > { %13217 = vmatpush3.msra.mxu0 %v16013_v45  ;;  %13250 = vmatpush3.msra.mxu1 %v8682_v46  ;;  %v9176_v46 = vpack.c.bf16 %v9161_v14, %v9160_v51 }
 0x725   : > { %13218 = vmatprep.subr.mxu0 %v14038_v0  ;;  %13251 = vmatprep.subr.mxu1 %v14038_v0 }
 0x726   : > { %13219 = vmatpush3.msra.mxu0 %v16021_v55  ;;  %13252 = vmatpush3.msra.mxu1 %v8681_v61  ;;  %v9339_v61 = vld [vmem:[#allocation2 + $0x28] sm:$0xff] }
 0x727   : > { %13220 = vmatprep.subr.mxu0 %v14038_v0  ;;  %13253 = vmatprep.subr.mxu1 %v14038_v0 }
 0x728   : > { %13221 = vmatpush3.msra.mxu0 %v16029_v25  ;;  %13254 = vmatpush3.msra.mxu1 %v8680_v15  ;;  %v9354_v15 = vpack.c.bf16 %v9339_v61, %v9338_v3 }
 0x729   : > { %13222 = vmatprep.subr.mxu0 %v14038_v0  ;;  %13255 = vmatprep.subr.mxu1 %v14038_v0 }
 0x72a   : > { %13223 = vmatpush3.msra.mxu0 %v16037_v48  ;;  %13256 = vmatpush3.msra.mxu1 %v8679_v20  ;;  %v16110_v20 = vld [vmem:[%s16644_s9 + $0x28] sm:$0xff]  }
 0x72b   : > { %13225 = vmatmul.mubr.msk.f32.vlgmr.msra.gmra.mxu0 %vm16931_vm13, %v14040_v5  ;;  %13257 = vmatprep.subr.mxu1 %v14038_v0 }
 0x72c   : > { %13258 = vmatpush3.msra.mxu1 %v8678_v2  ;;  %13273 = vmatprep.subr.mxu0 %v14038_v0  ;;  %v16116_v2 = vld [vmem:[%s16644_s9 + $0x38] sm:$0xff]  }
 0x72d   : > { %13260 = vmatmul.mubr.msk.f32.vlgmr.msra.gmra.mxu1 %vm16931_vm13, %v14040_v5  ;;  %13262 = vmatprep.subr.mxu1 %v14038_v0  ;;  %v8764_v5 = vld [vmem:[%s16646_s11] sm:$0xff] }
 0x72e   : > { %13263 = vmatpush3.msra.mxu1 %v8767_v28  ;;  %13274 = vmatpush3.msra.mxu0 %v8767_v28 }
 0x72f   : > { %13264 = vmatprep.subr.mxu1 %v14038_v0  ;;  %13275 = vmatprep.subr.mxu0 %v14038_v0 }
 0x730   : > { %13265 = vmatpush3.msra.mxu1 %v8766_v35  ;;  %13276 = vmatpush3.msra.mxu0 %v8766_v35 }
 0x731   : > { %13266 = vmatprep.subr.mxu1 %v14038_v0  ;;  %13277 = vmatprep.subr.mxu0 %v14038_v0 }
 0x732   : > { %13267 = vmatpush3.msra.mxu1 %v8765_v33  ;;  %13270 = vmatprep.mubr.msk.f32.mxu1 %vm16801_vm7, %v14038_v0 }
 0x733   : > { %13268 = vmatprep.subr.mxu1 %v14038_v0  ;;  %13278 = vmatpush3.msra.mxu0 %v8765_v33 }
 0x734   : > { %13279 = vmatprep.subr.mxu0 %v14038_v0  ;;  %13281 = vmatprep.mubr.msk.f32.mxu0 %vm16801_vm7, %v14038_v0 }
 0x735   : > { %13269 = vmatpush3.msra.mxu1 %v8764_v5  ;;  %13280 = vmatpush3.msra.mxu0 %v8764_v5 }
 0x736   : > { %13284 = vmatprep.subr.mxu0 %v14038_v0  ;;  %13314 = vmatprep.subr.bf16.mxu1 %v13709_v13 }
 0x7eb   : > { %v8674_v32 = vpop.f32.mrf.mxu0 }
 0x7ec   : > { %13271 = vmatmul.mubr.msk.f32.vlgmr.msra.gmra.mxu1 %vm16932_vm6, %v8674_v32  ;;  %vm16939_vm6 = vnez %v16702_v36 }
 0x7ed   : > { %v13226_v54 = vpop.f32.mrf.mxu0  ;;  %v8760_v53 = vpop.f32.mrf.mxu1  ;;  %13315 = vmatpush3.bf16.msra.mxu1 %v13709_v13  ;;  %13318 = vmatprep.mubr.msk.bf16.mxu1 %vm16937_vm15, %v9354_v15 }
 0x7ee   : > { %13282 = vmatmul.mubr.msk.f32.vlgmr.msra.gmra.mxu0 %vm16933_vm8, %v8760_v53  ;;  %v8568_v54 = vld [vmem:[#allocation16] sm:$0x1]  ;;  %vm16940_vm8 = vnez %v16700_v30 }
 0x7ef   : > { %v13261_v18 = vpop.f32.mrf.mxu1  ;;  %13286 = vmatprep.mubr.msk.f32.mxu0 %vm16801_vm7, %v14038_v0  ;;  %13285 = vmatpush3.msra.mxu0 %v8919_v59 }
 0x7f0   : > { %13289 = vmatprep.subr.mxu0 %v14038_v0 }
 0x8ac   : > { %v8837_v34 = vpop.f32.mrf.mxu1 }
 0x8ad   : > { %v8841_v58 = vmul.f32 0.00390625, %v8837_v34 }
 0x8ae   : > { %v13272_v7 = vpop.f32.mrf.mxu1  ;;  %v8911_v1 = vpop.f32.mrf.mxu0 }
 0x8af   : > { %v8916_v21 = vmul.f32 %v8841_v58, %v8841_v58  ;;  %v8915_v62 = vmul.f32 0.00390625, %v8911_v1  ;;  %13287 = vmatmul.mubr.msk.f32.vlgmr.msra.gmra.mxu0 %vm16934_vm5, %v8841_v58  ;;  %vm16941_vm5 = vnez %v16712_v56 }
 0x8b0   : > { %v13283_v23 = vpop.f32.mrf.mxu0  ;;  %13290 = vmatpush3.msra.mxu0 %v8919_v59  ;;  %13291 = vmatprep.mubr.msk.f32.mxu0 %vm16801_vm7, %v14038_v0  ;;  %v13711_v0 = vld [vmem:[%s16644_s9 + $0x10] sm:$0xff]   ;;  %vm16936_vm7 = vmmov %vm16930_vm3  ;;  %v8569_v59 = vld [vmem:[#allocation17] sm:$0x1]  ;;  %vm16938_vm3 = vnez %v16698_v16 }
 0x8b1   : > { %v8917_v38 = vsub.f32 %v8915_v62, %v8916_v21  ;;  %13294 = vmatprep.subr.bf16.mxu0 %v13708_v17  ;;  %13316 = vmatprep.subr.bf16.mxu1 %v13711_v0 }
 0x8b2   : > { %13317 = vmatpush3.bf16.msra.mxu1 %v13711_v0 }
 0x8b3   : > { %v8918_v11 = vmax.f32 %v8917_v38, 0.0  ;;  %13354 = vmatprep.subr.bf16.mxu1 %v16116_v2 }
 0x8b5   : > { %13292 = vmatmul.mubr.msk.f32.vlgmr.msra.gmra.mxu0 %vm16935_vm0, %v8918_v11  ;;  %vm16942_vm0 = vmmov %vm16936_vm7 }
 0x8b6   : > { %13295 = vmatpush3.bf16.msra.mxu0 %v13708_v17  ;;  %13298 = vmatprep.mubr.msk.bf16.mxu0 %vm16936_vm7, %v9176_v46  ;;  %vm16943_vm7 = vmmov %vm16942_vm0 }
 0x8b7   : > { %13296 = vmatprep.subr.bf16.mxu0 %v13710_v43  ;;  %vm16944_vm15 = vmmov %vm16942_vm0 }
 0x8ba   : > { %13297 = vmatpush3.bf16.msra.mxu0 %v13710_v43 }
 0x8bb   : > { %13334 = vmatprep.subr.bf16.mxu0 %v16110_v20 }
 0x96f   : > { %v8989_v28 = vpop.f32.mrf.mxu0 }
 0x971   : > { %v13288_v35 = vpop.f32.mrf.mxu0 }
 0x975   : > { %v9062_v33 = vpop.f32.mrf.mxu0 }
 0x976   : > { %v9063_v5 = vadd.f32 1e-05, %v9062_v33 }
 0x977   : > { %v13293_v32 = vpop.f32.mrf.mxu0 }
 0x978   : > { %13728 = vrsqrt.f32 %v9063_v5 }
 0x985   : > { %v13729_v53 = vpop.eup %13728 }
 0x986   : > { %v9067_v18 = vmul.f32 %v13729_v53, %v8568_v54 }
 0x988   : > { %v9068_v34 = vmul.f32 %v9067_v18, %v8989_v28  ;;  %v9073_v58 = vrot.slane %v9067_v18, %v15462_v49 }
 0x98a   : > { %v9069_v7 = vsub.f32 %v8569_v59, %v9068_v34  ;;  %v9074_v1 = vmul.f32 %v9073_v58, %v16037_v48  ;;  %v9075_v21 = vmul.f32 %v9073_v58, %v16029_v25  ;;  %v9076_v62 = vmul.f32 %v9073_v58, %v16021_v55 }
 0x98b   : > { %v9077_v23 = vmul.f32 %v9073_v58, %v16013_v45  ;;  %v9078_v38 = vmul.f32 %v9073_v58, %v16005_v40  ;;  %v9079_v11 = vmul.f32 %v9073_v58, %v15997_v22  ;;  %v9080_v17 = vmul.f32 %v9073_v58, %v15989_v24 }
 0x98c   : > { %v9081_v13 = vmul.f32 %v9073_v58, %v15981_v6  ;;  %v9082_v43 = vmul.f32 %v9073_v58, %v15973_v10  ;;  %v9083_v0 = vmul.f32 %v9073_v58, %v15965_v63  ;;  %v9084_v48 = vmul.f32 %v9073_v58, %v15957_v27 }
 0x98d   : > { %v9085_v25 = vmul.f32 %v9073_v58, %v15949_v42  ;;  %v9094_v55 = vrot.slane %v9069_v7, %v15462_v49  ;;  %v9086_v45 = vmul.f32 %v9073_v58, %v15941_v39  ;;  %v9087_v40 = vmul.f32 %v9073_v58, %v15934_v26 }
 0x98e   : > { %v9088_v22 = vmul.f32 %v9073_v58, %v15928_v52  ;;  %v9089_v24 = vmul.f32 %v9073_v58, %v15925_v60 }
 0x98f   : > { %v9096_v51 = vadd.f32 %v9094_v55, %v9074_v1  ;;  %v9097_v6 = vadd.f32 %v9094_v55, %v9075_v21  ;;  %v9098_v14 = vadd.f32 %v9094_v55, %v9076_v62  ;;  %v9099_v10 = vadd.f32 %v9094_v55, %v9077_v23 }
 0x990   : > { %v9100_v46 = vadd.f32 %v9094_v55, %v9078_v38  ;;  %v9101_v63 = vadd.f32 %v9094_v55, %v9079_v11  ;;  %v9102_v3 = vadd.f32 %v9094_v55, %v9080_v17  ;;  %v9103_v27 = vadd.f32 %v9094_v55, %v9081_v13 }
 0x991   : > { %v9104_v61 = vadd.f32 %v9094_v55, %v9082_v43  ;;  %v9105_v42 = vadd.f32 %v9094_v55, %v9083_v0  ;;  %v9106_v15 = vadd.f32 %v9094_v55, %v9084_v48  ;;  %v9107_v49 = vadd.f32 %v9094_v55, %v9085_v25 }
 0x992   : > { %v9108_v28 = vadd.f32 %v9094_v55, %v9086_v45  ;;  %v9109_v39 = vadd.f32 %v9094_v55, %v9087_v40  ;;  %v9110_v35 = vadd.f32 %v9094_v55, %v9088_v22  ;;  %v9111_v26 = vadd.f32 %v9094_v55, %v9089_v24  ;;  %v13713_v22 = vld [vmem:[%s16644_s9 + $0x20] sm:$0xff]  }
 0x993   : > { %v9112_v33 = vmax.f32 %v9096_v51, 0.0  ;;  %v9113_v52 = vmax.f32 %v9097_v6, 0.0  ;;  %v9114_v5 = vmax.f32 %v9098_v14, 0.0  ;;  %v9115_v60 = vmax.f32 %v9099_v10, 0.0  ;;  %v13715_v51 = vld [vmem:[%s16644_s9 + $0x30] sm:$0xff]   ;;  %v16211_v6 = vld [vmem:[%s16644_s9 + $0x48] sm:$0xff]  }
 0x994   : > { %v9116_v32 = vmax.f32 %v9100_v46, 0.0  ;;  %v9117_v54 = vmax.f32 %v9101_v63, 0.0  ;;  %v9118_v53 = vmax.f32 %v9102_v3, 0.0  ;;  %v9119_v18 = vmax.f32 %v9103_v27, 0.0  ;;  %v16216_v14 = vld [vmem:[%s16644_s9 + $0x58] sm:$0xff]  }
 0x995   : > { %v9120_v59 = vmax.f32 %v9104_v61, 0.0  ;;  %v9121_v34 = vmax.f32 %v9105_v42, 0.0  ;;  %v9122_v58 = vmax.f32 %v9106_v15, 0.0  ;;  %v9123_v7 = vmax.f32 %v9107_v49, 0.0 }
 0x996   : > { %v9124_v1 = vmax.f32 %v9108_v28, 0.0  ;;  %v9125_v21 = vmax.f32 %v9109_v39, 0.0  ;;  %v9126_v62 = vmax.f32 %v9110_v35, 0.0  ;;  %v9127_v23 = vmax.f32 %v9111_v26, 0.0 }
 0x997   : > { %v9128_v38 = vsel %vm16938_vm3, %v9112_v33, 0.0  ;;  %v9129_v11 = vsel %vm16939_vm6, %v9113_v52, 0.0  ;;  %v9130_v17 = vsel %vm16940_vm8, %v9114_v5, 0.0  ;;  %v9131_v13 = vsel %vm15482_vm9, %v9115_v60, 0.0  ;;  %vm16945_vm3 = vmmov %vm16942_vm0 }
 0x998   : > { %v9132_v43 = vsel %vm15490_vm10, %v9116_v32, 0.0  ;;  %v9133_v0 = vsel %vm15498_vm12, %v9117_v54, 0.0  ;;  %v9134_v48 = vsel %vm15494_vm11, %v9118_v53, 0.0  ;;  %v9135_v16 = vsel %vm16941_vm5, %v9119_v18, 0.0  ;;  %9144 = vst.msk [vmem:[#allocation2 + $0x30] sm:$0xff] %vm16942_vm0, %v9128_v38  ;;  %vm16948_vm11 = vmmov %vm16942_vm0 }
 0x999   : > { %9145 = vst.msk [vmem:[#allocation2 + $0x38] sm:$0xff] %vm16943_vm7, %v9129_v11  ;;  %v9136_v30 = vsel %vm15510_vm14, %v9120_v59, 0.0  ;;  %v9137_v36 = vsel %vm15518_vm2, %v9121_v34, 0.0  ;;  %vm16946_vm9 = vnez %v16716_v31  ;;  %vm16947_vm10 = vnez %v16720_v19  ;;  %vm16949_vm12 = vmmov %vm16942_vm0 }
 0x99a   : > { %9146 = vst.msk [vmem:[#allocation2 + $0x40] sm:$0xff] %vm16944_vm15, %v9130_v17  ;;  %v9138_v9 = vsel %vm16946_vm9, %v9122_v58, 0.0  ;;  %v9139_v37 = vsel %vm16947_vm10, %v9123_v7, 0.0  ;;  %vm16950_vm6 = vmmov %vm16942_vm0  ;;  %vm16952_vm5 = vnez %v16722_v57  ;;  %vm16953_vm14 = vnez %v16726_v8  ;;  %v9548_v7 = vld [vmem:[#allocation2 + $0x21] sm:$0xff] }
 0x99b   : > { %9147 = vst.msk [vmem:[#allocation2 + $0x48] sm:$0xff] %vm16945_vm3, %v9131_v13  ;;  %vm16951_vm8 = vmmov %vm16942_vm0  ;;  %v9140_v41 = vsel %vm16952_vm5, %v9124_v1, 0.0  ;;  %v9141_v44 = vsel %vm16953_vm14, %v9125_v21, 0.0  ;;  %v9142_v56 = vsel %vm15534_vm1, %v9126_v62, 0.0  ;;  %v9143_v47 = vsel %vm16737_vm4, %v9127_v23, 0.0 }
 0x99c   : > { %9148 = vst.msk [vmem:[#allocation2 + $0x50] sm:$0xff] %vm16948_vm11, %v9132_v43  ;;  %vm16954_vm2 = vmmov %vm16942_vm0 }
 0x99d   : > { %9149 = vst.msk [vmem:[#allocation2 + $0x58] sm:$0xff] %vm16949_vm12, %v9133_v0  ;;  %vm16955_vm7 = vmmov %vm16942_vm0 }
 0x99e   : > { %9150 = vst.msk [vmem:[#allocation2 + $0x60] sm:$0xff] %vm16950_vm6, %v9134_v48  ;;  %vm16956_vm15 = vmmov %vm16942_vm0 }
 0x99f   : > { %9151 = vst.msk [vmem:[#allocation2 + $0x68] sm:$0xff] %vm16951_vm8, %v9135_v16  ;;  %vm16957_vm3 = vmmov %vm16942_vm0  ;;  %v9162_v31 = vld [vmem:[#allocation2 + $0x2f] sm:$0xff] }
 0x9a0   : > { %9152 = vst.msk [vmem:[#allocation2 + $0x70] sm:$0xff] %vm16954_vm2, %v9136_v30  ;;  %vm16958_vm9 = vmmov %vm16942_vm0  ;;  %v9163_v50 = vld [vmem:[#allocation2 + $0x37] sm:$0xff]  ;;  %v9549_v62 = vld [vmem:[#allocation2 + $0x29] sm:$0xff] }
 0x9a1   : > { %9153 = vst.msk [vmem:[#allocation2 + $0x78] sm:$0xff] %vm16942_vm0, %v9137_v36  ;;  %vm16959_vm10 = vmmov %vm16942_vm0  ;;  %v9340_v19 = vld [vmem:[#allocation2 + $0x30] sm:$0xff]  ;;  %v16185_v57 = vpack.c.bf16 %v9163_v50, %v9162_v31  ;;  %v9341_v12 = vld [vmem:[#allocation2 + $0x38] sm:$0xff]  ;;  %v9564_v11 = vpack.c.bf16 %v9549_v62, %v9548_v7 }
 0x9a2   : > { %9154 = vst.msk [vmem:[#allocation2 + $0x80] sm:$0xff] %vm16955_vm7, %v9138_v9  ;;  %vm16960_vm11 = vmmov %vm16942_vm0  ;;  %v9164_v8 = vld [vmem:[#allocation2 + $0x3f] sm:$0xff]  ;;  %v9165_v4 = vld [vmem:[#allocation2 + $0x47] sm:$0xff]  ;;  %v16187_v25 = vpack.c.bf16 %v9341_v12, %v9340_v19 }
 0x9a3   : > { %9155 = vst.msk [vmem:[#allocation2 + $0x88] sm:$0xff] %vm16956_vm15, %v9139_v37  ;;  %v16189_v55 = vpack.c.bf16 %v9165_v4, %v9164_v8  ;;  %v9342_v45 = vld [vmem:[#allocation2 + $0x40] sm:$0xff]  ;;  %v9343_v40 = vld [vmem:[#allocation2 + $0x48] sm:$0xff]  ;;  %vm16961_vm1 = vmmov %vm16942_vm0 }
 0x9a4   : > { %9156 = vst.msk [vmem:[#allocation2 + $0x90] sm:$0xff] %vm16957_vm3, %v9140_v41  ;;  %13299 = vmatmul.mubr.msk.bf16.vlgmr.msra.gmra.mxu0 %vm16961_vm1, %v16185_v57  ;;  %v16196_v24 = vpack.c.bf16 %v9343_v40, %v9342_v45  ;;  %vm16962_vm4 = vmmov %vm16942_vm0  ;;  %v9166_v10 = vld [vmem:[#allocation2 + $0x4f] sm:$0xff]  ;;  %v9167_v46 = vld [vmem:[#allocation2 + $0x57] sm:$0xff] }
 0x9a5   : > { %9157 = vst.msk [vmem:[#allocation2 + $0x98] sm:$0xff] %vm16958_vm9, %v9141_v44  ;;  %13319 = vmatmul.mubr.msk.bf16.vlgmr.msra.gmra.mxu1 %vm16962_vm4, %v16187_v25  ;;  %vm16963_vm12 = vmmov %vm16942_vm0  ;;  %13335 = vmatpush3.bf16.msra.mxu0 %v16110_v20  ;;  %v9344_v63 = vld [vmem:[#allocation2 + $0x50] sm:$0xff]  ;;  %v9345_v3 = vld [vmem:[#allocation2 + $0x58] sm:$0xff]  ;;  %v16219_v15 = vpack.c.bf16 %v9167_v46, %v9166_v10 }
 0x9a6   : > { %9158 = vst.msk [vmem:[#allocation2 + $0xa0] sm:$0xff] %vm16959_vm10, %v9142_v56  ;;  %13302 = vmatprep.mubr.msk.bf16.mxu0 %vm16963_vm12, %v16189_v55  ;;  %vm16964_vm6 = vmmov %vm16942_vm0  ;;  %13336 = vmatprep.subr.bf16.mxu0 %v13713_v22  ;;  %v9168_v27 = vld [vmem:[#allocation2 + $0x5f] sm:$0xff]  ;;  %v9169_v61 = vld [vmem:[#allocation2 + $0x67] sm:$0xff]  ;;  %v16221_v49 = vpack.c.bf16 %v9345_v3, %v9344_v63 }
 0x9a7   : > { %9159 = vst.msk [vmem:[#allocation2 + $0xa8] sm:$0xff] %vm16960_vm11, %v9143_v47  ;;  %13322 = vmatprep.mubr.msk.bf16.mxu1 %vm16964_vm6, %v16196_v24  ;;  %13355 = vmatpush3.bf16.msra.mxu1 %v16116_v2  ;;  %v9346_v20 = vld [vmem:[#allocation2 + $0x60] sm:$0xff]  ;;  %v9347_v42 = vld [vmem:[#allocation2 + $0x68] sm:$0xff]  ;;  %v16223_v28 = vpack.c.bf16 %v9169_v61, %v9168_v27  ;;  %vm16965_vm8 = vmmov %vm16942_vm0 }
 0x9a8   : > { %13356 = vmatprep.subr.bf16.mxu1 %v13715_v51  ;;  %v16228_v2 = vpack.c.bf16 %v9347_v42, %v9346_v20  ;;  %vm16966_vm5 = vmmov %vm16942_vm0  ;;  %v9170_v39 = vld [vmem:[#allocation2 + $0x6f] sm:$0xff]  ;;  %v9171_v35 = vld [vmem:[#allocation2 + $0x77] sm:$0xff] }
 0x9a9   : > { %13337 = vmatpush3.bf16.msra.mxu0 %v13713_v22  ;;  %vm16967_vm14 = vmmov %vm16942_vm0  ;;  %v9348_v26 = vld [vmem:[#allocation2 + $0x70] sm:$0xff]  ;;  %v9349_v33 = vld [vmem:[#allocation2 + $0x78] sm:$0xff]  ;;  %v16237_v54 = vpack.c.bf16 %v9171_v35, %v9170_v39 }
 0x9aa   : > { %13374 = vmatprep.subr.bf16.mxu0 %v16211_v6  ;;  %vm16968_vm2 = vmmov %vm16942_vm0  ;;  %v9172_v52 = vld [vmem:[#allocation2 + $0x7f] sm:$0xff]  ;;  %v9173_v5 = vld [vmem:[#allocation2 + $0x87] sm:$0xff]  ;;  %v16239_v53 = vpack.c.bf16 %v9349_v33, %v9348_v26 }
 0x9ab   : > { %13357 = vmatpush3.bf16.msra.mxu1 %v13715_v51  ;;  %v9350_v60 = vld [vmem:[#allocation2 + $0x80] sm:$0xff]  ;;  %v9351_v32 = vld [vmem:[#allocation2 + $0x88] sm:$0xff]  ;;  %v16241_v18 = vpack.c.bf16 %v9173_v5, %v9172_v52  ;;  %vm16969_vm7 = vmmov %vm16942_vm0 }
 0x9ac   : > { %13303 = vmatmul.mubr.msk.bf16.gmra.mxu0 %vm16965_vm8, %v16219_v15  ;;  %13394 = vmatprep.subr.bf16.mxu1 %v16216_v14  ;;  %v16245_v59 = vpack.c.bf16 %v9351_v32, %v9350_v60  ;;  %vm16970_vm15 = vmmov %vm16942_vm0  ;;  %v9174_v34 = vld [vmem:[#allocation2 + $0x8f] sm:$0xff]  ;;  %v9175_v58 = vld [vmem:[#allocation2 + $0x97] sm:$0xff] }
 0x9ad   : > { %13323 = vmatmul.mubr.msk.bf16.gmra.mxu1 %vm16966_vm5, %v16221_v49  ;;  %13306 = vmatprep.mubr.msk.bf16.mxu0 %vm16967_vm14, %v16223_v28  ;;  %vm16971_vm3 = vmmov %vm16942_vm0  ;;  %v9352_v1 = vld [vmem:[#allocation2 + $0x90] sm:$0xff]  ;;  %v9353_v21 = vld [vmem:[#allocation2 + $0x98] sm:$0xff]  ;;  %v16253_v23 = vpack.c.bf16 %v9175_v58, %v9174_v34 }
 0x9ae   : > { %13326 = vmatprep.mubr.msk.bf16.mxu1 %vm16968_vm2, %v16228_v2  ;;  %v16255_v38 = vpack.c.bf16 %v9353_v21, %v9352_v1  ;;  %vm16972_vm9 = vmmov %vm16942_vm0  ;;  %v9550_v17 = vld [vmem:[#allocation2 + $0x31] sm:$0xff]  ;;  %v9551_v13 = vld [vmem:[#allocation2 + $0x39] sm:$0xff] }
 0x9af   : > { %vm16973_vm10 = vmmov %vm16942_vm0  ;;  %v9552_v43 = vld [vmem:[#allocation2 + $0x41] sm:$0xff]  ;;  %v9553_v0 = vld [vmem:[#allocation2 + $0x49] sm:$0xff]  ;;  %v9565_v48 = vpack.c.bf16 %v9551_v13, %v9550_v17 }
 0x9b0   : > { %vm16974_vm11 = vmmov %vm16942_vm0  ;;  %v16264_v16 = vpack.c.bf16 %v9553_v0, %v9552_v43  ;;  %v13717_v30 = vld [vmem:[%s16644_s9 + $0x40] sm:$0xff]   ;;  %v13719_v36 = vld [vmem:[%s16644_s9 + $0x50] sm:$0xff]  }
 0x9b1   : > { %vm16975_vm1 = vmmov %vm16942_vm0  ;;  %v9554_v9 = vld [vmem:[#allocation2 + $0x51] sm:$0xff]  ;;  %v9555_v37 = vld [vmem:[#allocation2 + $0x59] sm:$0xff] }
 0x9b2   : > { %vm16976_vm4 = vmmov %vm16942_vm0  ;;  %v13720_v41 = vld [vmem:[%s16644_s9 + $0x68] sm:$0xff]   ;;  %v13722_v47 = vld [vmem:[%s16644_s9 + $0x78] sm:$0xff]   ;;  %v16287_v31 = vpack.c.bf16 %v9555_v37, %v9554_v9 }
 0x9b3   : > { %vm16977_vm12 = vmmov %vm16942_vm0  ;;  %v9556_v44 = vld [vmem:[#allocation2 + $0x61] sm:$0xff]  ;;  %v9557_v56 = vld [vmem:[#allocation2 + $0x69] sm:$0xff] }
 0x9b4   : > { %13307 = vmatmul.mubr.msk.bf16.gmra.mxu0 %vm16942_vm0, %v16237_v54  ;;  %vm16978_vm6 = vmmov %vm16942_vm0  ;;  %v16289_v50 = vpack.c.bf16 %v9557_v56, %v9556_v44  ;;  %v9558_v19 = vld [vmem:[#allocation2 + $0x71] sm:$0xff]  ;;  %v9560_v12 = vld [vmem:[#allocation2 + $0x81] sm:$0xff] }
 0x9b5   : > { %13327 = vmatmul.mubr.msk.bf16.gmra.mxu1 %vm16969_vm7, %v16239_v53  ;;  %13310 = vmatprep.mubr.msk.bf16.mxu0 %vm16970_vm15, %v16241_v18  ;;  %vm16979_vm8 = vmmov %vm16942_vm0  ;;  %v9561_v8 = vld [vmem:[#allocation2 + $0x89] sm:$0xff]  ;;  %v9562_v40 = vld [vmem:[#allocation2 + $0x91] sm:$0xff] }
 0x9b6   : > { %13330 = vmatprep.mubr.msk.bf16.mxu1 %vm16971_vm3, %v16245_v59  ;;  %vm16980_vm5 = vmmov %vm16942_vm0  ;;  %v16301_v45 = vpack.c.bf16 %v9561_v8, %v9560_v12  ;;  %v9563_v22 = vld [vmem:[#allocation2 + $0x99] sm:$0xff]  ;;  %v13723_v63 = vld [vmem:[%s16644_s9 + $0x70] sm:$0xff]  }
 0x9b7   : > { %vm16981_vm14 = vmmov %vm16942_vm0  ;;  %v9772_v51 = vld [vmem:[#allocation2 + $0x9f] sm:$0xff]  ;;  %v9983_v27 = vld [vmem:[#allocation2 + $0xa8] sm:$0xff] }
 0x9b8   : > { %vm16982_vm2 = vmmov %vm16942_vm0  ;;  %v13721_v46 = vld [vmem:[%s16644_s9 + $0x60] sm:$0xff]   ;;  %v10193_v20 = vld [vmem:[#allocation2 + $0xa9] sm:$0xff] }
 0x9b9   : > { %vm16983_vm7 = vmmov %vm16942_vm0  ;;  %v9982_v3 = vld [vmem:[#allocation2 + $0xa0] sm:$0xff]  ;;  %v10822_v26 = vld [vmem:[#allocation2 + $0xb1] sm:$0xff] }
 0x9ba   : > { %vm16984_vm15 = vmmov %vm16942_vm0  ;;  %v10192_v61 = vld [vmem:[#allocation2 + $0xa1] sm:$0xff]  ;;  %v9991_v42 = vpack.c.bf16 %v9983_v27, %v9982_v3  ;;  %v10823_v33 = vld [vmem:[#allocation2 + $0xb9] sm:$0xff] }
 0x9bb   : > { %vm16985_vm3 = vmmov %vm16942_vm0  ;;  %v10201_v39 = vpack.c.bf16 %v10193_v20, %v10192_v61  ;;  %v13725_v35 = vld [vmem:[%s16644_s9 + $0x80] sm:$0xff]   ;;  %v10831_v52 = vpack.c.bf16 %v10823_v33, %v10822_v26 }
 0x9bc   : > { %13311 = vmatmul.mubr.msk.bf16.gmra.mxu0 %vm16972_vm9, %v16253_v23  ;;  %vm16986_vm9 = vmmov %vm16942_vm0 }
 0x9bd   : > { %13331 = vmatmul.mubr.msk.bf16.gmra.mxu1 %vm16973_vm10, %v16255_v38  ;;  %13338 = vmatprep.mubr.msk.bf16.mxu0 %vm16974_vm11, %v9564_v11  ;;  %vm16987_vm10 = vmmov %vm16942_vm0 }
 0x9be   : > { %13358 = vmatprep.mubr.msk.bf16.mxu1 %vm16975_vm1, %v16185_v57  ;;  %v9559_v57 = vld [vmem:[#allocation2 + $0x79] sm:$0xff]  ;;  %vm16988_vm11 = vmmov %vm16942_vm0 }
 0x9bf   : > { %v16299_v4 = vpack.c.bf16 %v9559_v57, %v9558_v19  ;;  %vm16989_vm1 = vmmov %vm16942_vm0 }
 0x9c4   : > { %13339 = vmatmul.mubr.msk.bf16.vlgmr.msra.gmra.mxu0 %vm16976_vm4, %v9565_v48  ;;  %vm16990_vm4 = vmmov %vm16942_vm0 }
 0x9c5   : > { %13359 = vmatmul.mubr.msk.bf16.vlgmr.msra.gmra.mxu1 %vm16977_vm12, %v16189_v55  ;;  %13342 = vmatprep.mubr.msk.bf16.mxu0 %vm16978_vm6, %v16264_v16  ;;  %vm16991_vm12 = vmmov %vm16942_vm0 }
 0x9c6   : > { %13362 = vmatprep.mubr.msk.bf16.mxu1 %vm16979_vm8, %v16219_v15  ;;  %13375 = vmatpush3.bf16.msra.mxu0 %v16211_v6  ;;  %v9773_v6 = vld [vmem:[#allocation2 + $0xa7] sm:$0xff]  ;;  %vm16992_vm6 = vmmov %vm16942_vm0 }
 0x9c7   : > { %13376 = vmatprep.subr.bf16.mxu0 %v13717_v30  ;;  %13395 = vmatpush3.bf16.msra.mxu1 %v16216_v14  ;;  %v16311_v14 = vpack.c.bf16 %v9563_v22, %v9562_v40  ;;  %v9781_v10 = vpack.c.bf16 %v9773_v6, %v9772_v51  ;;  %vm16993_vm8 = vmmov %vm16942_vm0 }
 0x9c8   : > { %13396 = vmatprep.subr.bf16.mxu1 %v13719_v36 }
 0x9ca   : > { %13377 = vmatpush3.bf16.msra.mxu0 %v13717_v30 }
 0x9cb   : > { %13397 = vmatpush3.bf16.msra.mxu1 %v13719_v36  ;;  %13414 = vmatprep.subr.bf16.mxu0 %v13720_v41 }
 0x9cc   : > { %13343 = vmatmul.mubr.msk.bf16.gmra.mxu0 %vm16980_vm5, %v16287_v31  ;;  %13434 = vmatprep.subr.bf16.mxu1 %v13722_v47  ;;  %vm16994_vm5 = vmmov %vm16942_vm0 }
 0x9cd   : > { %13363 = vmatmul.mubr.msk.bf16.gmra.mxu1 %vm16981_vm14, %v16223_v28  ;;  %13346 = vmatprep.mubr.msk.bf16.mxu0 %vm16982_vm2, %v16289_v50  ;;  %vm16995_vm14 = vmmov %vm16942_vm0 }
 0x9ce   : > { %13366 = vmatprep.mubr.msk.bf16.mxu1 %vm16942_vm0, %v16237_v54  ;;  %vm16996_vm2 = vmmov %vm16942_vm0 }
 0x9d4   : > { %13347 = vmatmul.mubr.msk.bf16.gmra.mxu0 %vm16983_vm7, %v16299_v4  ;;  %vm16997_vm7 = vmmov %vm16942_vm0 }
 0x9d5   : > { %13367 = vmatmul.mubr.msk.bf16.gmra.mxu1 %vm16984_vm15, %v16241_v18  ;;  %13350 = vmatprep.mubr.msk.bf16.mxu0 %vm16985_vm3, %v16301_v45  ;;  %vm16998_vm15 = vmmov %vm16942_vm0 }
 0x9d6   : > { %13370 = vmatprep.mubr.msk.bf16.mxu1 %vm16986_vm9, %v16253_v23  ;;  %vm16999_vm3 = vmmov %vm16942_vm0 }
 0x9d7   : > { %vm17000_vm9 = vmmov %vm16942_vm0 }
 0x9dc   : > { %13351 = vmatmul.mubr.msk.bf16.gmra.mxu0 %vm16987_vm10, %v16311_v14  ;;  %vm17001_vm10 = vmmov %vm16942_vm0 }
 0x9dd   : > { %13371 = vmatmul.mubr.msk.bf16.gmra.mxu1 %vm16988_vm11, %v9781_v10  ;;  %13378 = vmatprep.mubr.msk.bf16.mxu0 %vm16989_vm1, %v16187_v25  ;;  %v13724_v25 = vld [vmem:[%s16644_s9 + $0x88] sm:$0xff]   ;;  %vm17002_vm11 = vmmov %vm16942_vm0 }
 0x9de   : > { %13398 = vmatprep.mubr.msk.bf16.mxu1 %vm16990_vm4, %v9565_v48  ;;  %vm17003_vm1 = vmmov %vm16942_vm0 }
 0x9df   : > { %vm17004_vm4 = vmmov %vm16942_vm0 }
 0x9e4   : > { %13379 = vmatmul.mubr.msk.bf16.vlgmr.msra.gmra.mxu0 %vm16991_vm12, %v16196_v24  ;;  %vm17005_vm12 = vmmov %vm16942_vm0 }
 0x9e5   : > { %13399 = vmatmul.mubr.msk.bf16.vlgmr.msra.gmra.mxu1 %vm16992_vm6, %v16264_v16  ;;  %13382 = vmatprep.mubr.msk.bf16.mxu0 %vm16993_vm8, %v16221_v49  ;;  %vm17006_vm6 = vmmov %vm16942_vm0 }
 0x9e6   : > { %13402 = vmatprep.mubr.msk.bf16.mxu1 %vm16994_vm5, %v16287_v31  ;;  %13415 = vmatpush3.bf16.msra.mxu0 %v13720_v41  ;;  %vm17007_vm8 = vmmov %vm16942_vm0 }
 0x9e7   : > { %13416 = vmatprep.subr.bf16.mxu0 %v13721_v46  ;;  %13435 = vmatpush3.bf16.msra.mxu1 %v13722_v47  ;;  %vm17008_vm5 = vmmov %vm16942_vm0 }
 0x9e8   : > { %13436 = vmatprep.subr.bf16.mxu1 %v13723_v63 }
 0x9ea   : > { %13417 = vmatpush3.bf16.msra.mxu0 %v13721_v46 }
 0x9eb   : > { %13437 = vmatpush3.bf16.msra.mxu1 %v13723_v63  ;;  %13454 = vmatprep.subr.bf16.mxu0 %v13724_v25 }
 0x9ec   : > { %13383 = vmatmul.mubr.msk.bf16.gmra.mxu0 %vm16995_vm14, %v16228_v2  ;;  %vm17009_vm14 = vmmov %vm16942_vm0 }
 0x9ed   : > { %13403 = vmatmul.mubr.msk.bf16.gmra.mxu1 %vm16996_vm2, %v16289_v50  ;;  %13386 = vmatprep.mubr.msk.bf16.mxu0 %vm16942_vm0, %v16239_v53  ;;  %vm17010_vm2 = vmmov %vm16942_vm0 }
 0x9ee   : > { %13406 = vmatprep.mubr.msk.bf16.mxu1 %vm16997_vm7, %v16299_v4  ;;  %vm17011_vm7 = vmmov %vm16942_vm0 }
 0x9f4   : > { %13387 = vmatmul.mubr.msk.bf16.gmra.mxu0 %vm16998_vm15, %v16245_v59  ;;  %vm17012_vm15 = vmmov %vm16942_vm0 }
 0x9f5   : > { %13407 = vmatmul.mubr.msk.bf16.gmra.mxu1 %vm16999_vm3, %v16301_v45  ;;  %13390 = vmatprep.mubr.msk.bf16.mxu0 %vm17000_vm9, %v16255_v38  ;;  %vm17013_vm3 = vmmov %vm16942_vm0 }
 0x9f6   : > { %13410 = vmatprep.mubr.msk.bf16.mxu1 %vm17001_vm10, %v16311_v14  ;;  %vm17014_vm9 = vmmov %vm16942_vm0 }
 0x9f7   : > { %vm17015_vm10 = vmmov %vm16942_vm0 }
 0x9fc   : > { %13391 = vmatmul.mubr.msk.bf16.gmra.mxu0 %vm17002_vm11, %v9991_v42  ;;  %vm17016_vm11 = vmmov %vm16942_vm0 }
 0x9fd   : > { %13411 = vmatmul.mubr.msk.bf16.gmra.mxu1 %vm17003_vm1, %v10201_v39  ;;  %13418 = vmatprep.mubr.msk.bf16.mxu0 %vm17004_vm4, %v16189_v55  ;;  %v10612_v55 = vld [vmem:[#allocation2 + $0xb0] sm:$0xff]  ;;  %vm17017_vm1 = vmmov %vm16942_vm0 }
 0x9fe   : > { %13438 = vmatprep.mubr.msk.bf16.mxu1 %vm17005_vm12, %v16196_v24  ;;  %v10613_v24 = vld [vmem:[#allocation2 + $0xb8] sm:$0xff]  ;;  %vm17018_vm4 = vmmov %vm16942_vm0 }
 0x9ff   : > { %vm17019_vm12 = vmmov %vm16942_vm0 }
 0xa04   : > { %13419 = vmatmul.mubr.msk.bf16.vlgmr.msra.gmra.mxu0 %vm17006_vm6, %v16219_v15  ;;  %v10402_v15 = vld [vmem:[#allocation2 + $0xaf] sm:$0xff]  ;;  %vm17020_vm6 = vmmov %vm16942_vm0 }
 0xa05   : > { %13439 = vmatmul.mubr.msk.bf16.vlgmr.msra.gmra.mxu1 %vm17007_vm8, %v16221_v49  ;;  %13422 = vmatprep.mubr.msk.bf16.mxu0 %vm17008_vm5, %v16223_v28  ;;  %v10403_v49 = vld [vmem:[#allocation2 + $0xb7] sm:$0xff]  ;;  %v10621_v28 = vpack.c.bf16 %v10613_v24, %v10612_v55  ;;  %vm17021_vm8 = vmmov %vm16942_vm0 }
 0xa06   : > { %13442 = vmatprep.mubr.msk.bf16.mxu1 %vm17009_vm14, %v16228_v2  ;;  %13455 = vmatpush3.bf16.msra.mxu0 %v13724_v25  ;;  %v10411_v2 = vpack.c.bf16 %v10403_v49, %v10402_v15  ;;  %vm17022_vm5 = vmmov %vm16942_vm0 }
 0xa07   : > { %13456 = vmatprep.subr.bf16.mxu0 %v13725_v35  ;;  %vm17023_vm14 = vmmov %vm16942_vm0 }
 0xa0a   : > { %13457 = vmatpush3.bf16.msra.mxu0 %v13725_v35 }
 0xa0c   : > { %13423 = vmatmul.mubr.msk.bf16.gmra.mxu0 %vm17010_vm2, %v16237_v54  ;;  %vm17024_vm2 = vmmov %vm16942_vm0 }
 0xa0d   : > { %13443 = vmatmul.mubr.msk.bf16.gmra.mxu1 %vm16942_vm0, %v16239_v53  ;;  %13426 = vmatprep.mubr.msk.bf16.mxu0 %vm17011_vm7, %v16241_v18  ;;  %vm17025_vm7 = vmmov %vm16942_vm0 }
 0xa0e   : > { %13446 = vmatprep.mubr.msk.bf16.mxu1 %vm17012_vm15, %v16245_v59  ;;  %vm9321_vm15 = vcmask 130048  }
 0xa14   : > { %13427 = vmatmul.mubr.msk.bf16.gmra.mxu0 %vm17013_vm3, %v16253_v23  ;;  %vm17027_vm3 = vmmov %vm16942_vm0 }
 0xa15   : > { %13447 = vmatmul.mubr.msk.bf16.gmra.mxu1 %vm17014_vm9, %v16255_v38  ;;  %13430 = vmatprep.mubr.msk.bf16.mxu0 %vm17015_vm10, %v9781_v10 }
 0xa16   : > { %13450 = vmatprep.mubr.msk.bf16.mxu1 %vm17016_vm11, %v9991_v42 }
 0xa1c   : > { %13431 = vmatmul.mubr.msk.bf16.gmra.mxu0 %vm17017_vm1, %v10411_v2 }
 0xa1d   : > { %13458 = vmatprep.mubr.msk.bf16.mxu0 %vm17018_vm4, %v16264_v16  ;;  %13451 = vmatmul.mubr.msk.bf16.gmra.mxu1 %vm17019_vm12, %v10621_v28 }
 0xa24   : > { %13459 = vmatmul.mubr.msk.bf16.vlgmr.msra.gmra.mxu0 %vm17020_vm6, %v16287_v31 }
 0xa25   : > { %13462 = vmatprep.mubr.msk.bf16.mxu0 %vm17021_vm8, %v16289_v50 }
 0xa2c   : > { %13463 = vmatmul.mubr.msk.bf16.gmra.mxu0 %vm17022_vm5, %v16299_v4 }
 0xa2d   : > { %13466 = vmatprep.mubr.msk.bf16.mxu0 %vm17023_vm14, %v16301_v45 }
 0xa34   : > { %13467 = vmatmul.mubr.msk.bf16.gmra.mxu0 %vm17024_vm2, %v16311_v14 }
 0xa35   : > { %13470 = vmatprep.mubr.msk.bf16.mxu0 %vm16942_vm0, %v10201_v39 }
 0xa3c   : > { %13471 = vmatmul.mubr.msk.bf16.gmra.mxu0 %vm17025_vm7, %v10831_v52 }
 0xa64   : > { %v13300_v5 = vpop.f32.mrf.mxu0 }
 0xa65   : > { %9324 = vst.msk [vmem:[#allocation4 + $0x10] sm:$0xff] %vm9321_vm15, %v13300_v5  ;;  %v13320_v60 = vpop.f32.mrf.mxu1 }
 0xa66   : > { %v9258_v32 = vpop.f32.mrf.mxu0 }
 0xa67   : > { %9322 = vst.msk [vmem:[#allocation4] sm:$0xff] %vm9321_vm15, %v9258_v32  ;;  %v9437_v54 = vpop.f32.mrf.mxu1 }
 0xa68   : > { %v13301_v53 = vpop.f32.mrf.mxu0 }
 0xa69   : > { %9325 = vst.msk [vmem:[#allocation4 + $0x18] sm:$0xff] %vm9321_vm15, %v13301_v53  ;;  %v13321_v18 = vpop.f32.mrf.mxu1 }
 0xa6a   : > { %v9261_v59 = vpop.f32.mrf.mxu0 }
 0xa6b   : > { %9323 = vst.msk [vmem:[#allocation4 + $0x8] sm:$0xff] %vm9321_vm15, %v9261_v59  ;;  %v9440_v34 = vpop.f32.mrf.mxu1 }
 0xa6c   : > { %v9502_v58 = vld [vmem:[#allocation4 + $0x10] sm:$0xff]  ;;  %v13304_v7 = vpop.f32.mrf.mxu0 }
 0xa6d   : > { %v9518_v1 = vadd.f32 %v13320_v60, %v9502_v58  ;;  %9328 = vst.msk [vmem:[#allocation4 + $0x30] sm:$0xff] %vm9321_vm15, %v13304_v7  ;;  %v13324_v21 = vpop.f32.mrf.mxu1 }
 0xa6e   : > { %v9500_v62 = vld [vmem:[#allocation4] sm:$0xff]  ;;  %v9274_v23 = vpop.f32.mrf.mxu0 }
 0xa6f   : > { %9534 = vst.msk [vmem:[#allocation4 + $0x10] sm:$0xff] %vm9321_vm15, %v9518_v1  ;;  %v9516_v38 = vadd.f32 %v9500_v62, %v9437_v54  ;;  %9326 = vst.msk [vmem:[#allocation4 + $0x20] sm:$0xff] %vm9321_vm15, %v9274_v23  ;;  %v9453_v11 = vpop.f32.mrf.mxu1 }
 0xa70   : > { %v9503_v17 = vld [vmem:[#allocation4 + $0x18] sm:$0xff]  ;;  %v13305_v13 = vpop.f32.mrf.mxu0 }
 0xa71   : > { %9532 = vst.msk [vmem:[#allocation4] sm:$0xff] %vm9321_vm15, %v9516_v38  ;;  %v9519_v43 = vadd.f32 %v13321_v18, %v9503_v17  ;;  %9329 = vst.msk [vmem:[#allocation4 + $0x38] sm:$0xff] %vm9321_vm15, %v13305_v13  ;;  %v13325_v0 = vpop.f32.mrf.mxu1 }
 0xa72   : > { %v9501_v48 = vld [vmem:[#allocation4 + $0x8] sm:$0xff]  ;;  %v9277_v16 = vpop.f32.mrf.mxu0 }
 0xa73   : > { %9535 = vst.msk [vmem:[#allocation4 + $0x18] sm:$0xff] %vm9321_vm15, %v9519_v43  ;;  %v9517_v30 = vadd.f32 %v9501_v48, %v9440_v34  ;;  %9327 = vst.msk [vmem:[#allocation4 + $0x28] sm:$0xff] %vm9321_vm15, %v9277_v16  ;;  %v9456_v36 = vpop.f32.mrf.mxu1 }
 0xa74   : > { %v9506_v9 = vld [vmem:[#allocation4 + $0x30] sm:$0xff]  ;;  %v13308_v37 = vpop.f32.mrf.mxu0 }
 0xa75   : > { %9533 = vst.msk [vmem:[#allocation4 + $0x8] sm:$0xff] %vm9321_vm15, %v9517_v30  ;;  %v9522_v41 = vadd.f32 %v13324_v21, %v9506_v9  ;;  %9332 = vst.msk [vmem:[#allocation4 + $0x50] sm:$0xff] %vm9321_vm15, %v13308_v37  ;;  %v13328_v44 = vpop.f32.mrf.mxu1 }
 0xa76   : > { %v9504_v56 = vld [vmem:[#allocation4 + $0x20] sm:$0xff]  ;;  %v9290_v47 = vpop.f32.mrf.mxu0  ;;  %v9712_v28 = vld [vmem:[#allocation4 + $0x10] sm:$0xff] }
 0xa77   : > { %9538 = vst.msk [vmem:[#allocation4 + $0x30] sm:$0xff] %vm9321_vm15, %v9522_v41  ;;  %v9520_v31 = vadd.f32 %v9504_v56, %v9453_v11  ;;  %9330 = vst.msk [vmem:[#allocation4 + $0x40] sm:$0xff] %vm9321_vm15, %v9290_v47  ;;  %v9469_v50 = vpop.f32.mrf.mxu1 }
 0xa78   : > { %v9507_v19 = vld [vmem:[#allocation4 + $0x38] sm:$0xff]  ;;  %v13309_v57 = vpop.f32.mrf.mxu0  ;;  %v9710_v60 = vld [vmem:[#allocation4] sm:$0xff] }
 0xa79   : > { %9536 = vst.msk [vmem:[#allocation4 + $0x20] sm:$0xff] %vm9321_vm15, %v9520_v31  ;;  %v9523_v12 = vadd.f32 %v13325_v0, %v9507_v19  ;;  %9333 = vst.msk [vmem:[#allocation4 + $0x58] sm:$0xff] %vm9321_vm15, %v13309_v57  ;;  %v13329_v8 = vpop.f32.mrf.mxu1 }
 0xa7a   : > { %v9505_v4 = vld [vmem:[#allocation4 + $0x28] sm:$0xff]  ;;  %v9293_v45 = vpop.f32.mrf.mxu0  ;;  %v9713_v34 = vld [vmem:[#allocation4 + $0x18] sm:$0xff] }
 0xa7b   : > { %9539 = vst.msk [vmem:[#allocation4 + $0x38] sm:$0xff] %vm9321_vm15, %v9523_v12  ;;  %v9521_v40 = vadd.f32 %v9505_v4, %v9456_v36  ;;  %9331 = vst.msk [vmem:[#allocation4 + $0x48] sm:$0xff] %vm9321_vm15, %v9293_v45  ;;  %v9472_v22 = vpop.f32.mrf.mxu1 }
 0xa7c   : > { %v9510_v51 = vld [vmem:[#allocation4 + $0x50] sm:$0xff]  ;;  %v13312_v6 = vpop.f32.mrf.mxu0  ;;  %v9711_v23 = vld [vmem:[#allocation4 + $0x8] sm:$0xff] }
 0xa7d   : > { %9537 = vst.msk [vmem:[#allocation4 + $0x28] sm:$0xff] %vm9321_vm15, %v9521_v40  ;;  %v9526_v14 = vadd.f32 %v13328_v44, %v9510_v51  ;;  %9336 = vst.msk [vmem:[#allocation4 + $0x70] sm:$0xff] %vm9321_vm15, %v13312_v6  ;;  %v13332_v10 = vpop.f32.mrf.mxu1 }
 0xa7e   : > { %v9508_v46 = vld [vmem:[#allocation4 + $0x40] sm:$0xff]  ;;  %v9306_v63 = vpop.f32.mrf.mxu0  ;;  %v9716_v43 = vld [vmem:[#allocation4 + $0x30] sm:$0xff] }
 0xa7f   : > { %9542 = vst.msk [vmem:[#allocation4 + $0x50] sm:$0xff] %vm9321_vm15, %v9526_v14  ;;  %v9524_v25 = vadd.f32 %v9508_v46, %v9469_v50  ;;  %9334 = vst.msk [vmem:[#allocation4 + $0x60] sm:$0xff] %vm9321_vm15, %v9306_v63  ;;  %v9485_v3 = vpop.f32.mrf.mxu1 }
 0xa80   : > { %v9511_v27 = vld [vmem:[#allocation4 + $0x58] sm:$0xff]  ;;  %v13313_v61 = vpop.f32.mrf.mxu0  ;;  %v9714_v36 = vld [vmem:[#allocation4 + $0x20] sm:$0xff] }
 0xa81   : > { %9540 = vst.msk [vmem:[#allocation4 + $0x40] sm:$0xff] %vm9321_vm15, %v9524_v25  ;;  %v9527_v20 = vadd.f32 %v13329_v8, %v9511_v27  ;;  %9337 = vst.msk [vmem:[#allocation4 + $0x78] sm:$0xff] %vm9321_vm15, %v13313_v61  ;;  %v13333_v42 = vpop.f32.mrf.mxu1 }
 0xa82   : > { %v9509_v39 = vld [vmem:[#allocation4 + $0x48] sm:$0xff]  ;;  %v9309_v35 = vpop.f32.mrf.mxu0  ;;  %v9717_v47 = vld [vmem:[#allocation4 + $0x38] sm:$0xff] }
 0xa83   : > { %9543 = vst.msk [vmem:[#allocation4 + $0x58] sm:$0xff] %vm9321_vm15, %v9527_v20  ;;  %v9525_v55 = vadd.f32 %v9509_v39, %v9472_v22  ;;  %9335 = vst.msk [vmem:[#allocation4 + $0x68] sm:$0xff] %vm9321_vm15, %v9309_v35  ;;  %v9488_v24 = vpop.f32.mrf.mxu1 }
 0xa84   : > { %v9514_v15 = vld [vmem:[#allocation4 + $0x70] sm:$0xff]  ;;  %v13340_v49 = vpop.f32.mrf.mxu0  ;;  %v9715_v8 = vld [vmem:[#allocation4 + $0x28] sm:$0xff] }
 0xa85   : > { %9541 = vst.msk [vmem:[#allocation4 + $0x48] sm:$0xff] %vm9321_vm15, %v9525_v55  ;;  %v9530_v2 = vadd.f32 %v13332_v10, %v9514_v15  ;;  %v9728_v26 = vadd.f32 %v13340_v49, %v9712_v28  ;;  %v13360_v33 = vpop.f32.mrf.mxu1 }
 0xa86   : > { %v9512_v52 = vld [vmem:[#allocation4 + $0x60] sm:$0xff]  ;;  %v9647_v5 = vpop.f32.mrf.mxu0  ;;  %v9720_v6 = vld [vmem:[#allocation4 + $0x50] sm:$0xff] }
 0xa87   : > { %9546 = vst.msk [vmem:[#allocation4 + $0x70] sm:$0xff] %vm9321_vm15, %v9530_v2  ;;  %v9528_v32 = vadd.f32 %v9512_v52, %v9485_v3  ;;  %9744 = vst.msk [vmem:[#allocation4 + $0x10] sm:$0xff] %vm9321_vm15, %v9728_v26  ;;  %v9726_v54 = vadd.f32 %v9710_v60, %v9647_v5  ;;  %v9857_v53 = vpop.f32.mrf.mxu1 }
 0xa88   : > { %v9515_v18 = vld [vmem:[#allocation4 + $0x78] sm:$0xff]  ;;  %v13341_v59 = vpop.f32.mrf.mxu0  ;;  %v9718_v3 = vld [vmem:[#allocation4 + $0x40] sm:$0xff] }
 0xa89   : > { %9544 = vst.msk [vmem:[#allocation4 + $0x60] sm:$0xff] %vm9321_vm15, %v9528_v32  ;;  %v9531_v58 = vadd.f32 %v13333_v42, %v9515_v18  ;;  %9742 = vst.msk [vmem:[#allocation4] sm:$0xff] %vm9321_vm15, %v9726_v54  ;;  %v9729_v7 = vadd.f32 %v13341_v59, %v9713_v34  ;;  %v13361_v1 = vpop.f32.mrf.mxu1 }
 0xa8a   : > { %v9513_v21 = vld [vmem:[#allocation4 + $0x68] sm:$0xff]  ;;  %v9650_v62 = vpop.f32.mrf.mxu0  ;;  %v9721_v35 = vld [vmem:[#allocation4 + $0x58] sm:$0xff] }
 0xa8b   : > { %9547 = vst.msk [vmem:[#allocation4 + $0x78] sm:$0xff] %vm9321_vm15, %v9531_v58  ;;  %v9529_v38 = vadd.f32 %v9513_v21, %v9488_v24  ;;  %9745 = vst.msk [vmem:[#allocation4 + $0x18] sm:$0xff] %vm9321_vm15, %v9729_v7  ;;  %v9727_v11 = vadd.f32 %v9711_v23, %v9650_v62  ;;  %v9860_v17 = vpop.f32.mrf.mxu1 }
 0xa8c   : > { %v13344_v13 = vpop.f32.mrf.mxu0  ;;  %v9719_v2 = vld [vmem:[#allocation4 + $0x48] sm:$0xff] }
 0xa8d   : > { %9545 = vst.msk [vmem:[#allocation4 + $0x68] sm:$0xff] %vm9321_vm15, %v9529_v38  ;;  %9743 = vst.msk [vmem:[#allocation4 + $0x8] sm:$0xff] %vm9321_vm15, %v9727_v11  ;;  %v9732_v0 = vadd.f32 %v13344_v13, %v9716_v43  ;;  %v13364_v48 = vpop.f32.mrf.mxu1 }
 0xa8e   : > { %v9922_v16 = vld [vmem:[#allocation4 + $0x10] sm:$0xff]  ;;  %v9663_v30 = vpop.f32.mrf.mxu0 }
 0xa8f   : > { %v9938_v9 = vadd.f32 %v13360_v33, %v9922_v16  ;;  %9748 = vst.msk [vmem:[#allocation4 + $0x30] sm:$0xff] %vm9321_vm15, %v9732_v0  ;;  %v9730_v37 = vadd.f32 %v9714_v36, %v9663_v30  ;;  %v9873_v41 = vpop.f32.mrf.mxu1  ;;  %v9724_v32 = vld [vmem:[#allocation4 + $0x70] sm:$0xff] }
 0xa90   : > { %v9920_v44 = vld [vmem:[#allocation4] sm:$0xff]  ;;  %v13345_v56 = vpop.f32.mrf.mxu0 }
 0xa91   : > { %9954 = vst.msk [vmem:[#allocation4 + $0x10] sm:$0xff] %vm9321_vm15, %v9938_v9  ;;  %v9936_v31 = vadd.f32 %v9920_v44, %v9857_v53  ;;  %9746 = vst.msk [vmem:[#allocation4 + $0x20] sm:$0xff] %vm9321_vm15, %v9730_v37  ;;  %v9733_v50 = vadd.f32 %v13345_v56, %v9717_v47  ;;  %v13365_v19 = vpop.f32.mrf.mxu1  ;;  %v9722_v58 = vld [vmem:[#allocation4 + $0x60] sm:$0xff] }
 0xa92   : > { %v9923_v57 = vld [vmem:[#allocation4 + $0x18] sm:$0xff]  ;;  %v9666_v12 = vpop.f32.mrf.mxu0 }
 0xa93   : > { %9952 = vst.msk [vmem:[#allocation4] sm:$0xff] %vm9321_vm15, %v9936_v31  ;;  %v9939_v4 = vadd.f32 %v13361_v1, %v9923_v57  ;;  %9749 = vst.msk [vmem:[#allocation4 + $0x38] sm:$0xff] %vm9321_vm15, %v9733_v50  ;;  %v9731_v45 = vadd.f32 %v9715_v8, %v9666_v12  ;;  %v9876_v40 = vpop.f32.mrf.mxu1  ;;  %v9725_v38 = vld [vmem:[#allocation4 + $0x78] sm:$0xff] }
 0xa94   : > { %v9921_v22 = vld [vmem:[#allocation4 + $0x8] sm:$0xff]  ;;  %v13348_v51 = vpop.f32.mrf.mxu0 }
 0xa95   : > { %9955 = vst.msk [vmem:[#allocation4 + $0x18] sm:$0xff] %vm9321_vm15, %v9939_v4  ;;  %v9937_v14 = vadd.f32 %v9921_v22, %v9860_v17  ;;  %9747 = vst.msk [vmem:[#allocation4 + $0x28] sm:$0xff] %vm9321_vm15, %v9731_v45  ;;  %v9736_v10 = vadd.f32 %v13348_v51, %v9720_v6  ;;  %v13368_v46 = vpop.f32.mrf.mxu1 }
 0xa96   : > { %v9926_v63 = vld [vmem:[#allocation4 + $0x30] sm:$0xff]  ;;  %v9679_v25 = vpop.f32.mrf.mxu0 }
 0xa97   : > { %9953 = vst.msk [vmem:[#allocation4 + $0x8] sm:$0xff] %vm9321_vm15, %v9937_v14  ;;  %v9942_v27 = vadd.f32 %v13364_v48, %v9926_v63  ;;  %9752 = vst.msk [vmem:[#allocation4 + $0x50] sm:$0xff] %vm9321_vm15, %v9736_v10  ;;  %v9734_v61 = vadd.f32 %v9718_v3, %v9679_v25  ;;  %v9889_v20 = vpop.f32.mrf.mxu1  ;;  %v9723_v48 = vld [vmem:[#allocation4 + $0x68] sm:$0xff] }
 0xa98   : > { %v9924_v42 = vld [vmem:[#allocation4 + $0x20] sm:$0xff]  ;;  %v13349_v39 = vpop.f32.mrf.mxu0 }
 0xa99   : > { %9958 = vst.msk [vmem:[#allocation4 + $0x30] sm:$0xff] %vm9321_vm15, %v9942_v27  ;;  %v9940_v55 = vadd.f32 %v9924_v42, %v9873_v41  ;;  %9750 = vst.msk [vmem:[#allocation4 + $0x40] sm:$0xff] %vm9321_vm15, %v9734_v61  ;;  %v9737_v24 = vadd.f32 %v13349_v39, %v9721_v35  ;;  %v13369_v15 = vpop.f32.mrf.mxu1  ;;  %v10132_v41 = vld [vmem:[#allocation4 + $0x10] sm:$0xff] }
 0xa9a   : > { %v9927_v49 = vld [vmem:[#allocation4 + $0x38] sm:$0xff]  ;;  %v9682_v28 = vpop.f32.mrf.mxu0 }
 0xa9b   : > { %9956 = vst.msk [vmem:[#allocation4 + $0x20] sm:$0xff] %vm9321_vm15, %v9940_v55  ;;  %v9943_v26 = vadd.f32 %v13365_v19, %v9927_v49  ;;  %9753 = vst.msk [vmem:[#allocation4 + $0x58] sm:$0xff] %vm9321_vm15, %v9737_v24  ;;  %v9735_v33 = vadd.f32 %v9719_v2, %v9682_v28  ;;  %v9892_v52 = vpop.f32.mrf.mxu1  ;;  %v10130_v19 = vld [vmem:[#allocation4] sm:$0xff] }
 0xa9c   : > { %v9925_v5 = vld [vmem:[#allocation4 + $0x28] sm:$0xff]  ;;  %v13352_v60 = vpop.f32.mrf.mxu0 }
 0xa9d   : > { %9959 = vst.msk [vmem:[#allocation4 + $0x38] sm:$0xff] %vm9321_vm15, %v9943_v26  ;;  %v9941_v54 = vadd.f32 %v9925_v5, %v9876_v40  ;;  %9751 = vst.msk [vmem:[#allocation4 + $0x48] sm:$0xff] %vm9321_vm15, %v9735_v33  ;;  %v9740_v53 = vadd.f32 %v13352_v60, %v9724_v32  ;;  %v13372_v18 = vpop.f32.mrf.mxu1  ;;  %v10133_v40 = vld [vmem:[#allocation4 + $0x18] sm:$0xff] }
 0xa9e   : > { %v9930_v59 = vld [vmem:[#allocation4 + $0x50] sm:$0xff]  ;;  %v9695_v34 = vpop.f32.mrf.mxu0 }
 0xa9f   : > { %9957 = vst.msk [vmem:[#allocation4 + $0x28] sm:$0xff] %vm9321_vm15, %v9941_v54  ;;  %v9946_v7 = vadd.f32 %v13368_v46, %v9930_v59  ;;  %9756 = vst.msk [vmem:[#allocation4 + $0x70] sm:$0xff] %vm9321_vm15, %v9740_v53  ;;  %v9738_v1 = vadd.f32 %v9722_v58, %v9695_v34  ;;  %v9905_v21 = vpop.f32.mrf.mxu1  ;;  %v10131_v46 = vld [vmem:[#allocation4 + $0x8] sm:$0xff] }
 0xaa0   : > { %v9928_v62 = vld [vmem:[#allocation4 + $0x40] sm:$0xff]  ;;  %v13353_v23 = vpop.f32.mrf.mxu0 }
 0xaa1   : > { %9962 = vst.msk [vmem:[#allocation4 + $0x50] sm:$0xff] %vm9321_vm15, %v9946_v7  ;;  %v9944_v11 = vadd.f32 %v9928_v62, %v9889_v20  ;;  %9754 = vst.msk [vmem:[#allocation4 + $0x60] sm:$0xff] %vm9321_vm15, %v9738_v1  ;;  %v9741_v17 = vadd.f32 %v13353_v23, %v9725_v38  ;;  %v13373_v13 = vpop.f32.mrf.mxu1  ;;  %v10136_v20 = vld [vmem:[#allocation4 + $0x30] sm:$0xff] }
 0xaa2   : > { %v9931_v43 = vld [vmem:[#allocation4 + $0x58] sm:$0xff]  ;;  %v9698_v0 = vpop.f32.mrf.mxu0 }
 0xaa3   : > { %9960 = vst.msk [vmem:[#allocation4 + $0x40] sm:$0xff] %vm9321_vm15, %v9944_v11  ;;  %v9947_v16 = vadd.f32 %v13369_v15, %v9931_v43  ;;  %9757 = vst.msk [vmem:[#allocation4 + $0x78] sm:$0xff] %vm9321_vm15, %v9741_v17  ;;  %v9739_v30 = vadd.f32 %v9723_v48, %v9698_v0  ;;  %v9908_v36 = vpop.f32.mrf.mxu1  ;;  %v10134_v15 = vld [vmem:[#allocation4 + $0x20] sm:$0xff] }
 0xaa4   : > { %v9929_v9 = vld [vmem:[#allocation4 + $0x48] sm:$0xff]  ;;  %v13380_v37 = vpop.f32.mrf.mxu0 }
 0xaa5   : > { %9963 = vst.msk [vmem:[#allocation4 + $0x58] sm:$0xff] %vm9321_vm15, %v9947_v16  ;;  %v9945_v44 = vadd.f32 %v9929_v9, %v9892_v52  ;;  %9755 = vst.msk [vmem:[#allocation4 + $0x68] sm:$0xff] %vm9321_vm15, %v9739_v30  ;;  %v10148_v56 = vadd.f32 %v13380_v37, %v10132_v41  ;;  %v13400_v47 = vpop.f32.mrf.mxu1  ;;  %v10137_v52 = vld [vmem:[#allocation4 + $0x38] sm:$0xff] }
 0xaa6   : > { %v9934_v31 = vld [vmem:[#allocation4 + $0x70] sm:$0xff]  ;;  %v10067_v50 = vpop.f32.mrf.mxu0 }
 0xaa7   : > { %9961 = vst.msk [vmem:[#allocation4 + $0x48] sm:$0xff] %vm9321_vm15, %v9945_v44  ;;  %v9950_v57 = vadd.f32 %v13372_v18, %v9934_v31  ;;  %10164 = vst.msk [vmem:[#allocation4 + $0x10] sm:$0xff] %vm9321_vm15, %v10148_v56  ;;  %v10146_v12 = vadd.f32 %v10130_v19, %v10067_v50  ;;  %v10277_v8 = vpop.f32.mrf.mxu1  ;;  %v10135_v18 = vld [vmem:[#allocation4 + $0x28] sm:$0xff] }
 0xaa8   : > { %v9932_v4 = vld [vmem:[#allocation4 + $0x60] sm:$0xff]  ;;  %v13381_v45 = vpop.f32.mrf.mxu0 }
 0xaa9   : > { %9966 = vst.msk [vmem:[#allocation4 + $0x70] sm:$0xff] %vm9321_vm15, %v9950_v57  ;;  %v9948_v22 = vadd.f32 %v9932_v4, %v9905_v21  ;;  %10162 = vst.msk [vmem:[#allocation4] sm:$0xff] %vm9321_vm15, %v10146_v12  ;;  %v10149_v51 = vadd.f32 %v13381_v45, %v10133_v40  ;;  %v13401_v6 = vpop.f32.mrf.mxu1  ;;  %v10140_v21 = vld [vmem:[#allocation4 + $0x50] sm:$0xff] }
 0xaaa   : > { %v9935_v14 = vld [vmem:[#allocation4 + $0x78] sm:$0xff]  ;;  %v10070_v10 = vpop.f32.mrf.mxu0 }
 0xaab   : > { %9964 = vst.msk [vmem:[#allocation4 + $0x60] sm:$0xff] %vm9321_vm15, %v9948_v22  ;;  %v9951_v63 = vadd.f32 %v13373_v13, %v9935_v14  ;;  %10165 = vst.msk [vmem:[#allocation4 + $0x18] sm:$0xff] %vm9321_vm15, %v10149_v51  ;;  %v10147_v25 = vadd.f32 %v10131_v46, %v10070_v10  ;;  %v10280_v3 = vpop.f32.mrf.mxu1  ;;  %v10138_v13 = vld [vmem:[#allocation4 + $0x40] sm:$0xff] }
 0xaac   : > { %v9933_v27 = vld [vmem:[#allocation4 + $0x68] sm:$0xff]  ;;  %v13384_v61 = vpop.f32.mrf.mxu0 }
 0xaad   : > { %9967 = vst.msk [vmem:[#allocation4 + $0x78] sm:$0xff] %vm9321_vm15, %v9951_v63  ;;  %v9949_v42 = vadd.f32 %v9933_v27, %v9908_v36  ;;  %10163 = vst.msk [vmem:[#allocation4 + $0x8] sm:$0xff] %vm9321_vm15, %v10147_v25  ;;  %v10152_v39 = vadd.f32 %v13384_v61, %v10136_v20  ;;  %v13404_v35 = vpop.f32.mrf.mxu1  ;;  %v10141_v36 = vld [vmem:[#allocation4 + $0x58] sm:$0xff] }
 0xaae   : > { %v10342_v55 = vld [vmem:[#allocation4 + $0x10] sm:$0xff]  ;;  %v10083_v24 = vpop.f32.mrf.mxu0 }
 0xaaf   : > { %9965 = vst.msk [vmem:[#allocation4 + $0x68] sm:$0xff] %vm9321_vm15, %v9949_v42  ;;  %v10358_v49 = vadd.f32 %v13400_v47, %v10342_v55  ;;  %10168 = vst.msk [vmem:[#allocation4 + $0x30] sm:$0xff] %vm9321_vm15, %v10152_v39  ;;  %v10150_v28 = vadd.f32 %v10134_v15, %v10083_v24  ;;  %v10293_v2 = vpop.f32.mrf.mxu1  ;;  %v10139_v47 = vld [vmem:[#allocation4 + $0x48] sm:$0xff] }
 0xab0   : > { %v10340_v26 = vld [vmem:[#allocation4] sm:$0xff]  ;;  %v13385_v33 = vpop.f32.mrf.mxu0 }
 0xab1   : > { %10374 = vst.msk [vmem:[#allocation4 + $0x10] sm:$0xff] %vm9321_vm15, %v10358_v49  ;;  %v10356_v5 = vadd.f32 %v10340_v26, %v10277_v8  ;;  %10166 = vst.msk [vmem:[#allocation4 + $0x20] sm:$0xff] %vm9321_vm15, %v10150_v28  ;;  %v10153_v60 = vadd.f32 %v13385_v33, %v10137_v52  ;;  %v13405_v32 = vpop.f32.mrf.mxu1  ;;  %v10144_v8 = vld [vmem:[#allocation4 + $0x70] sm:$0xff] }
 0xab2   : > { %v10343_v54 = vld [vmem:[#allocation4 + $0x18] sm:$0xff]  ;;  %v10086_v53 = vpop.f32.mrf.mxu0 }
 0xab3   : > { %10372 = vst.msk [vmem:[#allocation4] sm:$0xff] %vm9321_vm15, %v10356_v5  ;;  %v10359_v59 = vadd.f32 %v13401_v6, %v10343_v54  ;;  %10169 = vst.msk [vmem:[#allocation4 + $0x38] sm:$0xff] %vm9321_vm15, %v10153_v60  ;;  %v10151_v34 = vadd.f32 %v10135_v18, %v10086_v53  ;;  %v10296_v58 = vpop.f32.mrf.mxu1  ;;  %v10142_v6 = vld [vmem:[#allocation4 + $0x60] sm:$0xff] }
 0xab4   : > { %v10341_v7 = vld [vmem:[#allocation4 + $0x8] sm:$0xff]  ;;  %v13388_v1 = vpop.f32.mrf.mxu0 }
 0xab5   : > { %10375 = vst.msk [vmem:[#allocation4 + $0x18] sm:$0xff] %vm9321_vm15, %v10359_v59  ;;  %v10357_v62 = vadd.f32 %v10341_v7, %v10280_v3  ;;  %10167 = vst.msk [vmem:[#allocation4 + $0x28] sm:$0xff] %vm9321_vm15, %v10151_v34  ;;  %v10156_v23 = vadd.f32 %v13388_v1, %v10140_v21  ;;  %v13408_v38 = vpop.f32.mrf.mxu1  ;;  %v10145_v3 = vld [vmem:[#allocation4 + $0x78] sm:$0xff] }
 0xab6   : > { %v10346_v11 = vld [vmem:[#allocation4 + $0x30] sm:$0xff]  ;;  %v10099_v17 = vpop.f32.mrf.mxu0 }
 0xab7   : > { %10373 = vst.msk [vmem:[#allocation4 + $0x8] sm:$0xff] %vm9321_vm15, %v10357_v62  ;;  %v10362_v43 = vadd.f32 %v13404_v35, %v10346_v11  ;;  %10172 = vst.msk [vmem:[#allocation4 + $0x50] sm:$0xff] %vm9321_vm15, %v10156_v23  ;;  %v10154_v0 = vadd.f32 %v10138_v13, %v10099_v17  ;;  %v10309_v48 = vpop.f32.mrf.mxu1  ;;  %v10143_v35 = vld [vmem:[#allocation4 + $0x68] sm:$0xff] }
 0xab8   : > { %v10344_v16 = vld [vmem:[#allocation4 + $0x20] sm:$0xff]  ;;  %v13389_v30 = vpop.f32.mrf.mxu0 }
 0xab9   : > { %10378 = vst.msk [vmem:[#allocation4 + $0x30] sm:$0xff] %vm9321_vm15, %v10362_v43  ;;  %v10360_v9 = vadd.f32 %v10344_v16, %v10293_v2  ;;  %10170 = vst.msk [vmem:[#allocation4 + $0x40] sm:$0xff] %vm9321_vm15, %v10154_v0  ;;  %v10157_v37 = vadd.f32 %v13389_v30, %v10141_v36  ;;  %v13409_v41 = vpop.f32.mrf.mxu1  ;;  %v10552_v2 = vld [vmem:[#allocation4 + $0x10] sm:$0xff] }
 0xaba   : > { %v10347_v44 = vld [vmem:[#allocation4 + $0x38] sm:$0xff]  ;;  %v10102_v56 = vpop.f32.mrf.mxu0 }
 0xabb   : > { %10376 = vst.msk [vmem:[#allocation4 + $0x20] sm:$0xff] %vm9321_vm15, %v10360_v9  ;;  %v10363_v31 = vadd.f32 %v13405_v32, %v10347_v44  ;;  %10173 = vst.msk [vmem:[#allocation4 + $0x58] sm:$0xff] %vm9321_vm15, %v10157_v37  ;;  %v10155_v50 = vadd.f32 %v10139_v47, %v10102_v56  ;;  %v10312_v19 = vpop.f32.mrf.mxu1  ;;  %v10550_v32 = vld [vmem:[#allocation4] sm:$0xff] }
 0xabc   : > { %v10345_v57 = vld [vmem:[#allocation4 + $0x28] sm:$0xff]  ;;  %v13392_v12 = vpop.f32.mrf.mxu0 }
 0xabd   : > { %10379 = vst.msk [vmem:[#allocation4 + $0x38] sm:$0xff] %vm9321_vm15, %v10363_v31  ;;  %v10361_v4 = vadd.f32 %v10345_v57, %v10296_v58  ;;  %10171 = vst.msk [vmem:[#allocation4 + $0x48] sm:$0xff] %vm9321_vm15, %v10155_v50  ;;  %v10160_v45 = vadd.f32 %v13392_v12, %v10144_v8  ;;  %v13412_v40 = vpop.f32.mrf.mxu1  ;;  %v10553_v58 = vld [vmem:[#allocation4 + $0x18] sm:$0xff] }
 0xabe   : > { %v10350_v22 = vld [vmem:[#allocation4 + $0x50] sm:$0xff]  ;;  %v10115_v51 = vpop.f32.mrf.mxu0 }
 0xabf   : > { %10377 = vst.msk [vmem:[#allocation4 + $0x28] sm:$0xff] %vm9321_vm15, %v10361_v4  ;;  %v10366_v14 = vadd.f32 %v13408_v38, %v10350_v22  ;;  %10176 = vst.msk [vmem:[#allocation4 + $0x70] sm:$0xff] %vm9321_vm15, %v10160_v45  ;;  %v10158_v10 = vadd.f32 %v10142_v6, %v10115_v51  ;;  %v10325_v46 = vpop.f32.mrf.mxu1  ;;  %v10551_v38 = vld [vmem:[#allocation4 + $0x8] sm:$0xff] }
 0xac0   : > { %v10348_v63 = vld [vmem:[#allocation4 + $0x40] sm:$0xff]  ;;  %v13393_v25 = vpop.f32.mrf.mxu0 }
 0xac1   : > { %10382 = vst.msk [vmem:[#allocation4 + $0x50] sm:$0xff] %vm9321_vm15, %v10366_v14  ;;  %v10364_v27 = vadd.f32 %v10348_v63, %v10309_v48  ;;  %10174 = vst.msk [vmem:[#allocation4 + $0x60] sm:$0xff] %vm9321_vm15, %v10158_v10  ;;  %v10161_v61 = vadd.f32 %v13393_v25, %v10145_v3  ;;  %v13413_v20 = vpop.f32.mrf.mxu1  ;;  %v10556_v48 = vld [vmem:[#allocation4 + $0x30] sm:$0xff] }
 0xac2   : > { %v10351_v42 = vld [vmem:[#allocation4 + $0x58] sm:$0xff]  ;;  %v10118_v39 = vpop.f32.mrf.mxu0 }
 0xac3   : > { %10380 = vst.msk [vmem:[#allocation4 + $0x40] sm:$0xff] %vm9321_vm15, %v10364_v27  ;;  %v10367_v55 = vadd.f32 %v13409_v41, %v10351_v42  ;;  %10177 = vst.msk [vmem:[#allocation4 + $0x78] sm:$0xff] %vm9321_vm15, %v10161_v61  ;;  %v10159_v24 = vadd.f32 %v10143_v35, %v10118_v39  ;;  %v10328_v15 = vpop.f32.mrf.mxu1  ;;  %v10554_v41 = vld [vmem:[#allocation4 + $0x20] sm:$0xff] }
 0xac4   : > { %v10349_v49 = vld [vmem:[#allocation4 + $0x48] sm:$0xff]  ;;  %v13420_v28 = vpop.f32.mrf.mxu0 }
 0xac5   : > { %10383 = vst.msk [vmem:[#allocation4 + $0x58] sm:$0xff] %vm9321_vm15, %v10367_v55  ;;  %v10365_v26 = vadd.f32 %v10349_v49, %v10312_v19  ;;  %10175 = vst.msk [vmem:[#allocation4 + $0x68] sm:$0xff] %vm9321_vm15, %v10159_v24  ;;  %v10568_v33 = vadd.f32 %v13420_v28, %v10552_v2  ;;  %v13440_v52 = vpop.f32.mrf.mxu1  ;;  %v10557_v19 = vld [vmem:[#allocation4 + $0x38] sm:$0xff] }
 0xac6   : > { %v10354_v5 = vld [vmem:[#allocation4 + $0x70] sm:$0xff]  ;;  %v10487_v60 = vpop.f32.mrf.mxu0 }
 0xac7   : > { %10381 = vst.msk [vmem:[#allocation4 + $0x48] sm:$0xff] %vm9321_vm15, %v10365_v26  ;;  %v10370_v54 = vadd.f32 %v13412_v40, %v10354_v5  ;;  %10584 = vst.msk [vmem:[#allocation4 + $0x10] sm:$0xff] %vm9321_vm15, %v10568_v33  ;;  %v10566_v53 = vadd.f32 %v10550_v32, %v10487_v60  ;;  %v10697_v18 = vpop.f32.mrf.mxu1  ;;  %v10555_v40 = vld [vmem:[#allocation4 + $0x28] sm:$0xff] }
 0xac8   : > { %v10352_v59 = vld [vmem:[#allocation4 + $0x60] sm:$0xff]  ;;  %v13421_v34 = vpop.f32.mrf.mxu0 }
 0xac9   : > { %10386 = vst.msk [vmem:[#allocation4 + $0x70] sm:$0xff] %vm9321_vm15, %v10370_v54  ;;  %v10368_v7 = vadd.f32 %v10352_v59, %v10325_v46  ;;  %10582 = vst.msk [vmem:[#allocation4] sm:$0xff] %vm9321_vm15, %v10566_v53  ;;  %v10569_v1 = vadd.f32 %v13421_v34, %v10553_v58  ;;  %v13441_v21 = vpop.f32.mrf.mxu1  ;;  %v10560_v46 = vld [vmem:[#allocation4 + $0x50] sm:$0xff] }
 0xaca   : > { %v10355_v62 = vld [vmem:[#allocation4 + $0x78] sm:$0xff]  ;;  %v10490_v23 = vpop.f32.mrf.mxu0 }
 0xacb   : > { %10384 = vst.msk [vmem:[#allocation4 + $0x60] sm:$0xff] %vm9321_vm15, %v10368_v7  ;;  %v10371_v11 = vadd.f32 %v13413_v20, %v10355_v62  ;;  %10585 = vst.msk [vmem:[#allocation4 + $0x18] sm:$0xff] %vm9321_vm15, %v10569_v1  ;;  %v10567_v17 = vadd.f32 %v10551_v38, %v10490_v23  ;;  %v10700_v13 = vpop.f32.mrf.mxu1  ;;  %v10558_v20 = vld [vmem:[#allocation4 + $0x40] sm:$0xff] }
 0xacc   : > { %v10353_v43 = vld [vmem:[#allocation4 + $0x68] sm:$0xff]  ;;  %v13424_v0 = vpop.f32.mrf.mxu0 }
 0xacd   : > { %10387 = vst.msk [vmem:[#allocation4 + $0x78] sm:$0xff] %vm9321_vm15, %v10371_v11  ;;  %v10369_v16 = vadd.f32 %v10353_v43, %v10328_v15  ;;  %10583 = vst.msk [vmem:[#allocation4 + $0x8] sm:$0xff] %vm9321_vm15, %v10567_v17  ;;  %v10572_v30 = vadd.f32 %v13424_v0, %v10556_v48  ;;  %v13444_v36 = vpop.f32.mrf.mxu1  ;;  %v10561_v15 = vld [vmem:[#allocation4 + $0x58] sm:$0xff] }
 0xace   : > { %v10762_v9 = vld [vmem:[#allocation4 + $0x10] sm:$0xff]  ;;  %v10503_v37 = vpop.f32.mrf.mxu0 }
 0xacf   : > { %10385 = vst.msk [vmem:[#allocation4 + $0x68] sm:$0xff] %vm9321_vm15, %v10369_v16  ;;  %v10778_v44 = vadd.f32 %v13440_v52, %v10762_v9  ;;  %10588 = vst.msk [vmem:[#allocation4 + $0x30] sm:$0xff] %vm9321_vm15, %v10572_v30  ;;  %v10570_v56 = vadd.f32 %v10554_v41, %v10503_v37  ;;  %v10713_v47 = vpop.f32.mrf.mxu1  ;;  %v10559_v52 = vld [vmem:[#allocation4 + $0x48] sm:$0xff] }
 0xad0   : > { %v10760_v31 = vld [vmem:[#allocation4] sm:$0xff]  ;;  %v13425_v50 = vpop.f32.mrf.mxu0 }
 0xad1   : > { %10794 = vst.msk [vmem:[#allocation4 + $0x10] sm:$0xff] %vm9321_vm15, %v10778_v44  ;;  %v10776_v57 = vadd.f32 %v10760_v31, %v10697_v18  ;;  %10586 = vst.msk [vmem:[#allocation4 + $0x20] sm:$0xff] %vm9321_vm15, %v10570_v56  ;;  %v10573_v12 = vadd.f32 %v13425_v50, %v10557_v19  ;;  %v13445_v8 = vpop.f32.mrf.mxu1  ;;  %v10564_v18 = vld [vmem:[#allocation4 + $0x70] sm:$0xff] }
 0xad2   : > { %v10763_v4 = vld [vmem:[#allocation4 + $0x18] sm:$0xff]  ;;  %v10506_v45 = vpop.f32.mrf.mxu0  ;;  %v10562_v1 = vld [vmem:[#allocation4 + $0x60] sm:$0xff] }
 0xad3   : > { %10792 = vst.msk [vmem:[#allocation4] sm:$0xff] %vm9321_vm15, %v10776_v57  ;;  %v10779_v22 = vadd.f32 %v13441_v21, %v10763_v4  ;;  %10589 = vst.msk [vmem:[#allocation4 + $0x38] sm:$0xff] %vm9321_vm15, %v10573_v12  ;;  %v10571_v51 = vadd.f32 %v10555_v40, %v10506_v45  ;;  %v10716_v6 = vpop.f32.mrf.mxu1 }
 0xad4   : > { %v10761_v14 = vld [vmem:[#allocation4 + $0x8] sm:$0xff]  ;;  %v13428_v10 = vpop.f32.mrf.mxu0  ;;  %v10565_v17 = vld [vmem:[#allocation4 + $0x78] sm:$0xff] }
 0xad5   : > { %10795 = vst.msk [vmem:[#allocation4 + $0x18] sm:$0xff] %vm9321_vm15, %v10779_v22  ;;  %v10777_v63 = vadd.f32 %v10761_v14, %v10700_v13  ;;  %10587 = vst.msk [vmem:[#allocation4 + $0x28] sm:$0xff] %vm9321_vm15, %v10571_v51  ;;  %v10576_v25 = vadd.f32 %v13428_v10, %v10560_v46  ;;  %v13448_v3 = vpop.f32.mrf.mxu1 }
 0xad6   : > { %v10766_v27 = vld [vmem:[#allocation4 + $0x30] sm:$0xff]  ;;  %v10519_v61 = vpop.f32.mrf.mxu0  ;;  %v10563_v16 = vld [vmem:[#allocation4 + $0x68] sm:$0xff] }
 0xad7   : > { %10793 = vst.msk [vmem:[#allocation4 + $0x8] sm:$0xff] %vm9321_vm15, %v10777_v63  ;;  %v10782_v42 = vadd.f32 %v13444_v36, %v10766_v27  ;;  %10592 = vst.msk [vmem:[#allocation4 + $0x50] sm:$0xff] %vm9321_vm15, %v10576_v25  ;;  %v10574_v39 = vadd.f32 %v10558_v20, %v10519_v61  ;;  %v10729_v35 = vpop.f32.mrf.mxu1 }
 0xad8   : > { %v10764_v55 = vld [vmem:[#allocation4 + $0x20] sm:$0xff]  ;;  %v13429_v24 = vpop.f32.mrf.mxu0  ;;  %v10972_v44 = vld [vmem:[#allocation4 + $0x10] sm:$0xff] }
 0xad9   : > { %10798 = vst.msk [vmem:[#allocation4 + $0x30] sm:$0xff] %vm9321_vm15, %v10782_v42  ;;  %v10780_v49 = vadd.f32 %v10764_v55, %v10713_v47  ;;  %10590 = vst.msk [vmem:[#allocation4 + $0x40] sm:$0xff] %vm9321_vm15, %v10574_v39  ;;  %v10577_v28 = vadd.f32 %v13429_v24, %v10561_v15  ;;  %v13449_v2 = vpop.f32.mrf.mxu1 }
 0xada   : > { %v10767_v26 = vld [vmem:[#allocation4 + $0x38] sm:$0xff]  ;;  %v10522_v33 = vpop.f32.mrf.mxu0  ;;  %v10970_v19 = vld [vmem:[#allocation4] sm:$0xff] }
 0xadb   : > { %10796 = vst.msk [vmem:[#allocation4 + $0x20] sm:$0xff] %vm9321_vm15, %v10780_v49  ;;  %v10783_v5 = vadd.f32 %v13445_v8, %v10767_v26  ;;  %10593 = vst.msk [vmem:[#allocation4 + $0x58] sm:$0xff] %vm9321_vm15, %v10577_v28  ;;  %v10575_v60 = vadd.f32 %v10559_v52, %v10522_v33  ;;  %v10732_v54 = vpop.f32.mrf.mxu1  ;;  %v16535_v28 = vld [vmem:[%s16645_s10] ss:$0 sm:$0xff] }
 0xadc   : > { %v10765_v32 = vld [vmem:[#allocation4 + $0x28] sm:$0xff]  ;;  %v13432_v53 = vpop.f32.mrf.mxu0  ;;  %v10973_v40 = vld [vmem:[#allocation4 + $0x18] sm:$0xff] }
 0xadd   : > { %10799 = vst.msk [vmem:[#allocation4 + $0x38] sm:$0xff] %vm9321_vm15, %v10783_v5  ;;  %v10781_v59 = vadd.f32 %v10765_v32, %v10716_v6  ;;  %10591 = vst.msk [vmem:[#allocation4 + $0x48] sm:$0xff] %vm9321_vm15, %v10575_v60  ;;  %v10580_v34 = vadd.f32 %v13432_v53, %v10564_v18  ;;  %v13452_v21 = vpop.f32.mrf.mxu1 }
 0xade   : > { %v10770_v58 = vld [vmem:[#allocation4 + $0x50] sm:$0xff]  ;;  %v10535_v7 = vpop.f32.mrf.mxu0  ;;  %v10971_v10 = vld [vmem:[#allocation4 + $0x8] sm:$0xff] }
 0xadf   : > { %10797 = vst.msk [vmem:[#allocation4 + $0x28] sm:$0xff] %vm9321_vm15, %v10781_v59  ;;  %v10786_v62 = vadd.f32 %v13448_v3, %v10770_v58  ;;  %10596 = vst.msk [vmem:[#allocation4 + $0x70] sm:$0xff] %vm9321_vm15, %v10580_v34  ;;  %v10578_v23 = vadd.f32 %v10562_v1, %v10535_v7  ;;  %v10745_v30 = vpop.f32.mrf.mxu1 }
 0xae0   : > { %v10768_v38 = vld [vmem:[#allocation4 + $0x40] sm:$0xff]  ;;  %v13433_v11 = vpop.f32.mrf.mxu0  ;;  %v10976_v61 = vld [vmem:[#allocation4 + $0x30] sm:$0xff] }
 0xae1   : > { %10802 = vst.msk [vmem:[#allocation4 + $0x50] sm:$0xff] %vm9321_vm15, %v10786_v62  ;;  %v10784_v13 = vadd.f32 %v10768_v38, %v10729_v35  ;;  %10594 = vst.msk [vmem:[#allocation4 + $0x60] sm:$0xff] %vm9321_vm15, %v10578_v23  ;;  %v10581_v43 = vadd.f32 %v13433_v11, %v10565_v17  ;;  %v13453_v57 = vpop.f32.mrf.mxu1 }
 0xae2   : > { %v10771_v0 = vld [vmem:[#allocation4 + $0x58] sm:$0xff]  ;;  %v10538_v48 = vpop.f32.mrf.mxu0  ;;  %v10974_v35 = vld [vmem:[#allocation4 + $0x20] sm:$0xff] }
 0xae3   : > { %10800 = vst.msk [vmem:[#allocation4 + $0x40] sm:$0xff] %vm9321_vm15, %v10784_v13  ;;  %v10787_v36 = vadd.f32 %v13449_v2, %v10771_v0  ;;  %10597 = vst.msk [vmem:[#allocation4 + $0x78] sm:$0xff] %vm9321_vm15, %v10581_v43  ;;  %v10579_v9 = vadd.f32 %v10563_v16, %v10538_v48  ;;  %v10748_v46 = vpop.f32.mrf.mxu1 }
 0xae4   : > { %v10769_v37 = vld [vmem:[#allocation4 + $0x48] sm:$0xff]  ;;  %v13460_v41 = vpop.f32.mrf.mxu0  ;;  %v10977_v15 = vld [vmem:[#allocation4 + $0x38] sm:$0xff] }
 0xae5   : > { %10803 = vst.msk [vmem:[#allocation4 + $0x58] sm:$0xff] %vm9321_vm15, %v10787_v36  ;;  %v10785_v56 = vadd.f32 %v10769_v37, %v10732_v54  ;;  %10595 = vst.msk [vmem:[#allocation4 + $0x68] sm:$0xff] %vm9321_vm15, %v10579_v9  ;;  %v10988_v47 = vadd.f32 %v13460_v41, %v10972_v44 }
 0xae6   : > { %v10774_v31 = vld [vmem:[#allocation4 + $0x70] sm:$0xff]  ;;  %v10907_v50 = vpop.f32.mrf.mxu0  ;;  %v10975_v52 = vld [vmem:[#allocation4 + $0x28] sm:$0xff] }
 0xae7   : > { %10801 = vst.msk [vmem:[#allocation4 + $0x48] sm:$0xff] %vm9321_vm15, %v10785_v56  ;;  %11004 = vst.msk [vmem:[#allocation4 + $0x10] sm:$0xff] %vm9321_vm15, %v10988_v47  ;;  %v10790_v12 = vadd.f32 %v13452_v21, %v10774_v31  ;;  %v10986_v8 = vadd.f32 %v10970_v19, %v10907_v50 }
 0xae8   : > { %v10772_v4 = vld [vmem:[#allocation4 + $0x60] sm:$0xff]  ;;  %v13461_v45 = vpop.f32.mrf.mxu0  ;;  %v10980_v32 = vld [vmem:[#allocation4 + $0x50] sm:$0xff] }
 0xae9   : > { %10806 = vst.msk [vmem:[#allocation4 + $0x70] sm:$0xff] %vm9321_vm15, %v10790_v12  ;;  %11002 = vst.msk [vmem:[#allocation4] sm:$0xff] %vm9321_vm15, %v10986_v8  ;;  %v10788_v22 = vadd.f32 %v10772_v4, %v10745_v30  ;;  %v10989_v51 = vadd.f32 %v13461_v45, %v10973_v40 }
 0xaea   : > { %v10775_v6 = vld [vmem:[#allocation4 + $0x78] sm:$0xff]  ;;  %v10910_v14 = vpop.f32.mrf.mxu0  ;;  %v10978_v34 = vld [vmem:[#allocation4 + $0x40] sm:$0xff] }
 0xaeb   : > { %10804 = vst.msk [vmem:[#allocation4 + $0x60] sm:$0xff] %vm9321_vm15, %v10788_v22  ;;  %11005 = vst.msk [vmem:[#allocation4 + $0x18] sm:$0xff] %vm9321_vm15, %v10989_v51  ;;  %v10791_v63 = vadd.f32 %v13453_v57, %v10775_v6  ;;  %v10987_v25 = vadd.f32 %v10971_v10, %v10910_v14 }
 0xaec   : > { %v10773_v3 = vld [vmem:[#allocation4 + $0x68] sm:$0xff]  ;;  %v13464_v27 = vpop.f32.mrf.mxu0  ;;  %v10981_v21 = vld [vmem:[#allocation4 + $0x58] sm:$0xff] }
 0xaed   : > { %10807 = vst.msk [vmem:[#allocation4 + $0x78] sm:$0xff] %vm9321_vm15, %v10791_v63  ;;  %11003 = vst.msk [vmem:[#allocation4 + $0x8] sm:$0xff] %vm9321_vm15, %v10987_v25  ;;  %v10789_v20 = vadd.f32 %v10773_v3, %v10748_v46  ;;  %v10992_v42 = vadd.f32 %v13464_v27, %v10976_v61 }
 0xaee   : > { %v10923_v39 = vpop.f32.mrf.mxu0  ;;  %v11020_v58 = vld [vmem:[#allocation4 + $0x10] sm:$0xff]  ;;  %v10979_v11 = vld [vmem:[#allocation4 + $0x48] sm:$0xff] }
 0xaef   : > { %10805 = vst.msk [vmem:[#allocation4 + $0x68] sm:$0xff] %vm9321_vm15, %v10789_v20  ;;  %11008 = vst.msk [vmem:[#allocation4 + $0x30] sm:$0xff] %vm9321_vm15, %v10992_v42  ;;  %v10990_v55 = vadd.f32 %v10974_v35, %v10923_v39  ;;  %v11043_v23 = vadd.f32 %v16535_v28, %v11020_v58 }
 0xaf0   : > { %v13465_v24 = vpop.f32.mrf.mxu0  ;;  %v11018_v49 = vld [vmem:[#allocation4] sm:$0xff]  ;;  %v10984_v0 = vld [vmem:[#allocation4 + $0x70] sm:$0xff] }
 0xaf1   : > { %11006 = vst.msk [vmem:[#allocation4 + $0x20] sm:$0xff] %vm9321_vm15, %v10990_v55  ;;  %v10993_v2 = vadd.f32 %v13465_v24, %v10977_v15  ;;  %v11041_v26 = vadd.f32 %v16535_v28, %v11018_v49 }
 0xaf2   : > { %v10926_v33 = vpop.f32.mrf.mxu0  ;;  %v11021_v17 = vld [vmem:[#allocation4 + $0x18] sm:$0xff]  ;;  %v10982_v36 = vld [vmem:[#allocation4 + $0x60] sm:$0xff] }
 0xaf3   : > { %11009 = vst.msk [vmem:[#allocation4 + $0x38] sm:$0xff] %vm9321_vm15, %v10993_v2  ;;  %v10991_v5 = vadd.f32 %v10975_v52, %v10926_v33  ;;  %11057 = vxpose.xlu0.b32.start [1/16] (narrow) %v11041_v26, 16  ;;  %v11044_v16 = vadd.f32 %v16535_v28, %v11021_v17  ;;  %v11125_v26 = vld [vmem:[%s14298_s21 + $0x78] sm:$0xff]  ;;  %v11124_v33 = vld [vmem:[%s14298_s21 + $0x70] sm:$0xff]  ;;  %v11123_v52 = vld [vmem:[%s14298_s21 + $0x68] sm:$0xff] }
 0xaf4   : > { %v13468_v60 = vpop.f32.mrf.mxu0  ;;  %v11019_v54 = vld [vmem:[#allocation4 + $0x8] sm:$0xff]  ;;  %v10985_v44 = vld [vmem:[#allocation4 + $0x78] sm:$0xff]  ;;  %13474 = vmatprep.subr.mxu1 %v11125_v26  ;;  %v11112_v17 = vld [vmem:[%s14298_s21 + $0x10] sm:$0xff] }
 0xaf5   : > { %11007 = vst.msk [vmem:[#allocation4 + $0x28] sm:$0xff] %vm9321_vm15, %v10991_v5  ;;  %v10996_v53 = vadd.f32 %v13468_v60, %v10980_v32  ;;  %v11042_v18 = vadd.f32 %v16535_v28, %v11019_v54  ;;  %13475 = vmatpush3.msra.mxu1 %v11125_v26  ;;  %v11121_v5 = vld [vmem:[%s14298_s21 + $0x58] sm:$0xff]  ;;  %v11120_v60 = vld [vmem:[%s14298_s21 + $0x50] sm:$0xff] }
 0xaf6   : > { %v10939_v59 = vpop.f32.mrf.mxu0  ;;  %v10983_v50 = vld [vmem:[#allocation4 + $0x68] sm:$0xff]  ;;  %v11024_v8 = vld [vmem:[#allocation4 + $0x30] sm:$0xff]  ;;  %13476 = vmatprep.subr.mxu1 %v11124_v33 }
 0xaf7   : > { %11012 = vst.msk [vmem:[#allocation4 + $0x50] sm:$0xff] %vm9321_vm15, %v10996_v53  ;;  %v10994_v7 = vadd.f32 %v10978_v34, %v10939_v59  ;;  %11058 = vxpose.xlu0.b32.cont [2/16] (narrow) %v11042_v18, 16  ;;  %v11047_v4 = vadd.f32 %v16535_v28, %v11024_v8  ;;  %13477 = vmatpush3.msra.mxu1 %v11124_v33 }
 0xaf8   : > { %v13469_v1 = vpop.f32.mrf.mxu0  ;;  %v11022_v9 = vld [vmem:[#allocation4 + $0x20] sm:$0xff]  ;;  %13478 = vmatprep.subr.mxu1 %v11123_v52 }
 0xaf9   : > { %11010 = vst.msk [vmem:[#allocation4 + $0x40] sm:$0xff] %vm9321_vm15, %v10994_v7  ;;  %v10997_v62 = vadd.f32 %v13469_v1, %v10981_v21  ;;  %v11045_v47 = vadd.f32 %v16535_v28, %v11022_v9  ;;  %13479 = vmatpush3.msra.mxu1 %v11123_v52  ;;  %v11119_v7 = vld [vmem:[%s14298_s21 + $0x48] sm:$0xff]  ;;  %v11118_v1 = vld [vmem:[%s14298_s21 + $0x40] sm:$0xff]  ;;  %v11117_v21 = vld [vmem:[%s14298_s21 + $0x38] sm:$0xff] }
 0xafa   : > { %v10942_v38 = vpop.f32.mrf.mxu0  ;;  %v11025_v45 = vld [vmem:[#allocation4 + $0x38] sm:$0xff] }
 0xafb   : > { %11013 = vst.msk [vmem:[#allocation4 + $0x58] sm:$0xff] %vm9321_vm15, %v10997_v62  ;;  %v10995_v13 = vadd.f32 %v10979_v11, %v10942_v38  ;;  %11059 = vxpose.xlu0.b32.cont [3/16] (narrow) %v11043_v23, 16  ;;  %v11048_v40 = vadd.f32 %v16535_v28, %v11025_v45  ;;  %v11116_v62 = vld [vmem:[%s14298_s21 + $0x30] sm:$0xff]  ;;  %v11115_v23 = vld [vmem:[%s14298_s21 + $0x28] sm:$0xff]  ;;  %v11114_v38 = vld [vmem:[%s14298_s21 + $0x20] sm:$0xff] }
 0xafc   : > { %v13472_v43 = vpop.f32.mrf.mxu0  ;;  %v11023_v19 = vld [vmem:[#allocation4 + $0x28] sm:$0xff]  ;;  %v11113_v11 = vld [vmem:[%s14298_s21 + $0x18] sm:$0xff] }
 0xafd   : > { %11011 = vst.msk [vmem:[#allocation4 + $0x48] sm:$0xff] %vm9321_vm15, %v10995_v13  ;;  %v11000_v48 = vadd.f32 %v13472_v43, %v10984_v0  ;;  %v11046_v12 = vadd.f32 %v16535_v28, %v11023_v19  ;;  %v11111_v13 = vld [vmem:[%s14298_s21 + $0x8] sm:$0xff]  ;;  %v11110_v43 = vld [vmem:[%s14298_s21] sm:$0xff] }
 0xafe   : > { %v10955_v30 = vpop.f32.mrf.mxu0  ;;  %v11028_v10 = vld [vmem:[#allocation4 + $0x50] sm:$0xff] }
 0xaff   : > { %11016 = vst.msk [vmem:[#allocation4 + $0x70] sm:$0xff] %vm9321_vm15, %v11000_v48  ;;  %v10998_v37 = vadd.f32 %v10982_v36, %v10955_v30  ;;  %11060 = vxpose.xlu0.b32.cont [4/16] (narrow) %v11044_v16, 16  ;;  %v11051_v46 = vadd.f32 %v16535_v28, %v11028_v10 }
 0xb00   : > { %v13473_v41 = vpop.f32.mrf.mxu0  ;;  %v11026_v22 = vld [vmem:[#allocation4 + $0x40] sm:$0xff] }
 0xb01   : > { %11014 = vst.msk [vmem:[#allocation4 + $0x60] sm:$0xff] %vm9321_vm15, %v10998_v37  ;;  %v11001_v56 = vadd.f32 %v13473_v41, %v10985_v44  ;;  %v11049_v51 = vadd.f32 %v16535_v28, %v11026_v22 }
 0xb02   : > { %v10958_v31 = vpop.f32.mrf.mxu0  ;;  %v11029_v63 = vld [vmem:[#allocation4 + $0x58] sm:$0xff] }
 0xb03   : > { %11017 = vst.msk [vmem:[#allocation4 + $0x78] sm:$0xff] %vm9321_vm15, %v11001_v56  ;;  %v10999_v57 = vadd.f32 %v10983_v50, %v10958_v31  ;;  %11061 = vxpose.xlu0.b32.cont [5/16] (narrow) %v11045_v47, 16  ;;  %v11052_v25 = vadd.f32 %v16535_v28, %v11029_v63 }
 0xb04   : > { %v11027_v6 = vld [vmem:[#allocation4 + $0x48] sm:$0xff] }
 0xb05   : > { %11015 = vst.msk [vmem:[#allocation4 + $0x68] sm:$0xff] %vm9321_vm15, %v10999_v57  ;;  %v11050_v14 = vadd.f32 %v16535_v28, %v11027_v6 }
 0xb06   : > { %v11032_v42 = vld [vmem:[#allocation4 + $0x70] sm:$0xff] }
 0xb07   : > { %11062 = vxpose.xlu0.b32.cont [6/16] (narrow) %v11046_v12, 16  ;;  %v11055_v39 = vadd.f32 %v16535_v28, %v11032_v42 }
 0xb08   : > { %v11030_v3 = vld [vmem:[#allocation4 + $0x60] sm:$0xff] }
 0xb09   : > { %v11053_v27 = vadd.f32 %v16535_v28, %v11030_v3 }
 0xb0a   : > { %v11033_v35 = vld [vmem:[#allocation4 + $0x78] sm:$0xff] }
 0xb0b   : > { %11063 = vxpose.xlu0.b32.cont [7/16] (narrow) %v11047_v4, 16  ;;  %v11056_v55 = vadd.f32 %v16535_v28, %v11033_v35 }
 0xb0c   : > { %v11031_v61 = vld [vmem:[#allocation4 + $0x68] sm:$0xff] }
 0xb0d   : > { %v11054_v20 = vadd.f32 %v16535_v28, %v11031_v61  ;;  %v11122_v28 = vld [vmem:[%s14298_s21 + $0x60] sm:$0xff]  ;;  %s11217_s21 = sshll.u32 %s538_s22, 4  ;;  %s16586_s21 = int_to_ptr.vmem [resolvable:$true] %s11217_s21 }
 0xb0e   : > { %13480 = vmatprep.subr.mxu1 %v11122_v28  ;;  %s13946_s16 = scalar_lea.vmem %s16586_s21, 256  ;;  %p13953_p13 = scmp.lt.s32.totalorder %s16586_s21, %s13951_s14 }
 0xb0f   : > { %11064 = vxpose.xlu0.b32.cont [8/16] (narrow) %v11048_v40, 16  ;;  %13481 = vmatpush3.msra.mxu1 %v11122_v28  ;;  %p13947_p6 = scmp.ne.s32.totalorder %s16586_s21, %s13946_s16  ;;  %p13954_p8 = scmp.lt.s32.totalorder %s13952_s2, %s13946_s16 }
 0xb10   : > { %13482 = vmatprep.subr.mxu1 %v11121_v5 }
 0xb11   : > { %13483 = vmatpush3.msra.mxu1 %v11121_v5  ;;  %p13948_p4 = pnand %p13947_p6, %p17028_p10  ;;  %p13955_p11 = por %p13954_p8, %p13953_p13 }
 0xb12   : > { %13484 = vmatprep.subr.mxu1 %v11120_v60 }
 0xb13   : > { %11065 = vxpose.xlu0.b32.cont [9/16] (narrow) %v11049_v51, 16  ;;  %13485 = vmatpush3.msra.mxu1 %v11120_v60  ;;  %p13949_p7 = pneg %p13948_p4 }
 0xb14   : > { %13486 = vmatprep.subr.mxu1 %v11119_v7 }
 0xb15   : > { %13487 = vmatpush3.msra.mxu1 %v11119_v7  ;;  %p13956_p0 = pnand %p13955_p11, %p13949_p7 }
 0xb16   : > { %13488 = vmatprep.subr.mxu1 %v11118_v1 }
 0xb17   : > { %11066 = vxpose.xlu0.b32.cont [10/16] (narrow) %v11050_v14, 16  ;;  %13489 = vmatpush3.msra.mxu1 %v11118_v1 }
 0xb18   : > { %13490 = vmatprep.subr.mxu1 %v11117_v21 }
 0xb19   : > { %13491 = vmatpush3.msra.mxu1 %v11117_v21 }
 0xb1a   : > { %13492 = vmatprep.subr.mxu1 %v11116_v62 }
 0xb1b   : > { %11067 = vxpose.xlu0.b32.cont [11/16] (narrow) %v11051_v46, 16  ;;  %13493 = vmatpush3.msra.mxu1 %v11116_v62 }
 0xb1c   : > { %13494 = vmatprep.subr.mxu1 %v11115_v23 }
 0xb1d   : > { %13495 = vmatpush3.msra.mxu1 %v11115_v23 }
 0xb1e   : > { %13496 = vmatprep.subr.mxu1 %v11114_v38 }
 0xb1f   : > { %11068 = vxpose.xlu0.b32.cont [12/16] (narrow) %v11052_v25, 16  ;;  %13497 = vmatpush3.msra.mxu1 %v11114_v38 }
 0xb20   : > { %13498 = vmatprep.subr.mxu1 %v11113_v11 }
 0xb21   : > { %13499 = vmatpush3.msra.mxu1 %v11113_v11 }
 0xb22   : > { %13500 = vmatprep.subr.mxu1 %v11112_v17 }
 0xb23   : > { %11069 = vxpose.xlu0.b32.cont [13/16] (narrow) %v11053_v27, 16  ;;  %13501 = vmatpush3.msra.mxu1 %v11112_v17 }
 0xb24   : > { %13502 = vmatprep.subr.mxu1 %v11111_v13 }
 0xb25   : > { %13503 = vmatpush3.msra.mxu1 %v11111_v13 }
 0xb26   : > { %13504 = vmatprep.subr.mxu1 %v11110_v43 }
 0xb27   : > { %11070 = vxpose.xlu0.b32.cont [14/16] (narrow) %v11054_v20, 16  ;;  %13505 = vmatpush3.msra.mxu1 %v11110_v43 }
 0xb2b   : > { %11071 = vxpose.xlu0.b32.cont [15/16] (narrow) %v11055_v39, 16 }
 0xb2f   : > { %11072 = vxpose.xlu0.b32.end [16/16] (narrow) %v11056_v55, 16 }
 0xb6f   : > { %v11073_v24 = vpop.trf.xlu0 }
 0xb70   : > { %v11090_v15 = vsel %vm16931_vm13, %v11073_v24, -1e+30 }
 0xb71   : > { %11092 = vmax.xlane.f32.xlu1 %v11090_v15 }
 0xb73   : > { %v11074_v49 = vpop.trf.xlu0 }
 0xb74   : > { %v11091_v2 = vsel %vm16931_vm13, %v11074_v49, -1e+30  ;;  %vm17026_vm13 = vmmov %vm16942_vm0 }
 0xb75   : > { %11094 = vmax.xlane.f32.xlu1 %v11091_v2 }
 0xbfa   : > { %v11093_v29 = vpop.xlane.xlu1 %11092 }
 0xbfb   : > { %v11096_v32 = vsub.f32 %v11090_v15, %v11093_v29 }
 0xbfd   : > { %v11098_v54 = vmul.f32 1.442695, %v11096_v32 }
 0xbfe   : > { %v11095_v53 = vpop.xlane.xlu1 %11094 }
 0xbff   : > { %13730 = vpow2.f32 %v11098_v54  ;;  %v11097_v18 = vsub.f32 %v11091_v2, %v11095_v53 }
 0xc01   : > { %v11100_v59 = vmul.f32 1.442695, %v11097_v18 }
 0xc03   : > { %13732 = vpow2.f32 %v11100_v59 }
 0xc0c   : > { %v13731_v34 = vpop.eup %13730 }
 0xc0d   : > { %11102 = vadd.xlane.f32.xlu1 %v13731_v34 }
 0xc10   : > { %v13733_v58 = vpop.eup %13732 }
 0xc11   : > { %11104 = vadd.xlane.f32.xlu1 %v13733_v58 }
 0xc96   : > { %v11103_v0 = vpop.xlane.xlu1 %11102 }
 0xc97   : > { %13734 = vrcp.f32 %v11103_v0 }
 0xc9a   : > { %v11105_v48 = vpop.xlane.xlu1 %11104 }
 0xc9b   : > { %13736 = vrcp.f32 %v11105_v48 }
 0xca4   : > { %v13735_v16 = vpop.eup %13734 }
 0xca5   : > { %v11108_v30 = vmul.f32 %v13735_v16, %v13731_v34 }
 0xca7   : > { %13506 = vmatprep.mubr.f32.mxu1 %v11108_v30 }
 0xca8   : > { %v13737_v36 = vpop.eup %13736 }
 0xca9   : > { %v11109_v9 = vmul.f32 %v13737_v36, %v13733_v58 }
 0xcab   : > { %13507 = vmatmul.mubr.f32.vlgmr.msra.gmra.mxu1 %v11109_v9 }
 0xd6b   : > { %v13508_v37 = vpop.f32.mrf.mxu1 }
 0xd6c   : > { %11202 = vst.msk [vmem:[%s538_s22 + $0x8] sm:$0xff] %vm17026_vm13, %v13508_v37 }
 0xd6d   : > { %v11192_v41 = vpop.f32.mrf.mxu1 }
 0xd6e   : > { %11201 = vst.msk [vmem:[%s538_s22] sm:$0xff] %vm17027_vm3, %v11192_v41 }
 0xd6f   : > { %13959 = shalt.err (!%p13956_p0)
}
 0xd70   : > { %s13960_s23 = scalar_lea.hbm %s16592_s24, 256  ;;  %s13964_s19 = scalar_lea.hbm %s16648_s13, 512 }
 0xd71   : > { %p13961_p12 = scmp.ne.s32.totalorder %s16592_s24, %s13960_s23  ;;  %p13965_p9 = scmp.lt.s32.totalorder %s16592_s24, %s16648_s13 }
 0xd72   : > { %p13966_p3 = scmp.lt.s32.totalorder %s13964_s19, %s13960_s23 }
 0xd73   : > { %p13962_p1 = pnand %p13961_p12, %p17028_p10 }
 0xd74   : > { %p13967_p5 = por %p13966_p3, %p13965_p9 }
 0xd75   : > { %p13963_p2 = pneg %p13962_p1 }
 0xd77   : > { %p13968_p6 = pnand %p13967_p5, %p13963_p2 }
 0xd79   : > { %13971 = shalt.err (!%p13968_p6)
}
 0xd7a   : > { %s14042_s20 = smov 128   ;;  %s14043_s30 = smov 8  }
 0xd7b   : > { %13545 = dma.vmem_to_hbm [thread:$0]  (%p17028_p10), %s16586_s21, 256, %s16592_s24, %s16595_s15, %s14042_s20, %s14042_s20, %s14043_s30  }
 0xd7c PF: > { %s17029_s16 = sld [smem:[#allocation29_spill]]  ;;  %p13592_p4 = scmp.ge.s32.totalorder %s14026_s28, 2 }
 0xd7d   : > { %s11232_s29 = sand.u32 1, %s14014_s25  }
 0xd7e   : > { %s11233_s14 = scalar_lea.sflag [#allocation7], %s11232_s29 }
 0xd82   : > { %p17030_p7 = scmp.ne.s32.totalorder %s17029_s16, 0 }
 0xd84   : > { %p13573_p13 = pnand %p13592_p4, %p17030_p7 }
 0xd86   : > { %p13574_p8 = pneg %p13573_p13 }
 0xd88   : > { %14009 = dma.done.wait (%p13574_p8), %s11233_s14, 256  }
 0xd89   : > { %14011 = vsyncadd (%p13574_p8), %s11233_s14, 4294967040  ;;  %s17031_s28 = sld [smem:[#allocation27_spill]]  ;;  %s17034_s25 = smov %s14018_s26 }
 0xd8a   : > { %s17032_s2 = sld [smem:[#allocation26_spill]] }
 0xd8b   : > { %s17033_s27 = sld [smem:[#allocation28_spill]] }
 0xd8f   : > { %p28_p11 = scmp.ge.s32.totalorder %s17031_s28, 4  }
 0xd90   : > { %s17035_s26 = smov %s17032_s2 }
 0xd91   :  { %30 = sbr.rel (!%p28_p11) target bundleno = 11 (0xb), region = 180 }
 0xd96   :  { %11238 = vsyncpa [#allocation6], 1 }
 0xd97   :  { %11240 = vsyncpa [#allocation6 + $0x1], 1 }
 0xd98   :  { %11241 = vsyncpa [#allocation9], 1 }
 0xd99   :  { %11242 = vsyncpa [#allocation12], 1 }
 0xd9a   :  { %11243 = vsyncpa [#allocation15], 1 }
 0xd9b   :  { %11244 = vsyncpa [#allocation18], 1 }
 0xd9c   :  { %11245 = vsyncpa [#allocation7], 1 }
 0xd9d   :  { %11247 = vsyncpa [#allocation7 + $0x1], 1 }

</bundles_post_ra>
